<compile_context>
chip_gen: v6e
topology: v6e:2x2x1
jax: 0.10.0
libtpu: 0.0.40
codegen_flags: <defaults>
</compile_context>

<pallas_src>
import functools

import jax
import jax.numpy as jnp
from jax.experimental import pallas as pl
from jax.experimental.pallas import tpu as pltpu

F32 = jnp.float32
BF16 = jnp.bfloat16


def _round_up(x, k):
    return (x + k - 1) // k * k


# ---------- fused PE-Transformer stack: ALL encoder layers in ONE kernel ----------

def _pe_transformer_kernel(x_ref, mask_ref, valid_ref,
                           wqkv_ref, bqkv_ref, wo_ref, bo_ref,
                           ln1_g_ref, ln1_b_ref,
                           w1_ref, b1_ref, w2_ref, b2_ref,
                           ln2_g_ref, ln2_b_ref,
                           o_ref, *, n_heads, ffn_chunk):
    # x_ref    : [R, D] f32, R = tile_n * m   (node-major rows, eigen-slot minor)
    # mask_ref : [TN, 1, m] f32 additive key-padding mask (0 / -1e9)
    # valid_ref: [TN, m, 1] f32, 1 = valid eigen slot, 0 = NaN-padded
    # stacked layer params carry a leading [L] axis; matmul weights are bf16.
    TN, _, m = mask_ref.shape
    n_layers, D, _ = wqkv_ref.shape
    R = TN * m
    dh = D // n_heads
    scale = 1.0 / float(dh) ** 0.5
    F_dim = w1_ref.shape[2]

    x = x_ref[...]                                   # [R, D] f32
    mask = mask_ref[...]                             # [TN, 1, m], built once, reused

    def _ln(z, g, b):                                # f32 LayerNorm, eps=1e-5 (PyTorch)
        mu = jnp.mean(z, axis=-1, keepdims=True)
        var = jnp.mean(jnp.square(z - mu), axis=-1, keepdims=True)
        return (z - mu) * jax.lax.rsqrt(var + 1e-5) * g + b

    for l in range(n_layers):                        # static unroll; weights stay in VMEM
        # ---- multi-head self-attention: one fused [D, 3D] QKV GEMM ----
        x_bf = x.astype(BF16)
        qkv = jnp.dot(x_bf, wqkv_ref[l],
                      preferred_element_type=jnp.float32) + bqkv_ref[l]      # [R, 3D]
        wo = wo_ref[l]                                                       # [D, D] bf16
        attn = jnp.zeros((R, D), jnp.float32) + bo_ref[l]
        for h in range(n_heads):                     # tiny static unroll (n_heads ~ 2)
            q = qkv[:, h * dh:(h + 1) * dh].reshape(TN, m, dh).astype(BF16)
            k = qkv[:, D + h * dh:D + (h + 1) * dh].reshape(TN, m, dh).astype(BF16)
            v = qkv[:, 2 * D + h * dh:2 * D + (h + 1) * dh].reshape(TN, m, dh).astype(BF16)
            # bf16 MXU inputs, f32 accumulation (perf review)
            s = jnp.einsum('bqd,bkd->bqk', q, k,
                           preferred_element_type=jnp.float32) * scale + mask
            s = s - jnp.max(s, axis=-1, keepdims=True)
            p = jnp.exp(s)
            p = p * pl.reciprocal(jnp.sum(p, axis=-1, keepdims=True), approx=True)
            o_h = jnp.einsum('bqk,bkd->bqd', p.astype(BF16), v,
                             preferred_element_type=jnp.float32)             # [TN, m, dh]
            # per-head output projection summed over heads == concat(heads) @ Wo,
            # removing the lane-concat (perf review)
            attn = attn + jnp.dot(o_h.reshape(R, dh).astype(BF16),
                                  wo[h * dh:(h + 1) * dh, :],
                                  preferred_element_type=jnp.float32)        # [R, D]
        x = _ln(x + attn, ln1_g_ref[l], ln1_b_ref[l])

        # ---- FFN: relu(x @ w1) @ w2; normally un-chunked (single GEMM pair) ----
        w1 = w1_ref[l]
        b1 = b1_ref[l]
        w2 = w2_ref[l]
        x_bf = x.astype(BF16)
        acc = jnp.zeros((R, D), jnp.float32) + b2_ref[l]
        for c in range(F_dim // ffn_chunk):          # 1 iteration in the common case
            lo = c * ffn_chunk
            hid = jnp.dot(x_bf, w1[:, lo:lo + ffn_chunk],
                          preferred_element_type=jnp.float32) + b1[:, lo:lo + ffn_chunk]
            hid = jnp.maximum(hid, 0.0).astype(BF16)
            acc = acc + jnp.dot(hid, w2[lo:lo + ffn_chunk, :],
                                preferred_element_type=jnp.float32)
        x = _ln(x + acc, ln2_g_ref[l], ln2_b_ref[l])

    # ---- fused epilogue: masked nansum over the eigen-slot axis (== torch.nansum) ----
    o_ref[...] = jnp.sum(x.reshape(TN, m, D) * valid_ref[...], axis=1)       # [TN, D]


def pe_transformer(pe2d, mask_add, valid, lw, *, n_heads, tile_n, m, ffn_chunk):
    Rtot, D = pe2d.shape
    Np = mask_add.shape[0]
    assert Np % tile_n == 0 and Rtot == Np * m

    def _full(a):
        return pl.BlockSpec(a.shape, lambda i: (0,) * a.ndim)

    in_specs = [
        pl.BlockSpec((tile_n * m, D), lambda i: (i, 0)),
        pl.BlockSpec((tile_n, 1, m), lambda i: (i, 0, 0)),
        pl.BlockSpec((tile_n, m, 1), lambda i: (i, 0, 0)),
        _full(lw['wqkv']), _full(lw['bqkv']), _full(lw['wo']), _full(lw['bo']),
        _full(lw['ln1_g']), _full(lw['ln1_b']),
        _full(lw['w1']), _full(lw['b1']), _full(lw['w2']), _full(lw['b2']),
        _full(lw['ln2_g']), _full(lw['ln2_b']),
    ]
    kern = functools.partial(_pe_transformer_kernel, n_heads=n_heads, ffn_chunk=ffn_chunk)
    return pl.pallas_call(
        kern,
        out_shape=jax.ShapeDtypeStruct((Np, D), F32),
        grid=(Np // tile_n,),
        in_specs=in_specs,
        out_specs=pl.BlockSpec((tile_n, D), lambda i: (i, 0)),
        compiler_params=pltpu.CompilerParams(dimension_semantics=("parallel",)),
    )(pe2d, mask_add, valid,
      lw['wqkv'], lw['bqkv'], lw['wo'], lw['bo'],
      lw['ln1_g'], lw['ln1_b'],
      lw['w1'], lw['b1'], lw['w2'], lw['b2'],
      lw['ln2_g'], lw['ln2_b'])


# ----------------------------- parameters ------------------------------

def init_params(key, node_features_dim, GT_hidden_dim, LPE_dim, LPE_layers,
                dim_feedforward, GT_out_dim, n_classes):
    keys = iter(jax.random.split(key, 32))

    def w(shape, scale=0.1, dtype=F32):
        return (scale * jax.random.normal(next(keys), shape)).astype(dtype)

    D = LPE_dim
    L = LPE_layers
    p = {}
    # embedding_h : Linear(node_features_dim, GT_hidden_dim - LPE_dim, bias=False)
    p['emb_h_w_t'] = w((node_features_dim, GT_hidden_dim - LPE_dim))
    # linear_A : Linear(2, LPE_dim)
    p['linA_w_t'] = w((2, LPE_dim))
    p['linA_b'] = w((LPE_dim,))
    # PE_Transformer weights stacked on a leading [L] axis so the whole stack runs in
    # ONE pallas_call.  Matmul weights bf16 (MXU-native), biases/LN f32.
    # QKV columns ordered [Wq | Wk | Wv], head-major (head, dh) column blocks per block,
    # matching nn.MultiheadAttention's packed in_proj.
    p['pe'] = {
        'wqkv': w((L, D, 3 * D), dtype=BF16), 'bqkv': w((L, 1, 3 * D)),
        'wo': w((L, D, D), dtype=BF16), 'bo': w((L, 1, D)),
        'ln1_g': jnp.ones((L, 1, D), F32), 'ln1_b': jnp.zeros((L, 1, D), F32),
        'w1': w((L, D, dim_feedforward), dtype=BF16), 'b1': w((L, 1, dim_feedforward)),
        'w2': w((L, dim_feedforward, D), dtype=BF16), 'b2': w((L, 1, D)),
        'ln2_g': jnp.ones((L, 1, D), F32), 'ln2_b': jnp.zeros((L, 1, D), F32),
    }
    # MLPReadout(GT_out_dim, n_classes), L = 2
    d = GT_out_dim
    p['fc0_w_t'] = w((d, d // 2));         p['fc0_b'] = w((d // 2,))
    p['fc1_w_t'] = w((d // 2, d // 4));    p['fc1_b'] = w((d // 4,))
    p['fc2_w_t'] = w((d // 4, n_classes)); p['fc2_b'] = w((n_classes,))
    return p


# ----------------------------- forward ------------------------------

def san_nodespectra_forward(params, h, EigVecs, EigVals, LPE_n_heads):
    N, m = EigVecs.shape
    D = params['linA_b'].shape[0]                         # LPE_dim

    # embedding_h (no bias); tiny K -> plain XLA matmul.
    h_emb = h.astype(F32) @ params['emb_h_w_t'].astype(F32)

    # PosEnc = cat(EigVecs.unsqueeze(2), EigVals); NaN -> 0; key-padding mask of NaNs.
    PosEnc = jnp.concatenate([EigVecs[:, :, None], EigVals], axis=2).astype(F32)  # [N,m,2]
    nan_mask = jnp.isnan(PosEnc)
    PosEnc = jnp.where(nan_mask, 0.0, PosEnc)
    key_pad = nan_mask[:, :, 0]                           # [N, m]  True = padded slot

    # linear_A as a broadcast FMA (K=2 would leave the MXU empty).
    wA = params['linA_w_t'].astype(F32)
    bA = params['linA_b'].astype(F32)
    pe = (PosEnc[:, :, 0:1] * wA[0][None, None, :]
          + PosEnc[:, :, 1:2] * wA[1][None, None, :]
          + bA[None, None, :])                            # [N, m, D]

    # Additive key-padding mask, built ONCE and reused by every layer.  -1e9 (not -inf)
    # keeps all-NaN rows finite; the fused masked-sum zeroes them (== torch.nansum).
    mask_add = jnp.where(key_pad, -1e9, 0.0).astype(F32)[:, None, :]   # [N, 1, m]
    valid = (~key_pad).astype(F32)[:, :, None]                          # [N, m, 1]

    # tile_n: grid >= 2 so both v7x TensorCores get work; cap at 128 keeps the
    # un-chunked FFN hidden (<= 128*m*2048*6 B) inside the default 32 MiB scoped VMEM
    # on all generations (v5e/v6e could raise this together with vmem_limit_bytes).
    tile_n = min(128, max(8, _round_up(pl.cdiv(N, 2), 8)))
    Np = _round_up(N, tile_n)
    if Np != N:
        pad = Np - N
        pe = jnp.pad(pe, ((0, pad), (0, 0), (0, 0)))
        mask_add = jnp.pad(mask_add, ((0, pad), (0, 0), (0, 0)))
        valid = jnp.pad(valid, ((0, pad), (0, 0), (0, 0)))
    pe2d = pe.reshape(Np * m, D)                          # node-major 2-D slab for the kernel

    lw = params['pe']
    F_dim = lw['w1'].shape[2]
    # Un-chunked FFN (one GEMM pair) unless the [tile_n*m, F] hidden would blow VMEM.
    ffn_chunk = F_dim
    while tile_n * m * ffn_chunk * 6 > (12 << 20) and ffn_chunk % 2 == 0 and ffn_chunk > 256:
        ffn_chunk //= 2

    # Entire PE_Transformer stack + masked nansum in ONE fused Pallas kernel.
    pos = pe_transformer(pe2d, mask_add, valid, lw, n_heads=LPE_n_heads,
                         tile_n=tile_n, m=m, ffn_chunk=ffn_chunk)[:N]   # [N, LPE_dim]

    h_cat = jnp.concatenate([h_emb, pos], axis=1)         # [N, GT_hidden_dim]

    # TODO(synk): GraphTransformerLayerSpectra / GraphTransformerLayer stack (DGL graph
    #             attention + spectral filters) not in the provided source -> identity.

    # 'mean' readout + MLPReadout on a [1, GT_out_dim] vector: left to XLA (pallas
    # dispatch overhead would dwarf the op at this size).
    hg = jnp.mean(h_cat, axis=0, keepdims=True)
    y = jnp.maximum(hg @ params['fc0_w_t'] + params['fc0_b'], 0.0)
    y = jnp.maximum(y @ params['fc1_w_t'] + params['fc1_b'], 0.0)
    y = y @ params['fc2_w_t'] + params['fc2_b']
    return y                                              # [1, n_classes]


# ----------------------------- main ------------------------------

if __name__ == "__main__":
    key = jax.random.PRNGKey(0)
    k_h, k_vec, k_val, k_par = jax.random.split(key, 4)

    # small, module-consistent shapes
    N_nodes, m_eig = 12, 8
    node_features_dim = 1
    GT_hidden_dim, LPE_dim = 32, 16
    LPE_n_heads, LPE_layers = 2, 2
    GT_out_dim, n_classes = 32, 3
    dim_feedforward = 2048                       # nn.TransformerEncoderLayer default

    h = jax.random.normal(k_h, (N_nodes, node_features_dim), F32)
    EigVecs = jax.random.normal(k_vec, (N_nodes, m_eig), F32)
    EigVals = jax.random.uniform(k_val, (N_nodes, m_eig, 1), F32)
    # simulate NaN padding of the eigen decomposition (last 2 slots unused)
    EigVecs = EigVecs.at[:, 6:].set(jnp.nan)
    EigVals = EigVals.at[:, 6:, :].set(jnp.nan)

    params = init_params(k_par, node_features_dim, GT_hidden_dim, LPE_dim,
                         LPE_layers, dim_feedforward, GT_out_dim, n_classes)

    fwd = jax.jit(lambda hh, ev, el: san_nodespectra_forward(params, hh, ev, el,
                                                             LPE_n_heads))
    out = jax.block_until_ready(fwd(h, EigVecs, EigVals))

    assert out.shape == (1, n_classes), out.shape
    assert bool(jnp.all(jnp.isfinite(out)))
    print("KERNEL_OK")
</pallas_src>

<mosaic_0001>
module attributes {stable_mosaic.version = 11 : i64} {
  func.func @_pe_transformer_kernel(%arg0: i32, %arg1: memref<64x16xf32, #tpu.memory_space<vmem>>, %arg2: memref<8x1x8xf32, #tpu.memory_space<vmem>>, %arg3: memref<8x8x1xf32, #tpu.memory_space<vmem>>, %arg4: memref<2x16x48xbf16, #tpu.memory_space<vmem>>, %arg5: memref<2x1x48xf32, #tpu.memory_space<vmem>>, %arg6: memref<2x16x16xbf16, #tpu.memory_space<vmem>>, %arg7: memref<2x1x16xf32, #tpu.memory_space<vmem>>, %arg8: memref<2x1x16xf32, #tpu.memory_space<vmem>>, %arg9: memref<2x1x16xf32, #tpu.memory_space<vmem>>, %arg10: memref<2x16x2048xbf16, #tpu.memory_space<vmem>>, %arg11: memref<2x1x2048xf32, #tpu.memory_space<vmem>>, %arg12: memref<2x2048x16xbf16, #tpu.memory_space<vmem>>, %arg13: memref<2x1x16xf32, #tpu.memory_space<vmem>>, %arg14: memref<2x1x16xf32, #tpu.memory_space<vmem>>, %arg15: memref<2x1x16xf32, #tpu.memory_space<vmem>>, %arg16: memref<8x16xf32, #tpu.memory_space<vmem>>) attributes {dimension_semantics = [#tpu.dimension_semantics<parallel>], iteration_bounds = array<i64: 2>, scalar_prefetch = 0 : i64, scratch_operands = 0 : i64, tpu.core_type = #tpu.core_type<tc>, window_params = [{transform_indices = @transform_0, window_bounds = array<i64: 64, 16>}, {transform_indices = @transform_1, window_bounds = array<i64: 8, 1, 8>}, {transform_indices = @transform_2, window_bounds = array<i64: 8, 8, 1>}, {pipeline_mode = #tpu.pipeline_mode<synchronous>, transform_indices = @transform_3, window_bounds = array<i64: 2, 16, 48>}, {pipeline_mode = #tpu.pipeline_mode<synchronous>, transform_indices = @transform_4, window_bounds = array<i64: 2, 1, 48>}, {pipeline_mode = #tpu.pipeline_mode<synchronous>, transform_indices = @transform_5, window_bounds = array<i64: 2, 16, 16>}, {pipeline_mode = #tpu.pipeline_mode<synchronous>, transform_indices = @transform_6, window_bounds = array<i64: 2, 1, 16>}, {pipeline_mode = #tpu.pipeline_mode<synchronous>, transform_indices = @transform_7, window_bounds = array<i64: 2, 1, 16>}, {pipeline_mode = #tpu.pipeline_mode<synchronous>, transform_indices = @transform_8, window_bounds = array<i64: 2, 1, 16>}, {pipeline_mode = #tpu.pipeline_mode<synchronous>, transform_indices = @transform_9, window_bounds = array<i64: 2, 16, 2048>}, {pipeline_mode = #tpu.pipeline_mode<synchronous>, transform_indices = @transform_10, window_bounds = array<i64: 2, 1, 2048>}, {pipeline_mode = #tpu.pipeline_mode<synchronous>, transform_indices = @transform_11, window_bounds = array<i64: 2, 2048, 16>}, {pipeline_mode = #tpu.pipeline_mode<synchronous>, transform_indices = @transform_12, window_bounds = array<i64: 2, 1, 16>}, {pipeline_mode = #tpu.pipeline_mode<synchronous>, transform_indices = @transform_13, window_bounds = array<i64: 2, 1, 16>}, {pipeline_mode = #tpu.pipeline_mode<synchronous>, transform_indices = @transform_14, window_bounds = array<i64: 2, 1, 16>}, {transform_indices = @transform_15, window_bounds = array<i64: 8, 16>}]} {
    %c0 = arith.constant 0 : index
    %c0_0 = arith.constant 0 : index
    %0 = vector.load %arg1[%c0, %c0_0] : memref<64x16xf32, #tpu.memory_space<vmem>>, vector<64x16xf32>
    %c0_1 = arith.constant 0 : index
    %c0_2 = arith.constant 0 : index
    %c0_3 = arith.constant 0 : index
    %1 = vector.load %arg2[%c0_1, %c0_2, %c0_3] : memref<8x1x8xf32, #tpu.memory_space<vmem>>, vector<8x1x8xf32>
    %2 = arith.truncf %0 : vector<64x16xf32> to vector<64x16xbf16>
    %c0_4 = arith.constant 0 : index
    %c0_5 = arith.constant 0 : index
    %c0_6 = arith.constant 0 : index
    %3 = vector.load %arg4[%c0_4, %c0_5, %c0_6] : memref<2x16x48xbf16, #tpu.memory_space<vmem>>, vector<1x16x48xbf16>
    %4 = vector.shape_cast %3 : vector<1x16x48xbf16> to vector<16x48xbf16>
    %cst = arith.constant dense<0.000000e+00> : vector<64x48xf32>
    %5 = tpu.matmul %2, %4, %cst {dimension_numbers = #tpu.dot_dimension_numbers<[1], [0], [0], [1], [0, 0, 1, 1], [], []>} : vector<64x16xbf16>, vector<16x48xbf16>, vector<64x48xf32> -> vector<64x48xf32>
    %c0_7 = arith.constant 0 : index
    %c0_8 = arith.constant 0 : index
    %c0_9 = arith.constant 0 : index
    %6 = vector.load %arg5[%c0_7, %c0_8, %c0_9] : memref<2x1x48xf32, #tpu.memory_space<vmem>>, vector<1x1x48xf32>
    %7 = vector.shape_cast %6 : vector<1x1x48xf32> to vector<1x48xf32>
    %8 = vector.broadcast %7 : vector<1x48xf32> to vector<64x48xf32>
    %9 = arith.addf %5, %8 : vector<64x48xf32>
    %c0_10 = arith.constant 0 : index
    %c0_11 = arith.constant 0 : index
    %c0_12 = arith.constant 0 : index
    %10 = vector.load %arg6[%c0_10, %c0_11, %c0_12] : memref<2x16x16xbf16, #tpu.memory_space<vmem>>, vector<1x16x16xbf16>
    %11 = vector.shape_cast %10 : vector<1x16x16xbf16> to vector<16x16xbf16>
    %cst_13 = arith.constant 0.000000e+00 : f32
    %12 = vector.broadcast %cst_13 : f32 to vector<64x16xf32>
    %c0_14 = arith.constant 0 : index
    %c0_15 = arith.constant 0 : index
    %c0_16 = arith.constant 0 : index
    %13 = vector.load %arg7[%c0_14, %c0_15, %c0_16] : memref<2x1x16xf32, #tpu.memory_space<vmem>>, vector<1x1x16xf32>
    %14 = vector.shape_cast %13 : vector<1x1x16xf32> to vector<1x16xf32>
    %15 = vector.broadcast %14 : vector<1x16xf32> to vector<64x16xf32>
    %16 = arith.addf %12, %15 : vector<64x16xf32>
    %17 = vector.extract_strided_slice %9 {offsets = [0, 0], sizes = [64, 8], strides = [1, 1]} : vector<64x48xf32> to vector<64x8xf32>
    %18 = vector.shape_cast %17 : vector<64x8xf32> to vector<8x8x8xf32>
    %19 = arith.truncf %18 : vector<8x8x8xf32> to vector<8x8x8xbf16>
    %20 = vector.extract_strided_slice %9 {offsets = [0, 16], sizes = [64, 8], strides = [1, 1]} : vector<64x48xf32> to vector<64x8xf32>
    %21 = vector.shape_cast %20 : vector<64x8xf32> to vector<8x8x8xf32>
    %22 = arith.truncf %21 : vector<8x8x8xf32> to vector<8x8x8xbf16>
    %23 = vector.extract_strided_slice %9 {offsets = [0, 32], sizes = [64, 8], strides = [1, 1]} : vector<64x48xf32> to vector<64x8xf32>
    %24 = vector.shape_cast %23 : vector<64x8xf32> to vector<8x8x8xf32>
    %25 = arith.truncf %24 : vector<8x8x8xf32> to vector<8x8x8xbf16>
    "tpu.trace_start"() <{level = 10 : i32, message = "bqd,bkd->bqk"}> : () -> ()
    %cst_17 = arith.constant dense<0.000000e+00> : vector<8x8x8xf32>
    %26 = tpu.matmul %19, %22, %cst_17 {dimension_numbers = #tpu.dot_dimension_numbers<[2], [2], [1], [1], [0, 0, 0, 1, 1, 1], [0], [0]>} : vector<8x8x8xbf16>, vector<8x8x8xbf16>, vector<8x8x8xf32> -> vector<8x8x8xf32>
    "tpu.trace_stop"() : () -> ()
    %cst_18 = arith.constant 0.353553385 : f32
    %27 = vector.broadcast %cst_18 : f32 to vector<8x8x8xf32>
    %28 = arith.mulf %26, %27 : vector<8x8x8xf32>
    %29 = vector.broadcast %1 : vector<8x1x8xf32> to vector<8x8x8xf32>
    %30 = arith.addf %28, %29 : vector<8x8x8xf32>
    %cst_19 = arith.constant dense<0xFF800000> : vector<8x8xf32>
    %31 = vector.multi_reduction <maximumf>, %30, %cst_19 [2] : vector<8x8x8xf32> to vector<8x8xf32>
    %32 = vector.shape_cast %31 : vector<8x8xf32> to vector<8x8x1xf32>
    %33 = vector.broadcast %32 : vector<8x8x1xf32> to vector<8x8x8xf32>
    %34 = arith.subf %30, %33 : vector<8x8x8xf32>
    %35 = math.exp %34 : vector<8x8x8xf32>
    %cst_20 = arith.constant dense<0.000000e+00> : vector<8x8xf32>
    %36 = vector.multi_reduction <add>, %35, %cst_20 [2] : vector<8x8x8xf32> to vector<8x8xf32>
    %37 = vector.shape_cast %36 : vector<8x8xf32> to vector<8x8x1xf32>
    %38 = tpu.reciprocal %37 {approx = true} : vector<8x8x1xf32> -> vector<8x8x1xf32>
    %39 = vector.broadcast %38 : vector<8x8x1xf32> to vector<8x8x8xf32>
    %40 = arith.mulf %35, %39 : vector<8x8x8xf32>
    %41 = arith.truncf %40 : vector<8x8x8xf32> to vector<8x8x8xbf16>
    "tpu.trace_start"() <{level = 10 : i32, message = "bqk,bkd->bqd"}> : () -> ()
    %cst_21 = arith.constant dense<0.000000e+00> : vector<8x8x8xf32>
    %42 = tpu.matmul %41, %25, %cst_21 {dimension_numbers = #tpu.dot_dimension_numbers<[2], [1], [1], [2], [0, 0, 0, 1, 1, 2], [0], [0]>} : vector<8x8x8xbf16>, vector<8x8x8xbf16>, vector<8x8x8xf32> -> vector<8x8x8xf32>
    "tpu.trace_stop"() : () -> ()
    %43 = vector.shape_cast %42 : vector<8x8x8xf32> to vector<64x8xf32>
    %44 = arith.truncf %43 : vector<64x8xf32> to vector<64x8xbf16>
    %45 = vector.extract_strided_slice %11 {offsets = [0, 0], sizes = [8, 16], strides = [1, 1]} : vector<16x16xbf16> to vector<8x16xbf16>
    %cst_22 = arith.constant dense<0.000000e+00> : vector<64x16xf32>
    %46 = tpu.matmul %44, %45, %cst_22 {dimension_numbers = #tpu.dot_dimension_numbers<[1], [0], [0], [1], [0, 0, 1, 1], [], []>} : vector<64x8xbf16>, vector<8x16xbf16>, vector<64x16xf32> -> vector<64x16xf32>
    %47 = arith.addf %16, %46 : vector<64x16xf32>
    %48 = vector.extract_strided_slice %9 {offsets = [0, 8], sizes = [64, 8], strides = [1, 1]} : vector<64x48xf32> to vector<64x8xf32>
    %49 = vector.shape_cast %48 : vector<64x8xf32> to vector<8x8x8xf32>
    %50 = arith.truncf %49 : vector<8x8x8xf32> to vector<8x8x8xbf16>
    %51 = vector.extract_strided_slice %9 {offsets = [0, 24], sizes = [64, 8], strides = [1, 1]} : vector<64x48xf32> to vector<64x8xf32>
    %52 = vector.shape_cast %51 : vector<64x8xf32> to vector<8x8x8xf32>
    %53 = arith.truncf %52 : vector<8x8x8xf32> to vector<8x8x8xbf16>
    %54 = vector.extract_strided_slice %9 {offsets = [0, 40], sizes = [64, 8], strides = [1, 1]} : vector<64x48xf32> to vector<64x8xf32>
    %55 = vector.shape_cast %54 : vector<64x8xf32> to vector<8x8x8xf32>
    %56 = arith.truncf %55 : vector<8x8x8xf32> to vector<8x8x8xbf16>
    "tpu.trace_start"() <{level = 10 : i32, message = "bqd,bkd->bqk"}> : () -> ()
    %cst_23 = arith.constant dense<0.000000e+00> : vector<8x8x8xf32>
    %57 = tpu.matmul %50, %53, %cst_23 {dimension_numbers = #tpu.dot_dimension_numbers<[2], [2], [1], [1], [0, 0, 0, 1, 1, 1], [0], [0]>} : vector<8x8x8xbf16>, vector<8x8x8xbf16>, vector<8x8x8xf32> -> vector<8x8x8xf32>
    "tpu.trace_stop"() : () -> ()
    %cst_24 = arith.constant 0.353553385 : f32
    %58 = vector.broadcast %cst_24 : f32 to vector<8x8x8xf32>
    %59 = arith.mulf %57, %58 : vector<8x8x8xf32>
    %60 = vector.broadcast %1 : vector<8x1x8xf32> to vector<8x8x8xf32>
    %61 = arith.addf %59, %60 : vector<8x8x8xf32>
    %cst_25 = arith.constant dense<0xFF800000> : vector<8x8xf32>
    %62 = vector.multi_reduction <maximumf>, %61, %cst_25 [2] : vector<8x8x8xf32> to vector<8x8xf32>
    %63 = vector.shape_cast %62 : vector<8x8xf32> to vector<8x8x1xf32>
    %64 = vector.broadcast %63 : vector<8x8x1xf32> to vector<8x8x8xf32>
    %65 = arith.subf %61, %64 : vector<8x8x8xf32>
    %66 = math.exp %65 : vector<8x8x8xf32>
    %cst_26 = arith.constant dense<0.000000e+00> : vector<8x8xf32>
    %67 = vector.multi_reduction <add>, %66, %cst_26 [2] : vector<8x8x8xf32> to vector<8x8xf32>
    %68 = vector.shape_cast %67 : vector<8x8xf32> to vector<8x8x1xf32>
    %69 = tpu.reciprocal %68 {approx = true} : vector<8x8x1xf32> -> vector<8x8x1xf32>
    %70 = vector.broadcast %69 : vector<8x8x1xf32> to vector<8x8x8xf32>
    %71 = arith.mulf %66, %70 : vector<8x8x8xf32>
    %72 = arith.truncf %71 : vector<8x8x8xf32> to vector<8x8x8xbf16>
    "tpu.trace_start"() <{level = 10 : i32, message = "bqk,bkd->bqd"}> : () -> ()
    %cst_27 = arith.constant dense<0.000000e+00> : vector<8x8x8xf32>
    %73 = tpu.matmul %72, %56, %cst_27 {dimension_numbers = #tpu.dot_dimension_numbers<[2], [1], [1], [2], [0, 0, 0, 1, 1, 2], [0], [0]>} : vector<8x8x8xbf16>, vector<8x8x8xbf16>, vector<8x8x8xf32> -> vector<8x8x8xf32>
    "tpu.trace_stop"() : () -> ()
    %74 = vector.shape_cast %73 : vector<8x8x8xf32> to vector<64x8xf32>
    %75 = arith.truncf %74 : vector<64x8xf32> to vector<64x8xbf16>
    %76 = vector.extract_strided_slice %11 {offsets = [8, 0], sizes = [8, 16], strides = [1, 1]} : vector<16x16xbf16> to vector<8x16xbf16>
    %cst_28 = arith.constant dense<0.000000e+00> : vector<64x16xf32>
    %77 = tpu.matmul %75, %76, %cst_28 {dimension_numbers = #tpu.dot_dimension_numbers<[1], [0], [0], [1], [0, 0, 1, 1], [], []>} : vector<64x8xbf16>, vector<8x16xbf16>, vector<64x16xf32> -> vector<64x16xf32>
    %78 = arith.addf %47, %77 : vector<64x16xf32>
    %79 = arith.addf %0, %78 : vector<64x16xf32>
    %c0_29 = arith.constant 0 : index
    %c0_30 = arith.constant 0 : index
    %c0_31 = arith.constant 0 : index
    %80 = vector.load %arg8[%c0_29, %c0_30, %c0_31] : memref<2x1x16xf32, #tpu.memory_space<vmem>>, vector<1x1x16xf32>
    %81 = vector.shape_cast %80 : vector<1x1x16xf32> to vector<1x16xf32>
    %c0_32 = arith.constant 0 : index
    %c0_33 = arith.constant 0 : index
    %c0_34 = arith.constant 0 : index
    %82 = vector.load %arg9[%c0_32, %c0_33, %c0_34] : memref<2x1x16xf32, #tpu.memory_space<vmem>>, vector<1x1x16xf32>
    %83 = vector.shape_cast %82 : vector<1x1x16xf32> to vector<1x16xf32>
    %cst_35 = arith.constant dense<0.000000e+00> : vector<64xf32>
    %84 = vector.multi_reduction <add>, %79, %cst_35 [1] : vector<64x16xf32> to vector<64xf32>
    %85 = vector.shape_cast %84 : vector<64xf32> to vector<64x1xf32>
    %cst_36 = arith.constant 1.600000e+01 : f32
    %86 = vector.broadcast %cst_36 : f32 to vector<64x1xf32>
    %87 = arith.divf %85, %86 : vector<64x1xf32>
    %88 = vector.broadcast %87 : vector<64x1xf32> to vector<64x16xf32>
    %89 = arith.subf %79, %88 : vector<64x16xf32>
    %90 = arith.mulf %89, %89 : vector<64x16xf32>
    %cst_37 = arith.constant dense<0.000000e+00> : vector<64xf32>
    %91 = vector.multi_reduction <add>, %90, %cst_37 [1] : vector<64x16xf32> to vector<64xf32>
    %92 = vector.shape_cast %91 : vector<64xf32> to vector<64x1xf32>
    %cst_38 = arith.constant 1.600000e+01 : f32
    %93 = vector.broadcast %cst_38 : f32 to vector<64x1xf32>
    %94 = arith.divf %92, %93 : vector<64x1xf32>
    %95 = vector.broadcast %87 : vector<64x1xf32> to vector<64x16xf32>
    %96 = arith.subf %79, %95 : vector<64x16xf32>
    %cst_39 = arith.constant 9.99999974E-6 : f32
    %97 = vector.broadcast %cst_39 : f32 to vector<64x1xf32>
    %98 = arith.addf %94, %97 : vector<64x1xf32>
    %99 = math.rsqrt %98 : vector<64x1xf32>
    %100 = vector.broadcast %99 : vector<64x1xf32> to vector<64x16xf32>
    %101 = arith.mulf %96, %100 : vector<64x16xf32>
    %102 = vector.broadcast %81 : vector<1x16xf32> to vector<64x16xf32>
    %103 = arith.mulf %101, %102 : vector<64x16xf32>
    %104 = vector.broadcast %83 : vector<1x16xf32> to vector<64x16xf32>
    %105 = arith.addf %103, %104 : vector<64x16xf32>
    %c0_40 = arith.constant 0 : index
    %c0_41 = arith.constant 0 : index
    %c0_42 = arith.constant 0 : index
    %106 = vector.load %arg10[%c0_40, %c0_41, %c0_42] : memref<2x16x2048xbf16, #tpu.memory_space<vmem>>, vector<1x16x2048xbf16>
    %107 = vector.shape_cast %106 : vector<1x16x2048xbf16> to vector<16x2048xbf16>
    %c0_43 = arith.constant 0 : index
    %c0_44 = arith.constant 0 : index
    %c0_45 = arith.constant 0 : index
    %108 = vector.load %arg11[%c0_43, %c0_44, %c0_45] : memref<2x1x2048xf32, #tpu.memory_space<vmem>>, vector<1x1x2048xf32>
    %109 = vector.shape_cast %108 : vector<1x1x2048xf32> to vector<1x2048xf32>
    %c0_46 = arith.constant 0 : index
    %c0_47 = arith.constant 0 : index
    %c0_48 = arith.constant 0 : index
    %110 = vector.load %arg12[%c0_46, %c0_47, %c0_48] : memref<2x2048x16xbf16, #tpu.memory_space<vmem>>, vector<1x2048x16xbf16>
    %111 = vector.shape_cast %110 : vector<1x2048x16xbf16> to vector<2048x16xbf16>
    %112 = arith.truncf %105 : vector<64x16xf32> to vector<64x16xbf16>
    %cst_49 = arith.constant 0.000000e+00 : f32
    %113 = vector.broadcast %cst_49 : f32 to vector<64x16xf32>
    %c0_50 = arith.constant 0 : index
    %c0_51 = arith.constant 0 : index
    %c0_52 = arith.constant 0 : index
    %114 = vector.load %arg13[%c0_50, %c0_51, %c0_52] : memref<2x1x16xf32, #tpu.memory_space<vmem>>, vector<1x1x16xf32>
    %115 = vector.shape_cast %114 : vector<1x1x16xf32> to vector<1x16xf32>
    %116 = vector.broadcast %115 : vector<1x16xf32> to vector<64x16xf32>
    %117 = arith.addf %113, %116 : vector<64x16xf32>
    %cst_53 = arith.constant dense<0.000000e+00> : vector<64x2048xf32>
    %118 = tpu.matmul %112, %107, %cst_53 {dimension_numbers = #tpu.dot_dimension_numbers<[1], [0], [0], [1], [0, 0, 1, 1], [], []>} : vector<64x16xbf16>, vector<16x2048xbf16>, vector<64x2048xf32> -> vector<64x2048xf32>
    %119 = vector.broadcast %109 : vector<1x2048xf32> to vector<64x2048xf32>
    %120 = arith.addf %118, %119 : vector<64x2048xf32>
    %cst_54 = arith.constant 0.000000e+00 : f32
    %121 = vector.broadcast %cst_54 : f32 to vector<64x2048xf32>
    %122 = arith.maximumf %120, %121 : vector<64x2048xf32>
    %123 = arith.truncf %122 : vector<64x2048xf32> to vector<64x2048xbf16>
    %cst_55 = arith.constant dense<0.000000e+00> : vector<64x16xf32>
    %124 = tpu.matmul %123, %111, %cst_55 {dimension_numbers = #tpu.dot_dimension_numbers<[1], [0], [0], [1], [0, 0, 1, 1], [], []>} : vector<64x2048xbf16>, vector<2048x16xbf16>, vector<64x16xf32> -> vector<64x16xf32>
    %125 = arith.addf %117, %124 : vector<64x16xf32>
    %126 = arith.addf %105, %125 : vector<64x16xf32>
    %c0_56 = arith.constant 0 : index
    %c0_57 = arith.constant 0 : index
    %c0_58 = arith.constant 0 : index
    %127 = vector.load %arg14[%c0_56, %c0_57, %c0_58] : memref<2x1x16xf32, #tpu.memory_space<vmem>>, vector<1x1x16xf32>
    %128 = vector.shape_cast %127 : vector<1x1x16xf32> to vector<1x16xf32>
    %c0_59 = arith.constant 0 : index
    %c0_60 = arith.constant 0 : index
    %c0_61 = arith.constant 0 : index
    %129 = vector.load %arg15[%c0_59, %c0_60, %c0_61] : memref<2x1x16xf32, #tpu.memory_space<vmem>>, vector<1x1x16xf32>
    %130 = vector.shape_cast %129 : vector<1x1x16xf32> to vector<1x16xf32>
    %cst_62 = arith.constant dense<0.000000e+00> : vector<64xf32>
    %131 = vector.multi_reduction <add>, %126, %cst_62 [1] : vector<64x16xf32> to vector<64xf32>
    %132 = vector.shape_cast %131 : vector<64xf32> to vector<64x1xf32>
    %cst_63 = arith.constant 1.600000e+01 : f32
    %133 = vector.broadcast %cst_63 : f32 to vector<64x1xf32>
    %134 = arith.divf %132, %133 : vector<64x1xf32>
    %135 = vector.broadcast %134 : vector<64x1xf32> to vector<64x16xf32>
    %136 = arith.subf %126, %135 : vector<64x16xf32>
    %137 = arith.mulf %136, %136 : vector<64x16xf32>
    %cst_64 = arith.constant dense<0.000000e+00> : vector<64xf32>
    %138 = vector.multi_reduction <add>, %137, %cst_64 [1] : vector<64x16xf32> to vector<64xf32>
    %139 = vector.shape_cast %138 : vector<64xf32> to vector<64x1xf32>
    %cst_65 = arith.constant 1.600000e+01 : f32
    %140 = vector.broadcast %cst_65 : f32 to vector<64x1xf32>
    %141 = arith.divf %139, %140 : vector<64x1xf32>
    %142 = vector.broadcast %134 : vector<64x1xf32> to vector<64x16xf32>
    %143 = arith.subf %126, %142 : vector<64x16xf32>
    %cst_66 = arith.constant 9.99999974E-6 : f32
    %144 = vector.broadcast %cst_66 : f32 to vector<64x1xf32>
    %145 = arith.addf %141, %144 : vector<64x1xf32>
    %146 = math.rsqrt %145 : vector<64x1xf32>
    %147 = vector.broadcast %146 : vector<64x1xf32> to vector<64x16xf32>
    %148 = arith.mulf %143, %147 : vector<64x16xf32>
    %149 = vector.broadcast %128 : vector<1x16xf32> to vector<64x16xf32>
    %150 = arith.mulf %148, %149 : vector<64x16xf32>
    %151 = vector.broadcast %130 : vector<1x16xf32> to vector<64x16xf32>
    %152 = arith.addf %150, %151 : vector<64x16xf32>
    %153 = arith.truncf %152 : vector<64x16xf32> to vector<64x16xbf16>
    %c1 = arith.constant 1 : index
    %c0_67 = arith.constant 0 : index
    %c0_68 = arith.constant 0 : index
    %154 = vector.load %arg4[%c1, %c0_67, %c0_68] : memref<2x16x48xbf16, #tpu.memory_space<vmem>>, vector<1x16x48xbf16>
    %155 = vector.shape_cast %154 : vector<1x16x48xbf16> to vector<16x48xbf16>
    %cst_69 = arith.constant dense<0.000000e+00> : vector<64x48xf32>
    %156 = tpu.matmul %153, %155, %cst_69 {dimension_numbers = #tpu.dot_dimension_numbers<[1], [0], [0], [1], [0, 0, 1, 1], [], []>} : vector<64x16xbf16>, vector<16x48xbf16>, vector<64x48xf32> -> vector<64x48xf32>
    %c1_70 = arith.constant 1 : index
    %c0_71 = arith.constant 0 : index
    %c0_72 = arith.constant 0 : index
    %157 = vector.load %arg5[%c1_70, %c0_71, %c0_72] : memref<2x1x48xf32, #tpu.memory_space<vmem>>, vector<1x1x48xf32>
    %158 = vector.shape_cast %157 : vector<1x1x48xf32> to vector<1x48xf32>
    %159 = vector.broadcast %158 : vector<1x48xf32> to vector<64x48xf32>
    %160 = arith.addf %156, %159 : vector<64x48xf32>
    %c1_73 = arith.constant 1 : index
    %c0_74 = arith.constant 0 : index
    %c0_75 = arith.constant 0 : index
    %161 = vector.load %arg6[%c1_73, %c0_74, %c0_75] : memref<2x16x16xbf16, #tpu.memory_space<vmem>>, vector<1x16x16xbf16>
    %162 = vector.shape_cast %161 : vector<1x16x16xbf16> to vector<16x16xbf16>
    %cst_76 = arith.constant 0.000000e+00 : f32
    %163 = vector.broadcast %cst_76 : f32 to vector<64x16xf32>
    %c1_77 = arith.constant 1 : index
    %c0_78 = arith.constant 0 : index
    %c0_79 = arith.constant 0 : index
    %164 = vector.load %arg7[%c1_77, %c0_78, %c0_79] : memref<2x1x16xf32, #tpu.memory_space<vmem>>, vector<1x1x16xf32>
    %165 = vector.shape_cast %164 : vector<1x1x16xf32> to vector<1x16xf32>
    %166 = vector.broadcast %165 : vector<1x16xf32> to vector<64x16xf32>
    %167 = arith.addf %163, %166 : vector<64x16xf32>
    %168 = vector.extract_strided_slice %160 {offsets = [0, 0], sizes = [64, 8], strides = [1, 1]} : vector<64x48xf32> to vector<64x8xf32>
    %169 = vector.shape_cast %168 : vector<64x8xf32> to vector<8x8x8xf32>
    %170 = arith.truncf %169 : vector<8x8x8xf32> to vector<8x8x8xbf16>
    %171 = vector.extract_strided_slice %160 {offsets = [0, 16], sizes = [64, 8], strides = [1, 1]} : vector<64x48xf32> to vector<64x8xf32>
    %172 = vector.shape_cast %171 : vector<64x8xf32> to vector<8x8x8xf32>
    %173 = arith.truncf %172 : vector<8x8x8xf32> to vector<8x8x8xbf16>
    %174 = vector.extract_strided_slice %160 {offsets = [0, 32], sizes = [64, 8], strides = [1, 1]} : vector<64x48xf32> to vector<64x8xf32>
    %175 = vector.shape_cast %174 : vector<64x8xf32> to vector<8x8x8xf32>
    %176 = arith.truncf %175 : vector<8x8x8xf32> to vector<8x8x8xbf16>
    "tpu.trace_start"() <{level = 10 : i32, message = "bqd,bkd->bqk"}> : () -> ()
    %cst_80 = arith.constant dense<0.000000e+00> : vector<8x8x8xf32>
    %177 = tpu.matmul %170, %173, %cst_80 {dimension_numbers = #tpu.dot_dimension_numbers<[2], [2], [1], [1], [0, 0, 0, 1, 1, 1], [0], [0]>} : vector<8x8x8xbf16>, vector<8x8x8xbf16>, vector<8x8x8xf32> -> vector<8x8x8xf32>
    "tpu.trace_stop"() : () -> ()
    %cst_81 = arith.constant 0.353553385 : f32
    %178 = vector.broadcast %cst_81 : f32 to vector<8x8x8xf32>
    %179 = arith.mulf %177, %178 : vector<8x8x8xf32>
    %180 = vector.broadcast %1 : vector<8x1x8xf32> to vector<8x8x8xf32>
    %181 = arith.addf %179, %180 : vector<8x8x8xf32>
    %cst_82 = arith.constant dense<0xFF800000> : vector<8x8xf32>
    %182 = vector.multi_reduction <maximumf>, %181, %cst_82 [2] : vector<8x8x8xf32> to vector<8x8xf32>
    %183 = vector.shape_cast %182 : vector<8x8xf32> to vector<8x8x1xf32>
    %184 = vector.broadcast %183 : vector<8x8x1xf32> to vector<8x8x8xf32>
    %185 = arith.subf %181, %184 : vector<8x8x8xf32>
    %186 = math.exp %185 : vector<8x8x8xf32>
    %cst_83 = arith.constant dense<0.000000e+00> : vector<8x8xf32>
    %187 = vector.multi_reduction <add>, %186, %cst_83 [2] : vector<8x8x8xf32> to vector<8x8xf32>
    %188 = vector.shape_cast %187 : vector<8x8xf32> to vector<8x8x1xf32>
    %189 = tpu.reciprocal %188 {approx = true} : vector<8x8x1xf32> -> vector<8x8x1xf32>
    %190 = vector.broadcast %189 : vector<8x8x1xf32> to vector<8x8x8xf32>
    %191 = arith.mulf %186, %190 : vector<8x8x8xf32>
    %192 = arith.truncf %191 : vector<8x8x8xf32> to vector<8x8x8xbf16>
    "tpu.trace_start"() <{level = 10 : i32, message = "bqk,bkd->bqd"}> : () -> ()
    %cst_84 = arith.constant dense<0.000000e+00> : vector<8x8x8xf32>
    %193 = tpu.matmul %192, %176, %cst_84 {dimension_numbers = #tpu.dot_dimension_numbers<[2], [1], [1], [2], [0, 0, 0, 1, 1, 2], [0], [0]>} : vector<8x8x8xbf16>, vector<8x8x8xbf16>, vector<8x8x8xf32> -> vector<8x8x8xf32>
    "tpu.trace_stop"() : () -> ()
    %194 = vector.shape_cast %193 : vector<8x8x8xf32> to vector<64x8xf32>
    %195 = arith.truncf %194 : vector<64x8xf32> to vector<64x8xbf16>
    %196 = vector.extract_strided_slice %162 {offsets = [0, 0], sizes = [8, 16], strides = [1, 1]} : vector<16x16xbf16> to vector<8x16xbf16>
    %cst_85 = arith.constant dense<0.000000e+00> : vector<64x16xf32>
    %197 = tpu.matmul %195, %196, %cst_85 {dimension_numbers = #tpu.dot_dimension_numbers<[1], [0], [0], [1], [0, 0, 1, 1], [], []>} : vector<64x8xbf16>, vector<8x16xbf16>, vector<64x16xf32> -> vector<64x16xf32>
    %198 = arith.addf %167, %197 : vector<64x16xf32>
    %199 = vector.extract_strided_slice %160 {offsets = [0, 8], sizes = [64, 8], strides = [1, 1]} : vector<64x48xf32> to vector<64x8xf32>
    %200 = vector.shape_cast %199 : vector<64x8xf32> to vector<8x8x8xf32>
    %201 = arith.truncf %200 : vector<8x8x8xf32> to vector<8x8x8xbf16>
    %202 = vector.extract_strided_slice %160 {offsets = [0, 24], sizes = [64, 8], strides = [1, 1]} : vector<64x48xf32> to vector<64x8xf32>
    %203 = vector.shape_cast %202 : vector<64x8xf32> to vector<8x8x8xf32>
    %204 = arith.truncf %203 : vector<8x8x8xf32> to vector<8x8x8xbf16>
    %205 = vector.extract_strided_slice %160 {offsets = [0, 40], sizes = [64, 8], strides = [1, 1]} : vector<64x48xf32> to vector<64x8xf32>
    %206 = vector.shape_cast %205 : vector<64x8xf32> to vector<8x8x8xf32>
    %207 = arith.truncf %206 : vector<8x8x8xf32> to vector<8x8x8xbf16>
    "tpu.trace_start"() <{level = 10 : i32, message = "bqd,bkd->bqk"}> : () -> ()
    %cst_86 = arith.constant dense<0.000000e+00> : vector<8x8x8xf32>
    %208 = tpu.matmul %201, %204, %cst_86 {dimension_numbers = #tpu.dot_dimension_numbers<[2], [2], [1], [1], [0, 0, 0, 1, 1, 1], [0], [0]>} : vector<8x8x8xbf16>, vector<8x8x8xbf16>, vector<8x8x8xf32> -> vector<8x8x8xf32>
    "tpu.trace_stop"() : () -> ()
    %cst_87 = arith.constant 0.353553385 : f32
    %209 = vector.broadcast %cst_87 : f32 to vector<8x8x8xf32>
    %210 = arith.mulf %208, %209 : vector<8x8x8xf32>
    %211 = vector.broadcast %1 : vector<8x1x8xf32> to vector<8x8x8xf32>
    %212 = arith.addf %210, %211 : vector<8x8x8xf32>
    %cst_88 = arith.constant dense<0xFF800000> : vector<8x8xf32>
    %213 = vector.multi_reduction <maximumf>, %212, %cst_88 [2] : vector<8x8x8xf32> to vector<8x8xf32>
    %214 = vector.shape_cast %213 : vector<8x8xf32> to vector<8x8x1xf32>
    %215 = vector.broadcast %214 : vector<8x8x1xf32> to vector<8x8x8xf32>
    %216 = arith.subf %212, %215 : vector<8x8x8xf32>
    %217 = math.exp %216 : vector<8x8x8xf32>
    %cst_89 = arith.constant dense<0.000000e+00> : vector<8x8xf32>
    %218 = vector.multi_reduction <add>, %217, %cst_89 [2] : vector<8x8x8xf32> to vector<8x8xf32>
    %219 = vector.shape_cast %218 : vector<8x8xf32> to vector<8x8x1xf32>
    %220 = tpu.reciprocal %219 {approx = true} : vector<8x8x1xf32> -> vector<8x8x1xf32>
    %221 = vector.broadcast %220 : vector<8x8x1xf32> to vector<8x8x8xf32>
    %222 = arith.mulf %217, %221 : vector<8x8x8xf32>
    %223 = arith.truncf %222 : vector<8x8x8xf32> to vector<8x8x8xbf16>
    "tpu.trace_start"() <{level = 10 : i32, message = "bqk,bkd->bqd"}> : () -> ()
    %cst_90 = arith.constant dense<0.000000e+00> : vector<8x8x8xf32>
    %224 = tpu.matmul %223, %207, %cst_90 {dimension_numbers = #tpu.dot_dimension_numbers<[2], [1], [1], [2], [0, 0, 0, 1, 1, 2], [0], [0]>} : vector<8x8x8xbf16>, vector<8x8x8xbf16>, vector<8x8x8xf32> -> vector<8x8x8xf32>
    "tpu.trace_stop"() : () -> ()
    %225 = vector.shape_cast %224 : vector<8x8x8xf32> to vector<64x8xf32>
    %226 = arith.truncf %225 : vector<64x8xf32> to vector<64x8xbf16>
    %227 = vector.extract_strided_slice %162 {offsets = [8, 0], sizes = [8, 16], strides = [1, 1]} : vector<16x16xbf16> to vector<8x16xbf16>
    %cst_91 = arith.constant dense<0.000000e+00> : vector<64x16xf32>
    %228 = tpu.matmul %226, %227, %cst_91 {dimension_numbers = #tpu.dot_dimension_numbers<[1], [0], [0], [1], [0, 0, 1, 1], [], []>} : vector<64x8xbf16>, vector<8x16xbf16>, vector<64x16xf32> -> vector<64x16xf32>
    %229 = arith.addf %198, %228 : vector<64x16xf32>
    %230 = arith.addf %152, %229 : vector<64x16xf32>
    %c1_92 = arith.constant 1 : index
    %c0_93 = arith.constant 0 : index
    %c0_94 = arith.constant 0 : index
    %231 = vector.load %arg8[%c1_92, %c0_93, %c0_94] : memref<2x1x16xf32, #tpu.memory_space<vmem>>, vector<1x1x16xf32>
    %232 = vector.shape_cast %231 : vector<1x1x16xf32> to vector<1x16xf32>
    %c1_95 = arith.constant 1 : index
    %c0_96 = arith.constant 0 : index
    %c0_97 = arith.constant 0 : index
    %233 = vector.load %arg9[%c1_95, %c0_96, %c0_97] : memref<2x1x16xf32, #tpu.memory_space<vmem>>, vector<1x1x16xf32>
    %234 = vector.shape_cast %233 : vector<1x1x16xf32> to vector<1x16xf32>
    %cst_98 = arith.constant dense<0.000000e+00> : vector<64xf32>
    %235 = vector.multi_reduction <add>, %230, %cst_98 [1] : vector<64x16xf32> to vector<64xf32>
    %236 = vector.shape_cast %235 : vector<64xf32> to vector<64x1xf32>
    %cst_99 = arith.constant 1.600000e+01 : f32
    %237 = vector.broadcast %cst_99 : f32 to vector<64x1xf32>
    %238 = arith.divf %236, %237 : vector<64x1xf32>
    %239 = vector.broadcast %238 : vector<64x1xf32> to vector<64x16xf32>
    %240 = arith.subf %230, %239 : vector<64x16xf32>
    %241 = arith.mulf %240, %240 : vector<64x16xf32>
    %cst_100 = arith.constant dense<0.000000e+00> : vector<64xf32>
    %242 = vector.multi_reduction <add>, %241, %cst_100 [1] : vector<64x16xf32> to vector<64xf32>
    %243 = vector.shape_cast %242 : vector<64xf32> to vector<64x1xf32>
    %cst_101 = arith.constant 1.600000e+01 : f32
    %244 = vector.broadcast %cst_101 : f32 to vector<64x1xf32>
    %245 = arith.divf %243, %244 : vector<64x1xf32>
    %246 = vector.broadcast %238 : vector<64x1xf32> to vector<64x16xf32>
    %247 = arith.subf %230, %246 : vector<64x16xf32>
    %cst_102 = arith.constant 9.99999974E-6 : f32
    %248 = vector.broadcast %cst_102 : f32 to vector<64x1xf32>
    %249 = arith.addf %245, %248 : vector<64x1xf32>
    %250 = math.rsqrt %249 : vector<64x1xf32>
    %251 = vector.broadcast %250 : vector<64x1xf32> to vector<64x16xf32>
    %252 = arith.mulf %247, %251 : vector<64x16xf32>
    %253 = vector.broadcast %232 : vector<1x16xf32> to vector<64x16xf32>
    %254 = arith.mulf %252, %253 : vector<64x16xf32>
    %255 = vector.broadcast %234 : vector<1x16xf32> to vector<64x16xf32>
    %256 = arith.addf %254, %255 : vector<64x16xf32>
    %c1_103 = arith.constant 1 : index
    %c0_104 = arith.constant 0 : index
    %c0_105 = arith.constant 0 : index
    %257 = vector.load %arg10[%c1_103, %c0_104, %c0_105] : memref<2x16x2048xbf16, #tpu.memory_space<vmem>>, vector<1x16x2048xbf16>
    %258 = vector.shape_cast %257 : vector<1x16x2048xbf16> to vector<16x2048xbf16>
    %c1_106 = arith.constant 1 : index
    %c0_107 = arith.constant 0 : index
    %c0_108 = arith.constant 0 : index
    %259 = vector.load %arg11[%c1_106, %c0_107, %c0_108] : memref<2x1x2048xf32, #tpu.memory_space<vmem>>, vector<1x1x2048xf32>
    %260 = vector.shape_cast %259 : vector<1x1x2048xf32> to vector<1x2048xf32>
    %c1_109 = arith.constant 1 : index
    %c0_110 = arith.constant 0 : index
    %c0_111 = arith.constant 0 : index
    %261 = vector.load %arg12[%c1_109, %c0_110, %c0_111] : memref<2x2048x16xbf16, #tpu.memory_space<vmem>>, vector<1x2048x16xbf16>
    %262 = vector.shape_cast %261 : vector<1x2048x16xbf16> to vector<2048x16xbf16>
    %263 = arith.truncf %256 : vector<64x16xf32> to vector<64x16xbf16>
    %cst_112 = arith.constant 0.000000e+00 : f32
    %264 = vector.broadcast %cst_112 : f32 to vector<64x16xf32>
    %c1_113 = arith.constant 1 : index
    %c0_114 = arith.constant 0 : index
    %c0_115 = arith.constant 0 : index
    %265 = vector.load %arg13[%c1_113, %c0_114, %c0_115] : memref<2x1x16xf32, #tpu.memory_space<vmem>>, vector<1x1x16xf32>
    %266 = vector.shape_cast %265 : vector<1x1x16xf32> to vector<1x16xf32>
    %267 = vector.broadcast %266 : vector<1x16xf32> to vector<64x16xf32>
    %268 = arith.addf %264, %267 : vector<64x16xf32>
    %cst_116 = arith.constant dense<0.000000e+00> : vector<64x2048xf32>
    %269 = tpu.matmul %263, %258, %cst_116 {dimension_numbers = #tpu.dot_dimension_numbers<[1], [0], [0], [1], [0, 0, 1, 1], [], []>} : vector<64x16xbf16>, vector<16x2048xbf16>, vector<64x2048xf32> -> vector<64x2048xf32>
    %270 = vector.broadcast %260 : vector<1x2048xf32> to vector<64x2048xf32>
    %271 = arith.addf %269, %270 : vector<64x2048xf32>
    %cst_117 = arith.constant 0.000000e+00 : f32
    %272 = vector.broadcast %cst_117 : f32 to vector<64x2048xf32>
    %273 = arith.maximumf %271, %272 : vector<64x2048xf32>
    %274 = arith.truncf %273 : vector<64x2048xf32> to vector<64x2048xbf16>
    %cst_118 = arith.constant dense<0.000000e+00> : vector<64x16xf32>
    %275 = tpu.matmul %274, %262, %cst_118 {dimension_numbers = #tpu.dot_dimension_numbers<[1], [0], [0], [1], [0, 0, 1, 1], [], []>} : vector<64x2048xbf16>, vector<2048x16xbf16>, vector<64x16xf32> -> vector<64x16xf32>
    %276 = arith.addf %268, %275 : vector<64x16xf32>
    %277 = arith.addf %256, %276 : vector<64x16xf32>
    %c1_119 = arith.constant 1 : index
    %c0_120 = arith.constant 0 : index
    %c0_121 = arith.constant 0 : index
    %278 = vector.load %arg14[%c1_119, %c0_120, %c0_121] : memref<2x1x16xf32, #tpu.memory_space<vmem>>, vector<1x1x16xf32>
    %279 = vector.shape_cast %278 : vector<1x1x16xf32> to vector<1x16xf32>
    %c1_122 = arith.constant 1 : index
    %c0_123 = arith.constant 0 : index
    %c0_124 = arith.constant 0 : index
    %280 = vector.load %arg15[%c1_122, %c0_123, %c0_124] : memref<2x1x16xf32, #tpu.memory_space<vmem>>, vector<1x1x16xf32>
    %281 = vector.shape_cast %280 : vector<1x1x16xf32> to vector<1x16xf32>
    %cst_125 = arith.constant dense<0.000000e+00> : vector<64xf32>
    %282 = vector.multi_reduction <add>, %277, %cst_125 [1] : vector<64x16xf32> to vector<64xf32>
    %283 = vector.shape_cast %282 : vector<64xf32> to vector<64x1xf32>
    %cst_126 = arith.constant 1.600000e+01 : f32
    %284 = vector.broadcast %cst_126 : f32 to vector<64x1xf32>
    %285 = arith.divf %283, %284 : vector<64x1xf32>
    %286 = vector.broadcast %285 : vector<64x1xf32> to vector<64x16xf32>
    %287 = arith.subf %277, %286 : vector<64x16xf32>
    %288 = arith.mulf %287, %287 : vector<64x16xf32>
    %cst_127 = arith.constant dense<0.000000e+00> : vector<64xf32>
    %289 = vector.multi_reduction <add>, %288, %cst_127 [1] : vector<64x16xf32> to vector<64xf32>
    %290 = vector.shape_cast %289 : vector<64xf32> to vector<64x1xf32>
    %cst_128 = arith.constant 1.600000e+01 : f32
    %291 = vector.broadcast %cst_128 : f32 to vector<64x1xf32>
    %292 = arith.divf %290, %291 : vector<64x1xf32>
    %293 = vector.broadcast %285 : vector<64x1xf32> to vector<64x16xf32>
    %294 = arith.subf %277, %293 : vector<64x16xf32>
    %cst_129 = arith.constant 9.99999974E-6 : f32
    %295 = vector.broadcast %cst_129 : f32 to vector<64x1xf32>
    %296 = arith.addf %292, %295 : vector<64x1xf32>
    %297 = math.rsqrt %296 : vector<64x1xf32>
    %298 = vector.broadcast %297 : vector<64x1xf32> to vector<64x16xf32>
    %299 = arith.mulf %294, %298 : vector<64x16xf32>
    %300 = vector.broadcast %279 : vector<1x16xf32> to vector<64x16xf32>
    %301 = arith.mulf %299, %300 : vector<64x16xf32>
    %302 = vector.broadcast %281 : vector<1x16xf32> to vector<64x16xf32>
    %303 = arith.addf %301, %302 : vector<64x16xf32>
    %304 = vector.shape_cast %303 : vector<64x16xf32> to vector<8x8x16xf32>
    %c0_130 = arith.constant 0 : index
    %c0_131 = arith.constant 0 : index
    %c0_132 = arith.constant 0 : index
    %305 = vector.load %arg3[%c0_130, %c0_131, %c0_132] : memref<8x8x1xf32, #tpu.memory_space<vmem>>, vector<8x8x1xf32>
    %306 = vector.broadcast %305 : vector<8x8x1xf32> to vector<8x8x16xf32>
    %307 = arith.mulf %304, %306 : vector<8x8x16xf32>
    %cst_133 = arith.constant dense<0.000000e+00> : vector<8x16xf32>
    %308 = vector.multi_reduction <add>, %307, %cst_133 [1] : vector<8x8x16xf32> to vector<8x16xf32>
    %c0_134 = arith.constant 0 : index
    %c0_135 = arith.constant 0 : index
    %309 = vector.load %arg16[%c0_134, %c0_135] : memref<8x16xf32, #tpu.memory_space<vmem>>, vector<8x16xf32>
    tpu.vector_store %arg16[%c0_134, %c0_135], %308 {strides = array<i32>} : memref<8x16xf32, #tpu.memory_space<vmem>>, vector<8x16xf32>,
    return
  }
  func.func @transform_0(%arg0: i32) -> (i32, i32) {
    %c0_i32 = arith.constant 0 : i32
    %c0_i32_0 = arith.constant 0 : i32
    return %arg0, %c0_i32 : i32, i32
  }
  func.func @transform_1(%arg0: i32) -> (i32, i32, i32) {
    %c0_i32 = arith.constant 0 : i32
    %c0_i32_0 = arith.constant 0 : i32
    %c0_i32_1 = arith.constant 0 : i32
    return %arg0, %c0_i32, %c0_i32_0 : i32, i32, i32
  }
  func.func @transform_2(%arg0: i32) -> (i32, i32, i32) {
    %c0_i32 = arith.constant 0 : i32
    %c0_i32_0 = arith.constant 0 : i32
    %c0_i32_1 = arith.constant 0 : i32
    return %arg0, %c0_i32, %c0_i32_0 : i32, i32, i32
  }
  func.func @transform_3(%arg0: i32) -> (i32, i32, i32) {
    %c0_i32 = arith.constant 0 : i32
    %c0_i32_0 = arith.constant 0 : i32
    %c0_i32_1 = arith.constant 0 : i32
    %c0_i32_2 = arith.constant 0 : i32
    return %c0_i32, %c0_i32_0, %c0_i32_1 : i32, i32, i32
  }
  func.func @transform_4(%arg0: i32) -> (i32, i32, i32) {
    %c0_i32 = arith.constant 0 : i32
    %c0_i32_0 = arith.constant 0 : i32
    %c0_i32_1 = arith.constant 0 : i32
    %c0_i32_2 = arith.constant 0 : i32
    return %c0_i32, %c0_i32_0, %c0_i32_1 : i32, i32, i32
  }
  func.func @transform_5(%arg0: i32) -> (i32, i32, i32) {
    %c0_i32 = arith.constant 0 : i32
    %c0_i32_0 = arith.constant 0 : i32
    %c0_i32_1 = arith.constant 0 : i32
    %c0_i32_2 = arith.constant 0 : i32
    return %c0_i32, %c0_i32_0, %c0_i32_1 : i32, i32, i32
  }
  func.func @transform_6(%arg0: i32) -> (i32, i32, i32) {
    %c0_i32 = arith.constant 0 : i32
    %c0_i32_0 = arith.constant 0 : i32
    %c0_i32_1 = arith.constant 0 : i32
    %c0_i32_2 = arith.constant 0 : i32
    return %c0_i32, %c0_i32_0, %c0_i32_1 : i32, i32, i32
  }
  func.func @transform_7(%arg0: i32) -> (i32, i32, i32) {
    %c0_i32 = arith.constant 0 : i32
    %c0_i32_0 = arith.constant 0 : i32
    %c0_i32_1 = arith.constant 0 : i32
    %c0_i32_2 = arith.constant 0 : i32
    return %c0_i32, %c0_i32_0, %c0_i32_1 : i32, i32, i32
  }
  func.func @transform_8(%arg0: i32) -> (i32, i32, i32) {
    %c0_i32 = arith.constant 0 : i32
    %c0_i32_0 = arith.constant 0 : i32
    %c0_i32_1 = arith.constant 0 : i32
    %c0_i32_2 = arith.constant 0 : i32
    return %c0_i32, %c0_i32_0, %c0_i32_1 : i32, i32, i32
  }
  func.func @transform_9(%arg0: i32) -> (i32, i32, i32) {
    %c0_i32 = arith.constant 0 : i32
    %c0_i32_0 = arith.constant 0 : i32
    %c0_i32_1 = arith.constant 0 : i32
    %c0_i32_2 = arith.constant 0 : i32
    return %c0_i32, %c0_i32_0, %c0_i32_1 : i32, i32, i32
  }
  func.func @transform_10(%arg0: i32) -> (i32, i32, i32) {
    %c0_i32 = arith.constant 0 : i32
    %c0_i32_0 = arith.constant 0 : i32
    %c0_i32_1 = arith.constant 0 : i32
    %c0_i32_2 = arith.constant 0 : i32
    return %c0_i32, %c0_i32_0, %c0_i32_1 : i32, i32, i32
  }
  func.func @transform_11(%arg0: i32) -> (i32, i32, i32) {
    %c0_i32 = arith.constant 0 : i32
    %c0_i32_0 = arith.constant 0 : i32
    %c0_i32_1 = arith.constant 0 : i32
    %c0_i32_2 = arith.constant 0 : i32
    return %c0_i32, %c0_i32_0, %c0_i32_1 : i32, i32, i32
  }
  func.func @transform_12(%arg0: i32) -> (i32, i32, i32) {
    %c0_i32 = arith.constant 0 : i32
    %c0_i32_0 = arith.constant 0 : i32
    %c0_i32_1 = arith.constant 0 : i32
    %c0_i32_2 = arith.constant 0 : i32
    return %c0_i32, %c0_i32_0, %c0_i32_1 : i32, i32, i32
  }
  func.func @transform_13(%arg0: i32) -> (i32, i32, i32) {
    %c0_i32 = arith.constant 0 : i32
    %c0_i32_0 = arith.constant 0 : i32
    %c0_i32_1 = arith.constant 0 : i32
    %c0_i32_2 = arith.constant 0 : i32
    return %c0_i32, %c0_i32_0, %c0_i32_1 : i32, i32, i32
  }
  func.func @transform_14(%arg0: i32) -> (i32, i32, i32) {
    %c0_i32 = arith.constant 0 : i32
    %c0_i32_0 = arith.constant 0 : i32
    %c0_i32_1 = arith.constant 0 : i32
    %c0_i32_2 = arith.constant 0 : i32
    return %c0_i32, %c0_i32_0, %c0_i32_1 : i32, i32, i32
  }
  func.func @transform_15(%arg0: i32) -> (i32, i32) {
    %c0_i32 = arith.constant 0 : i32
    %c0_i32_0 = arith.constant 0 : i32
    return %arg0, %c0_i32 : i32, i32
  }
}

</mosaic_0001>

<bundles_post_ra>
// kernel: _lambda_.1
= control target key start
LH: loop header
LB: loop body
LE: loop exit
PB: predicated region body
PF: predicated region fallthrough
CT: control target
= control target key end

     0   :  { %20 = vsyncpa [#allocation3], 0  ;;  %s13272_s18 = smov 0   ;;  %s16485_s0 = inlined_call_operand.vmem [shape: f32[128,16], index: 0, kind: input, shape index: {}]   ;;  %s16486_s1 = inlined_call_operand.vmem [shape: f32[16,1,8], index: 1, kind: input, shape index: {}]   ;;  %s16487_s2 = inlined_call_operand.vmem [shape: f32[16,8,1], index: 2, kind: input, shape index: {}]   ;;  %s16488_s3 = inlined_call_operand.vmem [shape: bf16[2,16,48], index: 3, kind: input, shape index: {}]   ;;  %s16489_s4 = inlined_call_operand.vmem [shape: f32[2,1,48], index: 4, kind: input, shape index: {}]   ;;  %s16490_s5 = inlined_call_operand.vmem [shape: bf16[2,16,16], index: 5, kind: input, shape index: {}]   ;;  %s16491_s6 = inlined_call_operand.vmem [shape: f32[2,1,16], index: 6, kind: input, shape index: {}]   ;;  %s16492_s7 = inlined_call_operand.vmem [shape: f32[2,1,16], index: 7, kind: input, shape index: {}, may-alias: {7,13}]   ;;  %s16493_s8 = inlined_call_operand.vmem [shape: f32[2,1,16], index: 8, kind: input, shape index: {}, may-alias: {8,14}]   ;;  %s16494_s9 = inlined_call_operand.hbm [shape: bf16[2,16,2048], index: 9, kind: input, shape index: {}]   ;;  %s16495_s10 = inlined_call_operand.vmem [shape: f32[2,1,2048], index: 10, kind: input, shape index: {}]   ;;  %s16496_s11 = inlined_call_operand.vmem [shape: bf16[2,2048,16], index: 11, kind: input, shape index: {}]   ;;  %s16497_s12 = inlined_call_operand.vmem [shape: f32[2,1,16], index: 12, kind: input, shape index: {}]   ;;  %s16498_s13 = inlined_call_operand.vmem [shape: f32[2,1,16], index: 13, kind: input, shape index: {}, may-alias: {7,13}]   ;;  %s16499_s14 = inlined_call_operand.vmem [shape: f32[2,1,16], index: 14, kind: input, shape index: {}, may-alias: {8,14}]   ;;  %s16500_s15 = inlined_call_operand.vmem [shape: f32[16,16], index: 15, kind: output, shape index: {}]  }
   0x1 LB: > { %s13278_s19 = sadd.s32 4294967295, %s13179_s18   ;;  %p10652_p0 = scmp.ge.s32.totalorder %s13179_s18, 1  ;;  %s13179_s18 = sphi %s13272_s18, %s26_s18  }
   0x2   : > { %p387_p1 = scmp.lt.s32.totalorder %s13179_s18, 3  ;;  %s13181_s20 = smov [#allocation2]  }
   0x3   : > { %s417_s21 = sshll.u32 %s13181_s20, 4  ;;  %p12654_p3 = scmp.eq.s32.totalorder %s13278_s19, 0  ;;  %s418_s21 = int_to_ptr.vmem [resolvable:$true] %s417_s21 }
   0x4   : > { %p13282_p2 = pnand %p10652_p0, %p387_p1  ;;  %s13154_s23 = scalar_lea.vmem %s418_s21, 4096 }
   0x5   : > { %p13155_p7 = scmp.ne.s32.totalorder %s418_s21, %s13154_s23  ;;  %p13162_p10 = scmp.lt.s32.totalorder %s418_s21, %s418_s21 }
   0x6   : > { %p12650_p4 = pneg %p13282_p2  ;;  %p13163_p11 = scmp.lt.s32.totalorder %s13154_s23, %s13154_s23 }
   0x8   : > { %p12651_p5 = pnand %p12654_p3, %p12650_p4  ;;  %p13164_p12 = por %p13163_p11, %p13162_p10 }
   0xa   : > { %p13145_p6 = pneg %p12651_p5 }
   0xc   : > { %p13157_p8 = pnand %p13155_p7, %p13145_p6 }
   0xe   : > { %p13158_p9 = pneg %p13157_p8 }
  0x10   : > { %p13165_p13 = pnand %p13164_p12, %p13158_p9 }
  0x12   : > { %13168 = shalt.err (!%p13165_p13)
}
  0x13   : > { %s13182_s24 = smov 1024   ;;  %s13183_s25 = smov 64  }
  0x14   : > { %12653 = dma.hbm_to_vmem [thread:$0]  (!%p12651_p5), %s16494_s9, 4096, %s418_s21, [#allocation3], %s13182_s24, %s13182_s24, %s13183_s25  }
  0x15   : > { %474 = sbr.rel (%p13282_p2) target bundleno = 6408 (0x1908), region = 80 }
  0x1a   : > { %13174 = dma.done.wait (%p12654_p3), [#allocation3], 4096  }
  0x1b   : > { %13176 = vsyncadd (%p12654_p3), [#allocation3], 4294963200  ;;  %s10657_s28 = sshll.u32 %s13278_s19, 3  ;;  %v12677_v0 = vld [vmem:[%s16488_s3] sm:$0xff]   ;;  %vm587_vm0 = vcmask 130048   ;;  %v16512_v13 = vmov 0.0  }
  0x1c   : > { %p531_p0 = scmp.lt.s32.totalorder %s10657_s28, 15  ;;  %12196 = vmatprep.subr.bf16.mxu0 %v12677_v0  ;;  %12640 = vmatprep.subr.bf16.mxu1 %v12677_v0  ;;  %v10663_v14 = vld [vmem:[%s16489_s4] ss:$0 sm:$0xff]  ;;  %vm13185_vm1 = vmmov 0   ;;  %s13186_s24 = smov 112   ;;  %vm686_vm2 = vcmask 64512  }
  0x1d   : > { %12197 = vmatpush3.bf16.msra.mxu0 %v12677_v0  ;;  %12641 = vmatpush3.bf16.msra.mxu1 %v12677_v0  ;;  %s16508_s30 = smov 96   ;;  %vm1241_vm3 = vcmask 1043456   ;;  %s16506_s16 = smov 120   ;;  %vm10548_vm4 = vcmask 1041409   ;;  %vm10550_vm5 = vcmask 1042434   ;;  %vm10552_vm6 = vcmask 1043459  }
  0x1e   : > { %s16657_s28 = smov (!%p531_p0, %s10657_s28), 15  ;;  %12218 = vmatprep.subr.bf16.mxu0 %v16512_v13  ;;  %12206 = vmatprep.subr.bf16.mxu1 %v16512_v13  ;;  %s16504_s20 = smov 104   ;;  %vm10554_vm7 = vcmask 1044484   ;;  %vm10556_vm8 = vcmask 1045509   ;;  %vm10558_vm9 = vcmask 1046534   ;;  %vm10560_vm10 = vcmask 1047559  }
  0x1f   : > { %s16501_s29 = sshll.u32 %s16657_s28, 3  ;;  %s13419_s27 = scalar_lea.vmem %s16486_s1, %s16657_s28 }
  0x20   : > { %s13309_s17 = scalar_lea.vmem %s16485_s0, %s16501_s29  ;;  %v13422_v58 = vld [vmem:[%s13419_s27] ss:$0 sm:$0xff]  ;;  %v13425_v63 = vld [vmem:[%s13419_s27 + $0x2] ss:$0 sm:$0xff]  ;;  %s16502_s23 = smov 88  }
  0x21   : > { %v552_v1 = vld [vmem:[%s13309_s17] sm:$0xff]  ;;  %v553_v2 = vld [vmem:[%s13309_s17 + $0x8] sm:$0xff]  ;;  %v554_v3 = vld [vmem:[%s13309_s17 + $0x10] sm:$0xff]  ;;  %s16598_s25 = smov 96   ;;  %s16601_s22 = smov 88  }
  0x22   : > { %v568_v4 = vpack.c.bf16 %v553_v2, %v552_v1  ;;  %v555_v5 = vld [vmem:[%s13309_s17 + $0x18] sm:$0xff]  ;;  %v556_v6 = vld [vmem:[%s13309_s17 + $0x20] sm:$0xff]  ;;  %v557_v7 = vld [vmem:[%s13309_s17 + $0x28] sm:$0xff]  ;;  %p547_p1 = scmp.lt.s32.totalorder %s13278_s19, 1 }
  0x23   : > { %v569_v8 = vpack.c.bf16 %v555_v5, %v554_v3  ;;  %v570_v9 = vpack.c.bf16 %v557_v7, %v556_v6  ;;  %v558_v10 = vld [vmem:[%s13309_s17 + $0x30] sm:$0xff]  ;;  %v559_v11 = vld [vmem:[%s13309_s17 + $0x38] sm:$0xff] }
  0x24   : > { %12198 = vmatprep.mubr.msk.bf16.mxu0 %vm587_vm0, %v568_v4  ;;  %v571_v12 = vpack.c.bf16 %v559_v11, %v558_v10  ;;  %s16659_s19 = smov (!%p547_p1, %s13278_s19), 1 }
  0x25   : > { %12202 = vmatprep.mubr.msk.bf16.mxu1 %vm587_vm0, %v570_v9  ;;  %12199 = vmatmul.mubr.msk.bf16.vlgmr.msra.gmra.mxu0 %vm587_vm0, %v569_v8  ;;  %v13436_v8 = vld [vmem:[%s13419_s27 + $0x1] ss:$0 sm:$0xff] }
  0x26   : > { %12203 = vmatmul.mubr.msk.bf16.vlgmr.msra.gmra.mxu1 %vm587_vm0, %v571_v12  ;;  %12220 = vmatprep.mubr.msk.bf16.mxu0 %vm13185_vm1, %v16512_v13 }
  0x27   : > { %12208 = vmatprep.mubr.msk.bf16.mxu1 %vm13185_vm1, %v16512_v13 }
  0xe5   : > { %v12200_v15 = vpop.f32.mrf.mxu0 }
  0xe6   : > { %v12204_v16 = vpop.f32.mrf.mxu1  ;;  %v643_v17 = vadd.f32 %v12200_v15, %v10663_v14  ;;  %v13441_v15 = vld [vmem:[%s13419_s27 + $0x4] ss:$0 sm:$0xff] }
  0xe7   : > { %v634_v18 = vpop.f32.mrf.mxu0  ;;  %v659_v35 = vadd.f32 %v12204_v16, %v10663_v14 }
  0xe8   : > { %v650_v19 = vpop.f32.mrf.mxu1  ;;  %v13335_v20 = vpack.c.bf16 %v643_v17, %v643_v17  ;;  %v635_v21 = vadd.f32 %v10663_v14, %v634_v18 }
  0xe9   : > { %v12201_v22 = vpop.f32.mrf.mxu0  ;;  %v651_v30 = vadd.f32 %v10663_v14, %v650_v19  ;;  %v13359_v38 = vpack.c.bf16 %v659_v35, %v659_v35 }
  0xea   : > { %v12205_v23 = vpop.f32.mrf.mxu1  ;;  %v13337_v24 = vpack.c.bf16 %v635_v21, %v635_v21  ;;  %v646_v25 = vadd.f32 %v12201_v22, %v10663_v14  ;;  %783 = vrot.lane.b32.xlu1 %v13335_v20, %s13186_s24 }
  0xeb   : > { %v637_v26 = vpop.f32.mrf.mxu0  ;;  %v662_v33 = vadd.f32 %v12205_v23, %v10663_v14  ;;  %v13351_v36 = vpack.c.bf16 %v651_v30, %v651_v30 }
  0xec   : > { %v653_v27 = vpop.f32.mrf.mxu1  ;;  %v13341_v28 = vpack.c.bf16 %v646_v25, %v646_v25  ;;  %v638_v29 = vadd.f32 %v10663_v14, %v637_v26  ;;  %684 = vrot.lane.b32.xlu0 %v13337_v24, %s13186_s24 }
  0xed   : > { %v654_v31 = vadd.f32 %v10663_v14, %v653_v27  ;;  %v13355_v37 = vpack.c.bf16 %v662_v33, %v662_v33  ;;  %v13447_v27 = vld [vmem:[%s13419_s27 + $0x3] ss:$0 sm:$0xff] }
  0xee   : > { %v13345_v32 = vpack.c.bf16 %v638_v29, %v638_v29  ;;  %832 = vrot.lane.b32.xlu1 %v13341_v28, %s13186_s24  ;;  %v13450_v29 = vld [vmem:[%s13419_s27 + $0x6] ss:$0 sm:$0xff] }
  0xef   : > { %v13349_v34 = vpack.c.bf16 %v654_v31, %v654_v31 }
  0xf0   : > { %734 = vrot.lane.b32.xlu0 %v13345_v32, %s13186_s24 }
  0xf2   : > { %930 = vrot.lane.b32.xlu1 %v13349_v34, %s13186_s24 }
  0xf4   : > { %881 = vrot.lane.b32.xlu0 %v13351_v36, %s13186_s24 }
  0xf6   : > { %1028 = vrot.lane.b32.xlu1 %v13355_v37, %s13186_s24 }
  0xf8   : > { %979 = vrot.lane.b32.xlu0 %v13359_v38, %s13186_s24 }
 0x15c   : > { %v784_v39 = vpop.permute.xlu1 %783 }
 0x15d   : > { %v789_v40 = vsel %vm686_vm2, %v784_v39, 0 }
 0x15e   : > { %12219 = vmatpush3.bf16.xpose.msra.mxu0 %v789_v40  ;;  %v685_v41 = vpop.permute.xlu0 %684 }
 0x15f   : > { %v691_v42 = vsel %vm686_vm2, %v685_v41, 0  ;;  %12230 = vmatprep.subr.bf16.mxu0 %v16512_v13 }
 0x160   : > { %12207 = vmatpush3.bf16.xpose.msra.mxu1 %v691_v42  ;;  %v833_v48 = vpop.permute.xlu1 %832 }
 0x161   : > { %12212 = vmatprep.subr.bf16.mxu1 %v16512_v13  ;;  %v838_v50 = vsel %vm686_vm2, %v833_v48, 0 }
 0x162   : > { %v735_v43 = vpop.permute.xlu0 %734 }
 0x163   : > { %v740_v45 = vsel %vm686_vm2, %v735_v43, 0 }
 0x164   : > { %v931_v51 = vpop.permute.xlu1 %930 }
 0x165   : > { %12221 = vmatmul.mubr.msk.bf16.vlgmr.msra.gmra.mxu0 %vm686_vm2, %v13335_v20  ;;  %v936_v52 = vsel %vm686_vm2, %v931_v51, 0 }
 0x166   : > { %v882_v44 = vpop.permute.xlu0 %881  ;;  %12232 = vmatprep.mubr.msk.bf16.mxu0 %vm13185_vm1, %v16512_v13 }
 0x167   : > { %v887_v46 = vsel %vm686_vm2, %v882_v44, 0  ;;  %12209 = vmatmul.mubr.msk.bf16.vlgmr.msra.gmra.mxu1 %vm686_vm2, %v13337_v24 }
 0x168   : > { %12213 = vmatpush3.bf16.xpose.msra.mxu1 %v740_v45  ;;  %12231 = vmatpush3.bf16.xpose.msra.mxu0 %v887_v46  ;;  %v1029_v53 = vpop.permute.xlu1 %1028 }
 0x169   : > { %12214 = vmatprep.mubr.msk.bf16.mxu1 %vm13185_vm1, %v16512_v13  ;;  %12224 = vmatprep.subr.bf16.mxu1 %v16512_v13  ;;  %v1034_v54 = vsel %vm686_vm2, %v1029_v53, 0 }
 0x16a   : > { %v980_v47 = vpop.permute.xlu0 %979  ;;  %12242 = vmatprep.subr.bf16.mxu0 %v16512_v13 }
 0x16b   : > { %v985_v49 = vsel %vm686_vm2, %v980_v47, 0 }
 0x16f   : > { %12215 = vmatmul.mubr.msk.bf16.vlgmr.msra.gmra.mxu1 %vm686_vm2, %v13345_v32  ;;  %12233 = vmatmul.mubr.msk.bf16.vlgmr.msra.gmra.mxu0 %vm686_vm2, %v13351_v36 }
 0x170   : > { %12225 = vmatpush3.bf16.xpose.msra.mxu1 %v838_v50  ;;  %12243 = vmatpush3.bf16.xpose.msra.mxu0 %v985_v49  ;;  %v13458_v49 = vld [vmem:[%s13419_s27 + $0x5] ss:$0 sm:$0xff] }
 0x171   : > { %12226 = vmatprep.mubr.msk.bf16.mxu1 %vm13185_vm1, %v16512_v13  ;;  %12244 = vmatprep.mubr.msk.bf16.mxu0 %vm13185_vm1, %v16512_v13 }
 0x172   : > { %12236 = vmatprep.subr.bf16.mxu1 %v16512_v13  ;;  %12254 = vmatprep.subr.bf16.mxu0 %v16512_v13 }
 0x177   : > { %12227 = vmatmul.mubr.msk.bf16.vlgmr.msra.gmra.mxu1 %vm686_vm2, %v13341_v28  ;;  %12245 = vmatmul.mubr.msk.bf16.vlgmr.msra.gmra.mxu0 %vm686_vm2, %v13359_v38 }
 0x178   : > { %12237 = vmatpush3.bf16.xpose.msra.mxu1 %v936_v52  ;;  %12238 = vmatprep.mubr.msk.bf16.mxu1 %vm13185_vm1, %v16512_v13 }
 0x179   : > { %12248 = vmatprep.subr.bf16.mxu1 %v16512_v13  ;;  %12256 = vmatprep.mubr.msk.bf16.mxu0 %vm13185_vm1, %v16512_v13 }
 0x17f   : > { %12239 = vmatmul.mubr.msk.bf16.vlgmr.msra.gmra.mxu1 %vm686_vm2, %v13349_v34 }
 0x180   : > { %12249 = vmatpush3.bf16.xpose.msra.mxu1 %v1034_v54  ;;  %12250 = vmatprep.mubr.msk.bf16.mxu1 %vm13185_vm1, %v16512_v13 }
 0x181   : > { %12260 = vmatprep.subr.bf16.mxu1 %v16512_v13 }
 0x187   : > { %12251 = vmatmul.mubr.msk.bf16.vlgmr.msra.gmra.mxu1 %vm686_vm2, %v13355_v37 }
 0x188   : > { %12262 = vmatprep.mubr.msk.bf16.mxu1 %vm13185_vm1, %v16512_v13 }
 0x225   : > { %v825_v55 = vpop.f32.mrf.mxu0 }
 0x226   : > { %v1078_v59 = vmul.f32 0.35355338, %v825_v55 }
 0x227   : > { %v727_v56 = vpop.f32.mrf.mxu1  ;;  %v12222_v57 = vpop.f32.mrf.mxu0 }
 0x228   : > { %v1076_v60 = vmul.f32 0.35355338, %v727_v56  ;;  %v13433_v4 = vadd.f32 %v13425_v63, %v1078_v59  ;;  %v13466_v57 = vld [vmem:[%s13419_s27 + $0x7] ss:$0 sm:$0xff] }
 0x229   : > { %v12210_v61 = vpop.f32.mrf.mxu1  ;;  %v828_v62 = vpop.f32.mrf.mxu0 }
 0x22a   : > { %v13428_v0 = vadd.f32 %v13422_v58, %v1076_v60  ;;  %v1146_v11 = vsel %vm686_vm2, %v13433_v4, -inf }
 0x22b   : > { %v730_v1 = vpop.f32.mrf.mxu1  ;;  %v12223_v2 = vpop.f32.mrf.mxu0 }
 0x22c   : > { %v1140_v3 = vsel %vm686_vm2, %v13428_v0, -inf }
 0x22d   : > { %1141 = vmax.xlane.f32.xlu0 %v1140_v3  ;;  %v12211_v5 = vpop.f32.mrf.mxu1 }
 0x22f   : > { %v776_v6 = vpop.f32.mrf.mxu1  ;;  %v923_v7 = vpop.f32.mrf.mxu0 }
 0x230   : > { %v1077_v9 = vmul.f32 0.35355338, %v776_v6  ;;  %v1080_v10 = vmul.f32 0.35355338, %v923_v7 }
 0x231   : > { %1147 = vmax.xlane.f32.xlu0 %v1146_v11  ;;  %v12216_v12 = vpop.f32.mrf.mxu1  ;;  %v12234_v14 = vpop.f32.mrf.mxu0 }
 0x232   : > { %v1133_v16 = vadd.f32 %v13436_v8, %v1077_v9  ;;  %v1136_v21 = vadd.f32 %v13441_v15, %v1080_v10 }
 0x233   : > { %v779_v17 = vpop.f32.mrf.mxu1  ;;  %v926_v18 = vpop.f32.mrf.mxu0 }
 0x234   : > { %v1143_v19 = vsel %vm686_vm2, %v1133_v16, -inf  ;;  %v1152_v33 = vsel %vm686_vm2, %v1136_v21, -inf }
 0x235   : > { %1144 = vmax.xlane.f32.xlu1 %v1143_v19  ;;  %v12217_v22 = vpop.f32.mrf.mxu1  ;;  %v12235_v23 = vpop.f32.mrf.mxu0 }
 0x237   : > { %v874_v25 = vpop.f32.mrf.mxu1  ;;  %v1021_v26 = vpop.f32.mrf.mxu0 }
 0x238   : > { %v1079_v30 = vmul.f32 0.35355338, %v874_v25  ;;  %v1082_v31 = vmul.f32 0.35355338, %v1021_v26 }
 0x239   : > { %v12228_v35 = vpop.f32.mrf.mxu1  ;;  %1153 = vmax.xlane.f32.xlu1 %v1152_v33  ;;  %v12246_v39 = vpop.f32.mrf.mxu0 }
 0x23a   : > { %v1135_v40 = vadd.f32 %v13447_v27, %v1079_v30  ;;  %v1138_v41 = vadd.f32 %v13450_v29, %v1082_v31 }
 0x23b   : > { %v877_v42 = vpop.f32.mrf.mxu1  ;;  %v1024_v43 = vpop.f32.mrf.mxu0 }
 0x23c   : > { %v1149_v44 = vsel %vm686_vm2, %v1135_v40, -inf  ;;  %v1158_v45 = vsel %vm686_vm2, %v1138_v41, -inf }
 0x23d   : > { %1150 = vmax.xlane.f32.xlu0 %v1149_v44  ;;  %v12229_v46 = vpop.f32.mrf.mxu1  ;;  %1159 = vmax.xlane.f32.xlu1 %v1158_v45  ;;  %v12247_v47 = vpop.f32.mrf.mxu0 }
 0x23f   : > { %v972_v48 = vpop.f32.mrf.mxu1 }
 0x240   : > { %v1081_v50 = vmul.f32 0.35355338, %v972_v48 }
 0x241   : > { %v12240_v51 = vpop.f32.mrf.mxu1 }
 0x242   : > { %v13461_v52 = vadd.f32 %v13458_v49, %v1081_v50 }
 0x243   : > { %v975_v53 = vpop.f32.mrf.mxu1 }
 0x244   : > { %v1155_v54 = vsel %vm686_vm2, %v13461_v52, -inf }
 0x245   : > { %1156 = vmax.xlane.f32.xlu0 %v1155_v54  ;;  %v12241_v55 = vpop.f32.mrf.mxu1 }
 0x247   : > { %v1070_v56 = vpop.f32.mrf.mxu1 }
 0x248   : > { %v1083_v59 = vmul.f32 0.35355338, %v1070_v56 }
 0x249   : > { %v12252_v60 = vpop.f32.mrf.mxu1 }
 0x24a   : > { %v13469_v61 = vadd.f32 %v13466_v57, %v1083_v59 }
 0x24b   : > { %v1073_v62 = vpop.f32.mrf.mxu1 }
 0x24c   : > { %v1161_v1 = vsel %vm686_vm2, %v13469_v61, -inf }
 0x24d   : > { %1162 = vmax.xlane.f32.xlu0 %v1161_v1  ;;  %v12253_v2 = vpop.f32.mrf.mxu1 }
 0x24e   : > { %1236 = vrot.lane.b32.xlu1 %v13337_v24, %s16508_s30 }
 0x252   : > { %1333 = vrot.lane.b32.xlu1 %v13335_v20, %s16508_s30 }
 0x256   : > { %1381 = vrot.lane.b32.xlu1 %v13341_v28, %s16508_s30 }
 0x263   : > { %1285 = vrot.lane.b32.xlu0 %v13345_v32, %s16508_s30 }
 0x2b6   : > { %v1142_v3 = vpop.xlane.xlu0 %1141 }
 0x2b7   : > { %v1164_v5 = vsub.f32 %v13428_v0, %v1142_v3 }
 0x2b9   : > { %v1172_v9 = vmul.f32 1.442695, %v1164_v5 }
 0x2ba   : > { %v1148_v6 = vpop.xlane.xlu0 %1147 }
 0x2bb   : > { %v1166_v7 = vsub.f32 %v13433_v4, %v1148_v6 }
 0x2bd   : > { %v1176_v10 = vmul.f32 1.442695, %v1166_v7 }
 0x2be   : > { %v1145_v11 = vpop.xlane.xlu1 %1144 }
 0x2bf   : > { %12935 = vpow2.f32 %v1176_v10  ;;  %v1165_v12 = vsub.f32 %v1133_v16, %v1145_v11 }
 0x2c0   : > { %12937 = vpow2.f32 %v1172_v9 }
 0x2c1   : > { %v1174_v14 = vmul.f32 1.442695, %v1165_v12 }
 0x2c2   : > { %v1154_v17 = vpop.xlane.xlu1 %1153 }
 0x2c3   : > { %12939 = vpow2.f32 %v1174_v14  ;;  %v1168_v18 = vsub.f32 %v1136_v21, %v1154_v17 }
 0x2c5   : > { %v1180_v19 = vmul.f32 1.442695, %v1168_v18 }
 0x2c6   : > { %v1160_v22 = vpop.xlane.xlu1 %1159  ;;  %v1151_v23 = vpop.xlane.xlu0 %1150 }
 0x2c7   : > { %12941 = vpow2.f32 %v1180_v19  ;;  %v1170_v25 = vsub.f32 %v1138_v41, %v1160_v22  ;;  %v1167_v26 = vsub.f32 %v1135_v40, %v1151_v23 }
 0x2c9   : > { %v1184_v0 = vmul.f32 1.442695, %v1170_v25  ;;  %v1178_v30 = vmul.f32 1.442695, %v1167_v26 }
 0x2ca   : > { %v1237_v4 = vpop.permute.xlu1 %1236 }
 0x2cb   : > { %12943 = vpow2.f32 %v1184_v0  ;;  %v1243_v31 = vsel %vm1241_vm3, %v1237_v4, 0 }
 0x2cc   : > { %v13484_v33 = vpop.eup %12935  ;;  %12945 = vpow2.f32 %v1178_v30  ;;  %12255 = vmatpush3.bf16.msra.mxu0 %v1243_v31 }
 0x2cd   : > { %v1194_v16 = vsel %vm686_vm2, %v13484_v33, 0.0  ;;  %12266 = vmatprep.subr.bf16.mxu0 %v16512_v13  ;;  %v13489_v21 = vpop.eup %12937 }
 0x2ce   : > { %1195 = vadd.xlane.f32.xlu1 %v1194_v16  ;;  %v1188_v40 = vsel %vm686_vm2, %v13489_v21, 0.0  ;;  %v1157_v41 = vpop.xlane.xlu0 %1156  ;;  %v1334_v62 = vpop.permute.xlu1 %1333 }
 0x2cf   : > { %v1169_v53 = vsub.f32 %v13461_v52, %v1157_v41  ;;  %v1339_v19 = vsel %vm1241_vm3, %v1334_v62, 0 }
 0x2d0   : > { %v13491_v35 = vpop.eup %12939 }
 0x2d1   : > { %v1191_v39 = vsel %vm686_vm2, %v13491_v35, 0.0  ;;  %v1182_v54 = vmul.f32 1.442695, %v1169_v53 }
 0x2d2   : > { %1192 = vadd.xlane.f32.xlu0 %v1191_v39  ;;  %1189 = vadd.xlane.f32.xlu1 %v1188_v40  ;;  %v1382_v1 = vpop.permute.xlu1 %1381 }
 0x2d3   : > { %12947 = vpow2.f32 %v1182_v54  ;;  %v1387_v23 = vsel %vm1241_vm3, %v1382_v1, 0 }
 0x2d4   : > { %v13497_v42 = vpop.eup %12941 }
 0x2d5   : > { %v1200_v43 = vsel %vm686_vm2, %v13497_v42, 0.0 }
 0x2d6   : > { %1201 = vadd.xlane.f32.xlu1 %v1200_v43  ;;  %v1163_v44 = vpop.xlane.xlu0 %1162 }
 0x2d7   : > { %v1171_v55 = vsub.f32 %v13469_v61, %v1163_v44 }
 0x2d8   : > { %v13501_v45 = vpop.eup %12943 }
 0x2d9   : > { %v13503_v46 = vpop.eup %12945  ;;  %v1206_v47 = vsel %vm686_vm2, %v13501_v45, 0.0  ;;  %v1186_v56 = vmul.f32 1.442695, %v1171_v55 }
 0x2da   : > { %1207 = vadd.xlane.f32.xlu1 %v1206_v47  ;;  %v1197_v48 = vsel %vm686_vm2, %v13503_v46, 0.0  ;;  %v1286_v50 = vpop.permute.xlu0 %1285 }
 0x2db   : > { %1198 = vadd.xlane.f32.xlu0 %v1197_v48  ;;  %v1291_v51 = vsel %vm1241_vm3, %v1286_v50, 0  ;;  %12949 = vpow2.f32 %v1186_v56 }
 0x2dc   : > { %12261 = vmatpush3.bf16.msra.mxu1 %v1291_v51 }
 0x2dd   : > { %12272 = vmatprep.subr.bf16.mxu1 %v16512_v13 }
 0x2e0   : > { %v13533_v52 = vpop.eup %12947 }
 0x2e1   : > { %v1203_v59 = vsel %vm686_vm2, %v13533_v52, 0.0 }
 0x2e8   : > { %v13539_v60 = vpop.eup %12949 }
 0x2e9   : > { %v1209_v61 = vsel %vm686_vm2, %v13539_v60, 0.0 }
 0x2eb   : > { %1477 = vrot.lane.b32.xlu1 %v13349_v34, %s16508_s30 }
 0x2ef   : > { %1573 = vrot.lane.b32.xlu1 %v13355_v37, %s16508_s30 }
 0x2f1   : > { %1429 = vrot.lane.b32.xlu0 %v13351_v36, %s16508_s30 }
 0x2f3   : > { %1713 = vrot.lane.b32.xlu1 %v13337_v24, %s16506_s16 }
 0x2f7   : > { %1763 = vrot.lane.b32.xlu1 %v13345_v32, %s16506_s16 }
 0x2fb   : > { %1865 = vrot.lane.b32.xlu1 %v13341_v28, %s16504_s20 }
 0x2ff   : > { %1863 = vrot.lane.b32.xlu1 %v13341_v28, %s16506_s16 }
 0x303   : > { %1965 = vrot.lane.b32.xlu1 %v13349_v34, %s16504_s20 }
 0x307   : > { %1963 = vrot.lane.b32.xlu1 %v13349_v34, %s16506_s16 }
 0x30b   : > { %2065 = vrot.lane.b32.xlu1 %v13355_v37, %s16504_s20 }
 0x30f   : > { %2063 = vrot.lane.b32.xlu1 %v13355_v37, %s16506_s16 }
 0x310   : > { %1204 = vadd.xlane.f32.xlu0 %v1203_v59 }
 0x314   : > { %1210 = vadd.xlane.f32.xlu0 %v1209_v61 }
 0x32a   : > { %1525 = vrot.lane.b32.xlu0 %v13359_v38, %s16508_s30 }
 0x32e   : > { %1715 = vrot.lane.b32.xlu0 %v13337_v24, %s16504_s20 }
 0x332   : > { %1765 = vrot.lane.b32.xlu0 %v13345_v32, %s16504_s20 }
 0x336   : > { %1815 = vrot.lane.b32.xlu0 %v13335_v20, %s16504_s20 }
 0x33a   : > { %1813 = vrot.lane.b32.xlu0 %v13335_v20, %s16506_s16 }
 0x33e   : > { %1915 = vrot.lane.b32.xlu0 %v13351_v36, %s16504_s20 }
 0x342   : > { %1913 = vrot.lane.b32.xlu0 %v13351_v36, %s16506_s16 }
 0x346   : > { %2015 = vrot.lane.b32.xlu0 %v13359_v38, %s16504_s20 }
 0x34a   : > { %2013 = vrot.lane.b32.xlu0 %v13359_v38, %s16506_s16 }
 0x357   : > { %v1196_v2 = vpop.xlane.xlu1 %1195 }
 0x35b   : > { %v1190_v3 = vpop.xlane.xlu1 %1189  ;;  %v1193_v5 = vpop.xlane.xlu0 %1192 }
 0x35c   : > { %12951 = vrcp.f32 %v1190_v3 }
 0x35d   : > { %12953 = vrcp.f32 %v1193_v5 }
 0x35e   : > { %12955 = vrcp.f32 %v1196_v2  ;;  %v665_v2 = vld [vmem:[%s16490_s5] sm:$0xf] }
 0x35f   : > { %v1202_v7 = vpop.xlane.xlu1 %1201 }
 0x363   : > { %v1208_v22 = vpop.xlane.xlu1 %1207 }
 0x364   : > { %v1199_v6 = vpop.xlane.xlu0 %1198 }
 0x365   : > { %12957 = vrcp.f32 %v1199_v6 }
 0x366   : > { %12959 = vrcp.f32 %v1202_v7 }
 0x367   : > { %v1478_v4 = vpop.permute.xlu1 %1477  ;;  %12961 = vrcp.f32 %v1208_v22 }
 0x368   : > { %v1430_v0 = vpop.permute.xlu0 %1429 }
 0x369   : > { %v12952_v9 = vpop.eup %12951 }
 0x36a   : > { %v12954_v10 = vpop.eup %12953  ;;  %v1220_v11 = vmul.f32 %v12952_v9, %v13489_v21 }
 0x36b   : > { %v1221_v12 = vmul.f32 %v12954_v10, %v13491_v35  ;;  %v12956_v17 = vpop.eup %12955  ;;  %v1435_v35 = vsel %vm1241_vm3, %v1430_v0, 0  ;;  %v1574_v51 = vpop.permute.xlu1 %1573 }
 0x36c   : > { %v1228_v14 = vpack.c.bf16 %v1220_v11, %v1220_v11  ;;  %v1222_v25 = vmul.f32 %v12956_v17, %v13484_v33  ;;  %v1483_v33 = vsel %vm1241_vm3, %v1478_v4, 0  ;;  %v1579_v56 = vsel %vm1241_vm3, %v1574_v51, 0 }
 0x36d   : > { %v1229_v18 = vpack.c.bf16 %v1221_v12, %v1221_v12 }
 0x36e   : > { %12257 = vmatmul.mubr.msk.bf16.vlgmr.msra.gmra.mxu0 %vm686_vm2, %v1228_v14  ;;  %v1230_v31 = vpack.c.bf16 %v1222_v25, %v1222_v25 }
 0x36f   : > { %12263 = vmatmul.mubr.msk.bf16.vlgmr.msra.gmra.mxu1 %vm686_vm2, %v1229_v18  ;;  %12267 = vmatpush3.bf16.msra.mxu0 %v1339_v19  ;;  %v1714_v59 = vpop.permute.xlu1 %1713 }
 0x370   : > { %12273 = vmatpush3.bf16.msra.mxu1 %v1387_v23  ;;  %12268 = vmatprep.mubr.msk.bf16.mxu0 %vm13185_vm1, %v16512_v13 }
 0x371   : > { %12274 = vmatprep.mubr.msk.bf16.mxu1 %vm13185_vm1, %v16512_v13  ;;  %12278 = vmatprep.subr.bf16.mxu0 %v16512_v13 }
 0x372   : > { %v12958_v26 = vpop.eup %12957  ;;  %12284 = vmatprep.subr.bf16.mxu1 %v16512_v13 }
 0x373   : > { %v1223_v30 = vmul.f32 %v12958_v26, %v13503_v46  ;;  %v12960_v16 = vpop.eup %12959  ;;  %v1764_v1 = vpop.permute.xlu1 %1763 }
 0x374   : > { %v1224_v39 = vmul.f32 %v12960_v16, %v13497_v42  ;;  %v12962_v43 = vpop.eup %12961 }
 0x375   : > { %v1231_v21 = vpack.c.bf16 %v1223_v30, %v1223_v30  ;;  %v1226_v42 = vmul.f32 %v12962_v43, %v13501_v45 }
 0x376   : > { %12269 = vmatmul.mubr.msk.bf16.vlgmr.msra.gmra.mxu0 %vm686_vm2, %v1230_v31  ;;  %v1232_v40 = vpack.c.bf16 %v1224_v39, %v1224_v39 }
 0x377   : > { %12275 = vmatmul.mubr.msk.bf16.vlgmr.msra.gmra.mxu1 %vm686_vm2, %v1231_v21  ;;  %12279 = vmatpush3.bf16.msra.mxu0 %v1435_v35  ;;  %v1234_v48 = vpack.c.bf16 %v1226_v42, %v1226_v42  ;;  %v1866_v3 = vpop.permute.xlu1 %1865 }
 0x378   : > { %12285 = vmatpush3.bf16.msra.mxu1 %v1483_v33  ;;  %12280 = vmatprep.mubr.msk.bf16.mxu0 %vm13185_vm1, %v16512_v13  ;;  %v1871_v9 = vsel %vm686_vm2, %v1866_v3, 0 }
 0x379   : > { %12290 = vmatprep.subr.bf16.mxu0 %v16512_v13  ;;  %12286 = vmatprep.mubr.msk.bf16.mxu1 %vm13185_vm1, %v16512_v13 }
 0x37a   : > { %12296 = vmatprep.subr.bf16.mxu1 %v16512_v13 }
 0x37b   : > { %v1864_v7 = vpop.permute.xlu1 %1863 }
 0x37e   : > { %12281 = vmatmul.mubr.msk.bf16.vlgmr.msra.gmra.mxu0 %vm686_vm2, %v1232_v40 }
 0x37f   : > { %12292 = vmatprep.mubr.msk.bf16.mxu0 %vm13185_vm1, %v16512_v13  ;;  %v1966_v10 = vpop.permute.xlu1 %1965 }
 0x380   : > { %v1971_v12 = vsel %vm686_vm2, %v1966_v10, 0 }
 0x383   : > { %v1964_v11 = vpop.permute.xlu1 %1963 }
 0x387   : > { %v2066_v14 = vpop.permute.xlu1 %2065 }
 0x388   : > { %v2071_v17 = vsel %vm686_vm2, %v2066_v14, 0 }
 0x38b   : > { %v2064_v18 = vpop.permute.xlu1 %2063 }
 0x399   : > { %v1205_v41 = vpop.xlane.xlu0 %1204 }
 0x39a   : > { %12963 = vrcp.f32 %v1205_v41 }
 0x39d   : > { %v1211_v44 = vpop.xlane.xlu0 %1210 }
 0x39e   : > { %12965 = vrcp.f32 %v1211_v44 }
 0x3a1   : > { %v1526_v46 = vpop.permute.xlu0 %1525 }
 0x3a2   : > { %v1531_v47 = vsel %vm1241_vm3, %v1526_v46, 0 }
 0x3a3   : > { %12291 = vmatpush3.bf16.msra.mxu0 %v1531_v47 }
 0x3a4   : > { %12642 = vmatprep.subr.msk.bf16.mxu0 %vm1241_vm3, %v665_v2 }
 0x3a5   : > { %v1716_v61 = vpop.permute.xlu0 %1715 }
 0x3a6   : > { %12293 = vmatmul.mubr.msk.bf16.vlgmr.msra.gmra.mxu0 %vm686_vm2, %v1234_v48 }
 0x3a7   : > { %v12964_v50 = vpop.eup %12963 }
 0x3a8   : > { %v1225_v53 = vmul.f32 %v12964_v50, %v13533_v52  ;;  %v1721_v52 = vsel %vm686_vm2, %v1716_v61, 0 }
 0x3a9   : > { %v1766_v5 = vpop.permute.xlu0 %1765 }
 0x3aa   : > { %v1233_v54 = vpack.c.bf16 %v1225_v53, %v1225_v53  ;;  %v1771_v6 = vsel %vm686_vm2, %v1766_v5, 0 }
 0x3ab   : > { %v12966_v55 = vpop.eup %12965 }
 0x3ac   : > { %12287 = vmatmul.mubr.msk.bf16.vlgmr.msra.gmra.mxu1 %vm686_vm2, %v1233_v54  ;;  %v1227_v45 = vmul.f32 %v12966_v55, %v13539_v60  ;;  %v1638_v60 = vsel %vm1241_vm3, %v665_v2, 0 }
 0x3ad   : > { %12297 = vmatpush3.bf16.msra.mxu1 %v1579_v56  ;;  %12298 = vmatprep.mubr.msk.bf16.mxu1 %vm13185_vm1, %v16512_v13  ;;  %v1816_v21 = vpop.permute.xlu0 %1815 }
 0x3ae   : > { %12312 = vmatprep.subr.bf16.mxu1 %v16512_v13  ;;  %v1235_v62 = vpack.c.bf16 %v1227_v45, %v1227_v45  ;;  %12303 = vmatpush3.bf16.msra.mxu0 %v1638_v60  ;;  %v1821_v41 = vsel %vm686_vm2, %v1816_v21, 0 }
 0x3af   : > { %12324 = vmatprep.subr.bf16.mxu0 %v16512_v13 }
 0x3b4   : > { %12299 = vmatmul.mubr.msk.bf16.vlgmr.msra.gmra.mxu1 %vm686_vm2, %v1235_v62 }
 0x3b5   : > { %12313 = vmatpush3.bf16.xpose.msra.mxu1 %v1721_v52  ;;  %12314 = vmatprep.mubr.msk.bf16.mxu1 %vm13185_vm1, %v16512_v13 }
 0x3b6   : > { %12318 = vmatprep.subr.bf16.mxu1 %v16512_v13 }
 0x3bc   : > { %12315 = vmatmul.mubr.msk.bf16.vlgmr.msra.gmra.mxu1 %vm686_vm2, %v1714_v59 }
 0x3bd   : > { %12319 = vmatpush3.bf16.xpose.msra.mxu1 %v1771_v6  ;;  %12320 = vmatprep.mubr.msk.bf16.mxu1 %vm13185_vm1, %v16512_v13 }
 0x3be   : > { %12330 = vmatprep.subr.bf16.mxu1 %v16512_v13 }
 0x3c4   : > { %12321 = vmatmul.mubr.msk.bf16.vlgmr.msra.gmra.mxu1 %vm686_vm2, %v1764_v1  ;;  %v1814_v1 = vpop.permute.xlu0 %1813 }
 0x3c5   : > { %12331 = vmatpush3.bf16.xpose.msra.mxu1 %v1871_v9  ;;  %12332 = vmatprep.mubr.msk.bf16.mxu1 %vm13185_vm1, %v16512_v13 }
 0x3c6   : > { %12342 = vmatprep.subr.bf16.mxu1 %v16512_v13 }
 0x3c8   : > { %v1916_v5 = vpop.permute.xlu0 %1915 }
 0x3c9   : > { %v1921_v14 = vsel %vm686_vm2, %v1916_v5, 0 }
 0x3cc   : > { %12333 = vmatmul.mubr.msk.bf16.vlgmr.msra.gmra.mxu1 %vm686_vm2, %v1864_v7 }
 0x3cd   : > { %12343 = vmatpush3.bf16.xpose.msra.mxu1 %v1971_v12  ;;  %12344 = vmatprep.mubr.msk.bf16.mxu1 %vm13185_vm1, %v16512_v13 }
 0x3ce   : > { %12354 = vmatprep.subr.bf16.mxu1 %v16512_v13 }
 0x3d4   : > { %12345 = vmatmul.mubr.msk.bf16.vlgmr.msra.gmra.mxu1 %vm686_vm2, %v1964_v11  ;;  %v1914_v11 = vpop.permute.xlu0 %1913 }
 0x3d5   : > { %12355 = vmatpush3.bf16.xpose.msra.mxu1 %v2071_v17  ;;  %12356 = vmatprep.mubr.msk.bf16.mxu1 %vm13185_vm1, %v16512_v13 }
 0x3d6   : > { %12366 = vmatprep.subr.bf16.mxu1 %v16512_v13 }
 0x3dc   : > { %12357 = vmatmul.mubr.msk.bf16.vlgmr.msra.gmra.mxu1 %vm686_vm2, %v2064_v18 }
 0x3dd   : > { %12368 = vmatprep.mubr.msk.bf16.mxu1 %vm13185_vm1, %v16512_v13 }
 0x42e   : > { %v1279_v19 = vpop.f32.mrf.mxu0 }
 0x42f   : > { %v1327_v22 = vpop.f32.mrf.mxu1 }
 0x430   : > { %v1621_v23 = vpack.c.bf16 %v1327_v22, %v1279_v19  ;;  %v12258_v25 = vpop.f32.mrf.mxu0 }
 0x431   : > { %v12264_v26 = vpop.f32.mrf.mxu1 }
 0x432   : > { %12304 = vmatprep.mubr.msk.bf16.mxu0 %vm686_vm2, %v1621_v23  ;;  %v1282_v0 = vpop.f32.mrf.mxu0  ;;  %v2016_v23 = vpop.permute.xlu0 %2015 }
 0x433   : > { %v1330_v30 = vpop.f32.mrf.mxu1 }
 0x434   : > { %v12259_v4 = vpop.f32.mrf.mxu0  ;;  %v2021_v30 = vsel %vm686_vm2, %v2016_v23, 0 }
 0x435   : > { %v12265_v31 = vpop.f32.mrf.mxu1 }
 0x436   : > { %v1375_v16 = vpop.f32.mrf.mxu0 }
 0x437   : > { %v1423_v35 = vpop.f32.mrf.mxu1 }
 0x438   : > { %v1622_v33 = vpack.c.bf16 %v1423_v35, %v1375_v16  ;;  %v12270_v39 = vpop.f32.mrf.mxu0  ;;  %v2014_v35 = vpop.permute.xlu0 %2013 }
 0x439   : > { %v12276_v40 = vpop.f32.mrf.mxu1 }
 0x43a   : > { %12305 = vmatmul.mubr.msk.bf16.vlgmr.msra.gmra.mxu0 %vm686_vm2, %v1622_v33  ;;  %v1378_v43 = vpop.f32.mrf.mxu0 }
 0x43b   : > { %12325 = vmatpush3.bf16.xpose.msra.mxu0 %v1821_v41  ;;  %v1426_v44 = vpop.f32.mrf.mxu1 }
 0x43c   : > { %v12271_v42 = vpop.f32.mrf.mxu0  ;;  %12336 = vmatprep.subr.bf16.mxu0 %v16512_v13 }
 0x43d   : > { %v12277_v46 = vpop.f32.mrf.mxu1 }
 0x43e   : > { %v1471_v47 = vpop.f32.mrf.mxu0 }
 0x440   : > { %v12282_v48 = vpop.f32.mrf.mxu0 }
 0x442   : > { %v1474_v50 = vpop.f32.mrf.mxu0 }
 0x444   : > { %v12283_v51 = vpop.f32.mrf.mxu0 }
 0x466   : > { %v1567_v53 = vpop.f32.mrf.mxu0 }
 0x468   : > { %v12294_v54 = vpop.f32.mrf.mxu0 }
 0x46a   : > { %v1570_v55 = vpop.f32.mrf.mxu0 }
 0x46c   : > { %v1519_v56 = vpop.f32.mrf.mxu1  ;;  %v12295_v59 = vpop.f32.mrf.mxu0 }
 0x46d   : > { %v1623_v45 = vpack.c.bf16 %v1519_v56, %v1471_v47 }
 0x46e   : > { %v12288_v61 = vpop.f32.mrf.mxu1 }
 0x46f   : > { %12308 = vmatprep.mubr.msk.bf16.mxu0 %vm686_vm2, %v1623_v45 }
 0x470   : > { %v1522_v62 = vpop.f32.mrf.mxu1 }
 0x472   : > { %v12289_v52 = vpop.f32.mrf.mxu1 }
 0x474   : > { %v1615_v2 = vpop.f32.mrf.mxu1 }
 0x475   : > { %v1624_v60 = vpack.c.bf16 %v1615_v2, %v1567_v53 }
 0x476   : > { %v12300_v3 = vpop.f32.mrf.mxu1 }
 0x477   : > { %12309 = vmatmul.mubr.msk.bf16.gmra.mxu0 %vm686_vm2, %v1624_v60 }
 0x478   : > { %v1618_v6 = vpop.f32.mrf.mxu1  ;;  %12326 = vmatprep.mubr.msk.bf16.mxu0 %vm13185_vm1, %v16512_v13 }
 0x47a   : > { %v12301_v7 = vpop.f32.mrf.mxu1 }
 0x47c   : > { %v1757_v9 = vpop.f32.mrf.mxu1 }
 0x47d   : > { %v2113_v10 = vmul.f32 0.35355338, %v1757_v9 }
 0x47e   : > { %v12316_v12 = vpop.f32.mrf.mxu1 }
 0x47f   : > { %12327 = vmatmul.mubr.msk.bf16.vlgmr.msra.gmra.mxu0 %vm686_vm2, %v1814_v1  ;;  %v2121_v17 = vadd.f32 %v13422_v58, %v2113_v10 }
 0x480   : > { %12337 = vmatpush3.bf16.xpose.msra.mxu0 %v1921_v14  ;;  %v1760_v18 = vpop.f32.mrf.mxu1  ;;  %12338 = vmatprep.mubr.msk.bf16.mxu0 %vm13185_vm1, %v16512_v13 }
 0x481   : > { %v2129_v19 = vsel %vm686_vm2, %v2121_v17, -inf  ;;  %12348 = vmatprep.subr.bf16.mxu0 %v16512_v13 }
 0x482   : > { %2130 = vmax.xlane.f32.xlu0 %v2129_v19  ;;  %v12317_v22 = vpop.f32.mrf.mxu1 }
 0x484   : > { %v1807_v25 = vpop.f32.mrf.mxu1 }
 0x485   : > { %v2114_v26 = vmul.f32 0.35355338, %v1807_v25 }
 0x486   : > { %v12322_v0 = vpop.f32.mrf.mxu1 }
 0x487   : > { %12339 = vmatmul.mubr.msk.bf16.vlgmr.msra.gmra.mxu0 %vm686_vm2, %v1914_v11  ;;  %v2122_v58 = vadd.f32 %v13436_v8, %v2114_v26 }
 0x488   : > { %12349 = vmatpush3.bf16.xpose.msra.mxu0 %v2021_v30  ;;  %v1810_v4 = vpop.f32.mrf.mxu1  ;;  %12350 = vmatprep.mubr.msk.bf16.mxu0 %vm13185_vm1, %v16512_v13 }
 0x489   : > { %v2132_v31 = vsel %vm686_vm2, %v2122_v58, -inf  ;;  %12360 = vmatprep.subr.bf16.mxu0 %v16512_v13 }
 0x48a   : > { %2133 = vmax.xlane.f32.xlu1 %v2132_v31  ;;  %v12323_v16 = vpop.f32.mrf.mxu1 }
 0x48c   : > { %v1907_v21 = vpop.f32.mrf.mxu1 }
 0x48d   : > { %v2116_v52 = vmul.f32 0.35355338, %v1907_v21 }
 0x48e   : > { %v12334_v33 = vpop.f32.mrf.mxu1 }
 0x48f   : > { %12351 = vmatmul.mubr.msk.bf16.vlgmr.msra.gmra.mxu0 %vm686_vm2, %v2014_v35  ;;  %v2124_v10 = vadd.f32 %v13447_v27, %v2116_v52 }
 0x490   : > { %v1910_v39 = vpop.f32.mrf.mxu1  ;;  %12362 = vmatprep.mubr.msk.bf16.mxu0 %vm13185_vm1, %v16512_v13 }
 0x491   : > { %v2138_v22 = vsel %vm686_vm2, %v2124_v10, -inf }
 0x492   : > { %v12335_v8 = vpop.f32.mrf.mxu1 }
 0x494   : > { %v2007_v40 = vpop.f32.mrf.mxu1 }
 0x495   : > { %v2118_v11 = vmul.f32 0.35355338, %v2007_v40 }
 0x496   : > { %v12346_v41 = vpop.f32.mrf.mxu1 }
 0x497   : > { %v2126_v25 = vadd.f32 %v13458_v49, %v2118_v11 }
 0x498   : > { %v2010_v43 = vpop.f32.mrf.mxu1 }
 0x499   : > { %v2144_v0 = vsel %vm686_vm2, %v2126_v25, -inf }
 0x49a   : > { %v12347_v44 = vpop.f32.mrf.mxu1 }
 0x49c   : > { %v2107_v42 = vpop.f32.mrf.mxu1 }
 0x49d   : > { %v2120_v23 = vmul.f32 0.35355338, %v2107_v42 }
 0x49e   : > { %v12358_v46 = vpop.f32.mrf.mxu1 }
 0x4a0   : > { %v2110_v47 = vpop.f32.mrf.mxu1 }
 0x4a2   : > { %v12359_v48 = vpop.f32.mrf.mxu1 }
 0x4fa   : > { %v13658_v50 = vpop.f32.mrf.mxu0 }
 0x4fc   : > { %v13660_v51 = vpop.f32.mrf.mxu0 }
 0x4fe   : > { %v13662_v53 = vpop.f32.mrf.mxu0 }
 0x500   : > { %v13664_v54 = vpop.f32.mrf.mxu0 }
 0x50b   : > { %v2131_v62 = vpop.xlane.xlu0 %2130 }
 0x50c   : > { %v2153_v60 = vsub.f32 %v2121_v17, %v2131_v62 }
 0x50e   : > { %v2161_v12 = vmul.f32 1.442695, %v2153_v60 }
 0x513   : > { %v2134_v56 = vpop.xlane.xlu1 %2133 }
 0x514   : > { %v2154_v61 = vsub.f32 %v2122_v58, %v2134_v56  ;;  %v2128_v58 = vadd.f32 %v13466_v57, %v2120_v23 }
 0x516   : > { %v2163_v3 = vmul.f32 1.442695, %v2154_v61  ;;  %v2150_v21 = vsel %vm686_vm2, %v2128_v58, -inf }
 0x518   : > { %12967 = vpow2.f32 %v2163_v3 }
 0x519   : > { %12969 = vpow2.f32 %v2161_v12 }
 0x525   : > { %v13684_v35 = vpop.eup %12967 }
 0x526   : > { %v2180_v39 = vsel %vm686_vm2, %v13684_v35, 0.0  ;;  %v12970_v57 = vpop.eup %12969 }
 0x527   : > { %v2177_v41 = vsel %vm686_vm2, %v12970_v57, 0.0 }
 0x537   : > { %v13666_v55 = vpop.f32.mrf.mxu0 }
 0x539   : > { %v13668_v59 = vpop.f32.mrf.mxu0 }
 0x53b   : > { %v13670_v45 = vpop.f32.mrf.mxu0 }
 0x53d   : > { %v13672_v1 = vpop.f32.mrf.mxu0 }
 0x53f   : > { %v1857_v2 = vpop.f32.mrf.mxu0 }
 0x540   : > { %v2115_v5 = vmul.f32 0.35355338, %v1857_v2 }
 0x541   : > { %v12328_v6 = vpop.f32.mrf.mxu0 }
 0x542   : > { %v2123_v7 = vadd.f32 %v13425_v63, %v2115_v5 }
 0x543   : > { %v1860_v9 = vpop.f32.mrf.mxu0 }
 0x544   : > { %v2135_v14 = vsel %vm686_vm2, %v2123_v7, -inf }
 0x545   : > { %2136 = vmax.xlane.f32.xlu0 %v2135_v14  ;;  %v12329_v18 = vpop.f32.mrf.mxu0 }
 0x547   : > { %v1957_v19 = vpop.f32.mrf.mxu0 }
 0x548   : > { %v2117_v17 = vmul.f32 0.35355338, %v1957_v19 }
 0x549   : > { %2139 = vmax.xlane.f32.xlu0 %v2138_v22  ;;  %v12340_v63 = vpop.f32.mrf.mxu0 }
 0x54a   : > { %v2125_v26 = vadd.f32 %v13441_v15, %v2117_v17 }
 0x54b   : > { %v1960_v27 = vpop.f32.mrf.mxu0 }
 0x54c   : > { %v2141_v30 = vsel %vm686_vm2, %v2125_v26, -inf }
 0x54d   : > { %2145 = vmax.xlane.f32.xlu0 %v2144_v0  ;;  %2142 = vmax.xlane.f32.xlu1 %v2141_v30  ;;  %v12341_v4 = vpop.f32.mrf.mxu0 }
 0x54f   : > { %v2057_v31 = vpop.f32.mrf.mxu0 }
 0x550   : > { %v2119_v16 = vmul.f32 0.35355338, %v2057_v31 }
 0x551   : > { %2151 = vmax.xlane.f32.xlu0 %v2150_v21  ;;  %v12352_v49 = vpop.f32.mrf.mxu0 }
 0x552   : > { %v2127_v15 = vadd.f32 %v13450_v29, %v2119_v16 }
 0x553   : > { %v2060_v33 = vpop.f32.mrf.mxu0 }
 0x554   : > { %v2147_v8 = vsel %vm686_vm2, %v2127_v15, -inf }
 0x555   : > { %2181 = vadd.xlane.f32.xlu0 %v2180_v39  ;;  %2148 = vmax.xlane.f32.xlu1 %v2147_v8  ;;  %v12353_v40 = vpop.f32.mrf.mxu0 }
 0x559   : > { %2178 = vadd.xlane.f32.xlu1 %v2177_v41 }
 0x56a   : > { %2225 = vrot.lane.b32.xlu1 %v13337_v24, %s16502_s23 }
 0x56e   : > { %2321 = vrot.lane.b32.xlu1 %v13335_v20, %s16502_s23 }
 0x572   : > { %2369 = vrot.lane.b32.xlu1 %v13341_v28, %s16502_s23 }
 0x576   : > { %2465 = vrot.lane.b32.xlu1 %v13349_v34, %s16502_s23 }
 0x5ce   : > { %v2137_v29 = vpop.xlane.xlu0 %2136 }
 0x5cf   : > { %v2155_v43 = vsub.f32 %v2123_v7, %v2137_v29 }
 0x5d1   : > { %v2165_v44 = vmul.f32 1.442695, %v2155_v43 }
 0x5d2   : > { %v2140_v42 = vpop.xlane.xlu0 %2139 }
 0x5d3   : > { %12971 = vpow2.f32 %v2165_v44  ;;  %v2156_v46 = vsub.f32 %v2124_v10, %v2140_v42 }
 0x5d5   : > { %v2167_v47 = vmul.f32 1.442695, %v2156_v46 }
 0x5d6   : > { %v2143_v48 = vpop.xlane.xlu1 %2142  ;;  %v2146_v56 = vpop.xlane.xlu0 %2145 }
 0x5d7   : > { %12973 = vpow2.f32 %v2167_v47  ;;  %v2157_v24 = vsub.f32 %v2125_v26, %v2143_v48  ;;  %v2158_v61 = vsub.f32 %v2126_v25, %v2146_v56 }
 0x5d9   : > { %v2169_v62 = vmul.f32 1.442695, %v2157_v24  ;;  %v2171_v20 = vmul.f32 1.442695, %v2158_v61 }
 0x5da   : > { %v2152_v52 = vpop.xlane.xlu0 %2151 }
 0x5db   : > { %12975 = vpow2.f32 %v2169_v62  ;;  %v2160_v28 = vsub.f32 %v2128_v58, %v2152_v52 }
 0x5dc   : > { %12977 = vpow2.f32 %v2171_v20 }
 0x5dd   : > { %v2175_v2 = vmul.f32 1.442695, %v2160_v28 }
 0x5de   : > { %v2149_v34 = vpop.xlane.xlu1 %2148  ;;  %v2182_v16 = vpop.xlane.xlu0 %2181 }
 0x5df   : > { %12979 = vpow2.f32 %v2175_v2  ;;  %v2159_v60 = vsub.f32 %v2127_v15, %v2149_v34 }
 0x5e0   : > { %v12972_v3 = vpop.eup %12971 }
 0x5e1   : > { %v2173_v5 = vmul.f32 1.442695, %v2159_v60  ;;  %v2183_v6 = vsel %vm686_vm2, %v12972_v3, 0.0 }
 0x5e2   : > { %v2179_v7 = vpop.xlane.xlu1 %2178  ;;  %2184 = vadd.xlane.f32.xlu1 %v2183_v6 }
 0x5e3   : > { %12981 = vpow2.f32 %v2173_v5 }
 0x5e4   : > { %v13700_v9 = vpop.eup %12973  ;;  %12983 = vrcp.f32 %v2179_v7 }
 0x5e5   : > { %v2186_v10 = vsel %vm686_vm2, %v13700_v9, 0.0  ;;  %12985 = vrcp.f32 %v2182_v16 }
 0x5e6   : > { %v2226_v11 = vpop.permute.xlu1 %2225  ;;  %2187 = vadd.xlane.f32.xlu0 %v2186_v10 }
 0x5e7   : > { %v2231_v12 = vsel %vm1241_vm3, %v2226_v11, 0 }
 0x5e8   : > { %v12976_v14 = vpop.eup %12975  ;;  %12361 = vmatpush3.bf16.msra.mxu0 %v2231_v12 }
 0x5e9   : > { %v13705_v18 = vpop.eup %12977  ;;  %v2189_v19 = vsel %vm686_vm2, %v12976_v14, 0.0  ;;  %12372 = vmatprep.subr.bf16.mxu0 %v16512_v13 }
 0x5ea   : > { %2190 = vadd.xlane.f32.xlu1 %v2189_v19  ;;  %v2192_v22 = vsel %vm686_vm2, %v13705_v18, 0.0  ;;  %v2322_v0 = vpop.permute.xlu1 %2321  ;;  %v666_v19 = vld [vmem:[%s16490_s5 + $0x4] sm:$0xf] }
 0x5eb   : > { %2193 = vadd.xlane.f32.xlu0 %v2192_v22  ;;  %v2327_v58 = vsel %vm1241_vm3, %v2322_v0, 0  ;;  %v2626_v22 = vsel %vm1241_vm3, %v666_v19, 0 }
 0x5ec   : > { %v13711_v23 = vpop.eup %12979 }
 0x5ed   : > { %v2198_v17 = vsel %vm686_vm2, %v13711_v23, 0.0 }
 0x5ee   : > { %v2370_v4 = vpop.permute.xlu1 %2369 }
 0x5ef   : > { %2199 = vadd.xlane.f32.xlu0 %v2198_v17  ;;  %v2375_v46 = vsel %vm1241_vm3, %v2370_v4, 0 }
 0x5f0   : > { %v13715_v25 = vpop.eup %12981 }
 0x5f1   : > { %v12984_v63 = vpop.eup %12983  ;;  %v2195_v26 = vsel %vm686_vm2, %v13715_v25, 0.0 }
 0x5f2   : > { %2196 = vadd.xlane.f32.xlu1 %v2195_v26  ;;  %v2209_v27 = vmul.f32 %v12984_v63, %v12970_v57  ;;  %v2466_v31 = vpop.permute.xlu1 %2465  ;;  %v12986_v33 = vpop.eup %12985 }
 0x5f3   : > { %v2210_v57 = vmul.f32 %v12986_v33, %v13684_v35  ;;  %v2471_v28 = vsel %vm1241_vm3, %v2466_v31, 0 }
 0x5f4   : > { %v2217_v30 = vpack.c.bf16 %v2209_v27, %v2209_v27 }
 0x5f5   : > { %v2218_v29 = vpack.c.bf16 %v2210_v57, %v2210_v57 }
 0x5f6   : > { %12363 = vmatmul.mubr.msk.bf16.vlgmr.msra.gmra.mxu0 %vm686_vm2, %v2217_v30 }
 0x5f7   : > { %12373 = vmatpush3.bf16.msra.mxu0 %v2327_v58  ;;  %12374 = vmatprep.mubr.msk.bf16.mxu0 %vm13185_vm1, %v16512_v13 }
 0x5f8   : > { %12384 = vmatprep.subr.bf16.mxu0 %v16512_v13 }
 0x603   : > { %2561 = vrot.lane.b32.xlu1 %v13355_v37, %s16502_s23 }
 0x605   : > { %2273 = vrot.lane.b32.xlu0 %v13345_v32, %s16502_s23 }
 0x609   : > { %2417 = vrot.lane.b32.xlu0 %v13351_v36, %s16502_s23 }
 0x60d   : > { %2513 = vrot.lane.b32.xlu0 %v13359_v38, %s16502_s23 }
 0x66b   : > { %v2185_v21 = vpop.xlane.xlu1 %2184 }
 0x66c   : > { %12987 = vrcp.f32 %v2185_v21 }
 0x66f   : > { %v2188_v49 = vpop.xlane.xlu0 %2187 }
 0x670   : > { %12989 = vrcp.f32 %v2188_v49 }
 0x673   : > { %v2191_v15 = vpop.xlane.xlu1 %2190 }
 0x674   : > { %12991 = vrcp.f32 %v2191_v15  ;;  %v2194_v37 = vpop.xlane.xlu0 %2193 }
 0x675   : > { %12993 = vrcp.f32 %v2194_v37 }
 0x678   : > { %v2200_v39 = vpop.xlane.xlu0 %2199 }
 0x679   : > { %v12988_v32 = vpop.eup %12987 }
 0x67a   : > { %v2211_v8 = vmul.f32 %v12988_v32, %v12972_v3 }
 0x67b   : > { %v2197_v36 = vpop.xlane.xlu1 %2196 }
 0x67c   : > { %12995 = vrcp.f32 %v2197_v36  ;;  %v2274_v38 = vpop.permute.xlu0 %2273  ;;  %v2219_v40 = vpack.c.bf16 %v2211_v8, %v2211_v8 }
 0x67d   : > { %v2279_v41 = vsel %vm1241_vm3, %v2274_v38, 0  ;;  %v12990_v43 = vpop.eup %12989  ;;  %12997 = vrcp.f32 %v2200_v39 }
 0x67e   : > { %12367 = vmatpush3.bf16.msra.mxu1 %v2279_v41  ;;  %12375 = vmatmul.mubr.msk.bf16.vlgmr.msra.gmra.mxu0 %vm686_vm2, %v2219_v40  ;;  %v2212_v48 = vmul.f32 %v12990_v43, %v13700_v9 }
 0x67f   : > { %12378 = vmatprep.subr.bf16.mxu1 %v16512_v13  ;;  %12386 = vmatprep.mubr.msk.bf16.mxu0 %vm13185_vm1, %v16512_v13  ;;  %v2562_v3 = vpop.permute.xlu1 %2561 }
 0x680   : > { %v2418_v44 = vpop.permute.xlu0 %2417  ;;  %v2220_v62 = vpack.c.bf16 %v2212_v48, %v2212_v48  ;;  %v2567_v7 = vsel %vm1241_vm3, %v2562_v3, 0  ;;  %v10669_v48 = vld [vmem:[%s16491_s6] ss:$0 sm:$0xff] }
 0x681   : > { %v12992_v42 = vpop.eup %12991  ;;  %v2423_v35 = vsel %vm1241_vm3, %v2418_v44, 0  ;;  %12369 = vmatmul.mubr.msk.bf16.vlgmr.msra.gmra.mxu1 %vm686_vm2, %v2218_v29 }
 0x682   : > { %12379 = vmatpush3.bf16.msra.mxu1 %v2375_v46  ;;  %12385 = vmatpush3.bf16.msra.mxu0 %v2423_v35  ;;  %v2213_v47 = vmul.f32 %v12992_v42, %v12976_v14  ;;  %v12994_v20 = vpop.eup %12993 }
 0x683   : > { %12396 = vmatprep.subr.bf16.mxu0 %v16512_v13  ;;  %12380 = vmatprep.mubr.msk.bf16.mxu1 %vm13185_vm1, %v16512_v13  ;;  %v2214_v34 = vmul.f32 %v12994_v20, %v13705_v18 }
 0x684   : > { %v2514_v56 = vpop.permute.xlu0 %2513  ;;  %v2221_v24 = vpack.c.bf16 %v2213_v47, %v2213_v47  ;;  %12390 = vmatprep.subr.bf16.mxu1 %v16512_v13 }
 0x685   : > { %v2519_v61 = vsel %vm1241_vm3, %v2514_v56, 0  ;;  %v2222_v5 = vpack.c.bf16 %v2214_v34, %v2214_v34  ;;  %v1706_v34 = vadd.f32 %v10669_v48, %v13664_v54 }
 0x686   : > { %12387 = vmatmul.mubr.msk.bf16.vlgmr.msra.gmra.mxu0 %vm686_vm2, %v2221_v24  ;;  %v1707_v24 = vadd.f32 %v13658_v50, %v10669_v48  ;;  %v13128_v50 = vld [vmem:[%s13309_s17 + $0x10] sm:$0xff] }
 0x687   : > { %12397 = vmatpush3.bf16.msra.mxu0 %v2519_v61  ;;  %12398 = vmatprep.mubr.msk.bf16.mxu0 %vm13185_vm1, %v16512_v13  ;;  %v1705_v61 = vadd.f32 %v10669_v48, %v13660_v51  ;;  %v13129_v51 = vld [vmem:[%s13309_s17 + $0x8] sm:$0xff] }
 0x688   : > { %12643 = vmatprep.subr.msk.bf16.mxu0 %vm1241_vm3, %v666_v19 }
 0x689   : > { %v12996_v52 = vpop.eup %12995  ;;  %12381 = vmatmul.mubr.msk.bf16.vlgmr.msra.gmra.mxu1 %vm686_vm2, %v2220_v62 }
 0x68a   : > { %12391 = vmatpush3.bf16.msra.mxu1 %v2471_v28  ;;  %v2215_v2 = vmul.f32 %v12996_v52, %v13715_v25  ;;  %12392 = vmatprep.mubr.msk.bf16.mxu1 %vm13185_vm1, %v16512_v13  ;;  %v12998_v6 = vpop.eup %12997 }
 0x68b   : > { %12402 = vmatprep.subr.bf16.mxu1 %v16512_v13  ;;  %v2216_v9 = vmul.f32 %v12998_v6, %v13711_v23 }
 0x68c   : > { %v2223_v60 = vpack.c.bf16 %v2215_v2, %v2215_v2  ;;  %v1708_v2 = vadd.f32 %v13662_v53, %v10669_v48  ;;  %v13130_v53 = vld [vmem:[%s13309_s17 + $0x18] sm:$0xff] }
 0x68d   : > { %v2224_v10 = vpack.c.bf16 %v2216_v9, %v2216_v9 }
 0x68e   : > { %12399 = vmatmul.mubr.msk.bf16.vlgmr.msra.gmra.mxu0 %vm686_vm2, %v2223_v60  ;;  %v13127_v60 = vld [vmem:[%s13309_s17] sm:$0xff] }
 0x68f   : > { %12409 = vmatpush3.bf16.msra.mxu0 %v2626_v22  ;;  %v1711_v22 = vadd.f32 %v13666_v55, %v10669_v48  ;;  %v13132_v55 = vld [vmem:[%s13309_s17 + $0x30] sm:$0xff] }
 0x691   : > { %12393 = vmatmul.mubr.msk.bf16.vlgmr.msra.gmra.mxu1 %vm686_vm2, %v2222_v5 }
 0x692   : > { %12403 = vmatpush3.bf16.msra.mxu1 %v2567_v7  ;;  %12404 = vmatprep.mubr.msk.bf16.mxu1 %vm13185_vm1, %v16512_v13 }
 0x699   : > { %12405 = vmatmul.mubr.msk.bf16.vlgmr.msra.gmra.mxu1 %vm686_vm2, %v2224_v10 }
 0x6b6   : > { %v2267_v11 = vpop.f32.mrf.mxu0 }
 0x6b8   : > { %v12364_v12 = vpop.f32.mrf.mxu0 }
 0x6ba   : > { %v2270_v14 = vpop.f32.mrf.mxu0 }
 0x6bc   : > { %v12365_v18 = vpop.f32.mrf.mxu0 }
 0x73e   : > { %v2363_v17 = vpop.f32.mrf.mxu0 }
 0x740   : > { %v12376_v25 = vpop.f32.mrf.mxu0 }
 0x741   : > { %v2315_v63 = vpop.f32.mrf.mxu1 }
 0x742   : > { %v2609_v23 = vpack.c.bf16 %v2315_v63, %v2267_v11  ;;  %v2366_v26 = vpop.f32.mrf.mxu0 }
 0x743   : > { %v12370_v27 = vpop.f32.mrf.mxu1 }
 0x744   : > { %12410 = vmatprep.mubr.msk.bf16.mxu0 %vm686_vm2, %v2609_v23  ;;  %v12377_v0 = vpop.f32.mrf.mxu0  ;;  %v1712_v27 = vadd.f32 %v13670_v45, %v10669_v48 }
 0x745   : > { %v2318_v30 = vpop.f32.mrf.mxu1  ;;  %v1710_v0 = vadd.f32 %v10669_v48, %v13672_v1 }
 0x746   : > { %v2459_v58 = vpop.f32.mrf.mxu0  ;;  %v13131_v30 = vld [vmem:[%s13309_s17 + $0x20] sm:$0xff] }
 0x747   : > { %v12371_v4 = vpop.f32.mrf.mxu1 }
 0x748   : > { %v12388_v31 = vpop.f32.mrf.mxu0 }
 0x749   : > { %v2411_v16 = vpop.f32.mrf.mxu1 }
 0x74a   : > { %v2610_v21 = vpack.c.bf16 %v2411_v16, %v2363_v17  ;;  %v2462_v49 = vpop.f32.mrf.mxu0  ;;  %v1709_v17 = vadd.f32 %v10669_v48, %v13668_v59  ;;  %v13133_v59 = vld [vmem:[%s13309_s17 + $0x28] sm:$0xff] }
 0x74b   : > { %v12382_v15 = vpop.f32.mrf.mxu1 }
 0x74c   : > { %12411 = vmatmul.mubr.msk.bf16.vlgmr.msra.gmra.mxu0 %vm686_vm2, %v2610_v21  ;;  %v12389_v37 = vpop.f32.mrf.mxu0 }
 0x74d   : > { %v2414_v33 = vpop.f32.mrf.mxu1 }
 0x74e   : > { %v2555_v39 = vpop.f32.mrf.mxu0 }
 0x74f   : > { %v12383_v32 = vpop.f32.mrf.mxu1 }
 0x750   : > { %v12400_v8 = vpop.f32.mrf.mxu0 }
 0x751   : > { %v2507_v36 = vpop.f32.mrf.mxu1 }
 0x752   : > { %v2611_v57 = vpack.c.bf16 %v2507_v36, %v2459_v58  ;;  %v2558_v38 = vpop.f32.mrf.mxu0 }
 0x753   : > { %v12394_v40 = vpop.f32.mrf.mxu1 }
 0x754   : > { %12414 = vmatprep.mubr.msk.bf16.mxu0 %vm686_vm2, %v2611_v57  ;;  %v12401_v41 = vpop.f32.mrf.mxu0 }
 0x755   : > { %v2510_v29 = vpop.f32.mrf.mxu1 }
 0x757   : > { %v12395_v43 = vpop.f32.mrf.mxu1 }
 0x759   : > { %v2603_v44 = vpop.f32.mrf.mxu1 }
 0x75a   : > { %v2612_v42 = vpack.c.bf16 %v2603_v44, %v2555_v39  ;;  %v13134_v39 = vld [vmem:[%s13309_s17 + $0x38] sm:$0xff]  ;;  %s10662_s17 = sshll.u32 %s16659_s19, 3 }
 0x75b   : > { %v12406_v46 = vpop.f32.mrf.mxu1  ;;  %s550_s30 = scalar_lea.vmem %s16500_s15, %s10662_s17 }
 0x75c   : > { %12415 = vmatmul.mubr.msk.bf16.gmra.mxu0 %vm686_vm2, %v2612_v42 }
 0x75d   : > { %v2606_v35 = vpop.f32.mrf.mxu1 }
 0x75f   : > { %v12407_v47 = vpop.f32.mrf.mxu1 }
 0x80c   : > { %v12412_v56 = vpop.f32.mrf.mxu0 }
 0x80d   : > { %v2695_v20 = vadd.f32 %v12412_v56, %v1707_v24 }
 0x80e   : > { %v2662_v62 = vpop.f32.mrf.mxu0 }
 0x80f   : > { %v2693_v52 = vadd.f32 %v2662_v62, %v1705_v61  ;;  %v2703_v10 = vadd.f32 %v13128_v50, %v2695_v20 }
 0x810   : > { %v12413_v28 = vpop.f32.mrf.mxu0 }
 0x811   : > { %v2701_v3 = vadd.f32 %v13127_v60, %v2693_v52  ;;  %v2696_v6 = vadd.f32 %v12413_v28, %v1708_v2  ;;  %v2717_v12 = vsel %vm587_vm0, %v2703_v10, 0.0 }
 0x812   : > { %v2665_v5 = vpop.f32.mrf.mxu0 }
 0x813   : > { %v2694_v7 = vadd.f32 %v2665_v5, %v1706_v34  ;;  %v2711_v9 = vsel %vm587_vm0, %v2701_v3, 0.0  ;;  %v2704_v18 = vadd.f32 %v13130_v53, %v2696_v6 }
 0x814   : > { %2712 = vadd.xlane.f32.xlu0 %v2711_v9 }
 0x815   : > { %v2702_v11 = vadd.f32 %v13129_v51, %v2694_v7  ;;  %v2720_v54 = vsel %vm587_vm0, %v2704_v18, 0.0 }
 0x817   : > { %v2714_v14 = vsel %vm587_vm0, %v2702_v11, 0.0 }
 0x818   : > { %2718 = vadd.xlane.f32.xlu0 %v2717_v12  ;;  %2715 = vadd.xlane.f32.xlu1 %v2714_v14 }
 0x81c   : > { %2721 = vadd.xlane.f32.xlu0 %v2720_v54  ;;  %v12416_v19 = vpop.f32.mrf.mxu0 }
 0x81d   : > { %v2699_v63 = vadd.f32 %v12416_v19, %v1711_v22  ;;  %v2844_v22 = vld [vmem:[#allocation2] sm:$0xff] }
 0x81e   : > { %v2678_v25 = vpop.f32.mrf.mxu0 }
 0x81f   : > { %v2697_v23 = vadd.f32 %v2678_v25, %v1709_v17  ;;  %v2707_v49 = vadd.f32 %v13132_v55, %v2699_v63  ;;  %v2852_v17 = vld [vmem:[#allocation2 + $0x40] sm:$0xff]  ;;  %v2845_v25 = vld [vmem:[#allocation2 + $0x8] sm:$0xff]  ;;  %v13854_v55 = vld [vmem:[#allocation2 + $0x58] sm:$0xff] }
 0x820   : > { %v12417_v26 = vpop.f32.mrf.mxu0  ;;  %v10722_v63 = vcombine.high %v2844_v22, %v2852_v17 }
 0x821   : > { %v2705_v58 = vadd.f32 %v13131_v30, %v2697_v23  ;;  %v2700_v31 = vadd.f32 %v12417_v26, %v1712_v27  ;;  %v2729_v37 = vsel %vm587_vm0, %v2707_v49, 0.0  ;;  %v2853_v23 = vld [vmem:[#allocation2 + $0x48] sm:$0xff]  ;;  %v10721_v26 = vcombine.low %v2844_v22, %v2852_v17 }
 0x822   : > { %v2681_v4 = vpop.f32.mrf.mxu0  ;;  %v10723_v27 = vcombine.low %v2845_v25, %v2853_v23  ;;  %3318 = vmatprep.subr.bf16.mxu1 %v10722_v63  ;;  %v16510_v30 = vmov 0   ;;  %v2849_v22 = vld [vmem:[#allocation2 + $0x28] sm:$0xff] }
 0x823   : > { %v2698_v16 = vadd.f32 %v2681_v4, %v1710_v0  ;;  %v2723_v21 = vsel %vm587_vm0, %v2705_v58, 0.0  ;;  %v2708_v45 = vadd.f32 %v13134_v39, %v2700_v31  ;;  %v10724_v0 = vcombine.high %v2845_v25, %v2853_v23  ;;  %3319 = vmatpush1.bf16.msra.mxu1 %v10721_v26  ;;  %3336 = vmatprep.mubr.bf16.mxu1 %v16510_v30  ;;  %v13846_v4 = vld [vmem:[#allocation2 + $0x50] sm:$0xff]  ;;  %v13848_v31 = vld [vmem:[#allocation2 + $0x18] sm:$0xff]  ;;  %v2857_v17 = vld [vmem:[#allocation2 + $0x68] sm:$0xff] }
 0x824   : > { %2724 = vadd.xlane.f32.xlu1 %v2723_v21  ;;  %3409 = vmatprep.mubr.bf16.mxu0 %v16510_v30  ;;  %v10732_v23 = vcombine.high %v2849_v22, %v2857_v17 }
 0x825   : > { %v2706_v15 = vadd.f32 %v13133_v59, %v2698_v16  ;;  %v2732_v1 = vsel %vm587_vm0, %v2708_v45, 0.0  ;;  %3391 = vmatprep.subr.bf16.mxu0 %v10724_v0  ;;  %12675 = vset.pattern.permute.xlu1 %v16510_v30  ;;  %v10728_v59 = vcombine.high %v13848_v31, %v13854_v55 }
 0x826   : > { %3392 = vmatpush1.bf16.msra.mxu0 %v10723_v27  ;;  %12676 = vset.pattern.permute.xlu0 %v16510_v30 }
 0x827   : > { %v2726_v33 = vsel %vm587_vm0, %v2706_v15, 0.0  ;;  %3537 = vmatprep.subr.bf16.mxu0 %v10728_v59 }
 0x828   : > { %2730 = vadd.xlane.f32.xlu1 %v2729_v37  ;;  %2727 = vadd.xlane.f32.xlu0 %v2726_v33 }
 0x82c   : > { %2733 = vadd.xlane.f32.xlu0 %v2732_v1 }
 0x89d   : > { %v2713_v32 = vpop.xlane.xlu0 %2712 }
 0x89e   : > { %v2736_v8 = vmul.f32 0.0625, %v2713_v32 }
 0x8a0   : > { %v13800_v36 = vsub.f32 %v2701_v3, %v2736_v8 }
 0x8a1   : > { %v2719_v57 = vpop.xlane.xlu0 %2718  ;;  %v2716_v38 = vpop.xlane.xlu1 %2715 }
 0x8a2   : > { %v2738_v40 = vmul.f32 0.0625, %v2719_v57  ;;  %v2737_v41 = vmul.f32 0.0625, %v2716_v38  ;;  %v2752_v29 = vmul.f32 %v13800_v36, %v13800_v36 }
 0x8a4   : > { %v13804_v43 = vsub.f32 %v2703_v10, %v2738_v40  ;;  %v13806_v44 = vsub.f32 %v2702_v11, %v2737_v41  ;;  %v2760_v42 = vsel %vm587_vm0, %v2752_v29, 0.0 }
 0x8a5   : > { %v2722_v46 = vpop.xlane.xlu0 %2721  ;;  %2761 = vadd.xlane.f32.xlu1 %v2760_v42 }
 0x8a6   : > { %v2739_v35 = vmul.f32 0.0625, %v2722_v46  ;;  %v2754_v47 = vmul.f32 %v13804_v43, %v13804_v43  ;;  %v2753_v48 = vmul.f32 %v13806_v44, %v13806_v44 }
 0x8a8   : > { %v13813_v56 = vsub.f32 %v2704_v18, %v2739_v35  ;;  %v2766_v24 = vsel %vm587_vm0, %v2754_v47, 0.0  ;;  %v2763_v61 = vsel %vm587_vm0, %v2753_v48, 0.0 }
 0x8a9   : > { %2767 = vadd.xlane.f32.xlu1 %v2766_v24  ;;  %2764 = vadd.xlane.f32.xlu0 %v2763_v61  ;;  %v10718_v61 = vld [vmem:[%s16492_s7] ss:$0 sm:$0xff] }
 0x8aa   : > { %v2755_v62 = vmul.f32 %v13813_v56, %v13813_v56 }
 0x8ac   : > { %v2769_v20 = vsel %vm587_vm0, %v2755_v62, 0.0 }
 0x8ad   : > { %v2725_v52 = vpop.xlane.xlu1 %2724  ;;  %2770 = vadd.xlane.f32.xlu0 %v2769_v20 }
 0x8ae   : > { %v2740_v28 = vmul.f32 0.0625, %v2725_v52 }
 0x8b0   : > { %v13820_v2 = vsub.f32 %v2705_v58, %v2740_v28  ;;  %v13844_v58 = vld [vmem:[#allocation2 + $0x10] sm:$0xff] }
 0x8b1   : > { %v2731_v34 = vpop.xlane.xlu1 %2730  ;;  %v2728_v60 = vpop.xlane.xlu0 %2727  ;;  %v10725_v16 = vcombine.low %v13844_v58, %v13846_v4  ;;  %v10726_v21 = vcombine.high %v13844_v58, %v13846_v4 }
 0x8b2   : > { %v2742_v3 = vmul.f32 0.0625, %v2731_v34  ;;  %v2741_v5 = vmul.f32 0.0625, %v2728_v60  ;;  %v2756_v6 = vmul.f32 %v13820_v2, %v13820_v2 }
 0x8b3   : > { %3464 = vmatprep.subr.bf16.mxu1 %v10726_v21 }
 0x8b4   : > { %v13824_v7 = vsub.f32 %v2707_v49, %v2742_v3  ;;  %v13826_v9 = vsub.f32 %v2706_v15, %v2741_v5  ;;  %v2772_v50 = vsel %vm587_vm0, %v2756_v6, 0.0  ;;  %v10727_v49 = vcombine.low %v13848_v31, %v13854_v55 }
 0x8b5   : > { %2773 = vadd.xlane.f32.xlu1 %v2772_v50  ;;  %v2734_v10 = vpop.xlane.xlu0 %2733 }
 0x8b6   : > { %v2743_v51 = vmul.f32 0.0625, %v2734_v10  ;;  %v2758_v11 = vmul.f32 %v13824_v7, %v13824_v7  ;;  %v2757_v12 = vmul.f32 %v13826_v9, %v13826_v9 }
 0x8b8   : > { %v13833_v14 = vsub.f32 %v2708_v45, %v2743_v51  ;;  %v2778_v53 = vsel %vm587_vm0, %v2758_v11, 0.0  ;;  %v2775_v18 = vsel %vm587_vm0, %v2757_v12, 0.0 }
 0x8b9   : > { %2779 = vadd.xlane.f32.xlu1 %v2778_v53  ;;  %2776 = vadd.xlane.f32.xlu0 %v2775_v18  ;;  %v13869_v53 = vld [vmem:[#allocation2 + $0x20] sm:$0xff] }
 0x8ba   : > { %v2759_v54 = vmul.f32 %v13833_v14, %v13833_v14 }
 0x8bc   : > { %v2781_v19 = vsel %vm587_vm0, %v2759_v54, 0.0 }
 0x8bd   : > { %2782 = vadd.xlane.f32.xlu0 %v2781_v19  ;;  %v2856_v19 = vld [vmem:[#allocation2 + $0x60] sm:$0xff] }
 0x92e   : > { %v2762_v15 = vpop.xlane.xlu1 %2761 }
 0x92f   : > { %v2784_v37 = vmul.f32 0.0625, %v2762_v15 }
 0x931   : > { %v2792_v33 = vadd.f32 1e-05, %v2784_v37 }
 0x932   : > { %v2768_v39 = vpop.xlane.xlu1 %2767  ;;  %v2765_v45 = vpop.xlane.xlu0 %2764 }
 0x933   : > { %12999 = vrsqrt.f32 %v2792_v33  ;;  %v2786_v1 = vmul.f32 0.0625, %v2768_v39  ;;  %v2785_v32 = vmul.f32 0.0625, %v2765_v45 }
 0x935   : > { %v2793_v8 = vadd.f32 1e-05, %v2785_v32  ;;  %v2794_v57 = vadd.f32 1e-05, %v2786_v1  ;;  %v2850_v32 = vld [vmem:[#allocation2 + $0x30] sm:$0xff] }
 0x936   : > { %v2771_v38 = vpop.xlane.xlu0 %2770 }
 0x937   : > { %v2787_v40 = vmul.f32 0.0625, %v2771_v38  ;;  %13001 = vrsqrt.f32 %v2793_v8  ;;  %v2858_v8 = vld [vmem:[#allocation2 + $0x70] sm:$0xff]  ;;  %v2859_v38 = vld [vmem:[#allocation2 + $0x78] sm:$0xff] }
 0x938   : > { %13003 = vrsqrt.f32 %v2794_v57  ;;  %v2851_v57 = vld [vmem:[#allocation2 + $0x38] sm:$0xff] }
 0x939   : > { %v2795_v41 = vadd.f32 1e-05, %v2787_v40  ;;  %v10729_v40 = vcombine.low %v13869_v53, %v2856_v19 }
 0x93b   : > { %13005 = vrsqrt.f32 %v2795_v41  ;;  %v10731_v41 = vcombine.low %v2849_v22, %v2857_v17  ;;  %v12700_v22 = vld [vmem:[%s16496_s11 + $0x10] sm:$0xff]  }
 0x93c   : > { %v12701_v17 = vld [vmem:[%s16496_s11 + $0x90] sm:$0xff]  }
 0x93e   : > { %v2774_v29 = vpop.xlane.xlu1 %2773 }
 0x93f   : > { %v2788_v42 = vmul.f32 0.0625, %v2774_v29  ;;  %v10734_v29 = vcombine.high %v2850_v32, %v2858_v8 }
 0x940   : > { %v13000_v46 = vpop.eup %12999 }
 0x941   : > { %v2796_v35 = vadd.f32 1e-05, %v2788_v42  ;;  %v2808_v47 = vmul.f32 %v13000_v46, %v13800_v36  ;;  %v10719_v36 = vld [vmem:[%s16493_s8] ss:$0 sm:$0xff]  ;;  %v10736_v42 = vcombine.high %v2851_v57, %v2859_v38  ;;  %v10733_v46 = vcombine.low %v2850_v32, %v2858_v8 }
 0x942   : > { %v2780_v48 = vpop.xlane.xlu1 %2779  ;;  %v2777_v24 = vpop.xlane.xlu0 %2776 }
 0x943   : > { %13007 = vrsqrt.f32 %v2796_v35  ;;  %v2790_v62 = vmul.f32 0.0625, %v2780_v48  ;;  %v2789_v20 = vmul.f32 0.0625, %v2777_v24  ;;  %v2822_v34 = vmul.f32 %v10718_v61, %v2808_v47  ;;  %v12678_v47 = vld [vmem:[%s16496_s11 + $0x78] sm:$0xff]  }
 0x944   : > { %v13002_v52 = vpop.eup %13001  ;;  %v10735_v35 = vcombine.low %v2851_v57, %v2859_v38  ;;  %v12679_v48 = vld [vmem:[%s16496_s11 + $0xf8] sm:$0xff]  }
 0x945   : > { %v2797_v28 = vadd.f32 1e-05, %v2789_v20  ;;  %v2809_v60 = vmul.f32 %v13002_v52, %v13806_v44  ;;  %v2798_v3 = vadd.f32 1e-05, %v2790_v62  ;;  %v13004_v6 = vpop.eup %13003  ;;  %v13871_v18 = vadd.f32 %v10719_v36, %v2822_v34  ;;  %v12680_v24 = vld [vmem:[%s16496_s11 + $0x38] sm:$0xff]   ;;  %v12682_v62 = vld [vmem:[%s16496_s11 + $0x70] sm:$0xff]  }
 0x946   : > { %v2783_v5 = vpop.xlane.xlu0 %2782  ;;  %v2810_v44 = vmul.f32 %v13004_v6, %v13804_v43  ;;  %v12683_v20 = vld [vmem:[%s16496_s11 + $0xf0] sm:$0xff]   ;;  %v12686_v34 = vld [vmem:[%s16496_s11 + $0x68] sm:$0xff]   ;;  %v12690_v6 = vld [vmem:[%s16496_s11 + $0x60] sm:$0xff]  }
 0x947   : > { %v2791_v50 = vmul.f32 0.0625, %v2783_v5  ;;  %v2823_v51 = vmul.f32 %v10718_v61, %v2809_v60  ;;  %13009 = vrsqrt.f32 %v2797_v28  ;;  %v12684_v52 = vld [vmem:[%s16496_s11 + $0x30] sm:$0xff]   ;;  %v12687_v60 = vld [vmem:[%s16496_s11 + $0xe8] sm:$0xff]  }
 0x948   : > { %v13006_v10 = vpop.eup %13005  ;;  %13011 = vrsqrt.f32 %v2798_v3  ;;  %v2824_v26 = vmul.f32 %v10718_v61, %v2810_v44  ;;  %v12685_v28 = vld [vmem:[%s16496_s11 + $0xb0] sm:$0xff]   ;;  %v12688_v3 = vld [vmem:[%s16496_s11 + $0x28] sm:$0xff]  }
 0x949   : > { %v2811_v11 = vmul.f32 %v13006_v10, %v13813_v56  ;;  %v2799_v12 = vadd.f32 1e-05, %v2791_v50  ;;  %v13874_v54 = vadd.f32 %v10719_v36, %v2823_v51  ;;  %v10730_v56 = vcombine.high %v13869_v53, %v2856_v19  ;;  %v12689_v5 = vld [vmem:[%s16496_s11 + $0xa8] sm:$0xff]   ;;  %v12692_v50 = vld [vmem:[%s16496_s11 + $0x20] sm:$0xff]   ;;  %v12694_v51 = vld [vmem:[%s16496_s11 + $0x58] sm:$0xff]  }
 0x94a   : > { %v13895_v0 = vadd.f32 %v10719_v36, %v2824_v26  ;;  %v12693_v10 = vld [vmem:[%s16496_s11 + $0xa0] sm:$0xff]   ;;  %v12697_v53 = vld [vmem:[%s16496_s11 + $0x98] sm:$0xff]   ;;  %v12698_v44 = vld [vmem:[%s16496_s11 + $0x50] sm:$0xff]  }
 0x94b   : > { %16545 = vst [vmem:[#allocation5_spill] sm:$0xff] %v13874_v54  ;;  %13013 = vrsqrt.f32 %v2799_v12  ;;  %v13878_v25 = vpack.c.bf16 %v13874_v54, %v13871_v18  ;;  %v2825_v63 = vmul.f32 %v10718_v61, %v2811_v11  ;;  %v12695_v11 = vld [vmem:[%s16496_s11 + $0xd8] sm:$0xff]   ;;  %v12699_v19 = vld [vmem:[%s16496_s11 + $0xd0] sm:$0xff]   ;;  %v12706_v26 = vld [vmem:[%s16496_s11 + $0x40] sm:$0xff]  }
 0x94c   : > { %16547 = vst [vmem:[#allocation7_spill] sm:$0xff] %v13895_v0  ;;  %v12696_v12 = vld [vmem:[%s16496_s11 + $0x18] sm:$0xff]  }
 0x94d   : > { %10737 = vmatmul.mubr.msk.bf16.vlgmr.msra.gmra.mxu1 %vm587_vm0, %v13878_v25  ;;  %10741 = vmatmul.mubr.msk.bf16.vlgmr.msra.gmra.mxu0 %vm587_vm0, %v13878_v25  ;;  %v13887_v27 = vadd.f32 %v10719_v36, %v2825_v63  ;;  %v12703_v63 = vld [vmem:[%s16496_s11 + $0xc8] sm:$0xff]  }
 0x94e   : > { %3346 = vmatprep.mubr.bf16.mxu1 %v16510_v30  ;;  %3419 = vmatprep.mubr.bf16.mxu0 %v16510_v30 }
 0x94f   : > { %16546 = vst [vmem:[#allocation6_spill] sm:$0xff] %v13887_v27  ;;  %3465 = vmatpush1.bf16.msra.mxu1 %v10725_v16  ;;  %3538 = vmatpush1.bf16.msra.mxu0 %v10727_v49  ;;  %v13900_v59 = vpack.c.bf16 %v13887_v27, %v13895_v0 }
 0x950   : > { %v13008_v43 = vpop.eup %13007  ;;  %3610 = vmatprep.subr.bf16.mxu1 %v10730_v56  ;;  %3683 = vmatprep.subr.bf16.mxu0 %v10732_v23  ;;  %v12704_v56 = vld [vmem:[%s16496_s11 + $0x8] sm:$0xff]  }
 0x951   : > { %v2812_v21 = vmul.f32 %v13008_v43, %v13820_v2  ;;  %v12705_v23 = vld [vmem:[%s16496_s11 + $0x88] sm:$0xff]   ;;  %v12707_v43 = vld [vmem:[%s16496_s11 + $0xc0] sm:$0xff]  }
 0x953   : > { %v2826_v37 = vmul.f32 %v10718_v61, %v2812_v21  ;;  %v12708_v21 = vld [vmem:[%s16496_s11] sm:$0xff]  }
 0x954   : > { %v13010_v15 = vpop.eup %13009 }
 0x955   : > { %v2813_v33 = vmul.f32 %v13010_v15, %v13826_v9  ;;  %10738 = vmatmul.mubr.msk.bf16.gmra.mxu1 %vm587_vm0, %v13900_v59  ;;  %10742 = vmatmul.mubr.msk.bf16.gmra.mxu0 %vm587_vm0, %v13900_v59  ;;  %v13012_v58 = vpop.eup %13011  ;;  %v13910_v16 = vadd.f32 %v10719_v36, %v2826_v37  ;;  %v12710_v15 = vld [vmem:[%s16496_s11 + $0x178] sm:$0xff]  }
 0x956   : > { %3356 = vmatprep.mubr.bf16.mxu1 %v16510_v30  ;;  %3429 = vmatprep.mubr.bf16.mxu0 %v16510_v30  ;;  %v2814_v55 = vmul.f32 %v13012_v58, %v13824_v7  ;;  %v12711_v37 = vld [vmem:[%s16496_s11 + $0x1f8] sm:$0xff]  }
 0x957   : > { %v2827_v4 = vmul.f32 %v10718_v61, %v2813_v33  ;;  %16548 = vst [vmem:[#allocation8_spill] sm:$0xff] %v13910_v16  ;;  %v3132_v33 = vlaneseq }
 0x958   : > { %v13014_v2 = vpop.eup %13013  ;;  %v2828_v45 = vmul.f32 %v10718_v61, %v2814_v55 }
 0x959   : > { %v2815_v31 = vmul.f32 %v13014_v2, %v13833_v14  ;;  %v13913_v9 = vadd.f32 %v10719_v36, %v2827_v4  ;;  %v14112_v58 = vshrl.u32 %v3132_v33, 7 }
 0x95a   : > { %v13927_v7 = vadd.f32 %v10719_v36, %v2828_v45 }
 0x95b   : > { %16549 = vst [vmem:[#allocation9_spill] sm:$0xff] %v13913_v9  ;;  %v13917_v49 = vpack.c.bf16 %v13913_v9, %v13910_v16  ;;  %v2829_v39 = vmul.f32 %v10718_v61, %v2815_v31  ;;  %v12681_v61 = vld [vmem:[%s16496_s11 + $0xb8] sm:$0xff]   ;;  %v14115_v2 = vsub.s32 1, %v14112_v58  ;;  %v14118_v4 = vsub.s32 3, %v14112_v58 }
 0x95c   : > { %16551 = vst [vmem:[#allocation11_spill] sm:$0xff] %v13927_v7  ;;  %v14121_v31 = vsub.s32 0, %v14112_v58  ;;  %v14124_v55 = vsub.s32 2, %v14112_v58 }
 0x95d   : > { %10739 = vmatmul.mubr.msk.bf16.gmra.mxu1 %vm587_vm0, %v13917_v49  ;;  %10743 = vmatmul.mubr.msk.bf16.gmra.mxu0 %vm587_vm0, %v13917_v49  ;;  %v13925_v14 = vadd.f32 %v10719_v36, %v2829_v39  ;;  %v12691_v36 = vld [vmem:[%s16496_s11 + $0xe0] sm:$0xff]   ;;  %16552 = vst [vmem:[#allocation12_spill] sm:$0xff] %v14115_v2  ;;  %16553 = vst [vmem:[#allocation13_spill] sm:$0xff] %v14118_v4 }
 0x95e   : > { %3366 = vmatprep.mubr.bf16.mxu1 %v16510_v30  ;;  %3439 = vmatprep.mubr.bf16.mxu0 %v16510_v30  ;;  %16554 = vst [vmem:[#allocation14_spill] sm:$0xff] %v14121_v31  ;;  %16555 = vst [vmem:[#allocation15_spill] sm:$0xff] %v14124_v55 }
 0x95f   : > { %16550 = vst [vmem:[#allocation10_spill] sm:$0xff] %v13925_v14  ;;  %v13931_v1 = vpack.c.bf16 %v13925_v14, %v13927_v7 }
 0x965   : > { %10740 = vmatmul.mubr.msk.bf16.gmra.mxu1 %vm587_vm0, %v13931_v1  ;;  %10744 = vmatmul.mubr.msk.bf16.gmra.mxu0 %vm587_vm0, %v13931_v1 }
 0x966   : > { %3482 = vmatprep.mubr.bf16.mxu1 %v16510_v30  ;;  %3555 = vmatprep.mubr.bf16.mxu0 %v16510_v30 }
 0x96d   : > { %10745 = vmatmul.mubr.msk.bf16.vlgmr.msra.gmra.mxu1 %vm587_vm0, %v13878_v25  ;;  %10749 = vmatmul.mubr.msk.bf16.vlgmr.msra.gmra.mxu0 %vm587_vm0, %v13878_v25 }
 0x96e   : > { %3492 = vmatprep.mubr.bf16.mxu1 %v16510_v30  ;;  %3565 = vmatprep.mubr.bf16.mxu0 %v16510_v30 }
 0x96f   : > { %3611 = vmatpush1.bf16.msra.mxu1 %v10729_v40  ;;  %3684 = vmatpush1.bf16.msra.mxu0 %v10731_v41 }
 0x970   : > { %3756 = vmatprep.subr.bf16.mxu1 %v10734_v29  ;;  %3829 = vmatprep.subr.bf16.mxu0 %v10736_v42 }
 0x975   : > { %10746 = vmatmul.mubr.msk.bf16.gmra.mxu1 %vm587_vm0, %v13900_v59  ;;  %10750 = vmatmul.mubr.msk.bf16.gmra.mxu0 %vm587_vm0, %v13900_v59 }
 0x976   : > { %3502 = vmatprep.mubr.bf16.mxu1 %v16510_v30  ;;  %3575 = vmatprep.mubr.bf16.mxu0 %v16510_v30 }
 0x97d   : > { %10747 = vmatmul.mubr.msk.bf16.gmra.mxu1 %vm587_vm0, %v13917_v49  ;;  %10751 = vmatmul.mubr.msk.bf16.gmra.mxu0 %vm587_vm0, %v13917_v49 }
 0x97e   : > { %3512 = vmatprep.mubr.bf16.mxu1 %v16510_v30  ;;  %3585 = vmatprep.mubr.bf16.mxu0 %v16510_v30 }
 0x985   : > { %10748 = vmatmul.mubr.msk.bf16.gmra.mxu1 %vm587_vm0, %v13931_v1  ;;  %10752 = vmatmul.mubr.msk.bf16.gmra.mxu0 %vm587_vm0, %v13931_v1 }
 0x986   : > { %3628 = vmatprep.mubr.bf16.mxu1 %v16510_v30  ;;  %3701 = vmatprep.mubr.bf16.mxu0 %v16510_v30 }
 0x98d   : > { %10753 = vmatmul.mubr.msk.bf16.vlgmr.msra.gmra.mxu1 %vm587_vm0, %v13878_v25  ;;  %10757 = vmatmul.mubr.msk.bf16.vlgmr.msra.gmra.mxu0 %vm587_vm0, %v13878_v25 }
 0x98e   : > { %3638 = vmatprep.mubr.bf16.mxu1 %v16510_v30  ;;  %3711 = vmatprep.mubr.bf16.mxu0 %v16510_v30 }
 0x98f   : > { %3757 = vmatpush1.bf16.msra.mxu1 %v10733_v46  ;;  %3830 = vmatpush1.bf16.msra.mxu0 %v10735_v35 }
 0x990   : > { %11477 = vmatprep.subr.bf16.mxu1 %v12678_v47  ;;  %11517 = vmatprep.subr.bf16.mxu0 %v12679_v48 }
 0x995   : > { %10754 = vmatmul.mubr.msk.bf16.gmra.mxu1 %vm587_vm0, %v13900_v59  ;;  %10758 = vmatmul.mubr.msk.bf16.gmra.mxu0 %vm587_vm0, %v13900_v59 }
 0x996   : > { %3648 = vmatprep.mubr.bf16.mxu1 %v16510_v30  ;;  %3721 = vmatprep.mubr.bf16.mxu0 %v16510_v30 }
 0x99d   : > { %10755 = vmatmul.mubr.msk.bf16.gmra.mxu1 %vm587_vm0, %v13917_v49  ;;  %10759 = vmatmul.mubr.msk.bf16.gmra.mxu0 %vm587_vm0, %v13917_v49 }
 0x99e   : > { %3658 = vmatprep.mubr.bf16.mxu1 %v16510_v30  ;;  %3731 = vmatprep.mubr.bf16.mxu0 %v16510_v30 }
 0x9a5   : > { %10756 = vmatmul.mubr.msk.bf16.gmra.mxu1 %vm587_vm0, %v13931_v1  ;;  %10760 = vmatmul.mubr.msk.bf16.gmra.mxu0 %vm587_vm0, %v13931_v1 }
 0x9a6   : > { %3774 = vmatprep.mubr.bf16.mxu1 %v16510_v30  ;;  %3847 = vmatprep.mubr.bf16.mxu0 %v16510_v30 }
 0x9ad   : > { %10761 = vmatmul.mubr.msk.bf16.vlgmr.msra.gmra.mxu1 %vm587_vm0, %v13878_v25  ;;  %10765 = vmatmul.mubr.msk.bf16.vlgmr.msra.gmra.mxu0 %vm587_vm0, %v13878_v25  ;;  %v12702_v25 = vld [vmem:[%s16496_s11 + $0x48] sm:$0xff]  }
 0x9ae   : > { %3784 = vmatprep.mubr.bf16.mxu1 %v16510_v30  ;;  %3857 = vmatprep.mubr.bf16.mxu0 %v16510_v30 }
 0x9af   : > { %11478 = vmatpush3.bf16.msra.mxu1 %v12680_v24  ;;  %11518 = vmatpush3.bf16.msra.mxu0 %v12681_v61 }
 0x9b0   : > { %11479 = vmatprep.subr.bf16.mxu1 %v12682_v62  ;;  %11519 = vmatprep.subr.bf16.mxu0 %v12683_v20 }
 0x9b3   : > { %11480 = vmatpush3.bf16.msra.mxu1 %v12684_v52  ;;  %11520 = vmatpush3.bf16.msra.mxu0 %v12685_v28 }
 0x9b4   : > { %11481 = vmatprep.subr.bf16.mxu1 %v12686_v34  ;;  %11521 = vmatprep.subr.bf16.mxu0 %v12687_v60 }
 0x9b5   : > { %10762 = vmatmul.mubr.msk.bf16.gmra.mxu1 %vm587_vm0, %v13900_v59  ;;  %10766 = vmatmul.mubr.msk.bf16.gmra.mxu0 %vm587_vm0, %v13900_v59  ;;  %v12709_v59 = vld [vmem:[%s16496_s11 + $0x80] sm:$0xff]  }
 0x9b6   : > { %3794 = vmatprep.mubr.bf16.mxu1 %v16510_v30  ;;  %3867 = vmatprep.mubr.bf16.mxu0 %v16510_v30 }
 0x9b7   : > { %11482 = vmatpush3.bf16.msra.mxu1 %v12688_v3  ;;  %11522 = vmatpush3.bf16.msra.mxu0 %v12689_v5 }
 0x9b8   : > { %11483 = vmatprep.subr.bf16.mxu1 %v12690_v6  ;;  %11523 = vmatprep.subr.bf16.mxu0 %v12691_v36 }
 0x9bb   : > { %11484 = vmatpush3.bf16.msra.mxu1 %v12692_v50  ;;  %11524 = vmatpush3.bf16.msra.mxu0 %v12693_v10 }
 0x9bc   : > { %11485 = vmatprep.subr.bf16.mxu1 %v12694_v51  ;;  %11525 = vmatprep.subr.bf16.mxu0 %v12695_v11 }
 0x9bd   : > { %10763 = vmatmul.mubr.msk.bf16.gmra.mxu1 %vm587_vm0, %v13917_v49  ;;  %10767 = vmatmul.mubr.msk.bf16.gmra.mxu0 %vm587_vm0, %v13917_v49  ;;  %v14129_v49 = vld [vmem:[%s16495_s10] sm:$0xff] }
 0x9be   : > { %3804 = vmatprep.mubr.bf16.mxu1 %v16510_v30  ;;  %3877 = vmatprep.mubr.bf16.mxu0 %v16510_v30  ;;  %v14137_v32 = vrot.slane %v14129_v49, %v14118_v4  ;;  %v14141_v8 = vrot.slane %v14129_v49, %v14121_v31  ;;  %v14145_v57 = vrot.slane %v14129_v49, %v14124_v55 }
 0x9bf   : > { %11486 = vmatpush3.bf16.msra.mxu1 %v12696_v12  ;;  %11526 = vmatpush3.bf16.msra.mxu0 %v12697_v53 }
 0x9c0   : > { %11487 = vmatprep.subr.bf16.mxu1 %v12698_v44  ;;  %11527 = vmatprep.subr.bf16.mxu0 %v12699_v19  ;;  %v12712_v19 = vld [vmem:[%s16496_s11 + $0x138] sm:$0xff]  }
 0x9c3   : > { %11488 = vmatpush3.bf16.msra.mxu1 %v12700_v22  ;;  %11528 = vmatpush3.bf16.msra.mxu0 %v12701_v17  ;;  %v12713_v22 = vld [vmem:[%s16496_s11 + $0x1b8] sm:$0xff]  }
 0x9c4   : > { %11489 = vmatprep.subr.bf16.mxu1 %v12702_v25  ;;  %11529 = vmatprep.subr.bf16.mxu0 %v12703_v63 }
 0x9c5   : > { %10764 = vmatmul.mubr.msk.bf16.gmra.mxu1 %vm587_vm0, %v13931_v1  ;;  %10768 = vmatmul.mubr.msk.bf16.gmra.mxu0 %vm587_vm0, %v13931_v1  ;;  %v14133_v1 = vrot.slane %v14129_v49, %v14115_v2 }
 0x9c7   : > { %11490 = vmatpush3.bf16.msra.mxu1 %v12704_v56  ;;  %11530 = vmatpush3.bf16.msra.mxu0 %v12705_v23  ;;  %v12714_v23 = vld [vmem:[%s16496_s11 + $0x170] sm:$0xff]  }
 0x9c8   : > { %11491 = vmatprep.subr.bf16.mxu1 %v12706_v26  ;;  %11531 = vmatprep.subr.bf16.mxu0 %v12707_v43  ;;  %v12715_v26 = vld [vmem:[%s16496_s11 + $0x1f0] sm:$0xff]  }
 0x9cb   : > { %11492 = vmatpush3.bf16.msra.mxu1 %v12708_v21  ;;  %11532 = vmatpush3.bf16.msra.mxu0 %v12709_v59 }
 0x9cc   : > { %11557 = vmatprep.subr.bf16.mxu1 %v12710_v15  ;;  %11597 = vmatprep.subr.bf16.mxu0 %v12711_v37 }
 0xa0d   : > { %v3338_v39 = vpop.f32.mrf.mxu1  ;;  %v3411_v45 = vpop.f32.mrf.mxu0 }
 0xa0e   : > { %v3339_v48 = vadd.f32 %v3338_v39, %v14141_v8  ;;  %v3412_v24 = vadd.f32 %v3411_v45, %v14145_v57 }
 0xa0f   : > { %v3340_v38 = vpop.f32.mrf.mxu1  ;;  %v3413_v40 = vpop.f32.mrf.mxu0 }
 0xa10   : > { %v3341_v42 = vadd.f32 %v3340_v38, %v14133_v1  ;;  %v3414_v46 = vadd.f32 %v3413_v40, %v14137_v32  ;;  %v3888_v10 = vmax.f32 %v3339_v48, 0.0  ;;  %v3890_v51 = vmax.f32 %v3412_v24, 0.0  ;;  %v12718_v48 = vld [vmem:[%s16496_s11 + $0x168] sm:$0xff]  }
 0xa11   : > { %v3342_v41 = vpop.f32.mrf.mxu1  ;;  %v3415_v29 = vpop.f32.mrf.mxu0  ;;  %v12719_v24 = vld [vmem:[%s16496_s11 + $0x1e8] sm:$0xff]  }
 0xa12   : > { %v3343_v35 = vadd.f32 %v3342_v41, %v14141_v8  ;;  %v3416_v47 = vadd.f32 %v3415_v29, %v14145_v57  ;;  %v3889_v5 = vmax.f32 %v3341_v42, 0.0  ;;  %v3891_v6 = vmax.f32 %v3414_v46, 0.0  ;;  %v12716_v41 = vld [vmem:[%s16496_s11 + $0x130] sm:$0xff]  }
 0xa13   : > { %v3344_v61 = vpop.f32.mrf.mxu1  ;;  %v3417_v62 = vpop.f32.mrf.mxu0  ;;  %v12717_v29 = vld [vmem:[%s16496_s11 + $0x1b0] sm:$0xff]  }
 0xa14   : > { %v3345_v20 = vadd.f32 %v3344_v61, %v14133_v1  ;;  %v3418_v52 = vadd.f32 %v3417_v62, %v14137_v32  ;;  %v3904_v28 = vmax.f32 %v3343_v35, 0.0  ;;  %v3906_v34 = vmax.f32 %v3416_v47, 0.0 }
 0xa15   : > { %v3348_v60 = vpop.f32.mrf.mxu1  ;;  %v3421_v3 = vpop.f32.mrf.mxu0 }
 0xa16   : > { %v3905_v36 = vmax.f32 %v3345_v20, 0.0  ;;  %v3907_v50 = vmax.f32 %v3418_v52, 0.0  ;;  %v4016_v17 = vpack.c.bf16 %v3904_v28, %v3888_v10  ;;  %v4018_v25 = vpack.c.bf16 %v3906_v34, %v3890_v51 }
 0xa17   : > { %v3350_v11 = vpop.f32.mrf.mxu1  ;;  %v3423_v12 = vpop.f32.mrf.mxu0  ;;  %v3349_v15 = vadd.f32 %v3348_v60, %v14141_v8  ;;  %v3422_v37 = vadd.f32 %v3421_v3, %v14145_v57 }
 0xa18   : > { %v4017_v53 = vpack.c.bf16 %v3905_v36, %v3889_v5  ;;  %v4019_v44 = vpack.c.bf16 %v3907_v50, %v3891_v6  ;;  %v3351_v43 = vadd.f32 %v3350_v11, %v14133_v1  ;;  %v3424_v33 = vadd.f32 %v3423_v12, %v14137_v32  ;;  %v12720_v6 = vld [vmem:[%s16496_s11 + $0x128] sm:$0xff]  }
 0xa19   : > { %v3352_v63 = vpop.f32.mrf.mxu1  ;;  %v3425_v56 = vpop.f32.mrf.mxu0  ;;  %v3920_v52 = vmax.f32 %v3349_v15, 0.0  ;;  %v3922_v28 = vmax.f32 %v3422_v37, 0.0  ;;  %v12721_v12 = vld [vmem:[%s16496_s11 + $0x1a8] sm:$0xff]  }
 0xa1a   : > { %v3353_v21 = vadd.f32 %v3352_v63, %v14141_v8  ;;  %v3426_v59 = vadd.f32 %v3425_v56, %v14145_v57  ;;  %4880 = vmatprep.mubr.bf16.mxu1 %v4017_v53  ;;  %4945 = vmatprep.mubr.bf16.mxu0 %v4019_v44  ;;  %v3921_v61 = vmax.f32 %v3351_v43, 0.0  ;;  %v3923_v34 = vmax.f32 %v3424_v33, 0.0  ;;  %v12722_v53 = vld [vmem:[%s16496_s11 + $0x160] sm:$0xff]  }
 0xa1b   : > { %v3354_v39 = vpop.f32.mrf.mxu1  ;;  %v3427_v45 = vpop.f32.mrf.mxu0  ;;  %4881 = vmatmul.mubr.bf16.vlgmr.msra.gmra.mxu1 %v4016_v17  ;;  %4946 = vmatmul.mubr.bf16.vlgmr.msra.gmra.mxu0 %v4018_v25  ;;  %v12723_v25 = vld [vmem:[%s16496_s11 + $0x1e0] sm:$0xff]  }
 0xa1c   : > { %v3355_v38 = vadd.f32 %v3354_v39, %v14133_v1  ;;  %v3428_v40 = vadd.f32 %v3427_v45, %v14137_v32  ;;  %11558 = vmatpush3.bf16.msra.mxu1 %v12712_v19  ;;  %11598 = vmatpush3.bf16.msra.mxu0 %v12713_v22  ;;  %v3936_v42 = vmax.f32 %v3353_v21, 0.0  ;;  %v3938_v46 = vmax.f32 %v3426_v59, 0.0  ;;  %v12724_v59 = vld [vmem:[%s16496_s11 + $0x120] sm:$0xff]  }
 0xa1d   : > { %v3358_v35 = vpop.f32.mrf.mxu1  ;;  %v3431_v47 = vpop.f32.mrf.mxu0  ;;  %11559 = vmatprep.subr.bf16.mxu1 %v12714_v23  ;;  %11599 = vmatprep.subr.bf16.mxu0 %v12715_v26  ;;  %v12725_v45 = vld [vmem:[%s16496_s11 + $0x1a0] sm:$0xff]  }
 0xa1e   : > { %v3937_v62 = vmax.f32 %v3355_v38, 0.0  ;;  %v3939_v20 = vmax.f32 %v3428_v40, 0.0  ;;  %v4032_v36 = vpack.c.bf16 %v3936_v42, %v3920_v52  ;;  %v4034_v50 = vpack.c.bf16 %v3938_v46, %v3922_v28  ;;  %v12726_v38 = vld [vmem:[%s16496_s11 + $0x158] sm:$0xff]  }
 0xa1f   : > { %v3360_v60 = vpop.f32.mrf.mxu1  ;;  %v3433_v3 = vpop.f32.mrf.mxu0  ;;  %v3359_v63 = vadd.f32 %v3358_v35, %v14141_v8  ;;  %v3432_v56 = vadd.f32 %v3431_v47, %v14145_v57  ;;  %v14223_v52 = vsub.s32 5, %v14112_v58 }
 0xa20   : > { %11560 = vmatpush3.bf16.msra.mxu1 %v12716_v41  ;;  %11600 = vmatpush3.bf16.msra.mxu0 %v12717_v29  ;;  %v4033_v5 = vpack.c.bf16 %v3937_v62, %v3921_v61  ;;  %v4035_v11 = vpack.c.bf16 %v3939_v20, %v3923_v34  ;;  %v3361_v44 = vadd.f32 %v3360_v60, %v14133_v1  ;;  %v12728_v20 = vld [vmem:[%s16496_s11 + $0x118] sm:$0xff]  }
 0xa21   : > { %v3362_v10 = vpop.f32.mrf.mxu1  ;;  %v3435_v51 = vpop.f32.mrf.mxu0  ;;  %11561 = vmatprep.subr.bf16.mxu1 %v12718_v48  ;;  %11601 = vmatprep.subr.bf16.mxu0 %v12719_v24  ;;  %v3434_v19 = vadd.f32 %v3433_v3, %v14137_v32  ;;  %v3952_v46 = vmax.f32 %v3359_v63, 0.0  ;;  %v3954_v35 = vmax.f32 %v3432_v56, 0.0  ;;  %v12727_v24 = vld [vmem:[%s16496_s11 + $0x1d8] sm:$0xff]   ;;  %16556 = vst [vmem:[#allocation16_spill] sm:$0xff] %v14223_v52 }
 0xa22   : > { %v3363_v22 = vadd.f32 %v3362_v10, %v14141_v8  ;;  %v3436_v17 = vadd.f32 %v3435_v51, %v14145_v57  ;;  %4888 = vmatprep.mubr.bf16.mxu1 %v4033_v5  ;;  %4953 = vmatprep.mubr.bf16.mxu0 %v4035_v11  ;;  %v3953_v40 = vmax.f32 %v3361_v44, 0.0 }
 0xa23   : > { %v3364_v23 = vpop.f32.mrf.mxu1  ;;  %v3437_v26 = vpop.f32.mrf.mxu0  ;;  %4889 = vmatmul.mubr.bf16.gmra.mxu1 %v4032_v36  ;;  %4954 = vmatmul.mubr.bf16.gmra.mxu0 %v4034_v50  ;;  %v3955_v41 = vmax.f32 %v3434_v19, 0.0  ;;  %v14230_v36 = vsub.s32 7, %v14112_v58  ;;  %v12730_v50 = vld [vmem:[%s16496_s11 + $0x150] sm:$0xff]  }
 0xa24   : > { %v3365_v43 = vadd.f32 %v3364_v23, %v14133_v1  ;;  %v3438_v21 = vadd.f32 %v3437_v26, %v14137_v32  ;;  %11562 = vmatpush3.bf16.msra.mxu1 %v12720_v6  ;;  %v3968_v15 = vmax.f32 %v3363_v22, 0.0  ;;  %v3970_v37 = vmax.f32 %v3436_v17, 0.0  ;;  %11602 = vmatpush3.bf16.msra.mxu0 %v12721_v12  ;;  %v12729_v6 = vld [vmem:[%s16496_s11 + $0x198] sm:$0xff]   ;;  %v12731_v12 = vld [vmem:[%s16496_s11 + $0x1d0] sm:$0xff]  }
 0xa25   : > { %v3368_v33 = vpop.f32.mrf.mxu1  ;;  %v3441_v39 = vpop.f32.mrf.mxu0  ;;  %11563 = vmatprep.subr.bf16.mxu1 %v12722_v53  ;;  %11603 = vmatprep.subr.bf16.mxu0 %v12723_v25  ;;  %16557 = vst [vmem:[#allocation17_spill] sm:$0xff] %v14230_v36  ;;  %v14244_v17 = vsub.s32 4, %v14112_v58  ;;  %v14247_v25 = vsub.s32 6, %v14112_v58  ;;  %v14260_v58 = vrot.slane %v14129_v49, %v14230_v36 }
 0xa26   : > { %v3969_v29 = vmax.f32 %v3365_v43, 0.0  ;;  %v3971_v42 = vmax.f32 %v3438_v21, 0.0  ;;  %v4048_v28 = vpack.c.bf16 %v3968_v15, %v3952_v46  ;;  %v4050_v34 = vpack.c.bf16 %v3970_v37, %v3954_v35 }
 0xa27   : > { %v3370_v47 = vpop.f32.mrf.mxu1  ;;  %v3443_v48 = vpop.f32.mrf.mxu0  ;;  %v3369_v53 = vadd.f32 %v3368_v33, %v14141_v8  ;;  %v3442_v44 = vadd.f32 %v3441_v39, %v14145_v57  ;;  %16558 = vst [vmem:[#allocation18_spill] sm:$0xff] %v14244_v17  ;;  %16559 = vst [vmem:[#allocation19_spill] sm:$0xff] %v14247_v25  ;;  %v14256_v21 = vrot.slane %v14129_v49, %v14223_v52 }
 0xa28   : > { %11564 = vmatpush3.bf16.msra.mxu1 %v12724_v59  ;;  %v4049_v61 = vpack.c.bf16 %v3969_v29, %v3953_v40  ;;  %v4051_v62 = vpack.c.bf16 %v3971_v42, %v3955_v41  ;;  %v3371_v60 = vadd.f32 %v3370_v47, %v14133_v1  ;;  %11604 = vmatpush3.bf16.msra.mxu0 %v12725_v45  ;;  %v12735_v42 = vld [vmem:[%s16496_s11 + $0x1c8] sm:$0xff]  }
 0xa29   : > { %v3372_v3 = vpop.f32.mrf.mxu1  ;;  %v3445_v5 = vpop.f32.mrf.mxu0  ;;  %11565 = vmatprep.subr.bf16.mxu1 %v12726_v38  ;;  %v3444_v10 = vadd.f32 %v3443_v48, %v14137_v32  ;;  %11605 = vmatprep.subr.bf16.mxu0 %v12727_v24  ;;  %v3984_v39 = vmax.f32 %v3369_v53, 0.0  ;;  %v3986_v45 = vmax.f32 %v3442_v44, 0.0  ;;  %v14270_v38 = vrot.slane %v14129_v49, %v14244_v17  ;;  %v12736_v47 = vld [vmem:[%s16496_s11 + $0x108] sm:$0xff]   ;;  %v12740_v53 = vld [vmem:[%s16496_s11 + $0x100] sm:$0xff]  }
 0xa2a   : > { %v3373_v51 = vadd.f32 %v3372_v3, %v14141_v8  ;;  %v3446_v11 = vadd.f32 %v3445_v5, %v14145_v57  ;;  %4896 = vmatprep.mubr.bf16.mxu1 %v4049_v61  ;;  %4961 = vmatprep.mubr.bf16.mxu0 %v4051_v62  ;;  %v12732_v8 = vld [vmem:[%s16496_s11 + $0x110] sm:$0xff]   ;;  %v3985_v59 = vmax.f32 %v3371_v60, 0.0  ;;  %v14274_v40 = vrot.slane %v14129_v49, %v14247_v25  ;;  %v12739_v5 = vld [vmem:[%s16496_s11 + $0x1c0] sm:$0xff]  }
 0xa2b   : > { %v3374_v19 = vpop.f32.mrf.mxu1  ;;  %v3447_v22 = vpop.f32.mrf.mxu0  ;;  %4897 = vmatmul.mubr.bf16.gmra.mxu1 %v4048_v28  ;;  %4962 = vmatmul.mubr.bf16.gmra.mxu0 %v4050_v34  ;;  %v3987_v15 = vmax.f32 %v3444_v10, 0.0  ;;  %v12738_v28 = vld [vmem:[%s16496_s11 + $0x140] sm:$0xff]  }
 0xa2c   : > { %v3375_v63 = vadd.f32 %v3374_v19, %v14133_v1  ;;  %v3448_v56 = vadd.f32 %v3447_v22, %v14137_v32  ;;  %11566 = vmatpush3.bf16.msra.mxu1 %v12728_v20  ;;  %v4000_v57 = vmax.f32 %v3373_v51, 0.0  ;;  %v4002_v23 = vmax.f32 %v3446_v11, 0.0  ;;  %11606 = vmatpush3.bf16.msra.mxu0 %v12729_v6  ;;  %v12733_v1 = vld [vmem:[%s16496_s11 + $0x190] sm:$0xff]   ;;  %v12734_v32 = vld [vmem:[%s16496_s11 + $0x148] sm:$0xff]  }
 0xa2d   : > { %v3484_v26 = vpop.f32.mrf.mxu1  ;;  %v3557_v43 = vpop.f32.mrf.mxu0  ;;  %11567 = vmatprep.subr.bf16.mxu1 %v12730_v50  ;;  %11607 = vmatprep.subr.bf16.mxu0 %v12731_v12  ;;  %v12737_v20 = vld [vmem:[%s16496_s11 + $0x188] sm:$0xff]  }
 0xa2e   : > { %v4001_v37 = vmax.f32 %v3375_v63, 0.0  ;;  %v4003_v33 = vmax.f32 %v3448_v56, 0.0  ;;  %v4064_v48 = vpack.c.bf16 %v4000_v57, %v3984_v39  ;;  %v4066_v24 = vpack.c.bf16 %v4002_v23, %v3986_v45  ;;  %v12741_v56 = vld [vmem:[%s16496_s11 + $0x180] sm:$0xff]   ;;  %v12744_v45 = vld [vmem:[%s16496_s11 + $0x238] sm:$0xff]  }
 0xa2f   : > { %v3486_v41 = vpop.f32.mrf.mxu1  ;;  %v3559_v29 = vpop.f32.mrf.mxu0  ;;  %v3485_v6 = vadd.f32 %v3484_v26, %v14270_v38  ;;  %v3558_v50 = vadd.f32 %v3557_v43, %v14274_v40 }
 0xa30   : > { %11568 = vmatpush3.bf16.msra.mxu1 %v12732_v8  ;;  %v4065_v46 = vpack.c.bf16 %v4001_v37, %v3985_v59  ;;  %v4067_v35 = vpack.c.bf16 %v4003_v33, %v3987_v15  ;;  %v3487_v61 = vadd.f32 %v3486_v41, %v14256_v21  ;;  %11608 = vmatpush3.bf16.msra.mxu0 %v12733_v1  ;;  %v12742_v8 = vld [vmem:[%s16496_s11 + $0x278] sm:$0xff]  }
 0xa31   : > { %v3488_v49 = vpop.f32.mrf.mxu1  ;;  %v3561_v62 = vpop.f32.mrf.mxu0  ;;  %11569 = vmatprep.subr.bf16.mxu1 %v12734_v32  ;;  %v3560_v34 = vadd.f32 %v3559_v29, %v14260_v58  ;;  %11609 = vmatprep.subr.bf16.mxu0 %v12735_v42  ;;  %v3892_v1 = vmax.f32 %v3485_v6, 0.0  ;;  %v3894_v32 = vmax.f32 %v3558_v50, 0.0  ;;  %v12743_v37 = vld [vmem:[%s16496_s11 + $0x2f8] sm:$0xff]   ;;  %v12748_v6 = vld [vmem:[%s16496_s11 + $0x230] sm:$0xff]  }
 0xa32   : > { %v3489_v60 = vadd.f32 %v3488_v49, %v14270_v38  ;;  %v3562_v3 = vadd.f32 %v3561_v62, %v14274_v40  ;;  %4904 = vmatprep.mubr.bf16.mxu1 %v4065_v46  ;;  %4969 = vmatprep.mubr.bf16.mxu0 %v4067_v35  ;;  %v3893_v57 = vmax.f32 %v3487_v61, 0.0  ;;  %v12747_v62 = vld [vmem:[%s16496_s11 + $0x2f0] sm:$0xff]  }
 0xa33   : > { %v3490_v10 = vpop.f32.mrf.mxu1  ;;  %v3563_v51 = vpop.f32.mrf.mxu0  ;;  %4905 = vmatmul.mubr.bf16.gmra.mxu1 %v4064_v48  ;;  %4970 = vmatmul.mubr.bf16.gmra.mxu0 %v4066_v24  ;;  %v3895_v23 = vmax.f32 %v3560_v34, 0.0  ;;  %v12746_v48 = vld [vmem:[%s16496_s11 + $0x270] sm:$0xff]  }
 0xa34   : > { %v3491_v11 = vadd.f32 %v3490_v10, %v14256_v21  ;;  %v3564_v12 = vadd.f32 %v3563_v51, %v14260_v58  ;;  %11570 = vmatpush3.bf16.msra.mxu1 %v12736_v47  ;;  %v3908_v44 = vmax.f32 %v3489_v60, 0.0  ;;  %v3910_v19 = vmax.f32 %v3562_v3, 0.0  ;;  %11610 = vmatpush3.bf16.msra.mxu0 %v12737_v20  ;;  %v12745_v47 = vld [vmem:[%s16496_s11 + $0x2b8] sm:$0xff]  }
 0xa35   : > { %v3494_v22 = vpop.f32.mrf.mxu1  ;;  %v3567_v63 = vpop.f32.mrf.mxu0  ;;  %11571 = vmatprep.subr.bf16.mxu1 %v12738_v28  ;;  %11611 = vmatprep.subr.bf16.mxu0 %v12739_v5 }
 0xa36   : > { %v3909_v26 = vmax.f32 %v3491_v11, 0.0  ;;  %v3911_v43 = vmax.f32 %v3564_v12, 0.0  ;;  %v4020_v41 = vpack.c.bf16 %v3908_v44, %v3892_v1  ;;  %v4022_v29 = vpack.c.bf16 %v3910_v19, %v3894_v32  ;;  %v12749_v12 = vld [vmem:[%s16496_s11 + $0x2b0] sm:$0xff]   ;;  %v12752_v32 = vld [vmem:[%s16496_s11 + $0x228] sm:$0xff]  }
 0xa37   : > { %v3496_v59 = vpop.f32.mrf.mxu1  ;;  %v3569_v15 = vpop.f32.mrf.mxu0  ;;  %v3495_v20 = vadd.f32 %v3494_v22, %v14270_v38  ;;  %v3568_v28 = vadd.f32 %v3567_v63, %v14274_v40 }
 0xa38   : > { %11572 = vmatpush3.bf16.msra.mxu1 %v12740_v53  ;;  %v4021_v33 = vpack.c.bf16 %v3909_v26, %v3893_v57  ;;  %v4023_v39 = vpack.c.bf16 %v3911_v43, %v3895_v23  ;;  %v3497_v42 = vadd.f32 %v3496_v59, %v14256_v21  ;;  %11612 = vmatpush3.bf16.msra.mxu0 %v12741_v56  ;;  %v12750_v53 = vld [vmem:[%s16496_s11 + $0x268] sm:$0xff]  }
 0xa39   : > { %v3498_v46 = vpop.f32.mrf.mxu1  ;;  %v3571_v35 = vpop.f32.mrf.mxu0  ;;  %11637 = vmatprep.subr.bf16.mxu1 %v12742_v8  ;;  %v3570_v24 = vadd.f32 %v3569_v15, %v14260_v58  ;;  %11677 = vmatprep.subr.bf16.mxu0 %v12743_v37  ;;  %v3924_v56 = vmax.f32 %v3495_v20, 0.0  ;;  %v3926_v8 = vmax.f32 %v3568_v28, 0.0  ;;  %v12751_v26 = vld [vmem:[%s16496_s11 + $0x2e8] sm:$0xff]   ;;  %v12756_v20 = vld [vmem:[%s16496_s11 + $0x220] sm:$0xff]  }
 0xa3a   : > { %v3499_v61 = vadd.f32 %v3498_v46, %v14270_v38  ;;  %v3572_v49 = vadd.f32 %v3571_v35, %v14274_v40  ;;  %5010 = vmatprep.mubr.bf16.mxu1 %v4021_v33  ;;  %5075 = vmatprep.mubr.bf16.mxu0 %v4023_v39  ;;  %v3925_v44 = vmax.f32 %v3497_v42, 0.0  ;;  %v12755_v35 = vld [vmem:[%s16496_s11 + $0x2e0] sm:$0xff]  }
 0xa3b   : > { %v3500_v34 = vpop.f32.mrf.mxu1  ;;  %v3573_v60 = vpop.f32.mrf.mxu0  ;;  %5011 = vmatmul.mubr.bf16.vlgmr.msra.gmra.mxu1 %v4020_v41  ;;  %5076 = vmatmul.mubr.bf16.vlgmr.msra.gmra.mxu0 %v4022_v29  ;;  %v3927_v19 = vmax.f32 %v3570_v24, 0.0  ;;  %v12754_v41 = vld [vmem:[%s16496_s11 + $0x260] sm:$0xff]  }
 0xa3c   : > { %v3501_v3 = vadd.f32 %v3500_v34, %v14256_v21  ;;  %v3574_v5 = vadd.f32 %v3573_v60, %v14260_v58  ;;  %11638 = vmatpush3.bf16.msra.mxu1 %v12744_v45  ;;  %v3940_v50 = vmax.f32 %v3499_v61, 0.0  ;;  %v3942_v10 = vmax.f32 %v3572_v49, 0.0  ;;  %11678 = vmatpush3.bf16.msra.mxu0 %v12745_v47  ;;  %v12753_v45 = vld [vmem:[%s16496_s11 + $0x2a8] sm:$0xff]  }
 0xa3d   : > { %v3504_v51 = vpop.f32.mrf.mxu1  ;;  %v3577_v11 = vpop.f32.mrf.mxu0  ;;  %11639 = vmatprep.subr.bf16.mxu1 %v12746_v48  ;;  %11679 = vmatprep.subr.bf16.mxu0 %v12747_v62 }
 0xa3e   : > { %v3941_v22 = vmax.f32 %v3501_v3, 0.0  ;;  %v3943_v63 = vmax.f32 %v3574_v5, 0.0  ;;  %v4036_v59 = vpack.c.bf16 %v3940_v50, %v3924_v56  ;;  %v4038_v15 = vpack.c.bf16 %v3942_v10, %v3926_v8  ;;  %v12757_v5 = vld [vmem:[%s16496_s11 + $0x2a0] sm:$0xff]   ;;  %v12760_v8 = vld [vmem:[%s16496_s11 + $0x218] sm:$0xff]  }
 0xa3f   : > { %v3506_v57 = vpop.f32.mrf.mxu1  ;;  %v3579_v23 = vpop.f32.mrf.mxu0  ;;  %v3505_v47 = vadd.f32 %v3504_v51, %v14270_v38  ;;  %v3578_v48 = vadd.f32 %v3577_v11, %v14274_v40 }
 0xa40   : > { %11640 = vmatpush3.bf16.msra.mxu1 %v12748_v6  ;;  %v4037_v43 = vpack.c.bf16 %v3941_v22, %v3925_v44  ;;  %v4039_v1 = vpack.c.bf16 %v3943_v63, %v3927_v19  ;;  %v3507_v37 = vadd.f32 %v3506_v57, %v14256_v21  ;;  %11680 = vmatpush3.bf16.msra.mxu0 %v12749_v12  ;;  %v12758_v6 = vld [vmem:[%s16496_s11 + $0x258] sm:$0xff]  }
 0xa41   : > { %v3508_v33 = vpop.f32.mrf.mxu1  ;;  %v3581_v39 = vpop.f32.mrf.mxu0  ;;  %11641 = vmatprep.subr.bf16.mxu1 %v12750_v53  ;;  %v3580_v29 = vadd.f32 %v3579_v23, %v14260_v58  ;;  %11681 = vmatprep.subr.bf16.mxu0 %v12751_v26  ;;  %v3956_v12 = vmax.f32 %v3505_v47, 0.0  ;;  %v3958_v53 = vmax.f32 %v3578_v48, 0.0  ;;  %v12759_v22 = vld [vmem:[%s16496_s11 + $0x2d8] sm:$0xff]   ;;  %v14398_v47 = vld [vmem:[%s16495_s10 + $0x8] sm:$0xff] }
 0xa42   : > { %v3509_v42 = vadd.f32 %v3508_v33, %v14270_v38  ;;  %v3582_v46 = vadd.f32 %v3581_v39, %v14274_v40  ;;  %5018 = vmatprep.mubr.bf16.mxu1 %v4037_v43  ;;  %5083 = vmatprep.mubr.bf16.mxu0 %v4039_v1  ;;  %v3957_v50 = vmax.f32 %v3507_v37, 0.0  ;;  %v12763_v39 = vld [vmem:[%s16496_s11 + $0x2d0] sm:$0xff]  }
 0xa43   : > { %v3510_v24 = vpop.f32.mrf.mxu1  ;;  %v3583_v61 = vpop.f32.mrf.mxu0  ;;  %5019 = vmatmul.mubr.bf16.gmra.mxu1 %v4036_v59  ;;  %5084 = vmatmul.mubr.bf16.gmra.mxu0 %v4038_v15  ;;  %v3959_v10 = vmax.f32 %v3580_v29, 0.0  ;;  %v12762_v59 = vld [vmem:[%s16496_s11 + $0x250] sm:$0xff]  }
 0xa44   : > { %v3511_v49 = vadd.f32 %v3510_v24, %v14256_v21  ;;  %v3584_v62 = vadd.f32 %v3583_v61, %v14260_v58  ;;  %11642 = vmatpush3.bf16.msra.mxu1 %v12752_v32  ;;  %v3972_v28 = vmax.f32 %v3509_v42, 0.0  ;;  %v3974_v34 = vmax.f32 %v3582_v46, 0.0  ;;  %11682 = vmatpush3.bf16.msra.mxu0 %v12753_v45  ;;  %v12761_v32 = vld [vmem:[%s16496_s11 + $0x298] sm:$0xff]  }
 0xa45   : > { %v3514_v60 = vpop.f32.mrf.mxu1  ;;  %v3587_v3 = vpop.f32.mrf.mxu0  ;;  %11643 = vmatprep.subr.bf16.mxu1 %v12754_v41  ;;  %11683 = vmatprep.subr.bf16.mxu0 %v12755_v35 }
 0xa46   : > { %v3973_v51 = vmax.f32 %v3511_v49, 0.0  ;;  %v3975_v11 = vmax.f32 %v3584_v62, 0.0  ;;  %v4052_v57 = vpack.c.bf16 %v3972_v28, %v3956_v12  ;;  %v4054_v23 = vpack.c.bf16 %v3974_v34, %v3958_v53  ;;  %v12765_v49 = vld [vmem:[%s16496_s11 + $0x290] sm:$0xff]   ;;  %v12766_v62 = vld [vmem:[%s16496_s11 + $0x248] sm:$0xff]  }
 0xa47   : > { %v3516_v44 = vpop.f32.mrf.mxu1  ;;  %v3589_v19 = vpop.f32.mrf.mxu0  ;;  %v3515_v45 = vadd.f32 %v3514_v60, %v14270_v38  ;;  %v3588_v41 = vadd.f32 %v3587_v3, %v14274_v40 }
 0xa48   : > { %11644 = vmatpush3.bf16.msra.mxu1 %v12756_v20  ;;  %v4053_v63 = vpack.c.bf16 %v3973_v51, %v3957_v50  ;;  %v4055_v56 = vpack.c.bf16 %v3975_v11, %v3959_v10  ;;  %v3517_v26 = vadd.f32 %v3516_v44, %v14256_v21  ;;  %11684 = vmatpush3.bf16.msra.mxu0 %v12757_v5  ;;  %v12767_v11 = vld [vmem:[%s16496_s11 + $0x2c8] sm:$0xff]  }
 0xa49   : > { %v3518_v43 = vpop.f32.mrf.mxu1  ;;  %v3591_v1 = vpop.f32.mrf.mxu0  ;;  %11645 = vmatprep.subr.bf16.mxu1 %v12758_v6  ;;  %v3590_v15 = vadd.f32 %v3589_v19, %v14260_v58  ;;  %11685 = vmatprep.subr.bf16.mxu0 %v12759_v22  ;;  %v3988_v3 = vmax.f32 %v3515_v45, 0.0  ;;  %v3990_v5 = vmax.f32 %v3588_v41, 0.0  ;;  %v14419_v6 = vrot.slane %v14398_v47, %v14121_v31  ;;  %v12768_v44 = vld [vmem:[%s16496_s11 + $0x208] sm:$0xff]   ;;  %v12772_v41 = vld [vmem:[%s16496_s11 + $0x200] sm:$0xff]  }
 0xa4a   : > { %v3519_v37 = vadd.f32 %v3518_v43, %v14270_v38  ;;  %v3592_v33 = vadd.f32 %v3591_v1, %v14274_v40  ;;  %5026 = vmatprep.mubr.bf16.mxu1 %v4053_v63  ;;  %5091 = vmatprep.mubr.bf16.mxu0 %v4055_v56  ;;  %v12764_v38 = vld [vmem:[%s16496_s11 + $0x210] sm:$0xff]   ;;  %v3989_v20 = vmax.f32 %v3517_v26, 0.0  ;;  %v14423_v50 = vrot.slane %v14398_v47, %v14124_v55 }
 0xa4b   : > { %v3520_v29 = vpop.f32.mrf.mxu1  ;;  %v3593_v42 = vpop.f32.mrf.mxu0  ;;  %5027 = vmatmul.mubr.bf16.gmra.mxu1 %v4052_v57  ;;  %5092 = vmatmul.mubr.bf16.gmra.mxu0 %v4054_v23  ;;  %v3991_v28 = vmax.f32 %v3590_v15, 0.0  ;;  %v12769_v57 = vld [vmem:[%s16496_s11 + $0x288] sm:$0xff]   ;;  %v12770_v23 = vld [vmem:[%s16496_s11 + $0x240] sm:$0xff]  }
 0xa4c   : > { %v3521_v46 = vadd.f32 %v3520_v29, %v14256_v21  ;;  %v3594_v35 = vadd.f32 %v3593_v42, %v14260_v58  ;;  %11646 = vmatpush3.bf16.msra.mxu1 %v12760_v8  ;;  %v4004_v40 = vmax.f32 %v3519_v37, 0.0  ;;  %v4006_v48 = vmax.f32 %v3592_v33, 0.0  ;;  %11686 = vmatpush3.bf16.msra.mxu0 %v12761_v32  ;;  %v12771_v32 = vld [vmem:[%s16496_s11 + $0x2c0] sm:$0xff]  }
 0xa4d   : > { %v3630_v24 = vpop.f32.mrf.mxu1  ;;  %v3703_v61 = vpop.f32.mrf.mxu0  ;;  %v14405_v21 = vrot.slane %v14398_v47, %v14115_v2  ;;  %v14409_v58 = vrot.slane %v14398_v47, %v14118_v4  ;;  %11647 = vmatprep.subr.bf16.mxu1 %v12762_v59  ;;  %11687 = vmatprep.subr.bf16.mxu0 %v12763_v39 }
 0xa4e   : > { %v4005_v34 = vmax.f32 %v3521_v46, 0.0  ;;  %v4007_v60 = vmax.f32 %v3594_v35, 0.0  ;;  %v4068_v19 = vpack.c.bf16 %v4004_v40, %v3988_v3  ;;  %v4070_v22 = vpack.c.bf16 %v4006_v48, %v3990_v5  ;;  %v12774_v40 = vld [vmem:[%s16496_s11 + $0x378] sm:$0xff]  }
 0xa4f   : > { %v3632_v10 = vpop.f32.mrf.mxu1  ;;  %v3705_v51 = vpop.f32.mrf.mxu0  ;;  %v3631_v59 = vadd.f32 %v3630_v24, %v14419_v6  ;;  %v3704_v15 = vadd.f32 %v3703_v61, %v14423_v50 }
 0xa50   : > { %11648 = vmatpush3.bf16.msra.mxu1 %v12764_v38  ;;  %v4069_v12 = vpack.c.bf16 %v4005_v34, %v3989_v20  ;;  %v4071_v53 = vpack.c.bf16 %v4007_v60, %v3991_v28  ;;  %v3633_v63 = vadd.f32 %v3632_v10, %v14405_v21  ;;  %11688 = vmatpush3.bf16.msra.mxu0 %v12765_v49  ;;  %v12773_v38 = vld [vmem:[%s16496_s11 + $0x280] sm:$0xff]   ;;  %v12775_v60 = vld [vmem:[%s16496_s11 + $0x3f8] sm:$0xff]  }
 0xa51   : > { %v3634_v56 = vpop.f32.mrf.mxu1  ;;  %v3707_v8 = vpop.f32.mrf.mxu0  ;;  %11649 = vmatprep.subr.bf16.mxu1 %v12766_v62  ;;  %v3706_v26 = vadd.f32 %v3705_v51, %v14409_v58  ;;  %11689 = vmatprep.subr.bf16.mxu0 %v12767_v11  ;;  %v3896_v62 = vmax.f32 %v3631_v59, 0.0  ;;  %v3898_v20 = vmax.f32 %v3704_v15, 0.0  ;;  %v12776_v10 = vld [vmem:[%s16496_s11 + $0x338] sm:$0xff]   ;;  %v12780_v15 = vld [vmem:[%s16496_s11 + $0x330] sm:$0xff]  }
 0xa52   : > { %v3635_v43 = vadd.f32 %v3634_v56, %v14419_v6  ;;  %v3708_v1 = vadd.f32 %v3707_v8, %v14423_v50  ;;  %5034 = vmatprep.mubr.bf16.mxu1 %v4069_v12  ;;  %5099 = vmatprep.mubr.bf16.mxu0 %v4071_v53  ;;  %v3897_v48 = vmax.f32 %v3633_v63, 0.0 }
 0xa53   : > { %v3636_v37 = vpop.f32.mrf.mxu1  ;;  %v3709_v33 = vpop.f32.mrf.mxu0  ;;  %5035 = vmatmul.mubr.bf16.gmra.mxu1 %v4068_v19  ;;  %5100 = vmatmul.mubr.bf16.gmra.mxu0 %v4070_v22  ;;  %v3899_v24 = vmax.f32 %v3706_v26, 0.0  ;;  %v12777_v19 = vld [vmem:[%s16496_s11 + $0x3b8] sm:$0xff]   ;;  %v12778_v22 = vld [vmem:[%s16496_s11 + $0x370] sm:$0xff]  }
 0xa54   : > { %v3637_v39 = vadd.f32 %v3636_v37, %v14405_v21  ;;  %v3710_v45 = vadd.f32 %v3709_v33, %v14409_v58  ;;  %11650 = vmatpush3.bf16.msra.mxu1 %v12768_v44  ;;  %v3912_v29 = vmax.f32 %v3635_v43, 0.0  ;;  %v3914_v42 = vmax.f32 %v3708_v1, 0.0  ;;  %11690 = vmatpush3.bf16.msra.mxu0 %v12769_v57  ;;  %v12779_v57 = vld [vmem:[%s16496_s11 + $0x3f0] sm:$0xff]  }
 0xa55   : > { %v3640_v46 = vpop.f32.mrf.mxu1  ;;  %v3713_v35 = vpop.f32.mrf.mxu0  ;;  %11651 = vmatprep.subr.bf16.mxu1 %v12770_v23  ;;  %11691 = vmatprep.subr.bf16.mxu0 %v12771_v32 }
 0xa56   : > { %v3913_v61 = vmax.f32 %v3637_v39, 0.0  ;;  %v3915_v49 = vmax.f32 %v3710_v45, 0.0  ;;  %v4024_v51 = vpack.c.bf16 %v3912_v29, %v3896_v62  ;;  %v4026_v11 = vpack.c.bf16 %v3914_v42, %v3898_v20  ;;  %v12782_v29 = vld [vmem:[%s16496_s11 + $0x368] sm:$0xff]  }
 0xa57   : > { %v3642_v28 = vpop.f32.mrf.mxu1  ;;  %v3715_v34 = vpop.f32.mrf.mxu0  ;;  %v3641_v23 = vadd.f32 %v3640_v46, %v14419_v6  ;;  %v3714_v26 = vadd.f32 %v3713_v35, %v14423_v50 }
 0xa58   : > { %11652 = vmatpush3.bf16.msra.mxu1 %v12772_v41  ;;  %v4025_v3 = vpack.c.bf16 %v3913_v61, %v3897_v48  ;;  %v4027_v5 = vpack.c.bf16 %v3915_v49, %v3899_v24  ;;  %v3643_v12 = vadd.f32 %v3642_v28, %v14405_v21  ;;  %11692 = vmatpush3.bf16.msra.mxu0 %v12773_v38  ;;  %v12781_v41 = vld [vmem:[%s16496_s11 + $0x3b0] sm:$0xff]   ;;  %v12783_v49 = vld [vmem:[%s16496_s11 + $0x3e8] sm:$0xff]  }
 0xa59   : > { %v3644_v53 = vpop.f32.mrf.mxu1  ;;  %v3717_v44 = vpop.f32.mrf.mxu0  ;;  %11717 = vmatprep.subr.bf16.mxu1 %v12774_v40  ;;  %v3716_v63 = vadd.f32 %v3715_v34, %v14409_v58  ;;  %11757 = vmatprep.subr.bf16.mxu0 %v12775_v60  ;;  %v3928_v40 = vmax.f32 %v3641_v23, 0.0  ;;  %v3930_v48 = vmax.f32 %v3714_v26, 0.0  ;;  %v12784_v28 = vld [vmem:[%s16496_s11 + $0x328] sm:$0xff]   ;;  %v12788_v26 = vld [vmem:[%s16496_s11 + $0x320] sm:$0xff]  }
 0xa5a   : > { %v3645_v56 = vadd.f32 %v3644_v53, %v14419_v6  ;;  %v3718_v8 = vadd.f32 %v3717_v44, %v14423_v50  ;;  %5140 = vmatprep.mubr.bf16.mxu1 %v4025_v3  ;;  %5205 = vmatprep.mubr.bf16.mxu0 %v4027_v5  ;;  %v3929_v42 = vmax.f32 %v3643_v12, 0.0 }
 0xa5b   : > { %v3646_v43 = vpop.f32.mrf.mxu1  ;;  %v3719_v1 = vpop.f32.mrf.mxu0  ;;  %5141 = vmatmul.mubr.bf16.vlgmr.msra.gmra.mxu1 %v4024_v51  ;;  %5206 = vmatmul.mubr.bf16.vlgmr.msra.gmra.mxu0 %v4026_v11  ;;  %v3931_v46 = vmax.f32 %v3716_v63, 0.0  ;;  %v12785_v51 = vld [vmem:[%s16496_s11 + $0x3a8] sm:$0xff]   ;;  %v12786_v11 = vld [vmem:[%s16496_s11 + $0x360] sm:$0xff]  }
 0xa5c   : > { %v3647_v32 = vadd.f32 %v3646_v43, %v14405_v21  ;;  %v3720_v59 = vadd.f32 %v3719_v1, %v14409_v58  ;;  %11718 = vmatpush3.bf16.msra.mxu1 %v12776_v10  ;;  %v3944_v37 = vmax.f32 %v3645_v56, 0.0  ;;  %v3946_v33 = vmax.f32 %v3718_v8, 0.0  ;;  %11758 = vmatpush3.bf16.msra.mxu0 %v12777_v19  ;;  %v12787_v19 = vld [vmem:[%s16496_s11 + $0x3e0] sm:$0xff]  }
 0xa5d   : > { %v3650_v39 = vpop.f32.mrf.mxu1  ;;  %v3723_v45 = vpop.f32.mrf.mxu0  ;;  %11719 = vmatprep.subr.bf16.mxu1 %v12778_v22  ;;  %11759 = vmatprep.subr.bf16.mxu0 %v12779_v57 }
 0xa5e   : > { %v3945_v35 = vmax.f32 %v3647_v32, 0.0  ;;  %v3947_v38 = vmax.f32 %v3720_v59, 0.0  ;;  %v4040_v34 = vpack.c.bf16 %v3944_v37, %v3928_v40  ;;  %v4042_v60 = vpack.c.bf16 %v3946_v33, %v3930_v48  ;;  %v12790_v37 = vld [vmem:[%s16496_s11 + $0x358] sm:$0xff]  }
 0xa5f   : > { %v3652_v24 = vpop.f32.mrf.mxu1  ;;  %v3725_v61 = vpop.f32.mrf.mxu0  ;;  %v3651_v22 = vadd.f32 %v3650_v39, %v14419_v6  ;;  %v3724_v63 = vadd.f32 %v3723_v45, %v14423_v50 }
 0xa60   : > { %11720 = vmatpush3.bf16.msra.mxu1 %v12780_v15  ;;  %v4041_v62 = vpack.c.bf16 %v3945_v35, %v3929_v42  ;;  %v4043_v20 = vpack.c.bf16 %v3947_v38, %v3931_v46  ;;  %v3653_v3 = vadd.f32 %v3652_v24, %v14405_v21  ;;  %11760 = vmatpush3.bf16.msra.mxu0 %v12781_v41  ;;  %v12789_v15 = vld [vmem:[%s16496_s11 + $0x3a0] sm:$0xff]   ;;  %v12791_v38 = vld [vmem:[%s16496_s11 + $0x3d8] sm:$0xff]  }
 0xa61   : > { %v3654_v5 = vpop.f32.mrf.mxu1  ;;  %v3727_v10 = vpop.f32.mrf.mxu0  ;;  %11721 = vmatprep.subr.bf16.mxu1 %v12782_v29  ;;  %v3726_v12 = vadd.f32 %v3725_v61, %v14409_v58  ;;  %11761 = vmatprep.subr.bf16.mxu0 %v12783_v49  ;;  %v3960_v29 = vmax.f32 %v3651_v22, 0.0  ;;  %v3962_v42 = vmax.f32 %v3724_v63, 0.0  ;;  %v12792_v24 = vld [vmem:[%s16496_s11 + $0x318] sm:$0xff]   ;;  %v12796_v63 = vld [vmem:[%s16496_s11 + $0x310] sm:$0xff]  }
 0xa62   : > { %v3655_v53 = vadd.f32 %v3654_v5, %v14419_v6  ;;  %v3728_v44 = vadd.f32 %v3727_v10, %v14423_v50  ;;  %5148 = vmatprep.mubr.bf16.mxu1 %v4041_v62  ;;  %5213 = vmatprep.mubr.bf16.mxu0 %v4043_v20  ;;  %v3961_v33 = vmax.f32 %v3653_v3, 0.0 }
 0xa63   : > { %v3656_v56 = vpop.f32.mrf.mxu1  ;;  %v3729_v8 = vpop.f32.mrf.mxu0  ;;  %5149 = vmatmul.mubr.bf16.gmra.mxu1 %v4040_v34  ;;  %5214 = vmatmul.mubr.bf16.gmra.mxu0 %v4042_v60  ;;  %v3963_v39 = vmax.f32 %v3726_v12, 0.0  ;;  %v12793_v34 = vld [vmem:[%s16496_s11 + $0x398] sm:$0xff]   ;;  %v12794_v60 = vld [vmem:[%s16496_s11 + $0x350] sm:$0xff]  }
 0xa64   : > { %v3657_v57 = vadd.f32 %v3656_v56, %v14405_v21  ;;  %v3730_v23 = vadd.f32 %v3729_v8, %v14409_v58  ;;  %11722 = vmatpush3.bf16.msra.mxu1 %v12784_v28  ;;  %v3976_v43 = vmax.f32 %v3655_v53, 0.0  ;;  %v3978_v1 = vmax.f32 %v3728_v44, 0.0  ;;  %11762 = vmatpush3.bf16.msra.mxu0 %v12785_v51  ;;  %v12795_v51 = vld [vmem:[%s16496_s11 + $0x3d0] sm:$0xff]  }
 0xa65   : > { %v3660_v32 = vpop.f32.mrf.mxu1  ;;  %v3733_v59 = vpop.f32.mrf.mxu0  ;;  %11723 = vmatprep.subr.bf16.mxu1 %v12786_v11  ;;  %11763 = vmatprep.subr.bf16.mxu0 %v12787_v19 }
 0xa66   : > { %v3977_v45 = vmax.f32 %v3657_v57, 0.0  ;;  %v3979_v41 = vmax.f32 %v3730_v23, 0.0  ;;  %v4056_v61 = vpack.c.bf16 %v3976_v43, %v3960_v29  ;;  %v4058_v49 = vpack.c.bf16 %v3978_v1, %v3962_v42  ;;  %v12798_v23 = vld [vmem:[%s16496_s11 + $0x348] sm:$0xff]  }
 0xa67   : > { %v3662_v46 = vpop.f32.mrf.mxu1  ;;  %v3735_v35 = vpop.f32.mrf.mxu0  ;;  %v3661_v11 = vadd.f32 %v3660_v32, %v14419_v6  ;;  %v3734_v12 = vadd.f32 %v3733_v59, %v14423_v50 }
 0xa68   : > { %11724 = vmatpush3.bf16.msra.mxu1 %v12788_v26  ;;  %v4057_v40 = vpack.c.bf16 %v3977_v45, %v3961_v33  ;;  %v4059_v48 = vpack.c.bf16 %v3979_v41, %v3963_v39  ;;  %v3663_v62 = vadd.f32 %v3662_v46, %v14405_v21  ;;  %11764 = vmatpush3.bf16.msra.mxu0 %v12789_v15  ;;  %v12799_v41 = vld [vmem:[%s16496_s11 + $0x3c8] sm:$0xff]  }
 0xa69   : > { %v3664_v20 = vpop.f32.mrf.mxu1  ;;  %v3737_v28 = vpop.f32.mrf.mxu0  ;;  %11725 = vmatprep.subr.bf16.mxu1 %v12790_v37  ;;  %v3736_v3 = vadd.f32 %v3735_v35, %v14409_v58  ;;  %11765 = vmatprep.subr.bf16.mxu0 %v12791_v38  ;;  %v3992_v59 = vmax.f32 %v3661_v11, 0.0  ;;  %v3994_v15 = vmax.f32 %v3734_v12, 0.0  ;;  %v14563_v37 = vrot.slane %v14398_v47, %v14244_v17  ;;  %v12800_v46 = vld [vmem:[%s16496_s11 + $0x308] sm:$0xff]   ;;  %v12804_v11 = vld [vmem:[%s16496_s11 + $0x300] sm:$0xff]  }
 0xa6a   : > { %v3665_v5 = vadd.f32 %v3664_v20, %v14419_v6  ;;  %v3738_v10 = vadd.f32 %v3737_v28, %v14423_v50  ;;  %5156 = vmatprep.mubr.bf16.mxu1 %v4057_v40  ;;  %5221 = vmatprep.mubr.bf16.mxu0 %v4059_v48  ;;  %v14549_v50 = vrot.slane %v14398_v47, %v14223_v52  ;;  %v3993_v26 = vmax.f32 %v3663_v62, 0.0  ;;  %v12803_v28 = vld [vmem:[%s16496_s11 + $0x3c0] sm:$0xff]  }
 0xa6b   : > { %v3666_v53 = vpop.f32.mrf.mxu1  ;;  %v3739_v44 = vpop.f32.mrf.mxu0  ;;  %5157 = vmatmul.mubr.bf16.gmra.mxu1 %v4056_v61  ;;  %5222 = vmatmul.mubr.bf16.gmra.mxu0 %v4058_v49  ;;  %v3995_v43 = vmax.f32 %v3736_v3, 0.0  ;;  %v14567_v33 = vrot.slane %v14398_v47, %v14247_v25  ;;  %v12802_v61 = vld [vmem:[%s16496_s11 + $0x340] sm:$0xff]  }
 0xa6c   : > { %v3667_v19 = vadd.f32 %v3666_v53, %v14405_v21  ;;  %v3740_v22 = vadd.f32 %v3739_v44, %v14409_v58  ;;  %11726 = vmatpush3.bf16.msra.mxu1 %v12792_v24  ;;  %v4008_v56 = vmax.f32 %v3665_v5, 0.0  ;;  %v4010_v8 = vmax.f32 %v3738_v10, 0.0  ;;  %11766 = vmatpush3.bf16.msra.mxu0 %v12793_v34  ;;  %v12797_v58 = vld [vmem:[%s16496_s11 + $0x390] sm:$0xff]   ;;  %v12801_v24 = vld [vmem:[%s16496_s11 + $0x388] sm:$0xff]  }
 0xa6d   : > { %v3776_v6 = vpop.f32.mrf.mxu1  ;;  %v3849_v57 = vpop.f32.mrf.mxu0  ;;  %v14553_v21 = vrot.slane %v14398_v47, %v14230_v36  ;;  %11727 = vmatprep.subr.bf16.mxu1 %v12794_v60  ;;  %11767 = vmatprep.subr.bf16.mxu0 %v12795_v51 }
 0xa6e   : > { %v4009_v1 = vmax.f32 %v3667_v19, 0.0  ;;  %v4011_v32 = vmax.f32 %v3740_v22, 0.0  ;;  %v4072_v35 = vpack.c.bf16 %v4008_v56, %v3992_v59  ;;  %v4074_v38 = vpack.c.bf16 %v4010_v8, %v3994_v15  ;;  %v12805_v22 = vld [vmem:[%s16496_s11 + $0x380] sm:$0xff]  }
 0xa6f   : > { %v3778_v39 = vpop.f32.mrf.mxu1  ;;  %v3851_v45 = vpop.f32.mrf.mxu0  ;;  %v3777_v34 = vadd.f32 %v3776_v6, %v14563_v37  ;;  %v3850_v60 = vadd.f32 %v3849_v57, %v14567_v33 }
 0xa70   : > { %11728 = vmatpush3.bf16.msra.mxu1 %v12796_v63  ;;  %v4073_v29 = vpack.c.bf16 %v4009_v1, %v3993_v26  ;;  %v4075_v42 = vpack.c.bf16 %v4011_v32, %v3995_v43  ;;  %v3779_v40 = vadd.f32 %v3778_v39, %v14549_v50  ;;  %11768 = vmatpush3.bf16.msra.mxu0 %v12797_v58 }
 0xa71   : > { %v3780_v47 = vpop.f32.mrf.mxu1  ;;  %v3853_v48 = vpop.f32.mrf.mxu0  ;;  %11729 = vmatprep.subr.bf16.mxu1 %v12798_v23  ;;  %v3852_v49 = vadd.f32 %v3851_v45, %v14553_v21  ;;  %11769 = vmatprep.subr.bf16.mxu0 %v12799_v41  ;;  %v3900_v57 = vmax.f32 %v3777_v34, 0.0  ;;  %v3902_v58 = vmax.f32 %v3850_v60, 0.0 }
 0xa72   : > { %v3781_v62 = vadd.f32 %v3780_v47, %v14563_v37  ;;  %v3854_v20 = vadd.f32 %v3853_v48, %v14567_v33  ;;  %5164 = vmatprep.mubr.bf16.mxu1 %v4073_v29  ;;  %5229 = vmatprep.mubr.bf16.mxu0 %v4075_v42  ;;  %v3901_v63 = vmax.f32 %v3779_v40, 0.0 }
 0xa73   : > { %v3782_v3 = vpop.f32.mrf.mxu1  ;;  %v3855_v5 = vpop.f32.mrf.mxu0  ;;  %5165 = vmatmul.mubr.bf16.gmra.mxu1 %v4072_v35  ;;  %5230 = vmatmul.mubr.bf16.gmra.mxu0 %v4074_v38  ;;  %v3903_v56 = vmax.f32 %v3852_v49, 0.0 }
 0xa74   : > { %v3783_v10 = vadd.f32 %v3782_v3, %v14549_v50  ;;  %v3856_v51 = vadd.f32 %v3855_v5, %v14553_v21  ;;  %11730 = vmatpush3.bf16.msra.mxu1 %v12800_v46  ;;  %v3916_v12 = vmax.f32 %v3781_v62, 0.0  ;;  %v3918_v53 = vmax.f32 %v3854_v20, 0.0  ;;  %11770 = vmatpush3.bf16.msra.mxu0 %v12801_v24 }
 0xa75   : > { %v3786_v44 = vpop.f32.mrf.mxu1  ;;  %v3859_v19 = vpop.f32.mrf.mxu0  ;;  %11731 = vmatprep.subr.bf16.mxu1 %v12802_v61  ;;  %11771 = vmatprep.subr.bf16.mxu0 %v12803_v28 }
 0xa76   : > { %v3917_v8 = vmax.f32 %v3783_v10, 0.0  ;;  %v3919_v6 = vmax.f32 %v3856_v51, 0.0  ;;  %v4028_v32 = vpack.c.bf16 %v3916_v12, %v3900_v57  ;;  %v4030_v59 = vpack.c.bf16 %v3918_v53, %v3902_v58 }
 0xa77   : > { %v3788_v23 = vpop.f32.mrf.mxu1  ;;  %v3861_v26 = vpop.f32.mrf.mxu0  ;;  %v3787_v46 = vadd.f32 %v3786_v44, %v14563_v37  ;;  %v3860_v35 = vadd.f32 %v3859_v19, %v14567_v33 }
 0xa78   : > { %11732 = vmatpush3.bf16.msra.mxu1 %v12804_v11  ;;  %v4029_v43 = vpack.c.bf16 %v3917_v8, %v3901_v63  ;;  %v4031_v1 = vpack.c.bf16 %v3919_v6, %v3903_v56  ;;  %v3789_v15 = vadd.f32 %v3788_v23, %v14549_v50  ;;  %11772 = vmatpush3.bf16.msra.mxu0 %v12805_v22 }
 0xa79   : > { %v3790_v39 = vpop.f32.mrf.mxu1  ;;  %v3863_v45 = vpop.f32.mrf.mxu0  ;;  %v3862_v41 = vadd.f32 %v3861_v26, %v14553_v21  ;;  %12428 = vmatprep.subr.bf16.mxu0 %v16512_v13  ;;  %v3932_v3 = vmax.f32 %v3787_v46, 0.0  ;;  %v3934_v5 = vmax.f32 %v3860_v35, 0.0 }
 0xa7a   : > { %v3791_v29 = vadd.f32 %v3790_v39, %v14563_v37  ;;  %v3864_v42 = vadd.f32 %v3863_v45, %v14567_v33  ;;  %5270 = vmatprep.mubr.bf16.mxu1 %v4029_v43  ;;  %5335 = vmatprep.mubr.bf16.mxu0 %v4031_v1  ;;  %v3933_v20 = vmax.f32 %v3789_v15, 0.0 }
 0xa7b   : > { %v3792_v38 = vpop.f32.mrf.mxu1  ;;  %v3865_v40 = vpop.f32.mrf.mxu0  ;;  %5271 = vmatmul.mubr.bf16.vlgmr.msra.gmra.mxu1 %v4028_v32  ;;  %5336 = vmatmul.mubr.bf16.vlgmr.msra.gmra.mxu0 %v4030_v59  ;;  %v3935_v28 = vmax.f32 %v3862_v41, 0.0 }
 0xa7c   : > { %v3793_v47 = vadd.f32 %v3792_v38, %v14549_v50  ;;  %v3866_v48 = vadd.f32 %v3865_v40, %v14553_v21  ;;  %v3948_v24 = vmax.f32 %v3791_v29, 0.0  ;;  %v3950_v61 = vmax.f32 %v3864_v42, 0.0 }
 0xa7d   : > { %v3796_v49 = vpop.f32.mrf.mxu1  ;;  %v3869_v62 = vpop.f32.mrf.mxu0 }
 0xa7e   : > { %v3949_v34 = vmax.f32 %v3793_v47, 0.0  ;;  %v3951_v60 = vmax.f32 %v3866_v48, 0.0  ;;  %v4044_v53 = vpack.c.bf16 %v3948_v24, %v3932_v3  ;;  %v4046_v44 = vpack.c.bf16 %v3950_v61, %v3934_v5 }
 0xa7f   : > { %v3798_v10 = vpop.f32.mrf.mxu1  ;;  %v3871_v51 = vpop.f32.mrf.mxu0  ;;  %v3797_v57 = vadd.f32 %v3796_v49, %v14563_v37  ;;  %v3870_v58 = vadd.f32 %v3869_v62, %v14567_v33 }
 0xa80   : > { %v4045_v11 = vpack.c.bf16 %v3949_v34, %v3933_v20  ;;  %v4047_v12 = vpack.c.bf16 %v3951_v60, %v3935_v28  ;;  %v3799_v19 = vadd.f32 %v3798_v10, %v14549_v50  ;;  %v3872_v56 = vadd.f32 %v3871_v51, %v14553_v21 }
 0xa81   : > { %v3800_v22 = vpop.f32.mrf.mxu1  ;;  %v3873_v63 = vpop.f32.mrf.mxu0  ;;  %v3964_v46 = vmax.f32 %v3797_v57, 0.0  ;;  %v3966_v35 = vmax.f32 %v3870_v58, 0.0 }
 0xa82   : > { %v3801_v8 = vadd.f32 %v3800_v22, %v14563_v37  ;;  %v3874_v6 = vadd.f32 %v3873_v63, %v14567_v33  ;;  %5278 = vmatprep.mubr.bf16.mxu1 %v4045_v11  ;;  %5343 = vmatprep.mubr.bf16.mxu0 %v4047_v12  ;;  %v3965_v45 = vmax.f32 %v3799_v19, 0.0  ;;  %v3967_v41 = vmax.f32 %v3872_v56, 0.0 }
 0xa83   : > { %v3802_v23 = vpop.f32.mrf.mxu1  ;;  %v3875_v26 = vpop.f32.mrf.mxu0  ;;  %5279 = vmatmul.mubr.bf16.gmra.mxu1 %v4044_v53  ;;  %5344 = vmatmul.mubr.bf16.gmra.mxu0 %v4046_v44 }
 0xa84   : > { %v3803_v43 = vadd.f32 %v3802_v23, %v14549_v50  ;;  %v3876_v1 = vadd.f32 %v3875_v26, %v14553_v21  ;;  %v3980_v32 = vmax.f32 %v3801_v8, 0.0  ;;  %v3982_v59 = vmax.f32 %v3874_v6, 0.0 }
 0xa85   : > { %v3806_v15 = vpop.f32.mrf.mxu1  ;;  %v3879_v39 = vpop.f32.mrf.mxu0 }
 0xa86   : > { %v3981_v29 = vmax.f32 %v3803_v43, 0.0  ;;  %v3983_v42 = vmax.f32 %v3876_v1, 0.0  ;;  %v4060_v24 = vpack.c.bf16 %v3980_v32, %v3964_v46  ;;  %v4062_v61 = vpack.c.bf16 %v3982_v59, %v3966_v35 }
 0xa87   : > { %v3808_v38 = vpop.f32.mrf.mxu1  ;;  %v3881_v40 = vpop.f32.mrf.mxu0  ;;  %v3807_v3 = vadd.f32 %v3806_v15, %v14563_v37  ;;  %v3880_v51 = vadd.f32 %v3879_v39, %v14567_v33 }
 0xa88   : > { %v4061_v47 = vpack.c.bf16 %v3981_v29, %v3965_v45  ;;  %v4063_v48 = vpack.c.bf16 %v3983_v42, %v3967_v41  ;;  %v3809_v49 = vadd.f32 %v3808_v38, %v14549_v50  ;;  %v3882_v28 = vadd.f32 %v3881_v40, %v14553_v21 }
 0xa89   : > { %v3810_v62 = vpop.f32.mrf.mxu1  ;;  %v3883_v20 = vpop.f32.mrf.mxu0  ;;  %v3996_v8 = vmax.f32 %v3807_v3, 0.0  ;;  %v3998_v6 = vmax.f32 %v3880_v51, 0.0 }
 0xa8a   : > { %v3811_v34 = vadd.f32 %v3810_v62, %v14563_v37  ;;  %v3884_v60 = vadd.f32 %v3883_v20, %v14567_v33  ;;  %5286 = vmatprep.mubr.bf16.mxu1 %v4061_v47  ;;  %5351 = vmatprep.mubr.bf16.mxu0 %v4063_v48  ;;  %v3997_v53 = vmax.f32 %v3809_v49, 0.0  ;;  %v3999_v19 = vmax.f32 %v3882_v28, 0.0 }
 0xa8b   : > { %v3812_v5 = vpop.f32.mrf.mxu1  ;;  %v3885_v10 = vpop.f32.mrf.mxu0  ;;  %5287 = vmatmul.mubr.bf16.gmra.mxu1 %v4060_v24  ;;  %5352 = vmatmul.mubr.bf16.gmra.mxu0 %v4062_v61 }
 0xa8c   : > { %v3813_v11 = vadd.f32 %v3812_v5, %v14549_v50  ;;  %v3886_v12 = vadd.f32 %v3885_v10, %v14553_v21  ;;  %v4012_v44 = vmax.f32 %v3811_v34, 0.0  ;;  %v4014_v22 = vmax.f32 %v3884_v60, 0.0 }
 0xa8e   : > { %v4013_v63 = vmax.f32 %v3813_v11, 0.0  ;;  %v4015_v56 = vmax.f32 %v3886_v12, 0.0  ;;  %v4076_v58 = vpack.c.bf16 %v4012_v44, %v3996_v8  ;;  %v4078_v23 = vpack.c.bf16 %v4014_v22, %v3998_v6 }
 0xa90   : > { %v4077_v57 = vpack.c.bf16 %v4013_v63, %v3997_v53  ;;  %v4079_v37 = vpack.c.bf16 %v4015_v56, %v3999_v19 }
 0xa92   : > { %5294 = vmatprep.mubr.bf16.mxu1 %v4077_v57  ;;  %5359 = vmatprep.mubr.bf16.mxu0 %v4079_v37 }
 0xa93   : > { %5295 = vmatmul.mubr.bf16.gmra.mxu1 %v4076_v58  ;;  %5360 = vmatmul.mubr.bf16.gmra.mxu0 %v4078_v23 }
 0xa94   : > { %12430 = vmatprep.mubr.msk.bf16.mxu0 %vm13185_vm1, %v16512_v13 }
 0xadb   : > { %v11493_v50 = vpop.f32.mrf.mxu1  ;;  %v11533_v21 = vpop.f32.mrf.mxu0 }
 0xadd   : > { %v11494_v33 = vpop.f32.mrf.mxu1  ;;  %v11534_v26 = vpop.f32.mrf.mxu0 }
 0xade   : > { %v11495_v43 = vadd.f32 %v11494_v33, %v11493_v50  ;;  %v11535_v1 = vadd.f32 %v11534_v26, %v11533_v21 }
 0xadf   : > { %v11496_v32 = vpop.f32.mrf.mxu1  ;;  %v11536_v59 = vpop.f32.mrf.mxu0 }
 0xae0   : > { %v14625_v15 = vadd.f32 %v11535_v1, %v11495_v43 }
 0xae1   : > { %v11497_v39 = vpop.f32.mrf.mxu1  ;;  %v11537_v45 = vpop.f32.mrf.mxu0 }
 0xae2   : > { %v11498_v41 = vadd.f32 %v11497_v39, %v11496_v32  ;;  %v11538_v29 = vadd.f32 %v11537_v45, %v11536_v59 }
 0xae3   : > { %v11499_v42 = vpop.f32.mrf.mxu1  ;;  %v11539_v35 = vpop.f32.mrf.mxu0 }
 0xae4   : > { %v14627_v46 = vadd.f32 %v11538_v29, %v11498_v41 }
 0xae5   : > { %v11500_v38 = vpop.f32.mrf.mxu1  ;;  %v11540_v47 = vpop.f32.mrf.mxu0 }
 0xae6   : > { %v11501_v40 = vadd.f32 %v11500_v38, %v11499_v42  ;;  %v11541_v48 = vadd.f32 %v11540_v47, %v11539_v35 }
 0xae7   : > { %v11502_v24 = vpop.f32.mrf.mxu1  ;;  %v11542_v61 = vpop.f32.mrf.mxu0 }
 0xae8   : > { %v14629_v49 = vadd.f32 %v11541_v48, %v11501_v40 }
 0xae9   : > { %v11503_v62 = vpop.f32.mrf.mxu1  ;;  %v11543_v28 = vpop.f32.mrf.mxu0 }
 0xaea   : > { %v11504_v20 = vadd.f32 %v11503_v62, %v11502_v24  ;;  %v11544_v34 = vadd.f32 %v11543_v28, %v11542_v61 }
 0xaeb   : > { %v11505_v60 = vpop.f32.mrf.mxu1  ;;  %v11545_v3 = vpop.f32.mrf.mxu0 }
 0xaec   : > { %v14631_v5 = vadd.f32 %v11544_v34, %v11504_v20 }
 0xaed   : > { %v11506_v10 = vpop.f32.mrf.mxu1  ;;  %v11546_v11 = vpop.f32.mrf.mxu0 }
 0xaee   : > { %v11507_v51 = vadd.f32 %v11506_v10, %v11505_v60  ;;  %v11547_v12 = vadd.f32 %v11546_v11, %v11545_v3 }
 0xaef   : > { %v11508_v53 = vpop.f32.mrf.mxu1  ;;  %v11548_v44 = vpop.f32.mrf.mxu0 }
 0xaf0   : > { %v14633_v19 = vadd.f32 %v11547_v12, %v11507_v51 }
 0xaf1   : > { %v11509_v22 = vpop.f32.mrf.mxu1  ;;  %v11549_v56 = vpop.f32.mrf.mxu0 }
 0xaf2   : > { %v11510_v63 = vadd.f32 %v11509_v22, %v11508_v53  ;;  %v11550_v8 = vadd.f32 %v11549_v56, %v11548_v44 }
 0xaf3   : > { %v11511_v6 = vpop.f32.mrf.mxu1  ;;  %v11551_v57 = vpop.f32.mrf.mxu0 }
 0xaf4   : > { %v14635_v37 = vadd.f32 %v11550_v8, %v11510_v63 }
 0xaf5   : > { %v11512_v58 = vpop.f32.mrf.mxu1  ;;  %v11552_v50 = vpop.f32.mrf.mxu0 }
 0xaf6   : > { %v11513_v23 = vadd.f32 %v11512_v58, %v11511_v6  ;;  %v11553_v21 = vadd.f32 %v11552_v50, %v11551_v57 }
 0xaf7   : > { %v11514_v33 = vpop.f32.mrf.mxu1  ;;  %v11554_v26 = vpop.f32.mrf.mxu0 }
 0xaf8   : > { %v14637_v43 = vadd.f32 %v11553_v21, %v11513_v23 }
 0xaf9   : > { %v11515_v1 = vpop.f32.mrf.mxu1  ;;  %v11555_v59 = vpop.f32.mrf.mxu0 }
 0xafa   : > { %16560 = vst [vmem:[#allocation20_spill] sm:$0xff] %v14637_v43  ;;  %v11516_v32 = vadd.f32 %v11515_v1, %v11514_v33  ;;  %v11556_v39 = vadd.f32 %v11555_v59, %v11554_v26 }
 0xafb   : > { %v11573_v45 = vpop.f32.mrf.mxu1  ;;  %v11613_v41 = vpop.f32.mrf.mxu0 }
 0xafc   : > { %v14639_v29 = vadd.f32 %v11556_v39, %v11516_v32 }
 0xafd   : > { %v11574_v42 = vpop.f32.mrf.mxu1  ;;  %v11614_v35 = vpop.f32.mrf.mxu0 }
 0xafe   : > { %16561 = vst [vmem:[#allocation21_spill] sm:$0xff] %v14639_v29  ;;  %v11615_v43 = vadd.f32 %v11614_v35, %v11613_v41 }
 0xaff   : > { %v11576_v38 = vpop.f32.mrf.mxu1  ;;  %v14641_v40 = vpop.f32.mrf.mxu0 }
 0xb01   : > { %v11577_v47 = vpop.f32.mrf.mxu1  ;;  %v14643_v48 = vpop.f32.mrf.mxu0 }
 0xb03   : > { %v11579_v24 = vpop.f32.mrf.mxu1  ;;  %v14645_v61 = vpop.f32.mrf.mxu0 }
 0xb05   : > { %v11580_v62 = vpop.f32.mrf.mxu1  ;;  %v14647_v20 = vpop.f32.mrf.mxu0 }
 0xb07   : > { %v14649_v28 = vpop.f32.mrf.mxu1  ;;  %v14651_v34 = vpop.f32.mrf.mxu0 }
 0xb09   : > { %v11583_v60 = vpop.f32.mrf.mxu1  ;;  %v14653_v3 = vpop.f32.mrf.mxu0 }
 0xb0a   : > { %v11584_v35 = vadd.f32 %v11583_v60, %v14649_v28 }
 0xb0b   : > { %v14655_v10 = vpop.f32.mrf.mxu1  ;;  %v14657_v51 = vpop.f32.mrf.mxu0 }
 0xb0d   : > { %v14659_v11 = vpop.f32.mrf.mxu1  ;;  %v14661_v12 = vpop.f32.mrf.mxu0 }
 0xb0f   : > { %v14663_v53 = vpop.f32.mrf.mxu1  ;;  %v14665_v44 = vpop.f32.mrf.mxu0 }
 0xb11   : > { %v14667_v22 = vpop.f32.mrf.mxu1  ;;  %v14669_v63 = vpop.f32.mrf.mxu0 }
 0xb13   : > { %v14671_v56 = vpop.f32.mrf.mxu1  ;;  %v14673_v8 = vpop.f32.mrf.mxu0 }
 0xb14   : > { %16562 = vst [vmem:[#allocation22_spill] sm:$0xff] %v14673_v8 }
 0xb15   : > { %v14675_v6 = vpop.f32.mrf.mxu1  ;;  %v14677_v57 = vpop.f32.mrf.mxu0 }
 0xb16   : > { %16563 = vst [vmem:[#allocation23_spill] sm:$0xff] %v14677_v57 }
 0xb17   : > { %v14679_v58 = vpop.f32.mrf.mxu1  ;;  %v14681_v23 = vpop.f32.mrf.mxu0 }
 0xb18   : > { %16564 = vst [vmem:[#allocation24_spill] sm:$0xff] %v14679_v58  ;;  %16565 = vst [vmem:[#allocation25_spill] sm:$0xff] %v14681_v23 }
 0xb19   : > { %v14683_v50 = vpop.f32.mrf.mxu1  ;;  %v14685_v21 = vpop.f32.mrf.mxu0 }
 0xb1a   : > { %16566 = vst [vmem:[#allocation26_spill] sm:$0xff] %v14683_v50  ;;  %16567 = vst [vmem:[#allocation27_spill] sm:$0xff] %v14685_v21  ;;  %v11575_v21 = vadd.f32 %v11574_v42, %v11573_v45  ;;  %v11578_v50 = vadd.f32 %v11577_v47, %v11576_v38  ;;  %v11581_v45 = vadd.f32 %v11580_v62, %v11579_v24 }
 0xb1b   : > { %v11653_v33 = vpop.f32.mrf.mxu1  ;;  %v11693_v26 = vpop.f32.mrf.mxu0 }
 0xb1c   : > { %v5013_v8 = vadd.f32 %v11575_v21, %v14625_v15  ;;  %v11618_v15 = vadd.f32 %v14643_v48, %v14641_v40  ;;  %v5021_v41 = vadd.f32 %v11581_v45, %v14629_v49  ;;  %v5024_v48 = vadd.f32 %v11584_v35, %v14631_v5 }
 0xb1d   : > { %v11654_v1 = vpop.f32.mrf.mxu1  ;;  %v11694_v32 = vpop.f32.mrf.mxu0  ;;  %v11587_v49 = vadd.f32 %v14659_v11, %v14655_v10 }
 0xb1f   : > { %v11656_v59 = vpop.f32.mrf.mxu1  ;;  %v11696_v39 = vpop.f32.mrf.mxu0 }
 0xb21   : > { %v11657_v30 = vpop.f32.mrf.mxu1  ;;  %v11697_v13 = vpop.f32.mrf.mxu0 }
 0xb22   : > { %v11658_v47 = vadd.f32 %v11657_v30, %v11656_v59  ;;  %v11698_v60 = vadd.f32 %v11697_v13, %v11696_v39  ;;  %v5029_v13 = vadd.f32 %v11587_v49, %v14633_v19  ;;  %v11590_v39 = vadd.f32 %v14667_v22, %v14663_v53  ;;  %v16577_v49 = vld [vmem:[#allocation20_spill] sm:$0xff] }
 0xb23   : > { %v11659_v25 = vpop.f32.mrf.mxu1  ;;  %v14687_v17 = vpop.f32.mrf.mxu0 }
 0xb25   : > { %v11660_v36 = vpop.f32.mrf.mxu1  ;;  %v14689_v52 = vpop.f32.mrf.mxu0 }
 0xb27   : > { %v11662_v55 = vpop.f32.mrf.mxu1  ;;  %v14691_v31 = vpop.f32.mrf.mxu0 }
 0xb29   : > { %v11663_v4 = vpop.f32.mrf.mxu1  ;;  %v14693_v2 = vpop.f32.mrf.mxu0 }
 0xb2b   : > { %v14695_v14 = vpop.f32.mrf.mxu1  ;;  %v14697_v7 = vpop.f32.mrf.mxu0 }
 0xb2c   : > { %16568 = vst [vmem:[#allocation28_spill] sm:$0xff] %v14697_v7 }
 0xb2d   : > { %v14699_v9 = vpop.f32.mrf.mxu1  ;;  %v14701_v16 = vpop.f32.mrf.mxu0 }
 0xb2e   : > { %16569 = vst [vmem:[#allocation29_spill] sm:$0xff] %v14701_v16  ;;  %v11655_v16 = vadd.f32 %v11654_v1, %v11653_v33  ;;  %v11667_v19 = vadd.f32 %v14699_v9, %v14695_v14 }
 0xb2f   : > { %v14703_v27 = vpop.f32.mrf.mxu1  ;;  %v14705_v23 = vpop.f32.mrf.mxu0 }
 0xb30   : > { %16570 = vst [vmem:[#allocation30_spill] sm:$0xff] %v14705_v23  ;;  %v5078_v23 = vadd.f32 %v11615_v43, %v5013_v8  ;;  %v11695_v43 = vadd.f32 %v11694_v32, %v11693_v26  ;;  %v14743_v32 = vld [vmem:[%s16497_s12] ss:$0 sm:$0xff] }
 0xb31   : > { %v14707_v29 = vpop.f32.mrf.mxu1  ;;  %v14709_v0 = vpop.f32.mrf.mxu0 }
 0xb32   : > { %16571 = vst [vmem:[#allocation31_spill] sm:$0xff] %v14707_v29  ;;  %16572 = vst [vmem:[#allocation32_spill] sm:$0xff] %v14709_v0  ;;  %v5016_v29 = vadd.f32 %v11578_v50, %v14627_v46  ;;  %v5143_v38 = vadd.f32 %v11655_v16, %v5078_v23  ;;  %v11621_v46 = vadd.f32 %v14647_v20, %v14645_v61 }
 0xb33   : > { %v14711_v57 = vpop.f32.mrf.mxu1  ;;  %v14714_v58 = vpop.f32.mrf.mxu0  ;;  %v11661_v50 = vadd.f32 %v11660_v36, %v11659_v25  ;;  %v11624_v61 = vadd.f32 %v14653_v3, %v14651_v34  ;;  %v11664_v25 = vadd.f32 %v11663_v4, %v11662_v55  ;;  %v11701_v34 = vadd.f32 %v14689_v52, %v14687_v17 }
 0xb34   : > { %16573 = vst [vmem:[#allocation33_spill] sm:$0xff] %v14711_v57  ;;  %v5081_v62 = vadd.f32 %v11618_v15, %v5016_v29  ;;  %v5208_v1 = vadd.f32 %v11695_v43, %v5143_v38  ;;  %v5086_v30 = vadd.f32 %v11621_v46, %v5021_v41  ;;  %v11593_v43 = vadd.f32 %v14675_v6, %v14671_v56 }
 0xb35   : > { %v14716_v7 = vpop.f32.mrf.mxu1  ;;  %v14718_v54 = vpop.f32.mrf.mxu0  ;;  %v5089_v11 = vadd.f32 %v11624_v61, %v5024_v48 }
 0xb36   : > { %v5151_v36 = vadd.f32 %v11661_v50, %v5086_v30 }
 0xb37   : > { %v14720_v42 = vpop.f32.mrf.mxu1  ;;  %v14723_v0 = vpop.f32.mrf.mxu0  ;;  %v5154_v41 = vadd.f32 %v11664_v25, %v5089_v11 }
 0xb38   : > { %16574 = vst [vmem:[#allocation34_spill] sm:$0xff] %v14723_v0  ;;  %v5146_v0 = vadd.f32 %v11658_v47, %v5081_v62  ;;  %v5216_v47 = vadd.f32 %v11701_v34, %v5151_v36  ;;  %v5032_v62 = vadd.f32 %v11590_v39, %v14635_v37 }
 0xb39   : > { %v14725_v57 = vpop.f32.mrf.mxu1  ;;  %v14729_v21 = vpop.f32.mrf.mxu0  ;;  %v16575_v37 = vld [vmem:[#allocation31_spill] sm:$0xff] }
 0xb3a   : > { %v5211_v5 = vadd.f32 %v11698_v60, %v5146_v0  ;;  %v11627_v0 = vadd.f32 %v14661_v12, %v14657_v51  ;;  %v11704_v51 = vadd.f32 %v14693_v2, %v14691_v31  ;;  %v16578_v60 = vld [vmem:[#allocation24_spill] sm:$0xff] }
 0xb3b   : > { %v11733_v24 = vpop.f32.mrf.mxu1  ;;  %v11773_v8 = vpop.f32.mrf.mxu0 }
 0xb3c   : > { %v5094_v17 = vadd.f32 %v11627_v0, %v5029_v13  ;;  %v16584_v13 = vld [vmem:[#allocation33_spill] sm:$0xff] }
 0xb3d   : > { %v11734_v33 = vpop.f32.mrf.mxu1  ;;  %v11774_v16 = vpop.f32.mrf.mxu0  ;;  %v11673_v39 = vadd.f32 %v14716_v7, %v16584_v13 }
 0xb3e   : > { %v11735_v40 = vadd.f32 %v11734_v33, %v11733_v24  ;;  %v11775_v23 = vadd.f32 %v11774_v16, %v11773_v8  ;;  %v5219_v33 = vadd.f32 %v11704_v51, %v5154_v41  ;;  %v5159_v6 = vadd.f32 %v11667_v19, %v5094_v17  ;;  %v16576_v16 = vld [vmem:[#allocation5_spill] sm:$0xff]  ;;  %v16587_v19 = vld [vmem:[#allocation30_spill] sm:$0xff] }
 0xb3f   : > { %v11736_v28 = vpop.f32.mrf.mxu1  ;;  %v11776_v26 = vpop.f32.mrf.mxu0  ;;  %v16586_v41 = vld [vmem:[#allocation21_spill] sm:$0xff] }
 0xb40   : > { %v5273_v29 = vadd.f32 %v11735_v40, %v5208_v1  ;;  %v11670_v1 = vadd.f32 %v16575_v37, %v14703_v27 }
 0xb41   : > { %v11737_v20 = vpop.f32.mrf.mxu1  ;;  %v11777_v10 = vpop.f32.mrf.mxu0 }
 0xb42   : > { %v5338_v59 = vadd.f32 %v11775_v23, %v5273_v29  ;;  %v11738_v45 = vadd.f32 %v11737_v20, %v11736_v28  ;;  %v11778_v3 = vadd.f32 %v11777_v10, %v11776_v26  ;;  %v5037_v28 = vadd.f32 %v11593_v43, %v16577_v49  ;;  %v16579_v29 = vld [vmem:[#allocation26_spill] sm:$0xff] }
 0xb43   : > { %v11739_v4 = vpop.f32.mrf.mxu1  ;;  %v11779_v15 = vpop.f32.mrf.mxu0  ;;  %v11596_v23 = vadd.f32 %v16579_v29, %v16578_v60 }
 0xb44   : > { %v5276_v55 = vadd.f32 %v11738_v45, %v5211_v5  ;;  %v5368_v38 = vadd.f32 %v14743_v32, %v5338_v59  ;;  %v16582_v59 = vld [vmem:[#allocation22_spill] sm:$0xff]  ;;  %v16583_v45 = vld [vmem:[#allocation23_spill] sm:$0xff] }
 0xb45   : > { %v11740_v35 = vpop.f32.mrf.mxu1  ;;  %v11780_v22 = vpop.f32.mrf.mxu0  ;;  %v11633_v10 = vadd.f32 %v16583_v45, %v16582_v59 }
 0xb46   : > { %v5341_v24 = vadd.f32 %v11778_v3, %v5276_v55  ;;  %v11741_v53 = vadd.f32 %v11740_v35, %v11739_v4  ;;  %v14756_v52 = vadd.f32 %v5368_v38, %v13871_v18  ;;  %v11781_v46 = vadd.f32 %v11780_v22, %v11779_v15  ;;  %v16585_v38 = vld [vmem:[#allocation7_spill] sm:$0xff] }
 0xb47   : > { %v11742_v12 = vpop.f32.mrf.mxu1  ;;  %v11782_v50 = vpop.f32.mrf.mxu0  ;;  %v11630_v18 = vadd.f32 %v14669_v63, %v14665_v44  ;;  %v16580_v44 = vld [vmem:[#allocation28_spill] sm:$0xff]  ;;  %v16581_v63 = vld [vmem:[#allocation29_spill] sm:$0xff]  ;;  %v5040_v35 = vadd.f32 %v11596_v23, %v16586_v41 }
 0xb48   : > { %v5281_v8 = vadd.f32 %v11741_v53, %v5216_v47  ;;  %v5386_v9 = vsel %vm587_vm0, %v14756_v52, 0.0  ;;  %v5369_v14 = vadd.f32 %v14743_v32, %v5341_v24  ;;  %v11707_v26 = vadd.f32 %v16581_v63, %v16580_v44  ;;  %v16588_v24 = vld [vmem:[#allocation32_spill] sm:$0xff] }
 0xb49   : > { %v11743_v56 = vpop.f32.mrf.mxu1  ;;  %5387 = vadd.xlane.f32.xlu1 %v5386_v9  ;;  %v11783_v40 = vpop.f32.mrf.mxu0  ;;  %v5097_v48 = vadd.f32 %v11630_v18, %v5032_v62  ;;  %v5102_v47 = vadd.f32 %v11633_v10, %v5037_v28  ;;  %v11710_v53 = vadd.f32 %v16588_v24, %v16587_v19  ;;  %v11676_v18 = vadd.f32 %v14725_v57, %v14720_v42  ;;  %v16596_v24 = vld [vmem:[#allocation10_spill] sm:$0xff] }
 0xb4a   : > { %v5346_v2 = vadd.f32 %v11781_v46, %v5281_v8  ;;  %v11744_v31 = vadd.f32 %v11743_v56, %v11742_v12  ;;  %v14771_v30 = vadd.f32 %v5369_v14, %v16576_v16  ;;  %v11784_v36 = vadd.f32 %v11783_v40, %v11782_v50  ;;  %v16589_v12 = vld [vmem:[#allocation25_spill] sm:$0xff]  ;;  %v16590_v8 = vld [vmem:[#allocation27_spill] sm:$0xff]  ;;  %v16591_v56 = vld [vmem:[#allocation6_spill] sm:$0xff] }
 0xb4b   : > { %v11745_v61 = vpop.f32.mrf.mxu1  ;;  %v11785_v25 = vpop.f32.mrf.mxu0  ;;  %v5162_v11 = vadd.f32 %v11670_v1, %v5097_v48  ;;  %v5224_v4 = vadd.f32 %v11707_v26, %v5159_v6  ;;  %v11636_v46 = vadd.f32 %v16590_v8, %v16589_v12  ;;  %v5167_v9 = vadd.f32 %v11673_v39, %v5102_v47  ;;  %v16592_v26 = vld [vmem:[#allocation8_spill] sm:$0xff]  ;;  %v16595_v47 = vld [vmem:[#allocation11_spill] sm:$0xff] }
 0xb4c   : > { %v5284_v27 = vadd.f32 %v11744_v31, %v5219_v33  ;;  %v5389_v20 = vsel %vm587_vm0, %v14771_v30, 0.0  ;;  %v5370_v5 = vadd.f32 %v14743_v32, %v5346_v2  ;;  %v11713_v31 = vadd.f32 %v14718_v54, %v14714_v58 }
 0xb4d   : > { %v11746_v34 = vpop.f32.mrf.mxu1  ;;  %5390 = vadd.xlane.f32.xlu0 %v5389_v20  ;;  %v11786_v15 = vpop.f32.mrf.mxu0  ;;  %v5227_v50 = vadd.f32 %v11710_v53, %v5162_v11  ;;  %v5105_v2 = vadd.f32 %v11636_v46, %v5040_v35 }
 0xb4e   : > { %v5349_v55 = vadd.f32 %v11784_v36, %v5284_v27  ;;  %v11747_v3 = vadd.f32 %v11746_v34, %v11745_v61  ;;  %v14786_v0 = vadd.f32 %v5370_v5, %v16585_v38  ;;  %v11787_v62 = vadd.f32 %v11786_v15, %v11785_v25  ;;  %v16593_v27 = vld [vmem:[#allocation34_spill] sm:$0xff]  ;;  %v16594_v34 = vld [vmem:[#allocation9_spill] sm:$0xff] }
 0xb4f   : > { %v11748_v22 = vpop.f32.mrf.mxu1  ;;  %v11788_v43 = vpop.f32.mrf.mxu0  ;;  %v5232_v29 = vadd.f32 %v11713_v31, %v5167_v9  ;;  %v5170_v57 = vadd.f32 %v11676_v18, %v5105_v2  ;;  %v11716_v54 = vadd.f32 %v14729_v21, %v16593_v27 }
 0xb50   : > { %v5289_v17 = vadd.f32 %v11747_v3, %v5224_v4  ;;  %v5392_v7 = vsel %vm587_vm0, %v14786_v0, 0.0  ;;  %v5371_v51 = vadd.f32 %v14743_v32, %v5349_v55 }
 0xb51   : > { %v11749_v14 = vpop.f32.mrf.mxu1  ;;  %5393 = vadd.xlane.f32.xlu1 %v5392_v7  ;;  %v11789_v1 = vpop.f32.mrf.mxu0  ;;  %v5235_v10 = vadd.f32 %v11716_v54, %v5170_v57 }
 0xb52   : > { %v5354_v33 = vadd.f32 %v11787_v62, %v5289_v17  ;;  %v11750_v37 = vadd.f32 %v11749_v14, %v11748_v22  ;;  %v5379_v6 = vadd.f32 %v5371_v51, %v16591_v56  ;;  %v11790_v48 = vadd.f32 %v11789_v1, %v11788_v43 }
 0xb53   : > { %v11751_v40 = vpop.f32.mrf.mxu1  ;;  %v11791_v49 = vpop.f32.mrf.mxu0 }
 0xb54   : > { %v5292_v16 = vadd.f32 %v11750_v37, %v5227_v50  ;;  %v5395_v28 = vsel %vm587_vm0, %v5379_v6, 0.0  ;;  %v5372_v60 = vadd.f32 %v14743_v32, %v5354_v33 }
 0xb55   : > { %v11752_v23 = vpop.f32.mrf.mxu1  ;;  %5396 = vadd.xlane.f32.xlu0 %v5395_v28  ;;  %v11792_v63 = vpop.f32.mrf.mxu0 }
 0xb56   : > { %v5357_v42 = vadd.f32 %v11790_v48, %v5292_v16  ;;  %v11753_v44 = vadd.f32 %v11752_v23, %v11751_v40  ;;  %v5380_v61 = vadd.f32 %v5372_v60, %v16592_v26  ;;  %v11793_v25 = vadd.f32 %v11792_v63, %v11791_v49 }
 0xb57   : > { %v11754_v58 = vpop.f32.mrf.mxu1  ;;  %v11794_v20 = vpop.f32.mrf.mxu0 }
 0xb58   : > { %v5297_v36 = vadd.f32 %v11753_v44, %v5232_v29  ;;  %v5398_v5 = vsel %vm587_vm0, %v5380_v61, 0.0  ;;  %v5373_v59 = vadd.f32 %v14743_v32, %v5357_v42 }
 0xb59   : > { %v11755_v45 = vpop.f32.mrf.mxu1  ;;  %5399 = vadd.xlane.f32.xlu1 %v5398_v5  ;;  %v11795_v39 = vpop.f32.mrf.mxu0 }
 0xb5a   : > { %v5362_v11 = vadd.f32 %v11793_v25, %v5297_v36  ;;  %v11756_v13 = vadd.f32 %v11755_v45, %v11754_v58  ;;  %v5381_v4 = vadd.f32 %v5373_v59, %v16594_v34  ;;  %v11796_v3 = vadd.f32 %v11795_v39, %v11794_v20  ;;  %v12806_v36 = vld [vmem:[%s16488_s3 + $0x8] sm:$0xff]  }
 0xb5b   : > { %12418 = vmatprep.subr.bf16.mxu1 %v12806_v36  ;;  %v16597_v25 = vmov 0.0  }
 0xb5c   : > { %v5300_v55 = vadd.f32 %v11756_v13, %v5235_v10  ;;  %v5401_v21 = vsel %vm587_vm0, %v5381_v4, 0.0  ;;  %v5374_v15 = vadd.f32 %v14743_v32, %v5362_v11  ;;  %12419 = vmatpush3.bf16.msra.mxu1 %v12806_v36 }
 0xb5d   : > { %5402 = vadd.xlane.f32.xlu0 %v5401_v21  ;;  %12434 = vmatprep.subr.bf16.mxu1 %v16597_v25 }
 0xb5e   : > { %v5365_v38 = vadd.f32 %v11796_v3, %v5300_v55  ;;  %v5382_v41 = vadd.f32 %v5374_v15, %v16595_v47 }
 0xb60   : > { %v5404_v35 = vsel %vm587_vm0, %v5382_v41, 0.0  ;;  %v5375_v19 = vadd.f32 %v14743_v32, %v5365_v38 }
 0xb61   : > { %5405 = vadd.xlane.f32.xlu1 %v5404_v35  ;;  %v10897_v35 = vld [vmem:[%s16498_s13] ss:$0 sm:$0xff] }
 0xb62   : > { %v5383_v53 = vadd.f32 %v5375_v19, %v16596_v24 }
 0xb64   : > { %v5407_v22 = vsel %vm587_vm0, %v5383_v53, 0.0 }
 0xb65   : > { %5408 = vadd.xlane.f32.xlu0 %v5407_v22 }
 0xbd2   : > { %v5388_v17 = vpop.xlane.xlu1 %5387 }
 0xbd3   : > { %v5410_v62 = vmul.f32 0.0625, %v5388_v17 }
 0xbd5   : > { %v14817_v43 = vsub.f32 %v14756_v52, %v5410_v62 }
 0xbd6   : > { %v5391_v7 = vpop.xlane.xlu0 %5390 }
 0xbd7   : > { %v5411_v51 = vmul.f32 0.0625, %v5391_v7  ;;  %v5426_v12 = vmul.f32 %v14817_v43, %v14817_v43  ;;  %v10898_v7 = vld [vmem:[%s16499_s14] ss:$0 sm:$0xff] }
 0xbd9   : > { %v14822_v8 = vsub.f32 %v14771_v30, %v5411_v51  ;;  %v5434_v32 = vsel %vm587_vm0, %v5426_v12, 0.0 }
 0xbda   : > { %v5394_v46 = vpop.xlane.xlu1 %5393  ;;  %5435 = vadd.xlane.f32.xlu1 %v5434_v32 }
 0xbdb   : > { %v5412_v50 = vmul.f32 0.0625, %v5394_v46  ;;  %v5427_v9 = vmul.f32 %v14822_v8, %v14822_v8 }
 0xbdd   : > { %v14828_v14 = vsub.f32 %v14786_v0, %v5412_v50  ;;  %v5437_v52 = vsel %vm587_vm0, %v5427_v9, 0.0 }
 0xbde   : > { %v5397_v18 = vpop.xlane.xlu0 %5396  ;;  %5438 = vadd.xlane.f32.xlu0 %v5437_v52 }
 0xbdf   : > { %v5413_v33 = vmul.f32 0.0625, %v5397_v18  ;;  %v5428_v30 = vmul.f32 %v14828_v14, %v14828_v14 }
 0xbe1   : > { %v14833_v37 = vsub.f32 %v5379_v6, %v5413_v33  ;;  %v5440_v1 = vsel %vm587_vm0, %v5428_v30, 0.0 }
 0xbe2   : > { %v5400_v56 = vpop.xlane.xlu1 %5399  ;;  %5441 = vadd.xlane.f32.xlu1 %v5440_v1 }
 0xbe3   : > { %v5414_v2 = vmul.f32 0.0625, %v5400_v56  ;;  %v5429_v31 = vmul.f32 %v14833_v37, %v14833_v37 }
 0xbe5   : > { %v14838_v0 = vsub.f32 %v5380_v61, %v5414_v2  ;;  %v5443_v40 = vsel %vm587_vm0, %v5429_v31, 0.0 }
 0xbe6   : > { %v5403_v16 = vpop.xlane.xlu0 %5402  ;;  %5444 = vadd.xlane.f32.xlu0 %v5443_v40 }
 0xbe7   : > { %v5415_v48 = vmul.f32 0.0625, %v5403_v16  ;;  %v5430_v49 = vmul.f32 %v14838_v0, %v14838_v0 }
 0xbe9   : > { %v14843_v6 = vsub.f32 %v5381_v4, %v5415_v48  ;;  %v5446_v28 = vsel %vm587_vm0, %v5430_v49, 0.0 }
 0xbea   : > { %5447 = vadd.xlane.f32.xlu1 %v5446_v28  ;;  %v5406_v60 = vpop.xlane.xlu1 %5405 }
 0xbeb   : > { %v5416_v29 = vmul.f32 0.0625, %v5406_v60  ;;  %v5431_v23 = vmul.f32 %v14843_v6, %v14843_v6 }
 0xbed   : > { %v14848_v57 = vsub.f32 %v5382_v41, %v5416_v29  ;;  %v5449_v42 = vsel %vm587_vm0, %v5431_v23, 0.0 }
 0xbee   : > { %5450 = vadd.xlane.f32.xlu0 %v5449_v42  ;;  %v5409_v44 = vpop.xlane.xlu0 %5408 }
 0xbef   : > { %v5417_v63 = vmul.f32 0.0625, %v5409_v44  ;;  %v5432_v26 = vmul.f32 %v14848_v57, %v14848_v57 }
 0xbf1   : > { %v14853_v61 = vsub.f32 %v5383_v53, %v5417_v63  ;;  %v5452_v27 = vsel %vm587_vm0, %v5432_v26, 0.0 }
 0xbf2   : > { %5453 = vadd.xlane.f32.xlu1 %v5452_v27 }
 0xbf3   : > { %v5433_v54 = vmul.f32 %v14853_v61, %v14853_v61 }
 0xbf5   : > { %v5455_v58 = vsel %vm587_vm0, %v5433_v54, 0.0 }
 0xbf6   : > { %5456 = vadd.xlane.f32.xlu0 %v5455_v58 }
 0xc63   : > { %v5436_v20 = vpop.xlane.xlu1 %5435 }
 0xc64   : > { %v5458_v5 = vmul.f32 0.0625, %v5436_v20 }
 0xc66   : > { %v5466_v59 = vadd.f32 1e-05, %v5458_v5 }
 0xc67   : > { %v5439_v45 = vpop.xlane.xlu0 %5438 }
 0xc68   : > { %13015 = vrsqrt.f32 %v5466_v59  ;;  %v5459_v10 = vmul.f32 0.0625, %v5439_v45 }
 0xc6a   : > { %v5467_v11 = vadd.f32 1e-05, %v5459_v10 }
 0xc6b   : > { %v5442_v13 = vpop.xlane.xlu1 %5441 }
 0xc6c   : > { %13017 = vrsqrt.f32 %v5467_v11  ;;  %v5460_v39 = vmul.f32 0.0625, %v5442_v13 }
 0xc6e   : > { %v5468_v34 = vadd.f32 1e-05, %v5460_v39 }
 0xc6f   : > { %v5445_v4 = vpop.xlane.xlu0 %5444 }
 0xc70   : > { %13019 = vrsqrt.f32 %v5468_v34  ;;  %v5461_v55 = vmul.f32 0.0625, %v5445_v4 }
 0xc72   : > { %v5469_v3 = vadd.f32 1e-05, %v5461_v55 }
 0xc73   : > { %v5448_v21 = vpop.xlane.xlu1 %5447 }
 0xc74   : > { %13021 = vrsqrt.f32 %v5469_v3  ;;  %v5462_v15 = vmul.f32 0.0625, %v5448_v21 }
 0xc75   : > { %v13016_v38 = vpop.eup %13015 }
 0xc76   : > { %v5470_v47 = vadd.f32 1e-05, %v5462_v15  ;;  %v5482_v41 = vmul.f32 %v13016_v38, %v14817_v43 }
 0xc77   : > { %v5451_v19 = vpop.xlane.xlu0 %5450 }
 0xc78   : > { %13023 = vrsqrt.f32 %v5470_v47  ;;  %v5463_v24 = vmul.f32 0.0625, %v5451_v19  ;;  %v5496_v62 = vmul.f32 %v10897_v35, %v5482_v41 }
 0xc79   : > { %v13018_v53 = vpop.eup %13017 }
 0xc7a   : > { %v5471_v22 = vadd.f32 1e-05, %v5463_v24  ;;  %v5483_v17 = vmul.f32 %v13018_v53, %v14822_v8  ;;  %v14872_v9 = vadd.f32 %v10898_v7, %v5496_v62 }
 0xc7b   : > { %v5454_v51 = vpop.xlane.xlu1 %5453 }
 0xc7c   : > { %13025 = vrsqrt.f32 %v5471_v22  ;;  %v5464_v12 = vmul.f32 0.0625, %v5454_v51  ;;  %v5497_v43 = vmul.f32 %v10897_v35, %v5483_v17 }
 0xc7d   : > { %v13020_v32 = vpop.eup %13019 }
 0xc7e   : > { %v5484_v46 = vmul.f32 %v13020_v32, %v14828_v14  ;;  %v5472_v50 = vadd.f32 1e-05, %v5464_v12  ;;  %v14874_v52 = vadd.f32 %v10898_v7, %v5497_v43 }
 0xc7f   : > { %v5457_v18 = vpop.xlane.xlu0 %5456 }
 0xc80   : > { %13027 = vrsqrt.f32 %v5472_v50  ;;  %v5465_v8 = vmul.f32 0.0625, %v5457_v18  ;;  %v5518_v33 = vpack.c.bf16 %v14874_v52, %v14872_v9  ;;  %v5498_v1 = vmul.f32 %v10897_v35, %v5484_v46 }
 0xc81   : > { %v13022_v30 = vpop.eup %13021 }
 0xc82   : > { %v5485_v56 = vmul.f32 %v13022_v30, %v14833_v37  ;;  %v5473_v2 = vadd.f32 1e-05, %v5465_v8  ;;  %12420 = vmatprep.mubr.msk.bf16.mxu1 %vm587_vm0, %v5518_v33  ;;  %v14880_v40 = vadd.f32 %v10898_v7, %v5498_v1 }
 0xc84   : > { %v5499_v31 = vmul.f32 %v10897_v35, %v5485_v56  ;;  %13029 = vrsqrt.f32 %v5473_v2 }
 0xc85   : > { %v13024_v14 = vpop.eup %13023 }
 0xc86   : > { %v14882_v16 = vadd.f32 %v10898_v7, %v5499_v31  ;;  %v5486_v48 = vmul.f32 %v13024_v14, %v14838_v0 }
 0xc88   : > { %v5519_v49 = vpack.c.bf16 %v14882_v16, %v14880_v40  ;;  %v5500_v60 = vmul.f32 %v10897_v35, %v5486_v48 }
 0xc89   : > { %v13026_v28 = vpop.eup %13025 }
 0xc8a   : > { %12421 = vmatmul.mubr.msk.bf16.vlgmr.msra.gmra.mxu1 %vm587_vm0, %v5519_v49  ;;  %v5487_v37 = vmul.f32 %v13026_v28, %v14843_v6  ;;  %v14890_v44 = vadd.f32 %v10898_v7, %v5500_v60 }
 0xc8c   : > { %v5501_v29 = vmul.f32 %v10897_v35, %v5487_v37 }
 0xc8d   : > { %v13028_v23 = vpop.eup %13027 }
 0xc8e   : > { %v5488_v42 = vmul.f32 %v13028_v23, %v14848_v57  ;;  %v14892_v63 = vadd.f32 %v10898_v7, %v5501_v29  ;;  %v14995_v29 = vld [vmem:[%s13419_s27] ss:$0 sm:$0xff] }
 0xc90   : > { %v5520_v0 = vpack.c.bf16 %v14892_v63, %v14890_v44  ;;  %v5502_v54 = vmul.f32 %v10897_v35, %v5488_v42 }
 0xc91   : > { %v13030_v26 = vpop.eup %13029 }
 0xc92   : > { %v5489_v27 = vmul.f32 %v13030_v26, %v14853_v61  ;;  %12424 = vmatprep.mubr.msk.bf16.mxu1 %vm587_vm0, %v5520_v0  ;;  %v14898_v6 = vadd.f32 %v10898_v7, %v5502_v54  ;;  %v10902_v61 = vld [vmem:[%s16489_s4 + $0x1] ss:$0 sm:$0xff] }
 0xc94   : > { %v5503_v58 = vmul.f32 %v10897_v35, %v5489_v27 }
 0xc96   : > { %v14900_v36 = vadd.f32 %v10898_v7, %v5503_v58 }
 0xc98   : > { %v5521_v57 = vpack.c.bf16 %v14900_v36, %v14898_v6 }
 0xc9a   : > { %12425 = vmatmul.mubr.msk.bf16.gmra.mxu1 %vm587_vm0, %v5521_v57  ;;  %v15003_v57 = vld [vmem:[%s13419_s27 + $0x1] ss:$0 sm:$0xff] }
 0xc9b   : > { %12436 = vmatprep.mubr.msk.bf16.mxu1 %vm13185_vm1, %v16597_v25 }
 0xd4a   : > { %v12422_v20 = vpop.f32.mrf.mxu1 }
 0xd4b   : > { %v5594_v10 = vadd.f32 %v12422_v20, %v10902_v61 }
 0xd4c   : > { %v5585_v5 = vpop.f32.mrf.mxu1 }
 0xd4d   : > { %v5586_v59 = vadd.f32 %v10902_v61, %v5585_v5  ;;  %v14914_v34 = vpack.c.bf16 %v5594_v10, %v5594_v10 }
 0xd4e   : > { %v12423_v45 = vpop.f32.mrf.mxu1 }
 0xd4f   : > { %v14910_v11 = vpack.c.bf16 %v5586_v59, %v5586_v59  ;;  %v5597_v4 = vadd.f32 %v12423_v45, %v10902_v61 }
 0xd50   : > { %v5588_v13 = vpop.f32.mrf.mxu1 }
 0xd51   : > { %v5589_v39 = vadd.f32 %v10902_v61, %v5588_v13  ;;  %5637 = vrot.lane.b32.xlu1 %v14910_v11, %s13186_s24  ;;  %v14922_v3 = vpack.c.bf16 %v5597_v4, %v5597_v4 }
 0xd53   : > { %v14916_v55 = vpack.c.bf16 %v5589_v39, %v5589_v39  ;;  %v15011_v39 = vld [vmem:[%s13419_s27 + $0x2] ss:$0 sm:$0xff] }
 0xd55   : > { %5686 = vrot.lane.b32.xlu0 %v14916_v55, %s13186_s24  ;;  %5735 = vrot.lane.b32.xlu1 %v14914_v34, %s13186_s24 }
 0xd59   : > { %5784 = vrot.lane.b32.xlu1 %v14922_v3, %s13186_s24 }
 0xd5a   : > { %v12426_v21 = vpop.f32.mrf.mxu1 }
 0xd5b   : > { %v5610_v41 = vadd.f32 %v12426_v21, %v10902_v61 }
 0xd5c   : > { %v5601_v15 = vpop.f32.mrf.mxu1 }
 0xd5d   : > { %v5602_v38 = vadd.f32 %v10902_v61, %v5601_v15  ;;  %v14930_v53 = vpack.c.bf16 %v5610_v41, %v5610_v41 }
 0xd5e   : > { %v12427_v47 = vpop.f32.mrf.mxu1 }
 0xd5f   : > { %v14926_v35 = vpack.c.bf16 %v5602_v38, %v5602_v38  ;;  %v5613_v22 = vadd.f32 %v12427_v47, %v10902_v61 }
 0xd60   : > { %v5604_v19 = vpop.f32.mrf.mxu1 }
 0xd61   : > { %v5605_v24 = vadd.f32 %v10902_v61, %v5604_v19  ;;  %5833 = vrot.lane.b32.xlu0 %v14926_v35, %s13186_s24  ;;  %v14938_v62 = vpack.c.bf16 %v5613_v22, %v5613_v22 }
 0xd63   : > { %v14932_v17 = vpack.c.bf16 %v5605_v24, %v5605_v24  ;;  %v15019_v24 = vld [vmem:[%s13419_s27 + $0x3] ss:$0 sm:$0xff] }
 0xd65   : > { %5882 = vrot.lane.b32.xlu1 %v14932_v17, %s13186_s24  ;;  %5931 = vrot.lane.b32.xlu0 %v14930_v53, %s13186_s24 }
 0xd69   : > { %5980 = vrot.lane.b32.xlu1 %v14938_v62, %s13186_s24  ;;  %s16599_s24 = smov 120  }
 0xd6d   : > { %6140 = vrot.lane.b32.xlu1 %v14910_v11, %s16598_s25 }
 0xdc3   : > { %v5638_v7 = vpop.permute.xlu1 %5637 }
 0xdc4   : > { %v5643_v51 = vsel %vm686_vm2, %v5638_v7, 0 }
 0xdc5   : > { %12429 = vmatpush3.bf16.xpose.msra.mxu0 %v5643_v51 }
 0xdc6   : > { %12440 = vmatprep.subr.bf16.mxu0 %v16597_v25 }
 0xdc7   : > { %v5687_v12 = vpop.permute.xlu0 %5686  ;;  %v5736_v43 = vpop.permute.xlu1 %5735 }
 0xdc8   : > { %v5692_v32 = vsel %vm686_vm2, %v5687_v12, 0  ;;  %v5741_v46 = vsel %vm686_vm2, %v5736_v43, 0 }
 0xdc9   : > { %12435 = vmatpush3.bf16.xpose.msra.mxu1 %v5692_v32 }
 0xdca   : > { %12446 = vmatprep.subr.bf16.mxu1 %v16597_v25 }
 0xdcb   : > { %v5785_v50 = vpop.permute.xlu1 %5784 }
 0xdcc   : > { %12431 = vmatmul.mubr.msk.bf16.vlgmr.msra.gmra.mxu0 %vm686_vm2, %v14910_v11  ;;  %v5790_v18 = vsel %vm686_vm2, %v5785_v50, 0  ;;  %v15024_v50 = vld [vmem:[%s13419_s27 + $0x4] ss:$0 sm:$0xff] }
 0xdcd   : > { %12441 = vmatpush3.bf16.xpose.msra.mxu0 %v5741_v46  ;;  %12442 = vmatprep.mubr.msk.bf16.mxu0 %vm13185_vm1, %v16597_v25 }
 0xdce   : > { %12452 = vmatprep.subr.bf16.mxu0 %v16597_v25 }
 0xdd0   : > { %12437 = vmatmul.mubr.msk.bf16.vlgmr.msra.gmra.mxu1 %vm686_vm2, %v14916_v55 }
 0xdd1   : > { %12447 = vmatpush3.bf16.xpose.msra.mxu1 %v5790_v18  ;;  %12448 = vmatprep.mubr.msk.bf16.mxu1 %vm13185_vm1, %v16597_v25 }
 0xdd2   : > { %12458 = vmatprep.subr.bf16.mxu1 %v16597_v25 }
 0xdd3   : > { %v5834_v8 = vpop.permute.xlu0 %5833 }
 0xdd4   : > { %v5839_v33 = vsel %vm686_vm2, %v5834_v8, 0  ;;  %12443 = vmatmul.mubr.msk.bf16.vlgmr.msra.gmra.mxu0 %vm686_vm2, %v14914_v34 }
 0xdd5   : > { %12453 = vmatpush3.bf16.xpose.msra.mxu0 %v5839_v33  ;;  %12454 = vmatprep.mubr.msk.bf16.mxu0 %vm13185_vm1, %v16597_v25 }
 0xdd6   : > { %12464 = vmatprep.subr.bf16.mxu0 %v16597_v25 }
 0xdd7   : > { %v5883_v30 = vpop.permute.xlu1 %5882  ;;  %v5932_v56 = vpop.permute.xlu0 %5931 }
 0xdd8   : > { %v5888_v1 = vsel %vm686_vm2, %v5883_v30, 0  ;;  %12449 = vmatmul.mubr.msk.bf16.vlgmr.msra.gmra.mxu1 %vm686_vm2, %v14922_v3  ;;  %v5937_v31 = vsel %vm686_vm2, %v5932_v56, 0 }
 0xdd9   : > { %12459 = vmatpush3.bf16.xpose.msra.mxu1 %v5888_v1  ;;  %12460 = vmatprep.mubr.msk.bf16.mxu1 %vm13185_vm1, %v16597_v25 }
 0xdda   : > { %12470 = vmatprep.subr.bf16.mxu1 %v16597_v25 }
 0xddb   : > { %v5981_v2 = vpop.permute.xlu1 %5980 }
 0xddc   : > { %12455 = vmatmul.mubr.msk.bf16.vlgmr.msra.gmra.mxu0 %vm686_vm2, %v14926_v35  ;;  %v5986_v14 = vsel %vm686_vm2, %v5981_v2, 0 }
 0xddd   : > { %12465 = vmatpush3.bf16.xpose.msra.mxu0 %v5937_v31  ;;  %12466 = vmatprep.mubr.msk.bf16.mxu0 %vm13185_vm1, %v16597_v25  ;;  %v15032_v31 = vld [vmem:[%s13419_s27 + $0x5] ss:$0 sm:$0xff] }
 0xdde   : > { %12476 = vmatprep.subr.bf16.mxu0 %v16597_v25 }
 0xddf   : > { %v6141_v48 = vpop.permute.xlu1 %6140 }
 0xde0   : > { %12461 = vmatmul.mubr.msk.bf16.vlgmr.msra.gmra.mxu1 %vm686_vm2, %v14932_v17  ;;  %v6146_v49 = vsel %vm1241_vm3, %v6141_v48, 0 }
 0xde1   : > { %12471 = vmatpush3.bf16.xpose.msra.mxu1 %v5986_v14  ;;  %12472 = vmatprep.mubr.msk.bf16.mxu1 %vm13185_vm1, %v16597_v25 }
 0xde2   : > { %12482 = vmatprep.subr.bf16.mxu1 %v16597_v25 }
 0xde4   : > { %12467 = vmatmul.mubr.msk.bf16.vlgmr.msra.gmra.mxu0 %vm686_vm2, %v14930_v53 }
 0xde5   : > { %12477 = vmatpush3.bf16.msra.mxu0 %v6146_v49  ;;  %12478 = vmatprep.mubr.msk.bf16.mxu0 %vm13185_vm1, %v16597_v25 }
 0xde6   : > { %12488 = vmatprep.subr.bf16.mxu0 %v16597_v25 }
 0xde8   : > { %12473 = vmatmul.mubr.msk.bf16.vlgmr.msra.gmra.mxu1 %vm686_vm2, %v14938_v62 }
 0xde9   : > { %12484 = vmatprep.mubr.msk.bf16.mxu1 %vm13185_vm1, %v16597_v25 }
 0xe8c   : > { %v5679_v28 = vpop.f32.mrf.mxu0 }
 0xe8d   : > { %v6028_v37 = vmul.f32 0.35355338, %v5679_v28 }
 0xe8e   : > { %v12432_v60 = vpop.f32.mrf.mxu0 }
 0xe8f   : > { %v14998_v23 = vadd.f32 %v14995_v29, %v6028_v37 }
 0xe90   : > { %v5682_v42 = vpop.f32.mrf.mxu0  ;;  %v5728_v0 = vpop.f32.mrf.mxu1 }
 0xe91   : > { %v6029_v26 = vmul.f32 0.35355338, %v5728_v0  ;;  %v6044_v27 = vsel %vm686_vm2, %v14998_v23, -inf  ;;  %v15040_v0 = vld [vmem:[%s13419_s27 + $0x6] ss:$0 sm:$0xff] }
 0xe92   : > { %v12438_v54 = vpop.f32.mrf.mxu1  ;;  %6045 = vmax.xlane.f32.xlu0 %v6044_v27  ;;  %v12433_v58 = vpop.f32.mrf.mxu0 }
 0xe93   : > { %v15006_v20 = vadd.f32 %v15003_v57, %v6029_v26 }
 0xe94   : > { %v5731_v61 = vpop.f32.mrf.mxu1  ;;  %v5777_v5 = vpop.f32.mrf.mxu0 }
 0xe95   : > { %v6030_v59 = vmul.f32 0.35355338, %v5777_v5  ;;  %v6047_v45 = vsel %vm686_vm2, %v15006_v20, -inf }
 0xe96   : > { %v12439_v10 = vpop.f32.mrf.mxu1  ;;  %6048 = vmax.xlane.f32.xlu1 %v6047_v45  ;;  %v12444_v13 = vpop.f32.mrf.mxu0  ;;  %v15045_v45 = vld [vmem:[%s13419_s27 + $0x7] ss:$0 sm:$0xff]  ;;  %s16600_s27 = smov 104  }
 0xe97   : > { %v15014_v4 = vadd.f32 %v15011_v39, %v6030_v59 }
 0xe98   : > { %v5780_v21 = vpop.f32.mrf.mxu0  ;;  %v5826_v15 = vpop.f32.mrf.mxu1 }
 0xe99   : > { %v6031_v38 = vmul.f32 0.35355338, %v5826_v15  ;;  %v6050_v47 = vsel %vm686_vm2, %v15014_v4, -inf }
 0xe9a   : > { %6051 = vmax.xlane.f32.xlu0 %v6050_v47  ;;  %v12445_v41 = vpop.f32.mrf.mxu0  ;;  %v12450_v19 = vpop.f32.mrf.mxu1 }
 0xe9b   : > { %v6039_v22 = vadd.f32 %v15019_v24, %v6031_v38 }
 0xe9c   : > { %v5829_v7 = vpop.f32.mrf.mxu1  ;;  %v5875_v51 = vpop.f32.mrf.mxu0 }
 0xe9d   : > { %v6032_v12 = vmul.f32 0.35355338, %v5875_v51  ;;  %v6053_v43 = vsel %vm686_vm2, %v6039_v22, -inf }
 0xe9e   : > { %v12456_v32 = vpop.f32.mrf.mxu0  ;;  %6054 = vmax.xlane.f32.xlu0 %v6053_v43  ;;  %v12451_v46 = vpop.f32.mrf.mxu1 }
 0xe9f   : > { %v15027_v18 = vadd.f32 %v15024_v50, %v6032_v12 }
 0xea0   : > { %v5878_v8 = vpop.f32.mrf.mxu0  ;;  %v5924_v33 = vpop.f32.mrf.mxu1 }
 0xea1   : > { %v6033_v30 = vmul.f32 0.35355338, %v5924_v33  ;;  %v6056_v1 = vsel %vm686_vm2, %v15027_v18, -inf }
 0xea2   : > { %6057 = vmax.xlane.f32.xlu1 %v6056_v1  ;;  %v12457_v56 = vpop.f32.mrf.mxu0  ;;  %v12462_v2 = vpop.f32.mrf.mxu1 }
 0xea3   : > { %v15035_v14 = vadd.f32 %v15032_v31, %v6033_v30 }
 0xea4   : > { %v5927_v48 = vpop.f32.mrf.mxu1  ;;  %v5973_v49 = vpop.f32.mrf.mxu0 }
 0xea5   : > { %v6034_v28 = vmul.f32 0.35355338, %v5973_v49  ;;  %v6059_v37 = vsel %vm686_vm2, %v15035_v14, -inf }
 0xea6   : > { %v12468_v60 = vpop.f32.mrf.mxu0  ;;  %6060 = vmax.xlane.f32.xlu0 %v6059_v37  ;;  %v12463_v42 = vpop.f32.mrf.mxu1 }
 0xea7   : > { %v6042_v26 = vadd.f32 %v15040_v0, %v6034_v28 }
 0xea8   : > { %v5976_v27 = vpop.f32.mrf.mxu0  ;;  %v6022_v54 = vpop.f32.mrf.mxu1 }
 0xea9   : > { %v6035_v58 = vmul.f32 0.35355338, %v6022_v54  ;;  %v6062_v61 = vsel %vm686_vm2, %v6042_v26, -inf }
 0xeaa   : > { %6063 = vmax.xlane.f32.xlu1 %v6062_v61  ;;  %v12469_v5 = vpop.f32.mrf.mxu0  ;;  %v12474_v59 = vpop.f32.mrf.mxu1 }
 0xeab   : > { %v6043_v10 = vadd.f32 %v15045_v45, %v6035_v58 }
 0xeac   : > { %v6025_v13 = vpop.f32.mrf.mxu1 }
 0xead   : > { %v6065_v21 = vsel %vm686_vm2, %v6043_v10, -inf }
 0xeae   : > { %6066 = vmax.xlane.f32.xlu0 %v6065_v21  ;;  %v12475_v15 = vpop.f32.mrf.mxu1 }
 0xebb   : > { %6236 = vrot.lane.b32.xlu1 %v14914_v34, %s16598_s25 }
 0xebf   : > { %6284 = vrot.lane.b32.xlu1 %v14922_v3, %s16598_s25 }
 0xec4   : > { %6188 = vrot.lane.b32.xlu0 %v14916_v55, %s16598_s25 }
 0xf1b   : > { %v6046_v38 = vpop.xlane.xlu0 %6045 }
 0xf1c   : > { %v6068_v47 = vsub.f32 %v14998_v23, %v6046_v38 }
 0xf1e   : > { %v6076_v41 = vmul.f32 1.442695, %v6068_v47 }
 0xf1f   : > { %v6049_v19 = vpop.xlane.xlu1 %6048 }
 0xf20   : > { %13031 = vpow2.f32 %v6076_v41  ;;  %v6069_v7 = vsub.f32 %v15006_v20, %v6049_v19 }
 0xf22   : > { %v6078_v51 = vmul.f32 1.442695, %v6069_v7 }
 0xf23   : > { %v6052_v12 = vpop.xlane.xlu0 %6051 }
 0xf24   : > { %13033 = vpow2.f32 %v6078_v51  ;;  %v6070_v43 = vsub.f32 %v15014_v4, %v6052_v12 }
 0xf26   : > { %v6080_v32 = vmul.f32 1.442695, %v6070_v43 }
 0xf27   : > { %v6055_v46 = vpop.xlane.xlu0 %6054 }
 0xf28   : > { %13035 = vpow2.f32 %v6080_v32  ;;  %v6071_v8 = vsub.f32 %v6039_v22, %v6055_v46 }
 0xf2a   : > { %v6082_v33 = vmul.f32 1.442695, %v6071_v8 }
 0xf2b   : > { %v6058_v60 = vpop.xlane.xlu1 %6057 }
 0xf2c   : > { %13037 = vpow2.f32 %v6082_v33  ;;  %v6072_v42 = vsub.f32 %v15027_v18, %v6058_v60 }
 0xf2d   : > { %v15058_v30 = vpop.eup %13031 }
 0xf2e   : > { %v6092_v23 = vsel %vm686_vm2, %v15058_v30, 0.0  ;;  %v6084_v58 = vmul.f32 1.442695, %v6072_v42 }
 0xf2f   : > { %6093 = vadd.xlane.f32.xlu1 %v6092_v23  ;;  %v6061_v56 = vpop.xlane.xlu0 %6060 }
 0xf30   : > { %v6073_v54 = vsub.f32 %v15035_v14, %v6061_v56  ;;  %13039 = vpow2.f32 %v6084_v58 }
 0xf31   : > { %v15062_v1 = vpop.eup %13033 }
 0xf32   : > { %v6095_v20 = vsel %vm686_vm2, %v15062_v1, 0.0  ;;  %v6086_v5 = vmul.f32 1.442695, %v6073_v54 }
 0xf33   : > { %6096 = vadd.xlane.f32.xlu0 %v6095_v20  ;;  %v6064_v27 = vpop.xlane.xlu1 %6063 }
 0xf34   : > { %v6074_v61 = vsub.f32 %v6042_v26, %v6064_v27  ;;  %13041 = vpow2.f32 %v6086_v5 }
 0xf35   : > { %v15066_v4 = vpop.eup %13035 }
 0xf36   : > { %v6098_v22 = vsel %vm686_vm2, %v15066_v4, 0.0  ;;  %v6088_v59 = vmul.f32 1.442695, %v6074_v61 }
 0xf37   : > { %6099 = vadd.xlane.f32.xlu1 %v6098_v22  ;;  %v6067_v2 = vpop.xlane.xlu0 %6066  ;;  %v6237_v19 = vpop.permute.xlu1 %6236 }
 0xf38   : > { %v6075_v13 = vsub.f32 %v6043_v10, %v6067_v2  ;;  %13043 = vpow2.f32 %v6088_v59  ;;  %v6242_v20 = vsel %vm1241_vm3, %v6237_v19, 0 }
 0xf39   : > { %v15070_v48 = vpop.eup %13037 }
 0xf3a   : > { %v6101_v49 = vsel %vm686_vm2, %v15070_v48, 0.0  ;;  %v6090_v21 = vmul.f32 1.442695, %v6075_v13 }
 0xf3b   : > { %v6189_v28 = vpop.permute.xlu0 %6188  ;;  %6102 = vadd.xlane.f32.xlu0 %v6101_v49  ;;  %v6285_v7 = vpop.permute.xlu1 %6284 }
 0xf3c   : > { %v6194_v37 = vsel %vm1241_vm3, %v6189_v28, 0  ;;  %13045 = vpow2.f32 %v6090_v21  ;;  %v6290_v49 = vsel %vm1241_vm3, %v6285_v7, 0 }
 0xf3d   : > { %12483 = vmatpush3.bf16.msra.mxu1 %v6194_v37  ;;  %v15082_v15 = vpop.eup %13039 }
 0xf3e   : > { %12494 = vmatprep.subr.bf16.mxu1 %v16597_v25  ;;  %v6104_v18 = vsel %vm686_vm2, %v15082_v15, 0.0 }
 0xf41   : > { %v15084_v38 = vpop.eup %13041 }
 0xf42   : > { %v6107_v14 = vsel %vm686_vm2, %v15084_v38, 0.0 }
 0xf45   : > { %v15088_v47 = vpop.eup %13043 }
 0xf46   : > { %v6110_v26 = vsel %vm686_vm2, %v15088_v47, 0.0 }
 0xf48   : > { %6380 = vrot.lane.b32.xlu1 %v14932_v17, %s16598_s25 }
 0xf49   : > { %v15094_v10 = vpop.eup %13045 }
 0xf4a   : > { %v6113_v41 = vsel %vm686_vm2, %v15094_v10, 0.0 }
 0xf51   : > { %6332 = vrot.lane.b32.xlu0 %v14926_v35, %s16598_s25 }
 0xf6c   : > { %6105 = vadd.xlane.f32.xlu1 %v6104_v18 }
 0xf70   : > { %6108 = vadd.xlane.f32.xlu0 %v6107_v14  ;;  %6111 = vadd.xlane.f32.xlu1 %v6110_v26 }
 0xf74   : > { %6114 = vadd.xlane.f32.xlu0 %v6113_v41 }
 0xf81   : > { %6476 = vrot.lane.b32.xlu1 %v14938_v62, %s16598_s25 }
 0xf85   : > { %6616 = vrot.lane.b32.xlu1 %v14910_v11, %s16599_s24 }
 0xf89   : > { %6666 = vrot.lane.b32.xlu1 %v14916_v55, %s16599_s24 }
 0xf8a   : > { %6428 = vrot.lane.b32.xlu0 %v14930_v53, %s16598_s25  ;;  %s16655_s25 = sshll.u32 %s16657_s28, 3 }
 0xf8b   : > { %s16380_s26 = scalar_lea.vmem %s16487_s2, %s16655_s25 }
 0xf8d   : > { %6768 = vrot.lane.b32.xlu1 %v14922_v3, %s16600_s27 }
 0xf8e   : > { %6618 = vrot.lane.b32.xlu0 %v14910_v11, %s16600_s27 }
 0xf91   : > { %6766 = vrot.lane.b32.xlu1 %v14922_v3, %s16599_s24 }
 0xf92   : > { %6668 = vrot.lane.b32.xlu0 %v14916_v55, %s16600_s27 }
 0xf95   : > { %6868 = vrot.lane.b32.xlu1 %v14932_v17, %s16600_s27 }
 0xf96   : > { %6718 = vrot.lane.b32.xlu0 %v14914_v34, %s16600_s27 }
 0xf99   : > { %6866 = vrot.lane.b32.xlu1 %v14932_v17, %s16599_s24 }
 0xf9a   : > { %6716 = vrot.lane.b32.xlu0 %v14914_v34, %s16599_s24 }
 0xf9d   : > { %6968 = vrot.lane.b32.xlu1 %v14938_v62, %s16600_s27 }
 0xf9e   : > { %6818 = vrot.lane.b32.xlu0 %v14926_v35, %s16600_s27 }
 0xfa1   : > { %6966 = vrot.lane.b32.xlu1 %v14938_v62, %s16599_s24 }
 0xfa2   : > { %6816 = vrot.lane.b32.xlu0 %v14926_v35, %s16599_s24 }
 0xfa6   : > { %6918 = vrot.lane.b32.xlu0 %v14930_v53, %s16600_s27 }
 0xfaa   : > { %6916 = vrot.lane.b32.xlu0 %v14930_v53, %s16599_s24 }
 0xfb8   : > { %v6094_v51 = vpop.xlane.xlu1 %6093 }
 0xfb9   : > { %13047 = vrcp.f32 %v6094_v51 }
 0xfbc   : > { %v6097_v12 = vpop.xlane.xlu0 %6096 }
 0xfbd   : > { %13049 = vrcp.f32 %v6097_v12 }
 0xfc0   : > { %v6100_v43 = vpop.xlane.xlu1 %6099 }
 0xfc1   : > { %13051 = vrcp.f32 %v6100_v43 }
 0xfc4   : > { %v6103_v32 = vpop.xlane.xlu0 %6102  ;;  %v6381_v27 = vpop.permute.xlu1 %6380 }
 0xfc5   : > { %13053 = vrcp.f32 %v6103_v32  ;;  %v6386_v54 = vsel %vm1241_vm3, %v6381_v27, 0 }
 0xfc6   : > { %v13048_v46 = vpop.eup %13047 }
 0xfc7   : > { %v6124_v8 = vmul.f32 %v13048_v46, %v15058_v30 }
 0xfc8   : > { %v6333_v28 = vpop.permute.xlu0 %6332 }
 0xfc9   : > { %v6132_v33 = vpack.c.bf16 %v6124_v8, %v6124_v8  ;;  %v6338_v42 = vsel %vm1241_vm3, %v6333_v28, 0 }
 0xfca   : > { %v13050_v23 = vpop.eup %13049 }
 0xfcb   : > { %v6125_v56 = vmul.f32 %v13050_v23, %v15062_v1  ;;  %12479 = vmatmul.mubr.msk.bf16.vlgmr.msra.gmra.mxu0 %vm686_vm2, %v6132_v33 }
 0xfcc   : > { %12489 = vmatpush3.bf16.msra.mxu0 %v6242_v20  ;;  %12490 = vmatprep.mubr.msk.bf16.mxu0 %vm13185_vm1, %v16597_v25  ;;  %v10908_v20 = vld [vmem:[%s16490_s5 + $0x8] sm:$0xf] }
 0xfcd   : > { %v6133_v22 = vpack.c.bf16 %v6125_v56, %v6125_v56  ;;  %12500 = vmatprep.subr.bf16.mxu0 %v16597_v25 }
 0xfce   : > { %v13052_v2 = vpop.eup %13051 }
 0xfcf   : > { %v6126_v30 = vmul.f32 %v13052_v2, %v15066_v4  ;;  %12485 = vmatmul.mubr.msk.bf16.vlgmr.msra.gmra.mxu1 %vm686_vm2, %v6133_v22 }
 0xfd0   : > { %12495 = vmatpush3.bf16.msra.mxu1 %v6290_v49  ;;  %12496 = vmatprep.mubr.msk.bf16.mxu1 %vm13185_vm1, %v16597_v25 }
 0xfd1   : > { %v6134_v1 = vpack.c.bf16 %v6126_v30, %v6126_v30  ;;  %12506 = vmatprep.subr.bf16.mxu1 %v16597_v25 }
 0xfd2   : > { %v13054_v37 = vpop.eup %13053 }
 0xfd3   : > { %v6127_v60 = vmul.f32 %v13054_v37, %v15070_v48  ;;  %12491 = vmatmul.mubr.msk.bf16.vlgmr.msra.gmra.mxu0 %vm686_vm2, %v6134_v1 }
 0xfd4   : > { %12501 = vmatpush3.bf16.msra.mxu0 %v6338_v42  ;;  %12502 = vmatprep.mubr.msk.bf16.mxu0 %vm13185_vm1, %v16597_v25 }
 0xfd5   : > { %v6135_v4 = vpack.c.bf16 %v6127_v60, %v6127_v60  ;;  %12512 = vmatprep.subr.bf16.mxu0 %v16597_v25 }
 0xfd7   : > { %12497 = vmatmul.mubr.msk.bf16.vlgmr.msra.gmra.mxu1 %vm686_vm2, %v6135_v4 }
 0xfd8   : > { %12507 = vmatpush3.bf16.msra.mxu1 %v6386_v54  ;;  %12508 = vmatprep.mubr.msk.bf16.mxu1 %vm13185_vm1, %v16597_v25 }
 0xfd9   : > { %12518 = vmatprep.subr.bf16.mxu1 %v16597_v25 }
 0xff5   : > { %v6106_v48 = vpop.xlane.xlu1 %6105 }
 0xff6   : > { %13055 = vrcp.f32 %v6106_v48 }
 0xff9   : > { %v6109_v58 = vpop.xlane.xlu0 %6108  ;;  %v6112_v61 = vpop.xlane.xlu1 %6111 }
 0xffa   : > { %13057 = vrcp.f32 %v6109_v58 }
 0xffb   : > { %13059 = vrcp.f32 %v6112_v61 }
 0xffd   : > { %v6115_v5 = vpop.xlane.xlu0 %6114  ;;  %v6477_v26 = vpop.permute.xlu1 %6476 }
 0xffe   : > { %13061 = vrcp.f32 %v6115_v5 }
0x1001   : > { %v6429_v21 = vpop.permute.xlu0 %6428  ;;  %v6617_v32 = vpop.permute.xlu1 %6616 }
0x1002   : > { %v6434_v7 = vsel %vm1241_vm3, %v6429_v21, 0 }
0x1003   : > { %v13056_v59 = vpop.eup %13055 }
0x1004   : > { %v6128_v13 = vmul.f32 %v13056_v59, %v15082_v15  ;;  %v6482_v15 = vsel %vm1241_vm3, %v6477_v26, 0 }
0x1005   : > { %v6619_v8 = vpop.permute.xlu0 %6618 }
0x1006   : > { %v6136_v18 = vpack.c.bf16 %v6128_v13, %v6128_v13  ;;  %v6624_v23 = vsel %vm686_vm2, %v6619_v8, 0 }
0x1007   : > { %v13058_v14 = vpop.eup %13057 }
0x1008   : > { %v13060_v41 = vpop.eup %13059  ;;  %v6129_v19 = vmul.f32 %v13058_v14, %v15084_v38  ;;  %12503 = vmatmul.mubr.msk.bf16.vlgmr.msra.gmra.mxu0 %vm686_vm2, %v6136_v18 }
0x1009   : > { %12513 = vmatpush3.bf16.msra.mxu0 %v6434_v7  ;;  %12514 = vmatprep.mubr.msk.bf16.mxu0 %vm13185_vm1, %v16597_v25  ;;  %v6130_v12 = vmul.f32 %v13060_v41, %v15088_v47  ;;  %v6667_v47 = vpop.permute.xlu1 %6666  ;;  %v6669_v56 = vpop.permute.xlu0 %6668 }
0x100a   : > { %v6137_v51 = vpack.c.bf16 %v6129_v19, %v6129_v19  ;;  %12644 = vmatprep.subr.msk.bf16.mxu0 %vm1241_vm3, %v10908_v20  ;;  %v6674_v2 = vsel %vm686_vm2, %v6669_v56, 0 }
0x100b   : > { %v13062_v43 = vpop.eup %13061  ;;  %v6138_v38 = vpack.c.bf16 %v6130_v12, %v6130_v12 }
0x100c   : > { %12509 = vmatmul.mubr.msk.bf16.vlgmr.msra.gmra.mxu1 %vm686_vm2, %v6137_v51  ;;  %v6131_v46 = vmul.f32 %v13062_v43, %v15094_v10  ;;  %v6541_v10 = vsel %vm1241_vm3, %v10908_v20, 0 }
0x100d   : > { %12519 = vmatpush3.bf16.msra.mxu1 %v6482_v15  ;;  %12520 = vmatprep.mubr.msk.bf16.mxu1 %vm13185_vm1, %v16597_v25  ;;  %v6769_v22 = vpop.permute.xlu1 %6768  ;;  %v6719_v26 = vpop.permute.xlu0 %6718 }
0x100e   : > { %12534 = vmatprep.subr.bf16.mxu1 %v16597_v25  ;;  %v6139_v33 = vpack.c.bf16 %v6131_v46, %v6131_v46  ;;  %v6774_v30 = vsel %vm686_vm2, %v6769_v22, 0  ;;  %v6724_v43 = vsel %vm686_vm2, %v6719_v26, 0 }
0x1010   : > { %12515 = vmatmul.mubr.msk.bf16.vlgmr.msra.gmra.mxu0 %vm686_vm2, %v6138_v38 }
0x1011   : > { %12525 = vmatpush3.bf16.msra.mxu0 %v6541_v10  ;;  %v6767_v49 = vpop.permute.xlu1 %6766  ;;  %v6717_v22 = vpop.permute.xlu0 %6716 }
0x1012   : > { %12546 = vmatprep.subr.bf16.mxu0 %v16597_v25 }
0x1014   : > { %12521 = vmatmul.mubr.msk.bf16.vlgmr.msra.gmra.mxu1 %vm686_vm2, %v6139_v33 }
0x1015   : > { %12535 = vmatpush3.bf16.xpose.msra.mxu1 %v6624_v23  ;;  %12536 = vmatprep.mubr.msk.bf16.mxu1 %vm13185_vm1, %v16597_v25  ;;  %v6869_v28 = vpop.permute.xlu1 %6868 }
0x1016   : > { %12540 = vmatprep.subr.bf16.mxu1 %v16597_v25  ;;  %v6874_v37 = vsel %vm686_vm2, %v6869_v28, 0 }
0x1019   : > { %v6867_v1 = vpop.permute.xlu1 %6866 }
0x101c   : > { %12537 = vmatmul.mubr.msk.bf16.vlgmr.msra.gmra.mxu1 %vm686_vm2, %v6617_v32 }
0x101d   : > { %12541 = vmatpush3.bf16.xpose.msra.mxu1 %v6674_v2  ;;  %12542 = vmatprep.mubr.msk.bf16.mxu1 %vm13185_vm1, %v16597_v25  ;;  %v6969_v60 = vpop.permute.xlu1 %6968 }
0x101e   : > { %12552 = vmatprep.subr.bf16.mxu1 %v16597_v25  ;;  %v6974_v42 = vsel %vm686_vm2, %v6969_v60, 0 }
0x1021   : > { %v6967_v27 = vpop.permute.xlu1 %6966 }
0x1024   : > { %12543 = vmatmul.mubr.msk.bf16.vlgmr.msra.gmra.mxu1 %vm686_vm2, %v6667_v47 }
0x1025   : > { %12553 = vmatpush3.bf16.xpose.msra.mxu1 %v6774_v30  ;;  %12554 = vmatprep.mubr.msk.bf16.mxu1 %vm13185_vm1, %v16597_v25 }
0x1026   : > { %12564 = vmatprep.subr.bf16.mxu1 %v16597_v25 }
0x102c   : > { %12555 = vmatmul.mubr.msk.bf16.vlgmr.msra.gmra.mxu1 %vm686_vm2, %v6767_v49 }
0x102d   : > { %12565 = vmatpush3.bf16.xpose.msra.mxu1 %v6874_v37  ;;  %12566 = vmatprep.mubr.msk.bf16.mxu1 %vm13185_vm1, %v16597_v25 }
0x102e   : > { %12576 = vmatprep.subr.bf16.mxu1 %v16597_v25 }
0x1034   : > { %12567 = vmatmul.mubr.msk.bf16.vlgmr.msra.gmra.mxu1 %vm686_vm2, %v6867_v1 }
0x1035   : > { %12577 = vmatpush3.bf16.xpose.msra.mxu1 %v6974_v42  ;;  %12578 = vmatprep.mubr.msk.bf16.mxu1 %vm13185_vm1, %v16597_v25  ;;  %v6819_v42 = vpop.permute.xlu0 %6818 }
0x1036   : > { %12588 = vmatprep.subr.bf16.mxu1 %v16597_v25 }
0x103c   : > { %12579 = vmatmul.mubr.msk.bf16.vlgmr.msra.gmra.mxu1 %vm686_vm2, %v6967_v27 }
0x103d   : > { %12590 = vmatprep.mubr.msk.bf16.mxu1 %vm13185_vm1, %v16597_v25 }
0x108b   : > { %v6182_v4 = vpop.f32.mrf.mxu0 }
0x108d   : > { %v12480_v54 = vpop.f32.mrf.mxu0 }
0x108f   : > { %v6185_v48 = vpop.f32.mrf.mxu0  ;;  %v6230_v58 = vpop.f32.mrf.mxu1 }
0x1090   : > { %v6524_v61 = vpack.c.bf16 %v6230_v58, %v6182_v4  ;;  %v6817_v58 = vpop.permute.xlu0 %6816 }
0x1091   : > { %v12481_v5 = vpop.f32.mrf.mxu0  ;;  %v12486_v59 = vpop.f32.mrf.mxu1 }
0x1092   : > { %12526 = vmatprep.mubr.msk.bf16.mxu0 %vm686_vm2, %v6524_v61  ;;  %v6824_v5 = vsel %vm686_vm2, %v6819_v42, 0 }
0x1093   : > { %v6233_v13 = vpop.f32.mrf.mxu1  ;;  %v6278_v21 = vpop.f32.mrf.mxu0 }
0x1095   : > { %v12487_v18 = vpop.f32.mrf.mxu1  ;;  %v12492_v14 = vpop.f32.mrf.mxu0 }
0x1096   : > { %v6919_v14 = vpop.permute.xlu0 %6918 }
0x1097   : > { %v6281_v41 = vpop.f32.mrf.mxu0  ;;  %v6326_v19 = vpop.f32.mrf.mxu1 }
0x1098   : > { %v6525_v7 = vpack.c.bf16 %v6326_v19, %v6278_v21 }
0x1099   : > { %v12493_v51 = vpop.f32.mrf.mxu0  ;;  %v12498_v12 = vpop.f32.mrf.mxu1 }
0x109a   : > { %12527 = vmatmul.mubr.msk.bf16.vlgmr.msra.gmra.mxu0 %vm686_vm2, %v6525_v7  ;;  %v6924_v7 = vsel %vm686_vm2, %v6919_v14, 0 }
0x109b   : > { %12547 = vmatpush3.bf16.xpose.msra.mxu0 %v6724_v43  ;;  %v6329_v15 = vpop.f32.mrf.mxu1 }
0x109c   : > { %12558 = vmatprep.subr.bf16.mxu0 %v16597_v25 }
0x109d   : > { %v12499_v32 = vpop.f32.mrf.mxu1 }
0x109e   : > { %v6917_v32 = vpop.permute.xlu0 %6916 }
0x10c8   : > { %v6374_v38 = vpop.f32.mrf.mxu0 }
0x10ca   : > { %v12504_v46 = vpop.f32.mrf.mxu0 }
0x10cc   : > { %v6377_v8 = vpop.f32.mrf.mxu0  ;;  %v6422_v33 = vpop.f32.mrf.mxu1 }
0x10cd   : > { %v6526_v47 = vpack.c.bf16 %v6422_v33, %v6374_v38 }
0x10ce   : > { %v12505_v23 = vpop.f32.mrf.mxu0  ;;  %v12510_v20 = vpop.f32.mrf.mxu1 }
0x10cf   : > { %12530 = vmatprep.mubr.msk.bf16.mxu0 %vm686_vm2, %v6526_v47 }
0x10d0   : > { %v6425_v10 = vpop.f32.mrf.mxu1  ;;  %v6470_v56 = vpop.f32.mrf.mxu0 }
0x10d2   : > { %v12511_v2 = vpop.f32.mrf.mxu1  ;;  %v12516_v49 = vpop.f32.mrf.mxu0 }
0x10d4   : > { %v6473_v30 = vpop.f32.mrf.mxu0  ;;  %v6518_v28 = vpop.f32.mrf.mxu1 }
0x10d5   : > { %v6527_v1 = vpack.c.bf16 %v6518_v28, %v6470_v56 }
0x10d6   : > { %v12517_v37 = vpop.f32.mrf.mxu0  ;;  %v12522_v60 = vpop.f32.mrf.mxu1 }
0x10d7   : > { %12531 = vmatmul.mubr.msk.bf16.gmra.mxu0 %vm686_vm2, %v6527_v1 }
0x10d8   : > { %v6521_v27 = vpop.f32.mrf.mxu1  ;;  %12548 = vmatprep.mubr.msk.bf16.mxu0 %vm13185_vm1, %v16597_v25 }
0x10da   : > { %v12523_v4 = vpop.f32.mrf.mxu1 }
0x10dc   : > { %v6660_v54 = vpop.f32.mrf.mxu1 }
0x10dd   : > { %v7016_v48 = vmul.f32 0.35355338, %v6660_v54 }
0x10de   : > { %v12538_v61 = vpop.f32.mrf.mxu1 }
0x10df   : > { %v7024_v59 = vadd.f32 %v14995_v29, %v7016_v48  ;;  %12549 = vmatmul.mubr.msk.bf16.vlgmr.msra.gmra.mxu0 %vm686_vm2, %v6717_v22 }
0x10e0   : > { %12559 = vmatpush3.bf16.xpose.msra.mxu0 %v6824_v5  ;;  %v6663_v13 = vpop.f32.mrf.mxu1  ;;  %12560 = vmatprep.mubr.msk.bf16.mxu0 %vm13185_vm1, %v16597_v25 }
0x10e1   : > { %v7032_v21 = vsel %vm686_vm2, %v7024_v59, -inf  ;;  %12570 = vmatprep.subr.bf16.mxu0 %v16597_v25 }
0x10e2   : > { %7033 = vmax.xlane.f32.xlu0 %v7032_v21  ;;  %v12539_v18 = vpop.f32.mrf.mxu1 }
0x10e4   : > { %v6710_v26 = vpop.f32.mrf.mxu1 }
0x10e5   : > { %v7017_v41 = vmul.f32 0.35355338, %v6710_v26 }
0x10e6   : > { %v12544_v19 = vpop.f32.mrf.mxu1 }
0x10e7   : > { %v7025_v29 = vadd.f32 %v15003_v57, %v7017_v41  ;;  %12561 = vmatmul.mubr.msk.bf16.vlgmr.msra.gmra.mxu0 %vm686_vm2, %v6817_v58 }
0x10e8   : > { %12571 = vmatpush3.bf16.xpose.msra.mxu0 %v6924_v7  ;;  %v6713_v51 = vpop.f32.mrf.mxu1  ;;  %12572 = vmatprep.mubr.msk.bf16.mxu0 %vm13185_vm1, %v16597_v25 }
0x10e9   : > { %v7035_v12 = vsel %vm686_vm2, %v7025_v29, -inf  ;;  %12582 = vmatprep.subr.bf16.mxu0 %v16597_v25 }
0x10ea   : > { %7036 = vmax.xlane.f32.xlu1 %v7035_v12  ;;  %v12545_v43 = vpop.f32.mrf.mxu1 }
0x10ec   : > { %v6810_v15 = vpop.f32.mrf.mxu1 }
0x10ed   : > { %v7019_v48 = vmul.f32 0.35355338, %v6810_v15 }
0x10ee   : > { %v12556_v38 = vpop.f32.mrf.mxu1 }
0x10ef   : > { %12573 = vmatmul.mubr.msk.bf16.vlgmr.msra.gmra.mxu0 %vm686_vm2, %v6917_v32  ;;  %v7027_v14 = vadd.f32 %v15019_v24, %v7019_v48 }
0x10f0   : > { %v6813_v46 = vpop.f32.mrf.mxu1  ;;  %12584 = vmatprep.mubr.msk.bf16.mxu0 %vm13185_vm1, %v16597_v25 }
0x10f1   : > { %v7041_v12 = vsel %vm686_vm2, %v7027_v14, -inf }
0x10f2   : > { %v12557_v57 = vpop.f32.mrf.mxu1 }
0x10f4   : > { %v6910_v8 = vpop.f32.mrf.mxu1 }
0x10f5   : > { %v7021_v41 = vmul.f32 0.35355338, %v6910_v8 }
0x10f6   : > { %v12568_v33 = vpop.f32.mrf.mxu1 }
0x10f8   : > { %v6913_v47 = vpop.f32.mrf.mxu1 }
0x10fa   : > { %v12569_v23 = vpop.f32.mrf.mxu1 }
0x10fc   : > { %v7010_v20 = vpop.f32.mrf.mxu1 }
0x10fd   : > { %v7023_v43 = vmul.f32 0.35355338, %v7010_v20 }
0x10fe   : > { %v12580_v10 = vpop.f32.mrf.mxu1 }
0x10ff   : > { %v7031_v38 = vadd.f32 %v15045_v45, %v7023_v43 }
0x1100   : > { %v7013_v56 = vpop.f32.mrf.mxu1 }
0x1102   : > { %v12581_v22 = vpop.f32.mrf.mxu1 }
0x115a   : > { %v15231_v2 = vpop.f32.mrf.mxu0 }
0x115c   : > { %v15233_v49 = vpop.f32.mrf.mxu0 }
0x115e   : > { %v15235_v30 = vpop.f32.mrf.mxu0 }
0x1160   : > { %v15237_v28 = vpop.f32.mrf.mxu0 }
0x116b   : > { %v7034_v4 = vpop.xlane.xlu0 %7033 }
0x116c   : > { %v7056_v61 = vsub.f32 %v7024_v59, %v7034_v4  ;;  %v7029_v59 = vadd.f32 %v15032_v31, %v7021_v41  ;;  %v7053_v31 = vsel %vm686_vm2, %v7031_v38, -inf }
0x116e   : > { %v7064_v19 = vmul.f32 1.442695, %v7056_v61  ;;  %v7047_v57 = vsel %vm686_vm2, %v7029_v59, -inf }
0x1173   : > { %v7037_v37 = vpop.xlane.xlu1 %7036 }
0x1174   : > { %v7057_v27 = vsub.f32 %v7025_v29, %v7037_v37 }
0x1176   : > { %v7066_v5 = vmul.f32 1.442695, %v7057_v27 }
0x1178   : > { %13063 = vpow2.f32 %v7066_v5 }
0x1179   : > { %13065 = vpow2.f32 %v7064_v19 }
0x1185   : > { %v15257_v23 = vpop.eup %13063 }
0x1186   : > { %v7083_v56 = vsel %vm686_vm2, %v15257_v23, 0.0  ;;  %v13066_v22 = vpop.eup %13065 }
0x1187   : > { %v7080_v27 = vsel %vm686_vm2, %v13066_v22, 0.0 }
0x1197   : > { %v15239_v1 = vpop.f32.mrf.mxu0 }
0x1199   : > { %v15241_v60 = vpop.f32.mrf.mxu0 }
0x119b   : > { %v15243_v42 = vpop.f32.mrf.mxu0 }
0x119d   : > { %v15245_v54 = vpop.f32.mrf.mxu0 }
0x119f   : > { %v6760_v58 = vpop.f32.mrf.mxu0 }
0x11a0   : > { %v7018_v13 = vmul.f32 0.35355338, %v6760_v58 }
0x11a1   : > { %v12550_v21 = vpop.f32.mrf.mxu0 }
0x11a2   : > { %v7026_v18 = vadd.f32 %v15011_v39, %v7018_v13 }
0x11a3   : > { %v6763_v26 = vpop.f32.mrf.mxu0 }
0x11a4   : > { %v7038_v7 = vsel %vm686_vm2, %v7026_v18, -inf }
0x11a5   : > { %v12551_v29 = vpop.f32.mrf.mxu0  ;;  %7039 = vmax.xlane.f32.xlu0 %v7038_v7 }
0x11a7   : > { %v6860_v51 = vpop.f32.mrf.mxu0 }
0x11a8   : > { %v7020_v15 = vmul.f32 0.35355338, %v6860_v51 }
0x11a9   : > { %v12562_v32 = vpop.f32.mrf.mxu0  ;;  %7042 = vmax.xlane.f32.xlu0 %v7041_v12 }
0x11aa   : > { %v7028_v39 = vadd.f32 %v15024_v50, %v7020_v15 }
0x11ab   : > { %v6863_v24 = vpop.f32.mrf.mxu0 }
0x11ac   : > { %v7044_v46 = vsel %vm686_vm2, %v7028_v39, -inf }
0x11ad   : > { %v12563_v8 = vpop.f32.mrf.mxu0  ;;  %7045 = vmax.xlane.f32.xlu1 %v7044_v46  ;;  %7048 = vmax.xlane.f32.xlu0 %v7047_v57 }
0x11af   : > { %v6960_v33 = vpop.f32.mrf.mxu0 }
0x11b0   : > { %v7022_v47 = vmul.f32 0.35355338, %v6960_v33 }
0x11b1   : > { %v12574_v20 = vpop.f32.mrf.mxu0  ;;  %7054 = vmax.xlane.f32.xlu0 %v7053_v31 }
0x11b2   : > { %v7030_v50 = vadd.f32 %v15040_v0, %v7022_v47 }
0x11b3   : > { %v6963_v10 = vpop.f32.mrf.mxu0 }
0x11b4   : > { %v7050_v45 = vsel %vm686_vm2, %v7030_v50, -inf }
0x11b5   : > { %v12575_v37 = vpop.f32.mrf.mxu0  ;;  %7051 = vmax.xlane.f32.xlu1 %v7050_v45  ;;  %7084 = vadd.xlane.f32.xlu0 %v7083_v56 }
0x11b9   : > { %7081 = vadd.xlane.f32.xlu1 %v7080_v27 }
0x11ca   : > { %7128 = vrot.lane.b32.xlu1 %v14910_v11, %s16601_s22 }
0x11ce   : > { %7224 = vrot.lane.b32.xlu1 %v14914_v34, %s16601_s22 }
0x11d2   : > { %7272 = vrot.lane.b32.xlu1 %v14922_v3, %s16601_s22 }
0x11d6   : > { %7368 = vrot.lane.b32.xlu1 %v14932_v17, %s16601_s22 }
0x122e   : > { %v7040_v0 = vpop.xlane.xlu0 %7039 }
0x122f   : > { %v7058_v4 = vsub.f32 %v7026_v18, %v7040_v0 }
0x1231   : > { %v7068_v48 = vmul.f32 1.442695, %v7058_v4 }
0x1232   : > { %v7043_v58 = vpop.xlane.xlu0 %7042 }
0x1233   : > { %13067 = vpow2.f32 %v7068_v48  ;;  %v7059_v61 = vsub.f32 %v7027_v14, %v7043_v58 }
0x1235   : > { %v7070_v5 = vmul.f32 1.442695, %v7059_v61 }
0x1236   : > { %v7049_v13 = vpop.xlane.xlu0 %7048  ;;  %v7046_v21 = vpop.xlane.xlu1 %7045 }
0x1237   : > { %13069 = vpow2.f32 %v7070_v5  ;;  %v7061_v11 = vsub.f32 %v7029_v59, %v7049_v13  ;;  %v7060_v26 = vsub.f32 %v7028_v39, %v7046_v21 }
0x1239   : > { %v7074_v41 = vmul.f32 1.442695, %v7061_v11  ;;  %v7072_v34 = vmul.f32 1.442695, %v7060_v26 }
0x123a   : > { %v7055_v19 = vpop.xlane.xlu0 %7054 }
0x123b   : > { %13071 = vpow2.f32 %v7074_v41  ;;  %v7063_v3 = vsub.f32 %v7031_v38, %v7055_v19 }
0x123c   : > { %13073 = vpow2.f32 %v7072_v34 }
0x123d   : > { %v7078_v7 = vmul.f32 1.442695, %v7063_v3 }
0x123e   : > { %v7052_v17 = vpop.xlane.xlu1 %7051 }
0x123f   : > { %13075 = vpow2.f32 %v7078_v7  ;;  %v7062_v18 = vsub.f32 %v7030_v50, %v7052_v17 }
0x1240   : > { %v13068_v29 = vpop.eup %13067 }
0x1241   : > { %v7076_v51 = vmul.f32 1.442695, %v7062_v18  ;;  %v7086_v14 = vsel %vm686_vm2, %v13068_v29, 0.0 }
0x1242   : > { %7087 = vadd.xlane.f32.xlu1 %v7086_v14  ;;  %v7082_v12 = vpop.xlane.xlu1 %7081 }
0x1243   : > { %13077 = vpow2.f32 %v7076_v51 }
0x1244   : > { %v15273_v43 = vpop.eup %13069  ;;  %13079 = vrcp.f32 %v7082_v12 }
0x1245   : > { %v7089_v59 = vsel %vm686_vm2, %v15273_v43, 0.0 }
0x1246   : > { %7090 = vadd.xlane.f32.xlu0 %v7089_v59  ;;  %v7129_v15 = vpop.permute.xlu1 %7128 }
0x1247   : > { %v7134_v32 = vsel %vm1241_vm3, %v7129_v15, 0 }
0x1248   : > { %v15278_v39 = vpop.eup %13071  ;;  %12583 = vmatpush3.bf16.msra.mxu0 %v7134_v32 }
0x1249   : > { %v15280_v24 = vpop.eup %13073  ;;  %v7095_v38 = vsel %vm686_vm2, %v15278_v39, 0.0  ;;  %12594 = vmatprep.subr.bf16.mxu0 %v16597_v25 }
0x124a   : > { %7096 = vadd.xlane.f32.xlu0 %v7095_v38  ;;  %v7092_v46 = vsel %vm686_vm2, %v15280_v24, 0.0  ;;  %v7225_v50 = vpop.permute.xlu1 %7224 }
0x124b   : > { %7093 = vadd.xlane.f32.xlu1 %v7092_v46  ;;  %v7230_v45 = vsel %vm1241_vm3, %v7225_v50, 0 }
0x124c   : > { %v15287_v57 = vpop.eup %13075 }
0x124d   : > { %v7101_v8 = vsel %vm686_vm2, %v15287_v57, 0.0 }
0x124e   : > { %7102 = vadd.xlane.f32.xlu0 %v7101_v8  ;;  %v7273_v56 = vpop.permute.xlu1 %7272 }
0x1250   : > { %v15291_v33 = vpop.eup %13077 }
0x1251   : > { %v13080_v47 = vpop.eup %13079  ;;  %v7098_v31 = vsel %vm686_vm2, %v15291_v33, 0.0 }
0x1252   : > { %v7112_v20 = vmul.f32 %v13080_v47, %v13066_v22  ;;  %7099 = vadd.xlane.f32.xlu1 %v7098_v31  ;;  %v7085_v22 = vpop.xlane.xlu0 %7084  ;;  %v7369_v37 = vpop.permute.xlu1 %7368  ;;  %v16602_v47 = vmov 0  }
0x1253   : > { %13081 = vrcp.f32 %v7085_v22  ;;  %v7374_v12 = vsel %vm1241_vm3, %v7369_v37, 0 }
0x1254   : > { %v7120_v10 = vpack.c.bf16 %v7112_v20, %v7112_v20 }
0x1256   : > { %12585 = vmatmul.mubr.msk.bf16.vlgmr.msra.gmra.mxu0 %vm686_vm2, %v7120_v10 }
0x1257   : > { %12595 = vmatpush3.bf16.msra.mxu0 %v7230_v45  ;;  %12596 = vmatprep.mubr.msk.bf16.mxu0 %vm13185_vm1, %v16597_v25  ;;  %v10909_v45 = vld [vmem:[%s16490_s5 + $0xc] sm:$0xf] }
0x1258   : > { %12606 = vmatprep.subr.bf16.mxu0 %v16597_v25 }
0x1263   : > { %7464 = vrot.lane.b32.xlu1 %v14938_v62, %s16601_s22  ;;  %v13082_v62 = vpop.eup %13081 }
0x1264   : > { %7176 = vrot.lane.b32.xlu0 %v14916_v55, %s16601_s22  ;;  %v7113_v61 = vmul.f32 %v13082_v62, %v15257_v23  ;;  %v7278_v23 = vsel %vm1241_vm3, %v7273_v56, 0  ;;  %v7529_v56 = vsel %vm1241_vm3, %v10909_v45, 0 }
0x1266   : > { %v7121_v11 = vpack.c.bf16 %v7113_v61, %v7113_v61 }
0x1268   : > { %7320 = vrot.lane.b32.xlu0 %v14926_v35, %s16601_s22 }
0x126c   : > { %7416 = vrot.lane.b32.xlu0 %v14930_v53, %s16601_s22 }
0x12cb   : > { %v7088_v27 = vpop.xlane.xlu1 %7087 }
0x12cc   : > { %13083 = vrcp.f32 %v7088_v27 }
0x12cf   : > { %v7091_v0 = vpop.xlane.xlu0 %7090 }
0x12d0   : > { %13085 = vrcp.f32 %v7091_v0 }
0x12d3   : > { %v7097_v4 = vpop.xlane.xlu0 %7096 }
0x12d4   : > { %v7094_v48 = vpop.xlane.xlu1 %7093 }
0x12d5   : > { %13087 = vrcp.f32 %v7094_v48 }
0x12d6   : > { %13089 = vrcp.f32 %v7097_v4 }
0x12d7   : > { %v7103_v58 = vpop.xlane.xlu0 %7102 }
0x12d9   : > { %v13084_v55 = vpop.eup %13083 }
0x12da   : > { %v7114_v35 = vmul.f32 %v13084_v55, %v13068_v29 }
0x12db   : > { %v7177_v5 = vpop.permute.xlu0 %7176  ;;  %v7100_v53 = vpop.xlane.xlu1 %7099 }
0x12dc   : > { %v7122_v13 = vpack.c.bf16 %v7114_v35, %v7114_v35  ;;  %v7182_v21 = vsel %vm1241_vm3, %v7177_v5, 0  ;;  %13091 = vrcp.f32 %v7100_v53 }
0x12dd   : > { %12589 = vmatpush3.bf16.msra.mxu1 %v7182_v21  ;;  %v13086_v26 = vpop.eup %13085  ;;  %13093 = vrcp.f32 %v7103_v58 }
0x12de   : > { %12597 = vmatmul.mubr.msk.bf16.vlgmr.msra.gmra.mxu0 %vm686_vm2, %v7122_v13  ;;  %12600 = vmatprep.subr.bf16.mxu1 %v16597_v25  ;;  %v7115_v3 = vmul.f32 %v13086_v26, %v15273_v43 }
0x12df   : > { %v7321_v41 = vpop.permute.xlu0 %7320  ;;  %12608 = vmatprep.mubr.msk.bf16.mxu0 %vm13185_vm1, %v16597_v25 }
0x12e0   : > { %v7326_v34 = vsel %vm1241_vm3, %v7321_v41, 0  ;;  %12591 = vmatmul.mubr.msk.bf16.vlgmr.msra.gmra.mxu1 %vm686_vm2, %v7121_v11  ;;  %v7123_v51 = vpack.c.bf16 %v7115_v3, %v7115_v3 }
0x12e1   : > { %12601 = vmatpush3.bf16.msra.mxu1 %v7278_v23  ;;  %12607 = vmatpush3.bf16.msra.mxu0 %v7326_v34 }
0x12e2   : > { %v13088_v19 = vpop.eup %13087  ;;  %12618 = vmatprep.subr.bf16.mxu0 %v16597_v25  ;;  %12602 = vmatprep.mubr.msk.bf16.mxu1 %vm13185_vm1, %v16597_v25 }
0x12e3   : > { %v7116_v7 = vmul.f32 %v13088_v19, %v15280_v24  ;;  %v7417_v17 = vpop.permute.xlu0 %7416  ;;  %12612 = vmatprep.subr.bf16.mxu1 %v16597_v25  ;;  %v13090_v14 = vpop.eup %13089 }
0x12e4   : > { %v7422_v29 = vsel %vm1241_vm3, %v7417_v17, 0  ;;  %v7117_v59 = vmul.f32 %v13090_v14, %v15278_v39  ;;  %v7465_v24 = vpop.permute.xlu1 %7464 }
0x12e5   : > { %v7124_v18 = vpack.c.bf16 %v7116_v7, %v7116_v7  ;;  %v7470_v8 = vsel %vm1241_vm3, %v7465_v24, 0 }
0x12e6   : > { %v7125_v38 = vpack.c.bf16 %v7117_v59, %v7117_v59  ;;  %v10911_v59 = vld [vmem:[%s16491_s6 + $0x1] ss:$0 sm:$0xff] }
0x12e7   : > { %12609 = vmatmul.mubr.msk.bf16.vlgmr.msra.gmra.mxu0 %vm686_vm2, %v7124_v18  ;;  %v6608_v24 = vadd.f32 %v10911_v59, %v15233_v49 }
0x12e8   : > { %12619 = vmatpush3.bf16.msra.mxu0 %v7422_v29  ;;  %12603 = vmatmul.mubr.msk.bf16.vlgmr.msra.gmra.mxu1 %vm686_vm2, %v7123_v51 }
0x12e9   : > { %v13092_v43 = vpop.eup %13091  ;;  %12613 = vmatpush3.bf16.msra.mxu1 %v7374_v12  ;;  %12620 = vmatprep.mubr.msk.bf16.mxu0 %vm13185_vm1, %v16597_v25 }
0x12ea   : > { %v7118_v15 = vmul.f32 %v13092_v43, %v15291_v33  ;;  %12614 = vmatprep.mubr.msk.bf16.mxu1 %vm13185_vm1, %v16597_v25  ;;  %12624 = vmatprep.subr.bf16.mxu1 %v16597_v25  ;;  %v13094_v46 = vpop.eup %13093 }
0x12eb   : > { %v7119_v39 = vmul.f32 %v13094_v46, %v15287_v57  ;;  %12645 = vmatprep.subr.msk.bf16.mxu0 %vm1241_vm3, %v10909_v45 }
0x12ec   : > { %v7126_v32 = vpack.c.bf16 %v7118_v15, %v7118_v15 }
0x12ed   : > { %v7127_v33 = vpack.c.bf16 %v7119_v39, %v7119_v39 }
0x12ef   : > { %12621 = vmatmul.mubr.msk.bf16.vlgmr.msra.gmra.mxu0 %vm686_vm2, %v7126_v32  ;;  %v6610_v32 = vadd.f32 %v15231_v2, %v10911_v59 }
0x12f0   : > { %12615 = vmatmul.mubr.msk.bf16.vlgmr.msra.gmra.mxu1 %vm686_vm2, %v7125_v38  ;;  %12631 = vmatpush3.bf16.msra.mxu0 %v7529_v56 }
0x12f1   : > { %12625 = vmatpush3.bf16.msra.mxu1 %v7470_v8  ;;  %12626 = vmatprep.mubr.msk.bf16.mxu1 %vm13185_vm1, %v16597_v25 }
0x12f8   : > { %12627 = vmatmul.mubr.msk.bf16.vlgmr.msra.gmra.mxu1 %vm686_vm2, %v7127_v33  ;;  %v6611_v33 = vadd.f32 %v15235_v30, %v10911_v59 }
0x12f9   : > { %8244 = vmatprep.mubr.bf16.mxu1 %v16602_v47 }
0x1316   : > { %v7170_v31 = vpop.f32.mrf.mxu0 }
0x1318   : > { %v12586_v20 = vpop.f32.mrf.mxu0 }
0x131a   : > { %v7173_v50 = vpop.f32.mrf.mxu0 }
0x131c   : > { %v12587_v10 = vpop.f32.mrf.mxu0 }
0x139e   : > { %v7266_v25 = vpop.f32.mrf.mxu0 }
0x13a0   : > { %v7218_v57 = vpop.f32.mrf.mxu1  ;;  %v12598_v22 = vpop.f32.mrf.mxu0 }
0x13a1   : > { %v7512_v37 = vpack.c.bf16 %v7218_v57, %v7170_v31  ;;  %v6609_v31 = vadd.f32 %v10911_v59, %v15237_v28  ;;  %v6612_v22 = vadd.f32 %v10911_v59, %v15241_v60 }
0x13a2   : > { %v12592_v27 = vpop.f32.mrf.mxu1  ;;  %v7269_v0 = vpop.f32.mrf.mxu0 }
0x13a3   : > { %12632 = vmatprep.mubr.msk.bf16.mxu0 %vm686_vm2, %v7512_v37 }
0x13a4   : > { %v7221_v4 = vpop.f32.mrf.mxu1  ;;  %v12599_v48 = vpop.f32.mrf.mxu0 }
0x13a5   : > { %v6613_v4 = vadd.f32 %v10911_v59, %v15245_v54 }
0x13a6   : > { %v12593_v62 = vpop.f32.mrf.mxu1 }
0x13a7   : > { %v7362_v58 = vpop.f32.mrf.mxu0 }
0x13a8   : > { %v7314_v55 = vpop.f32.mrf.mxu1 }
0x13a9   : > { %v7513_v61 = vpack.c.bf16 %v7314_v55, %v7266_v25  ;;  %v12610_v35 = vpop.f32.mrf.mxu0 }
0x13aa   : > { %v12604_v5 = vpop.f32.mrf.mxu1 }
0x13ab   : > { %v7365_v53 = vpop.f32.mrf.mxu0  ;;  %12633 = vmatmul.mubr.msk.bf16.vlgmr.msra.gmra.mxu0 %vm686_vm2, %v7513_v61 }
0x13ac   : > { %v7317_v13 = vpop.f32.mrf.mxu1 }
0x13ad   : > { %v12611_v21 = vpop.f32.mrf.mxu0 }
0x13ae   : > { %v12605_v11 = vpop.f32.mrf.mxu1 }
0x13af   : > { %v7458_v26 = vpop.f32.mrf.mxu0 }
0x13b0   : > { %v7410_v41 = vpop.f32.mrf.mxu1 }
0x13b1   : > { %v7514_v23 = vpack.c.bf16 %v7410_v41, %v7362_v58  ;;  %v12622_v34 = vpop.f32.mrf.mxu0 }
0x13b2   : > { %v12616_v19 = vpop.f32.mrf.mxu1 }
0x13b3   : > { %v7461_v3 = vpop.f32.mrf.mxu0  ;;  %12636 = vmatprep.mubr.msk.bf16.mxu0 %vm686_vm2, %v7514_v23 }
0x13b4   : > { %v7413_v7 = vpop.f32.mrf.mxu1 }
0x13b5   : > { %v12623_v17 = vpop.f32.mrf.mxu0 }
0x13b6   : > { %v12617_v18 = vpop.f32.mrf.mxu1 }
0x13b8   : > { %v7506_v29 = vpop.f32.mrf.mxu1 }
0x13b9   : > { %v7515_v51 = vpack.c.bf16 %v7506_v29, %v7458_v26 }
0x13ba   : > { %v12628_v14 = vpop.f32.mrf.mxu1 }
0x13bb   : > { %12637 = vmatmul.mubr.msk.bf16.gmra.mxu0 %vm686_vm2, %v7515_v51 }
0x13bc   : > { %v7509_v12 = vpop.f32.mrf.mxu1  ;;  %8317 = vmatprep.mubr.bf16.mxu0 %v16602_v47 }
0x13be   : > { %v12629_v43 = vpop.f32.mrf.mxu1 }
0x146b   : > { %v12634_v15 = vpop.f32.mrf.mxu0 }
0x146c   : > { %v7598_v46 = vadd.f32 %v12634_v15, %v6610_v32 }
0x146d   : > { %v7565_v38 = vpop.f32.mrf.mxu0 }
0x146e   : > { %v7596_v8 = vadd.f32 %v7565_v38, %v6608_v24  ;;  %v7606_v10 = vadd.f32 %v7598_v46, %v14880_v40  ;;  %v6614_v40 = vadd.f32 %v15239_v1, %v10911_v59 }
0x146f   : > { %v12635_v39 = vpop.f32.mrf.mxu0 }
0x1470   : > { %v7604_v20 = vadd.f32 %v7596_v8, %v14872_v9  ;;  %v7599_v45 = vadd.f32 %v12635_v39, %v6611_v33  ;;  %v7622_v57 = vsel %vm587_vm0, %v7606_v10, 0.0 }
0x1471   : > { %v7568_v50 = vpop.f32.mrf.mxu0 }
0x1472   : > { %v7597_v56 = vadd.f32 %v7568_v50, %v6609_v31  ;;  %v7616_v25 = vsel %vm587_vm0, %v7604_v20, 0.0  ;;  %v7607_v49 = vadd.f32 %v7599_v45, %v14882_v16  ;;  %v6615_v16 = vadd.f32 %v15243_v42, %v10911_v59 }
0x1473   : > { %7617 = vadd.xlane.f32.xlu0 %v7616_v25 }
0x1474   : > { %v7605_v2 = vadd.f32 %v7597_v56, %v14874_v52  ;;  %v7625_v9 = vsel %vm587_vm0, %v7607_v49, 0.0 }
0x1476   : > { %v7619_v30 = vsel %vm587_vm0, %v7605_v2, 0.0 }
0x1477   : > { %7623 = vadd.xlane.f32.xlu0 %v7622_v57  ;;  %7620 = vadd.xlane.f32.xlu1 %v7619_v30  ;;  %v7749_v57 = vld [vmem:[#allocation2 + $0x80] sm:$0xff] }
0x1478   : > { %v7757_v30 = vld [vmem:[#allocation2 + $0xc0] sm:$0xff] }
0x147b   : > { %7626 = vadd.xlane.f32.xlu0 %v7625_v9  ;;  %v12638_v28 = vpop.f32.mrf.mxu0  ;;  %v7750_v9 = vld [vmem:[#allocation2 + $0x88] sm:$0xff] }
0x147c   : > { %v7602_v27 = vadd.f32 %v12638_v28, %v6614_v40  ;;  %v11217_v28 = vcombine.high %v7749_v57, %v7757_v30  ;;  %v7758_v40 = vld [vmem:[#allocation2 + $0xc8] sm:$0xff] }
0x147d   : > { %v7581_v37 = vpop.f32.mrf.mxu0 }
0x147e   : > { %v7600_v0 = vadd.f32 %v7581_v37, %v6612_v22  ;;  %v7610_v58 = vadd.f32 %v7602_v27, %v14898_v6  ;;  %v11216_v22 = vcombine.low %v7749_v57, %v7757_v30  ;;  %v11218_v37 = vcombine.low %v7750_v9, %v7758_v40  ;;  %8226 = vmatprep.subr.bf16.mxu1 %v11217_v28  ;;  %v7762_v57 = vld [vmem:[#allocation2 + $0xe8] sm:$0xff] }
0x147f   : > { %v12639_v52 = vpop.f32.mrf.mxu0  ;;  %v11219_v27 = vcombine.high %v7750_v9, %v7758_v40 }
0x1480   : > { %v7608_v48 = vadd.f32 %v7600_v0, %v14890_v44  ;;  %v7603_v55 = vadd.f32 %v12639_v52, %v6615_v16  ;;  %v7634_v5 = vsel %vm587_vm0, %v7610_v58, 0.0  ;;  %8227 = vmatpush1.bf16.msra.mxu1 %v11216_v22  ;;  %v15419_v0 = vld [vmem:[#allocation2 + $0x90] sm:$0xff]  ;;  %v15423_v16 = vld [vmem:[#allocation2 + $0x98] sm:$0xff] }
0x1481   : > { %v7584_v62 = vpop.f32.mrf.mxu0  ;;  %8299 = vmatprep.subr.bf16.mxu0 %v11219_v27  ;;  %v15421_v52 = vld [vmem:[#allocation2 + $0xd0] sm:$0xff] }
0x1482   : > { %v7601_v61 = vadd.f32 %v7584_v62, %v6613_v4  ;;  %v7628_v35 = vsel %vm587_vm0, %v7608_v48, 0.0  ;;  %v7611_v60 = vadd.f32 %v7603_v55, %v14900_v36  ;;  %8300 = vmatpush1.bf16.msra.mxu0 %v11218_v37  ;;  %v11220_v4 = vcombine.low %v15419_v0, %v15421_v52  ;;  %v15429_v62 = vld [vmem:[#allocation2 + $0xd8] sm:$0xff] }
0x1483   : > { %7629 = vadd.xlane.f32.xlu1 %v7628_v35  ;;  %v11223_v55 = vcombine.high %v15423_v16, %v15429_v62 }
0x1484   : > { %v7609_v1 = vadd.f32 %v7601_v61, %v14892_v63  ;;  %v7637_v44 = vsel %vm587_vm0, %v7611_v60, 0.0 }
0x1485   : > { %8445 = vmatprep.subr.bf16.mxu0 %v11223_v55 }
0x1486   : > { %v7631_v42 = vsel %vm587_vm0, %v7609_v1, 0.0 }
0x1487   : > { %7635 = vadd.xlane.f32.xlu1 %v7634_v5  ;;  %7632 = vadd.xlane.f32.xlu0 %v7631_v42 }
0x148b   : > { %7638 = vadd.xlane.f32.xlu0 %v7637_v44 }
0x14fc   : > { %v7618_v54 = vpop.xlane.xlu0 %7617 }
0x14fd   : > { %v7640_v6 = vmul.f32 0.0625, %v7618_v54 }
0x14ff   : > { %v15379_v53 = vsub.f32 %v7604_v20, %v7640_v6 }
0x1500   : > { %v7624_v13 = vpop.xlane.xlu0 %7623  ;;  %v7621_v21 = vpop.xlane.xlu1 %7620 }
0x1501   : > { %v7642_v11 = vmul.f32 0.0625, %v7624_v13  ;;  %v7641_v26 = vmul.f32 0.0625, %v7621_v21  ;;  %v7656_v63 = vmul.f32 %v15379_v53, %v15379_v53 }
0x1503   : > { %v15383_v36 = vsub.f32 %v7606_v10, %v7642_v11  ;;  %v15385_v41 = vsub.f32 %v7605_v2, %v7641_v26  ;;  %v7664_v23 = vsel %vm587_vm0, %v7656_v63, 0.0 }
0x1504   : > { %v7627_v34 = vpop.xlane.xlu0 %7626  ;;  %7665 = vadd.xlane.f32.xlu1 %v7664_v23 }
0x1505   : > { %v7643_v19 = vmul.f32 0.0625, %v7627_v34  ;;  %v7658_v3 = vmul.f32 %v15383_v36, %v15383_v36  ;;  %v7657_v7 = vmul.f32 %v15385_v41, %v15385_v41  ;;  %v15438_v34 = vld [vmem:[%s16492_s7 + $0x1] ss:$0 sm:$0xff] }
0x1507   : > { %v15392_v17 = vsub.f32 %v7607_v49, %v7643_v19  ;;  %v7670_v18 = vsel %vm587_vm0, %v7658_v3, 0.0  ;;  %v7667_v29 = vsel %vm587_vm0, %v7657_v7, 0.0 }
0x1508   : > { %7671 = vadd.xlane.f32.xlu1 %v7670_v18  ;;  %7668 = vadd.xlane.f32.xlu0 %v7667_v29 }
0x1509   : > { %v7659_v51 = vmul.f32 %v15392_v17, %v15392_v17 }
0x150b   : > { %v7673_v14 = vsel %vm587_vm0, %v7659_v51, 0.0 }
0x150c   : > { %7674 = vadd.xlane.f32.xlu0 %v7673_v14  ;;  %v7630_v12 = vpop.xlane.xlu1 %7629 }
0x150d   : > { %v7644_v43 = vmul.f32 0.0625, %v7630_v12 }
0x150f   : > { %v15399_v59 = vsub.f32 %v7608_v48, %v7644_v43  ;;  %v11221_v48 = vcombine.high %v15419_v0, %v15421_v52 }
0x1510   : > { %v7633_v15 = vpop.xlane.xlu0 %7632  ;;  %v7636_v32 = vpop.xlane.xlu1 %7635 }
0x1511   : > { %v7645_v24 = vmul.f32 0.0625, %v7633_v15  ;;  %v7646_v38 = vmul.f32 0.0625, %v7636_v32  ;;  %v7660_v46 = vmul.f32 %v15399_v59, %v15399_v59  ;;  %8372 = vmatprep.subr.bf16.mxu1 %v11221_v48  ;;  %v10955_v15 = vld [vmem:[%s16493_s8 + $0x1] ss:$0 sm:$0xff] }
0x1513   : > { %v15403_v8 = vsub.f32 %v7609_v1, %v7645_v24  ;;  %v15405_v39 = vsub.f32 %v7610_v58, %v7646_v38  ;;  %v7676_v33 = vsel %vm587_vm0, %v7660_v46, 0.0  ;;  %v11222_v58 = vcombine.low %v15423_v16, %v15429_v62 }
0x1514   : > { %v7639_v31 = vpop.xlane.xlu0 %7638  ;;  %7677 = vadd.xlane.f32.xlu1 %v7676_v33 }
0x1515   : > { %v7647_v20 = vmul.f32 0.0625, %v7639_v31  ;;  %v7661_v50 = vmul.f32 %v15403_v8, %v15403_v8  ;;  %v7662_v10 = vmul.f32 %v15405_v39, %v15405_v39 }
0x1517   : > { %v15412_v45 = vsub.f32 %v7611_v60, %v7647_v20  ;;  %v7679_v56 = vsel %vm587_vm0, %v7661_v50, 0.0  ;;  %v7682_v25 = vsel %vm587_vm0, %v7662_v10, 0.0  ;;  %v15450_v10 = vld [vmem:[#allocation2 + $0xa0] sm:$0xff] }
0x1518   : > { %7680 = vadd.xlane.f32.xlu0 %v7679_v56  ;;  %7683 = vadd.xlane.f32.xlu1 %v7682_v25 }
0x1519   : > { %v7663_v2 = vmul.f32 %v15412_v45, %v15412_v45 }
0x151b   : > { %v7685_v49 = vsel %vm587_vm0, %v7663_v2, 0.0  ;;  %v7761_v2 = vld [vmem:[#allocation2 + $0xe0] sm:$0xff] }
0x151c   : > { %7686 = vadd.xlane.f32.xlu0 %v7685_v49  ;;  %v7754_v49 = vld [vmem:[#allocation2 + $0xa8] sm:$0xff] }
0x151d   : > { %v11227_v28 = vcombine.high %v7754_v49, %v7762_v57 }
0x158d   : > { %v7666_v61 = vpop.xlane.xlu1 %7665 }
0x158e   : > { %v7688_v35 = vmul.f32 0.0625, %v7666_v61 }
0x1590   : > { %v7696_v1 = vadd.f32 1e-05, %v7688_v35 }
0x1591   : > { %v7669_v60 = vpop.xlane.xlu0 %7668  ;;  %v7672_v5 = vpop.xlane.xlu1 %7671 }
0x1592   : > { %13095 = vrsqrt.f32 %v7696_v1  ;;  %v7689_v42 = vmul.f32 0.0625, %v7669_v60  ;;  %v7690_v44 = vmul.f32 0.0625, %v7672_v5 }
0x1594   : > { %v7697_v54 = vadd.f32 1e-05, %v7689_v42  ;;  %v7698_v6 = vadd.f32 1e-05, %v7690_v44  ;;  %v7755_v42 = vld [vmem:[#allocation2 + $0xb0] sm:$0xff] }
0x1595   : > { %v7675_v13 = vpop.xlane.xlu0 %7674  ;;  %v7763_v44 = vld [vmem:[#allocation2 + $0xf0] sm:$0xff] }
0x1596   : > { %13097 = vrsqrt.f32 %v7697_v54  ;;  %v7691_v21 = vmul.f32 0.0625, %v7675_v13  ;;  %v7756_v54 = vld [vmem:[#allocation2 + $0xb8] sm:$0xff]  ;;  %v11224_v13 = vcombine.low %v15450_v10, %v7761_v2 }
0x1597   : > { %13099 = vrsqrt.f32 %v7698_v6  ;;  %v7764_v6 = vld [vmem:[#allocation2 + $0xf8] sm:$0xff] }
0x1598   : > { %v7699_v11 = vadd.f32 1e-05, %v7691_v21  ;;  %v11226_v21 = vcombine.low %v7754_v49, %v7762_v57  ;;  %v12830_v49 = vld [vmem:[%s16496_s11 + $0x490] sm:$0xff]   ;;  %v12831_v57 = vld [vmem:[%s16496_s11 + $0x448] sm:$0xff]  }
0x159a   : > { %13101 = vrsqrt.f32 %v7699_v11  ;;  %v11229_v11 = vcombine.high %v7755_v42, %v7763_v44 }
0x159d   : > { %v7678_v26 = vpop.xlane.xlu1 %7677 }
0x159e   : > { %v7692_v63 = vmul.f32 0.0625, %v7678_v26  ;;  %v11231_v26 = vcombine.high %v7756_v54, %v7764_v6 }
0x159f   : > { %v13096_v23 = vpop.eup %13095 }
0x15a0   : > { %v7712_v19 = vmul.f32 %v13096_v23, %v15379_v53  ;;  %v7700_v3 = vadd.f32 1e-05, %v7692_v63  ;;  %v11228_v63 = vcombine.low %v7755_v42, %v7763_v44  ;;  %v11230_v23 = vcombine.low %v7756_v54, %v7764_v6 }
0x15a1   : > { %v7681_v7 = vpop.xlane.xlu0 %7680  ;;  %v7684_v18 = vpop.xlane.xlu1 %7683 }
0x15a2   : > { %13103 = vrsqrt.f32 %v7700_v3  ;;  %v7693_v29 = vmul.f32 0.0625, %v7681_v7  ;;  %v7694_v51 = vmul.f32 0.0625, %v7684_v18  ;;  %v7726_v12 = vmul.f32 %v15438_v34, %v7712_v19  ;;  %v12808_v19 = vld [vmem:[%s16496_s11 + $0x4f8] sm:$0xff]   ;;  %v12811_v18 = vld [vmem:[%s16496_s11 + $0x470] sm:$0xff]  }
0x15a3   : > { %v13098_v14 = vpop.eup %13097  ;;  %v12809_v3 = vld [vmem:[%s16496_s11 + $0x438] sm:$0xff]  }
0x15a4   : > { %v13100_v43 = vpop.eup %13099  ;;  %v7713_v32 = vmul.f32 %v13098_v14, %v15385_v41  ;;  %v7701_v24 = vadd.f32 1e-05, %v7693_v29  ;;  %v7702_v38 = vadd.f32 1e-05, %v7694_v51  ;;  %v15447_v20 = vadd.f32 %v10955_v15, %v7726_v12  ;;  %v12810_v7 = vld [vmem:[%s16496_s11 + $0x4b8] sm:$0xff]   ;;  %v12812_v29 = vld [vmem:[%s16496_s11 + $0x4f0] sm:$0xff]  }
0x15a5   : > { %v7687_v46 = vpop.xlane.xlu0 %7686  ;;  %v7714_v50 = vmul.f32 %v13100_v43, %v15383_v36  ;;  %v11225_v36 = vcombine.high %v15450_v10, %v7761_v2  ;;  %v12813_v51 = vld [vmem:[%s16496_s11 + $0x430] sm:$0xff]   ;;  %v12815_v12 = vld [vmem:[%s16496_s11 + $0x468] sm:$0xff]   ;;  %v12826_v10 = vld [vmem:[%s16496_s11 + $0x498] sm:$0xff]  }
0x15a6   : > { %v7727_v53 = vmul.f32 %v15438_v34, %v7713_v32  ;;  %13105 = vrsqrt.f32 %v7701_v24  ;;  %v7695_v33 = vmul.f32 0.0625, %v7687_v46  ;;  %v12814_v14 = vld [vmem:[%s16496_s11 + $0x4b0] sm:$0xff]   ;;  %v12816_v43 = vld [vmem:[%s16496_s11 + $0x4e8] sm:$0xff]   ;;  %v12819_v24 = vld [vmem:[%s16496_s11 + $0x460] sm:$0xff]  }
0x15a7   : > { %v13102_v31 = vpop.eup %13101  ;;  %13107 = vrsqrt.f32 %v7702_v38  ;;  %v7728_v40 = vmul.f32 %v15438_v34, %v7714_v50  ;;  %v12818_v32 = vld [vmem:[%s16496_s11 + $0x4a8] sm:$0xff]   ;;  %v12820_v38 = vld [vmem:[%s16496_s11 + $0x4e0] sm:$0xff]   ;;  %v12825_v50 = vld [vmem:[%s16496_s11 + $0x418] sm:$0xff]  }
0x15a8   : > { %v15452_v56 = vadd.f32 %v10955_v15, %v7727_v53  ;;  %v7715_v25 = vmul.f32 %v13102_v31, %v15392_v17  ;;  %v7703_v41 = vadd.f32 1e-05, %v7695_v33  ;;  %v12821_v46 = vld [vmem:[%s16496_s11 + $0x420] sm:$0xff]   ;;  %v12823_v33 = vld [vmem:[%s16496_s11 + $0x458] sm:$0xff]   ;;  %v12829_v2 = vld [vmem:[%s16496_s11 + $0x410] sm:$0xff]  }
0x15a9   : > { %v15476_v37 = vadd.f32 %v10955_v15, %v7728_v40  ;;  %v12822_v53 = vld [vmem:[%s16496_s11 + $0x4a0] sm:$0xff]   ;;  %v12824_v31 = vld [vmem:[%s16496_s11 + $0x4d8] sm:$0xff]  }
0x15aa   : > { %16603 = vst [vmem:[#allocation31_spill] sm:$0xff] %v15452_v56  ;;  %v15457_v30 = vpack.c.bf16 %v15452_v56, %v15447_v20  ;;  %v7729_v9 = vmul.f32 %v15438_v34, %v7715_v25  ;;  %13109 = vrsqrt.f32 %v7703_v41  ;;  %v12827_v25 = vld [vmem:[%s16496_s11 + $0x450] sm:$0xff]   ;;  %v12837_v40 = vld [vmem:[%s16496_s11 + $0x400] sm:$0xff]  }
0x15ab   : > { %16605 = vst [vmem:[#allocation20_spill] sm:$0xff] %v15476_v37  ;;  %v12828_v41 = vld [vmem:[%s16496_s11 + $0x4d0] sm:$0xff]  }
0x15ac   : > { %11232 = vmatmul.mubr.msk.bf16.vlgmr.msra.gmra.mxu1 %vm587_vm0, %v15457_v30  ;;  %11236 = vmatmul.mubr.msk.bf16.vlgmr.msra.gmra.mxu0 %vm587_vm0, %v15457_v30  ;;  %v15468_v17 = vadd.f32 %v10955_v15, %v7729_v9  ;;  %v12834_v9 = vld [vmem:[%s16496_s11 + $0x488] sm:$0xff]  }
0x15ad   : > { %8254 = vmatprep.mubr.bf16.mxu1 %v16602_v47  ;;  %8327 = vmatprep.mubr.bf16.mxu0 %v16602_v47 }
0x15ae   : > { %16604 = vst [vmem:[#allocation5_spill] sm:$0xff] %v15468_v17  ;;  %8373 = vmatpush1.bf16.msra.mxu1 %v11220_v4  ;;  %8446 = vmatpush1.bf16.msra.mxu0 %v11222_v58  ;;  %v15481_v48 = vpack.c.bf16 %v15468_v17, %v15476_v37 }
0x15af   : > { %v13104_v22 = vpop.eup %13103  ;;  %8518 = vmatprep.subr.bf16.mxu1 %v11225_v36  ;;  %8591 = vmatprep.subr.bf16.mxu0 %v11227_v28  ;;  %v12835_v36 = vld [vmem:[%s16496_s11 + $0x440] sm:$0xff]  }
0x15b0   : > { %v7716_v27 = vmul.f32 %v13104_v22, %v15399_v59  ;;  %v12836_v28 = vld [vmem:[%s16496_s11 + $0x4c0] sm:$0xff]  }
0x15b1   : > { %v12838_v22 = vld [vmem:[%s16496_s11 + $0x480] sm:$0xff]  }
0x15b2   : > { %v7730_v61 = vmul.f32 %v15438_v34, %v7716_v27  ;;  %v12839_v27 = vld [vmem:[%s16496_s11 + $0x578] sm:$0xff]  }
0x15b3   : > { %v13106_v55 = vpop.eup %13105 }
0x15b4   : > { %v7717_v0 = vmul.f32 %v13106_v55, %v15403_v8  ;;  %11233 = vmatmul.mubr.msk.bf16.gmra.mxu1 %vm587_vm0, %v15481_v48  ;;  %11237 = vmatmul.mubr.msk.bf16.gmra.mxu0 %vm587_vm0, %v15481_v48  ;;  %v13108_v52 = vpop.eup %13107  ;;  %v15492_v4 = vadd.f32 %v10955_v15, %v7730_v61  ;;  %v15700_v55 = vld [vmem:[%s16495_s10 + $0x10] sm:$0xff] }
0x15b5   : > { %8264 = vmatprep.mubr.bf16.mxu1 %v16602_v47  ;;  %8337 = vmatprep.mubr.bf16.mxu0 %v16602_v47  ;;  %v7718_v8 = vmul.f32 %v13108_v52, %v15405_v39  ;;  %v16610_v52 = vld [vmem:[#allocation12_spill] sm:$0xff] }
0x15b6   : > { %v7731_v59 = vmul.f32 %v15438_v34, %v7717_v0  ;;  %16606 = vst [vmem:[#allocation24_spill] sm:$0xff] %v15492_v4 }
0x15b7   : > { %v13110_v16 = vpop.eup %13109  ;;  %v7732_v60 = vmul.f32 %v15438_v34, %v7718_v8 }
0x15b8   : > { %v15494_v62 = vadd.f32 %v10955_v15, %v7731_v59  ;;  %v7719_v58 = vmul.f32 %v13110_v16, %v15412_v45  ;;  %v15704_v59 = vrot.slane %v15700_v55, %v16610_v52  ;;  %v16611_v16 = vld [vmem:[#allocation13_spill] sm:$0xff] }
0x15b9   : > { %v15512_v45 = vadd.f32 %v10955_v15, %v7732_v60  ;;  %v15708_v8 = vrot.slane %v15700_v55, %v16611_v16 }
0x15ba   : > { %16607 = vst [vmem:[#allocation26_spill] sm:$0xff] %v15494_v62  ;;  %v15500_v35 = vpack.c.bf16 %v15494_v62, %v15492_v4  ;;  %v7733_v1 = vmul.f32 %v15438_v34, %v7719_v58  ;;  %v12807_v34 = vld [vmem:[%s16496_s11 + $0x478] sm:$0xff]   ;;  %v16612_v58 = vld [vmem:[#allocation14_spill] sm:$0xff] }
0x15bb   : > { %16609 = vst [vmem:[#allocation29_spill] sm:$0xff] %v15512_v45 }
0x15bc   : > { %11234 = vmatmul.mubr.msk.bf16.gmra.mxu1 %vm587_vm0, %v15500_v35  ;;  %11238 = vmatmul.mubr.msk.bf16.gmra.mxu0 %vm587_vm0, %v15500_v35  ;;  %v15510_v39 = vadd.f32 %v10955_v15, %v7733_v1  ;;  %v12817_v15 = vld [vmem:[%s16496_s11 + $0x428] sm:$0xff]   ;;  %v16613_v1 = vld [vmem:[#allocation15_spill] sm:$0xff] }
0x15bd   : > { %8274 = vmatprep.mubr.bf16.mxu1 %v16602_v47  ;;  %8347 = vmatprep.mubr.bf16.mxu0 %v16602_v47  ;;  %v15716_v60 = vrot.slane %v15700_v55, %v16613_v1 }
0x15be   : > { %16608 = vst [vmem:[#allocation28_spill] sm:$0xff] %v15510_v39  ;;  %v15516_v5 = vpack.c.bf16 %v15510_v39, %v15512_v45 }
0x15c4   : > { %11235 = vmatmul.mubr.msk.bf16.gmra.mxu1 %vm587_vm0, %v15516_v5  ;;  %11239 = vmatmul.mubr.msk.bf16.gmra.mxu0 %vm587_vm0, %v15516_v5 }
0x15c5   : > { %8390 = vmatprep.mubr.bf16.mxu1 %v16602_v47  ;;  %8463 = vmatprep.mubr.bf16.mxu0 %v16602_v47 }
0x15cc   : > { %11240 = vmatmul.mubr.msk.bf16.vlgmr.msra.gmra.mxu1 %vm587_vm0, %v15457_v30  ;;  %11244 = vmatmul.mubr.msk.bf16.vlgmr.msra.gmra.mxu0 %vm587_vm0, %v15457_v30 }
0x15cd   : > { %8400 = vmatprep.mubr.bf16.mxu1 %v16602_v47  ;;  %8473 = vmatprep.mubr.bf16.mxu0 %v16602_v47 }
0x15ce   : > { %8519 = vmatpush1.bf16.msra.mxu1 %v11224_v13  ;;  %8592 = vmatpush1.bf16.msra.mxu0 %v11226_v21 }
0x15cf   : > { %8664 = vmatprep.subr.bf16.mxu1 %v11229_v11  ;;  %8737 = vmatprep.subr.bf16.mxu0 %v11231_v26 }
0x15d4   : > { %11241 = vmatmul.mubr.msk.bf16.gmra.mxu1 %vm587_vm0, %v15481_v48  ;;  %11245 = vmatmul.mubr.msk.bf16.gmra.mxu0 %vm587_vm0, %v15481_v48 }
0x15d5   : > { %8410 = vmatprep.mubr.bf16.mxu1 %v16602_v47  ;;  %8483 = vmatprep.mubr.bf16.mxu0 %v16602_v47 }
0x15dc   : > { %11242 = vmatmul.mubr.msk.bf16.gmra.mxu1 %vm587_vm0, %v15500_v35  ;;  %11246 = vmatmul.mubr.msk.bf16.gmra.mxu0 %vm587_vm0, %v15500_v35 }
0x15dd   : > { %8420 = vmatprep.mubr.bf16.mxu1 %v16602_v47  ;;  %8493 = vmatprep.mubr.bf16.mxu0 %v16602_v47 }
0x15e4   : > { %11243 = vmatmul.mubr.msk.bf16.gmra.mxu1 %vm587_vm0, %v15516_v5  ;;  %11247 = vmatmul.mubr.msk.bf16.gmra.mxu0 %vm587_vm0, %v15516_v5 }
0x15e5   : > { %8536 = vmatprep.mubr.bf16.mxu1 %v16602_v47  ;;  %8609 = vmatprep.mubr.bf16.mxu0 %v16602_v47 }
0x15ec   : > { %11248 = vmatmul.mubr.msk.bf16.vlgmr.msra.gmra.mxu1 %vm587_vm0, %v15457_v30  ;;  %11252 = vmatmul.mubr.msk.bf16.vlgmr.msra.gmra.mxu0 %vm587_vm0, %v15457_v30 }
0x15ed   : > { %8546 = vmatprep.mubr.bf16.mxu1 %v16602_v47  ;;  %8619 = vmatprep.mubr.bf16.mxu0 %v16602_v47 }
0x15ee   : > { %8665 = vmatpush1.bf16.msra.mxu1 %v11228_v63  ;;  %8738 = vmatpush1.bf16.msra.mxu0 %v11230_v23 }
0x15ef   : > { %11876 = vmatprep.subr.bf16.mxu1 %v12807_v34  ;;  %11916 = vmatprep.subr.bf16.mxu0 %v12808_v19 }
0x15f4   : > { %11249 = vmatmul.mubr.msk.bf16.gmra.mxu1 %vm587_vm0, %v15481_v48  ;;  %11253 = vmatmul.mubr.msk.bf16.gmra.mxu0 %vm587_vm0, %v15481_v48 }
0x15f5   : > { %8556 = vmatprep.mubr.bf16.mxu1 %v16602_v47  ;;  %8629 = vmatprep.mubr.bf16.mxu0 %v16602_v47 }
0x15fc   : > { %11250 = vmatmul.mubr.msk.bf16.gmra.mxu1 %vm587_vm0, %v15500_v35  ;;  %11254 = vmatmul.mubr.msk.bf16.gmra.mxu0 %vm587_vm0, %v15500_v35 }
0x15fd   : > { %8566 = vmatprep.mubr.bf16.mxu1 %v16602_v47  ;;  %8639 = vmatprep.mubr.bf16.mxu0 %v16602_v47 }
0x1604   : > { %11251 = vmatmul.mubr.msk.bf16.gmra.mxu1 %vm587_vm0, %v15516_v5  ;;  %11255 = vmatmul.mubr.msk.bf16.gmra.mxu0 %vm587_vm0, %v15516_v5 }
0x1605   : > { %8682 = vmatprep.mubr.bf16.mxu1 %v16602_v47  ;;  %8755 = vmatprep.mubr.bf16.mxu0 %v16602_v47 }
0x160c   : > { %11256 = vmatmul.mubr.msk.bf16.vlgmr.msra.gmra.mxu1 %vm587_vm0, %v15457_v30  ;;  %11260 = vmatmul.mubr.msk.bf16.vlgmr.msra.gmra.mxu0 %vm587_vm0, %v15457_v30  ;;  %v12833_v30 = vld [vmem:[%s16496_s11 + $0x408] sm:$0xff]  }
0x160d   : > { %8692 = vmatprep.mubr.bf16.mxu1 %v16602_v47  ;;  %8765 = vmatprep.mubr.bf16.mxu0 %v16602_v47 }
0x160e   : > { %11877 = vmatpush3.bf16.msra.mxu1 %v12809_v3  ;;  %11917 = vmatpush3.bf16.msra.mxu0 %v12810_v7 }
0x160f   : > { %11878 = vmatprep.subr.bf16.mxu1 %v12811_v18  ;;  %11918 = vmatprep.subr.bf16.mxu0 %v12812_v29 }
0x1612   : > { %11879 = vmatpush3.bf16.msra.mxu1 %v12813_v51  ;;  %11919 = vmatpush3.bf16.msra.mxu0 %v12814_v14 }
0x1613   : > { %11880 = vmatprep.subr.bf16.mxu1 %v12815_v12  ;;  %11920 = vmatprep.subr.bf16.mxu0 %v12816_v43 }
0x1614   : > { %11257 = vmatmul.mubr.msk.bf16.gmra.mxu1 %vm587_vm0, %v15481_v48  ;;  %11261 = vmatmul.mubr.msk.bf16.gmra.mxu0 %vm587_vm0, %v15481_v48  ;;  %v12840_v48 = vld [vmem:[%s16496_s11 + $0x5f8] sm:$0xff]  }
0x1615   : > { %8702 = vmatprep.mubr.bf16.mxu1 %v16602_v47  ;;  %8775 = vmatprep.mubr.bf16.mxu0 %v16602_v47 }
0x1616   : > { %11881 = vmatpush3.bf16.msra.mxu1 %v12817_v15  ;;  %11921 = vmatpush3.bf16.msra.mxu0 %v12818_v32 }
0x1617   : > { %11882 = vmatprep.subr.bf16.mxu1 %v12819_v24  ;;  %11922 = vmatprep.subr.bf16.mxu0 %v12820_v38 }
0x161a   : > { %11883 = vmatpush3.bf16.msra.mxu1 %v12821_v46  ;;  %11923 = vmatpush3.bf16.msra.mxu0 %v12822_v53 }
0x161b   : > { %11884 = vmatprep.subr.bf16.mxu1 %v12823_v33  ;;  %11924 = vmatprep.subr.bf16.mxu0 %v12824_v31  ;;  %v12841_v31 = vld [vmem:[%s16496_s11 + $0x538] sm:$0xff]  }
0x161c   : > { %11258 = vmatmul.mubr.msk.bf16.gmra.mxu1 %vm587_vm0, %v15500_v35  ;;  %11262 = vmatmul.mubr.msk.bf16.gmra.mxu0 %vm587_vm0, %v15500_v35  ;;  %v15712_v35 = vrot.slane %v15700_v55, %v16612_v58 }
0x161d   : > { %8712 = vmatprep.mubr.bf16.mxu1 %v16602_v47  ;;  %8785 = vmatprep.mubr.bf16.mxu0 %v16602_v47  ;;  %v12832_v47 = vld [vmem:[%s16496_s11 + $0x4c8] sm:$0xff]  }
0x161e   : > { %11885 = vmatpush3.bf16.msra.mxu1 %v12825_v50  ;;  %11925 = vmatpush3.bf16.msra.mxu0 %v12826_v10  ;;  %v12842_v50 = vld [vmem:[%s16496_s11 + $0x5b8] sm:$0xff]  }
0x161f   : > { %11886 = vmatprep.subr.bf16.mxu1 %v12827_v25  ;;  %11926 = vmatprep.subr.bf16.mxu0 %v12828_v41 }
0x1622   : > { %11887 = vmatpush3.bf16.msra.mxu1 %v12829_v2  ;;  %11927 = vmatpush3.bf16.msra.mxu0 %v12830_v49  ;;  %v12843_v49 = vld [vmem:[%s16496_s11 + $0x570] sm:$0xff]  }
0x1623   : > { %11888 = vmatprep.subr.bf16.mxu1 %v12831_v57  ;;  %11928 = vmatprep.subr.bf16.mxu0 %v12832_v47  ;;  %v12844_v57 = vld [vmem:[%s16496_s11 + $0x5f0] sm:$0xff]  }
0x1624   : > { %11259 = vmatmul.mubr.msk.bf16.gmra.mxu1 %vm587_vm0, %v15516_v5  ;;  %11263 = vmatmul.mubr.msk.bf16.gmra.mxu0 %vm587_vm0, %v15516_v5 }
0x1626   : > { %11889 = vmatpush3.bf16.msra.mxu1 %v12833_v30  ;;  %11929 = vmatpush3.bf16.msra.mxu0 %v12834_v9 }
0x1627   : > { %11890 = vmatprep.subr.bf16.mxu1 %v12835_v36  ;;  %11930 = vmatprep.subr.bf16.mxu0 %v12836_v28 }
0x162a   : > { %11891 = vmatpush3.bf16.msra.mxu1 %v12837_v40  ;;  %11931 = vmatpush3.bf16.msra.mxu0 %v12838_v22 }
0x162b   : > { %11956 = vmatprep.subr.bf16.mxu1 %v12839_v27  ;;  %11996 = vmatprep.subr.bf16.mxu0 %v12840_v48 }
0x166c   : > { %v8246_v61 = vpop.f32.mrf.mxu1  ;;  %v8319_v0 = vpop.f32.mrf.mxu0 }
0x166d   : > { %v8247_v26 = vadd.f32 %v8246_v61, %v15712_v35  ;;  %v8320_v63 = vadd.f32 %v8319_v0, %v15716_v60  ;;  %v12845_v0 = vld [vmem:[%s16496_s11 + $0x530] sm:$0xff]  }
0x166e   : > { %v8248_v5 = vpop.f32.mrf.mxu1  ;;  %v8321_v42 = vpop.f32.mrf.mxu0 }
0x166f   : > { %v8249_v6 = vadd.f32 %v8248_v5, %v15704_v59  ;;  %v8322_v13 = vadd.f32 %v8321_v42, %v15708_v8  ;;  %v8796_v32 = vmax.f32 %v8247_v26, 0.0  ;;  %v8798_v24 = vmax.f32 %v8320_v63, 0.0  ;;  %v12846_v5 = vld [vmem:[%s16496_s11 + $0x5b0] sm:$0xff]  }
0x1670   : > { %v8250_v44 = vpop.f32.mrf.mxu1  ;;  %v8323_v54 = vpop.f32.mrf.mxu0 }
0x1671   : > { %v8251_v21 = vadd.f32 %v8250_v44, %v15712_v35  ;;  %v8324_v11 = vadd.f32 %v8323_v54, %v15716_v60  ;;  %v8797_v14 = vmax.f32 %v8249_v6, 0.0  ;;  %v8799_v12 = vmax.f32 %v8322_v13, 0.0  ;;  %v12847_v13 = vld [vmem:[%s16496_s11 + $0x568] sm:$0xff]  }
0x1672   : > { %v8252_v23 = vpop.f32.mrf.mxu1  ;;  %v8325_v34 = vpop.f32.mrf.mxu0 }
0x1673   : > { %v8253_v19 = vadd.f32 %v8252_v23, %v15704_v59  ;;  %v8326_v3 = vadd.f32 %v8325_v34, %v15708_v8  ;;  %v8812_v7 = vmax.f32 %v8251_v21, 0.0  ;;  %v8814_v18 = vmax.f32 %v8324_v11, 0.0  ;;  %v12848_v21 = vld [vmem:[%s16496_s11 + $0x5e8] sm:$0xff]  }
0x1674   : > { %v8256_v29 = vpop.f32.mrf.mxu1  ;;  %v8329_v51 = vpop.f32.mrf.mxu0 }
0x1675   : > { %v8813_v43 = vmax.f32 %v8253_v19, 0.0  ;;  %v8815_v15 = vmax.f32 %v8326_v3, 0.0  ;;  %v8924_v10 = vpack.c.bf16 %v8812_v7, %v8796_v32  ;;  %v8926_v25 = vpack.c.bf16 %v8814_v18, %v8798_v24  ;;  %v12850_v32 = vld [vmem:[%s16496_s11 + $0x5a8] sm:$0xff]   ;;  %v12851_v24 = vld [vmem:[%s16496_s11 + $0x560] sm:$0xff]  }
0x1676   : > { %v8258_v38 = vpop.f32.mrf.mxu1  ;;  %v8331_v46 = vpop.f32.mrf.mxu0  ;;  %v8257_v36 = vadd.f32 %v8256_v29, %v15712_v35  ;;  %v8330_v28 = vadd.f32 %v8329_v51, %v15716_v60  ;;  %v12849_v29 = vld [vmem:[%s16496_s11 + $0x528] sm:$0xff]  }
0x1677   : > { %v8925_v53 = vpack.c.bf16 %v8813_v43, %v8797_v14  ;;  %v8927_v33 = vpack.c.bf16 %v8815_v15, %v8799_v12  ;;  %v8259_v47 = vadd.f32 %v8258_v38, %v15704_v59  ;;  %v8332_v40 = vadd.f32 %v8331_v46, %v15708_v8 }
0x1678   : > { %v8260_v41 = vpop.f32.mrf.mxu1  ;;  %v8333_v2 = vpop.f32.mrf.mxu0  ;;  %v8828_v23 = vmax.f32 %v8257_v36, 0.0  ;;  %v8830_v34 = vmax.f32 %v8330_v28, 0.0  ;;  %v12854_v28 = vld [vmem:[%s16496_s11 + $0x5a0] sm:$0xff]  }
0x1679   : > { %v8261_v30 = vadd.f32 %v8260_v41, %v15712_v35  ;;  %v8334_v9 = vadd.f32 %v8333_v2, %v15716_v60  ;;  %9788 = vmatprep.mubr.bf16.mxu1 %v8925_v53  ;;  %9853 = vmatprep.mubr.bf16.mxu0 %v8927_v33  ;;  %v8829_v11 = vmax.f32 %v8259_v47, 0.0  ;;  %v8831_v19 = vmax.f32 %v8332_v40, 0.0  ;;  %v12855_v40 = vld [vmem:[%s16496_s11 + $0x558] sm:$0xff]  }
0x167a   : > { %v8262_v22 = vpop.f32.mrf.mxu1  ;;  %v8335_v27 = vpop.f32.mrf.mxu0  ;;  %9789 = vmatmul.mubr.bf16.vlgmr.msra.gmra.mxu1 %v8924_v10  ;;  %9854 = vmatmul.mubr.bf16.vlgmr.msra.gmra.mxu0 %v8926_v25 }
0x167b   : > { %v8263_v48 = vadd.f32 %v8262_v22, %v15704_v59  ;;  %v8336_v61 = vadd.f32 %v8335_v27, %v15708_v8  ;;  %11957 = vmatpush3.bf16.msra.mxu1 %v12841_v31  ;;  %11997 = vmatpush3.bf16.msra.mxu0 %v12842_v50  ;;  %v8844_v42 = vmax.f32 %v8261_v30, 0.0  ;;  %v8846_v44 = vmax.f32 %v8334_v9, 0.0  ;;  %v12852_v31 = vld [vmem:[%s16496_s11 + $0x5e0] sm:$0xff]  }
0x167c   : > { %v8266_v54 = vpop.f32.mrf.mxu1  ;;  %v8339_v6 = vpop.f32.mrf.mxu0  ;;  %11958 = vmatprep.subr.bf16.mxu1 %v12843_v49  ;;  %11998 = vmatprep.subr.bf16.mxu0 %v12844_v57  ;;  %v12853_v57 = vld [vmem:[%s16496_s11 + $0x520] sm:$0xff]  }
0x167d   : > { %v8845_v26 = vmax.f32 %v8263_v48, 0.0  ;;  %v8847_v63 = vmax.f32 %v8336_v61, 0.0  ;;  %v8940_v51 = vpack.c.bf16 %v8844_v42, %v8828_v23  ;;  %v8942_v14 = vpack.c.bf16 %v8846_v44, %v8830_v34 }
0x167e   : > { %v8268_v3 = vpop.f32.mrf.mxu1  ;;  %v8341_v7 = vpop.f32.mrf.mxu0  ;;  %v8267_v50 = vadd.f32 %v8266_v54, %v15712_v35  ;;  %v8340_v10 = vadd.f32 %v8339_v6, %v15716_v60  ;;  %v12856_v54 = vld [vmem:[%s16496_s11 + $0x5d8] sm:$0xff]  }
0x167f   : > { %11959 = vmatpush3.bf16.msra.mxu1 %v12845_v0  ;;  %11999 = vmatpush3.bf16.msra.mxu0 %v12846_v5  ;;  %v8941_v18 = vpack.c.bf16 %v8845_v26, %v8829_v11  ;;  %v8943_v15 = vpack.c.bf16 %v8847_v63, %v8831_v19  ;;  %v8269_v38 = vadd.f32 %v8268_v3, %v15704_v59  ;;  %v12858_v19 = vld [vmem:[%s16496_s11 + $0x598] sm:$0xff]   ;;  %v12859_v3 = vld [vmem:[%s16496_s11 + $0x550] sm:$0xff]  }
0x1680   : > { %v8270_v12 = vpop.f32.mrf.mxu1  ;;  %v8343_v43 = vpop.f32.mrf.mxu0  ;;  %11960 = vmatprep.subr.bf16.mxu1 %v12847_v13  ;;  %12000 = vmatprep.subr.bf16.mxu0 %v12848_v21  ;;  %v8342_v46 = vadd.f32 %v8341_v7, %v15708_v8  ;;  %v8860_v0 = vmax.f32 %v8267_v50, 0.0  ;;  %v8862_v5 = vmax.f32 %v8340_v10, 0.0  ;;  %v12857_v21 = vld [vmem:[%s16496_s11 + $0x518] sm:$0xff]   ;;  %v16615_v50 = vld [vmem:[#allocation17_spill] sm:$0xff]  ;;  %v12863_v10 = vld [vmem:[%s16496_s11 + $0x548] sm:$0xff]  }
0x1681   : > { %v8271_v53 = vadd.f32 %v8270_v12, %v15712_v35  ;;  %v8344_v33 = vadd.f32 %v8343_v43, %v15716_v60  ;;  %9796 = vmatprep.mubr.bf16.mxu1 %v8941_v18  ;;  %9861 = vmatprep.mubr.bf16.mxu0 %v8943_v15  ;;  %v8861_v22 = vmax.f32 %v8269_v38, 0.0  ;;  %v12861_v38 = vld [vmem:[%s16496_s11 + $0x510] sm:$0xff]  }
0x1682   : > { %v8272_v25 = vpop.f32.mrf.mxu1  ;;  %v8345_v41 = vpop.f32.mrf.mxu0  ;;  %9797 = vmatmul.mubr.bf16.gmra.mxu1 %v8940_v51  ;;  %9862 = vmatmul.mubr.bf16.gmra.mxu0 %v8942_v14  ;;  %v8863_v27 = vmax.f32 %v8342_v46, 0.0  ;;  %v12860_v51 = vld [vmem:[%s16496_s11 + $0x5d0] sm:$0xff]  }
0x1683   : > { %v8273_v2 = vadd.f32 %v8272_v25, %v15704_v59  ;;  %v8346_v49 = vadd.f32 %v8345_v41, %v15708_v8  ;;  %11961 = vmatpush3.bf16.msra.mxu1 %v12849_v29  ;;  %v8876_v47 = vmax.f32 %v8271_v53, 0.0  ;;  %v8878_v30 = vmax.f32 %v8344_v33, 0.0  ;;  %12001 = vmatpush3.bf16.msra.mxu0 %v12850_v32 }
0x1684   : > { %v8276_v9 = vpop.f32.mrf.mxu1  ;;  %v8349_v36 = vpop.f32.mrf.mxu0  ;;  %11962 = vmatprep.subr.bf16.mxu1 %v12851_v24  ;;  %12002 = vmatprep.subr.bf16.mxu0 %v12852_v31 }
0x1685   : > { %v8877_v48 = vmax.f32 %v8273_v2, 0.0  ;;  %v8879_v61 = vmax.f32 %v8346_v49, 0.0  ;;  %v8956_v11 = vpack.c.bf16 %v8876_v47, %v8860_v0  ;;  %v8958_v26 = vpack.c.bf16 %v8878_v30, %v8862_v5  ;;  %v16616_v30 = vld [vmem:[#allocation18_spill] sm:$0xff] }
0x1686   : > { %v8278_v42 = vpop.f32.mrf.mxu1  ;;  %v8351_v44 = vpop.f32.mrf.mxu0  ;;  %v8277_v14 = vadd.f32 %v8276_v9, %v15712_v35  ;;  %v8350_v12 = vadd.f32 %v8349_v36, %v15716_v60  ;;  %v15829_v9 = vrot.slane %v15700_v55, %v16616_v30  ;;  %v16617_v36 = vld [vmem:[#allocation19_spill] sm:$0xff]  ;;  %v12865_v0 = vld [vmem:[%s16496_s11 + $0x508] sm:$0xff]  }
0x1687   : > { %11963 = vmatpush3.bf16.msra.mxu1 %v12853_v57  ;;  %v8957_v6 = vpack.c.bf16 %v8877_v48, %v8861_v22  ;;  %v8959_v13 = vpack.c.bf16 %v8879_v61, %v8863_v27  ;;  %v8279_v63 = vadd.f32 %v8278_v42, %v15704_v59  ;;  %12003 = vmatpush3.bf16.msra.mxu0 %v12854_v28  ;;  %v12864_v27 = vld [vmem:[%s16496_s11 + $0x5c8] sm:$0xff]  }
0x1688   : > { %v8280_v23 = vpop.f32.mrf.mxu1  ;;  %v8353_v34 = vpop.f32.mrf.mxu0  ;;  %11964 = vmatprep.subr.bf16.mxu1 %v12855_v40  ;;  %v8352_v7 = vadd.f32 %v8351_v44, %v15708_v8  ;;  %12004 = vmatprep.subr.bf16.mxu0 %v12856_v54  ;;  %v8892_v57 = vmax.f32 %v8277_v14, 0.0  ;;  %v8894_v47 = vmax.f32 %v8350_v12, 0.0  ;;  %v15833_v28 = vrot.slane %v15700_v55, %v16617_v36 }
0x1689   : > { %v8281_v18 = vadd.f32 %v8280_v23, %v15712_v35  ;;  %v8354_v29 = vadd.f32 %v8353_v34, %v15716_v60  ;;  %9804 = vmatprep.mubr.bf16.mxu1 %v8957_v6  ;;  %9869 = vmatprep.mubr.bf16.mxu0 %v8959_v13  ;;  %v16614_v60 = vld [vmem:[#allocation16_spill] sm:$0xff]  ;;  %v8893_v25 = vmax.f32 %v8279_v63, 0.0  ;;  %v12866_v6 = vld [vmem:[%s16496_s11 + $0x588] sm:$0xff]   ;;  %v12867_v13 = vld [vmem:[%s16496_s11 + $0x540] sm:$0xff]  }
0x168a   : > { %v8282_v43 = vpop.f32.mrf.mxu1  ;;  %v8355_v15 = vpop.f32.mrf.mxu0  ;;  %9805 = vmatmul.mubr.bf16.gmra.mxu1 %v8956_v11  ;;  %9870 = vmatmul.mubr.bf16.gmra.mxu0 %v8958_v26  ;;  %v15815_v31 = vrot.slane %v15700_v55, %v16614_v60  ;;  %v8895_v41 = vmax.f32 %v8352_v7, 0.0  ;;  %v12868_v63 = vld [vmem:[%s16496_s11 + $0x5c0] sm:$0xff]  }
0x168b   : > { %v8283_v32 = vadd.f32 %v8282_v43, %v15704_v59  ;;  %v8356_v24 = vadd.f32 %v8355_v15, %v15708_v8  ;;  %11965 = vmatpush3.bf16.msra.mxu1 %v12857_v21  ;;  %v8908_v46 = vmax.f32 %v8281_v18, 0.0  ;;  %v8910_v53 = vmax.f32 %v8354_v29, 0.0  ;;  %12005 = vmatpush3.bf16.msra.mxu0 %v12858_v19  ;;  %v12862_v8 = vld [vmem:[%s16496_s11 + $0x590] sm:$0xff]   ;;  %v12869_v29 = vld [vmem:[%s16496_s11 + $0x500] sm:$0xff]  }
0x168c   : > { %v8392_v35 = vpop.f32.mrf.mxu1  ;;  %v8465_v33 = vpop.f32.mrf.mxu0  ;;  %v15819_v59 = vrot.slane %v15700_v55, %v16615_v50  ;;  %11966 = vmatprep.subr.bf16.mxu1 %v12859_v3  ;;  %12006 = vmatprep.subr.bf16.mxu0 %v12860_v51  ;;  %v12870_v15 = vld [vmem:[%s16496_s11 + $0x580] sm:$0xff]  }
0x168d   : > { %v8909_v2 = vmax.f32 %v8283_v32, 0.0  ;;  %v8911_v49 = vmax.f32 %v8356_v24, 0.0  ;;  %v8972_v5 = vpack.c.bf16 %v8908_v46, %v8892_v57  ;;  %v8974_v42 = vpack.c.bf16 %v8910_v53, %v8894_v47  ;;  %v12871_v32 = vld [vmem:[%s16496_s11 + $0x678] sm:$0xff]  }
0x168e   : > { %v8394_v40 = vpop.f32.mrf.mxu1  ;;  %v8467_v22 = vpop.f32.mrf.mxu0  ;;  %v8393_v23 = vadd.f32 %v8392_v35, %v15829_v9  ;;  %v8466_v34 = vadd.f32 %v8465_v33, %v15833_v28 }
0x168f   : > { %11967 = vmatpush3.bf16.msra.mxu1 %v12861_v38  ;;  %v8973_v48 = vpack.c.bf16 %v8909_v2, %v8893_v25  ;;  %v8975_v61 = vpack.c.bf16 %v8911_v49, %v8895_v41  ;;  %v8395_v44 = vadd.f32 %v8394_v40, %v15815_v31  ;;  %12007 = vmatpush3.bf16.msra.mxu0 %v12862_v8  ;;  %v12872_v25 = vld [vmem:[%s16496_s11 + $0x6f8] sm:$0xff]  }
0x1690   : > { %v8396_v55 = vpop.f32.mrf.mxu1  ;;  %v8469_v54 = vpop.f32.mrf.mxu0  ;;  %11968 = vmatprep.subr.bf16.mxu1 %v12863_v10  ;;  %v8468_v21 = vadd.f32 %v8467_v22, %v15819_v59  ;;  %12008 = vmatprep.subr.bf16.mxu0 %v12864_v27  ;;  %v8800_v35 = vmax.f32 %v8393_v23, 0.0  ;;  %v8802_v33 = vmax.f32 %v8466_v34, 0.0  ;;  %v12873_v49 = vld [vmem:[%s16496_s11 + $0x638] sm:$0xff]  }
0x1691   : > { %v8397_v11 = vadd.f32 %v8396_v55, %v15829_v9  ;;  %v8470_v26 = vadd.f32 %v8469_v54, %v15833_v28  ;;  %9812 = vmatprep.mubr.bf16.mxu1 %v8973_v48  ;;  %9877 = vmatprep.mubr.bf16.mxu0 %v8975_v61  ;;  %v8801_v24 = vmax.f32 %v8395_v44, 0.0  ;;  %v12874_v48 = vld [vmem:[%s16496_s11 + $0x6b8] sm:$0xff]   ;;  %v12875_v61 = vld [vmem:[%s16496_s11 + $0x670] sm:$0xff]  }
0x1692   : > { %v8398_v19 = vpop.f32.mrf.mxu1  ;;  %v8471_v3 = vpop.f32.mrf.mxu0  ;;  %9813 = vmatmul.mubr.bf16.gmra.mxu1 %v8972_v5  ;;  %9878 = vmatmul.mubr.bf16.gmra.mxu0 %v8974_v42  ;;  %v8803_v38 = vmax.f32 %v8468_v21, 0.0  ;;  %v12876_v44 = vld [vmem:[%s16496_s11 + $0x6f0] sm:$0xff]  }
0x1693   : > { %v8399_v7 = vadd.f32 %v8398_v19, %v15815_v31  ;;  %v8472_v18 = vadd.f32 %v8471_v3, %v15819_v59  ;;  %11969 = vmatpush3.bf16.msra.mxu1 %v12865_v0  ;;  %v8816_v51 = vmax.f32 %v8397_v11, 0.0  ;;  %v8818_v14 = vmax.f32 %v8470_v26, 0.0  ;;  %12009 = vmatpush3.bf16.msra.mxu0 %v12866_v6  ;;  %v12877_v26 = vld [vmem:[%s16496_s11 + $0x630] sm:$0xff]  }
0x1694   : > { %v8402_v12 = vpop.f32.mrf.mxu1  ;;  %v8475_v43 = vpop.f32.mrf.mxu0  ;;  %11970 = vmatprep.subr.bf16.mxu1 %v12867_v13  ;;  %12010 = vmatprep.subr.bf16.mxu0 %v12868_v63  ;;  %v12878_v3 = vld [vmem:[%s16496_s11 + $0x6b0] sm:$0xff]  }
0x1695   : > { %v8817_v46 = vmax.f32 %v8399_v7, 0.0  ;;  %v8819_v53 = vmax.f32 %v8472_v18, 0.0  ;;  %v8928_v57 = vpack.c.bf16 %v8816_v51, %v8800_v35  ;;  %v8930_v47 = vpack.c.bf16 %v8818_v14, %v8802_v33  ;;  %v12879_v7 = vld [vmem:[%s16496_s11 + $0x668] sm:$0xff]  }
0x1696   : > { %v8404_v8 = vpop.f32.mrf.mxu1  ;;  %v8477_v10 = vpop.f32.mrf.mxu0  ;;  %v8403_v55 = vadd.f32 %v8402_v12, %v15829_v9  ;;  %v8476_v54 = vadd.f32 %v8475_v43, %v15833_v28 }
0x1697   : > { %v8929_v41 = vpack.c.bf16 %v8817_v46, %v8801_v24  ;;  %v8931_v2 = vpack.c.bf16 %v8819_v53, %v8803_v38  ;;  %11971 = vmatpush3.bf16.msra.mxu1 %v12869_v29  ;;  %v8405_v40 = vadd.f32 %v8404_v8, %v15815_v31  ;;  %12011 = vmatpush3.bf16.msra.mxu0 %v12870_v15  ;;  %v12880_v24 = vld [vmem:[%s16496_s11 + $0x6e8] sm:$0xff]  }
0x1698   : > { %v8406_v22 = vpop.f32.mrf.mxu1  ;;  %v8479_v27 = vpop.f32.mrf.mxu0  ;;  %12036 = vmatprep.subr.bf16.mxu1 %v12871_v32  ;;  %v8478_v0 = vadd.f32 %v8477_v10, %v15819_v59  ;;  %12076 = vmatprep.subr.bf16.mxu0 %v12872_v25  ;;  %v8832_v12 = vmax.f32 %v8403_v55, 0.0  ;;  %v8834_v43 = vmax.f32 %v8476_v54, 0.0  ;;  %v12881_v53 = vld [vmem:[%s16496_s11 + $0x628] sm:$0xff]  }
0x1699   : > { %v8407_v5 = vadd.f32 %v8406_v22, %v15829_v9  ;;  %v8480_v42 = vadd.f32 %v8479_v27, %v15833_v28  ;;  %9918 = vmatprep.mubr.bf16.mxu1 %v8929_v41  ;;  %9983 = vmatprep.mubr.bf16.mxu0 %v8931_v2  ;;  %v8833_v18 = vmax.f32 %v8405_v40, 0.0  ;;  %v12882_v41 = vld [vmem:[%s16496_s11 + $0x6a8] sm:$0xff]   ;;  %v12883_v2 = vld [vmem:[%s16496_s11 + $0x660] sm:$0xff]  }
0x169a   : > { %v8408_v6 = vpop.f32.mrf.mxu1  ;;  %v8481_v13 = vpop.f32.mrf.mxu0  ;;  %9919 = vmatmul.mubr.bf16.vlgmr.msra.gmra.mxu1 %v8928_v57  ;;  %9984 = vmatmul.mubr.bf16.vlgmr.msra.gmra.mxu0 %v8930_v47  ;;  %v8835_v29 = vmax.f32 %v8478_v0, 0.0  ;;  %v12884_v40 = vld [vmem:[%s16496_s11 + $0x6e0] sm:$0xff]  }
0x169b   : > { %v8409_v21 = vadd.f32 %v8408_v6, %v15815_v31  ;;  %v8482_v11 = vadd.f32 %v8481_v13, %v15819_v59  ;;  %12037 = vmatpush3.bf16.msra.mxu1 %v12873_v49  ;;  %v8848_v63 = vmax.f32 %v8407_v5, 0.0  ;;  %v8850_v23 = vmax.f32 %v8480_v42, 0.0  ;;  %12077 = vmatpush3.bf16.msra.mxu0 %v12874_v48  ;;  %v12885_v42 = vld [vmem:[%s16496_s11 + $0x620] sm:$0xff]  }
0x169c   : > { %v8412_v34 = vpop.f32.mrf.mxu1  ;;  %v8485_v19 = vpop.f32.mrf.mxu0  ;;  %12038 = vmatprep.subr.bf16.mxu1 %v12875_v61  ;;  %12078 = vmatprep.subr.bf16.mxu0 %v12876_v44  ;;  %v12886_v13 = vld [vmem:[%s16496_s11 + $0x6a0] sm:$0xff]  }
0x169d   : > { %v8849_v51 = vmax.f32 %v8409_v21, 0.0  ;;  %v8851_v14 = vmax.f32 %v8482_v11, 0.0  ;;  %v8944_v35 = vpack.c.bf16 %v8848_v63, %v8832_v12  ;;  %v8946_v33 = vpack.c.bf16 %v8850_v23, %v8834_v43  ;;  %v12887_v21 = vld [vmem:[%s16496_s11 + $0x658] sm:$0xff]  }
0x169e   : > { %v8414_v15 = vpop.f32.mrf.mxu1  ;;  %v8487_v32 = vpop.f32.mrf.mxu0  ;;  %v8413_v22 = vadd.f32 %v8412_v34, %v15829_v9  ;;  %v8486_v27 = vadd.f32 %v8485_v19, %v15833_v28 }
0x169f   : > { %v8945_v38 = vpack.c.bf16 %v8849_v51, %v8833_v18  ;;  %v8947_v46 = vpack.c.bf16 %v8851_v14, %v8835_v29  ;;  %12039 = vmatpush3.bf16.msra.mxu1 %v12877_v26  ;;  %v8415_v8 = vadd.f32 %v8414_v15, %v15815_v31  ;;  %12079 = vmatpush3.bf16.msra.mxu0 %v12878_v3  ;;  %v12888_v18 = vld [vmem:[%s16496_s11 + $0x6d8] sm:$0xff]  }
0x16a0   : > { %v8416_v10 = vpop.f32.mrf.mxu1  ;;  %v8489_v25 = vpop.f32.mrf.mxu0  ;;  %12040 = vmatprep.subr.bf16.mxu1 %v12879_v7  ;;  %v8488_v49 = vadd.f32 %v8487_v32, %v15819_v59  ;;  %12080 = vmatprep.subr.bf16.mxu0 %v12880_v24  ;;  %v8864_v34 = vmax.f32 %v8413_v22, 0.0  ;;  %v8866_v19 = vmax.f32 %v8486_v27, 0.0  ;;  %v12889_v14 = vld [vmem:[%s16496_s11 + $0x618] sm:$0xff]  }
0x16a1   : > { %v8417_v57 = vadd.f32 %v8416_v10, %v15829_v9  ;;  %v8490_v47 = vadd.f32 %v8489_v25, %v15833_v28  ;;  %9926 = vmatprep.mubr.bf16.mxu1 %v8945_v38  ;;  %9991 = vmatprep.mubr.bf16.mxu0 %v8947_v46  ;;  %v8865_v11 = vmax.f32 %v8415_v8, 0.0  ;;  %v12890_v38 = vld [vmem:[%s16496_s11 + $0x698] sm:$0xff]   ;;  %v12891_v46 = vld [vmem:[%s16496_s11 + $0x650] sm:$0xff]  }
0x16a2   : > { %v8418_v48 = vpop.f32.mrf.mxu1  ;;  %v8491_v61 = vpop.f32.mrf.mxu0  ;;  %9927 = vmatmul.mubr.bf16.gmra.mxu1 %v8944_v35  ;;  %9992 = vmatmul.mubr.bf16.gmra.mxu0 %v8946_v33  ;;  %v8867_v26 = vmax.f32 %v8488_v49, 0.0  ;;  %v12892_v8 = vld [vmem:[%s16496_s11 + $0x6d0] sm:$0xff]  }
0x16a3   : > { %v8419_v0 = vadd.f32 %v8418_v48, %v15815_v31  ;;  %v8492_v5 = vadd.f32 %v8491_v61, %v15819_v59  ;;  %12041 = vmatpush3.bf16.msra.mxu1 %v12881_v53  ;;  %v8880_v44 = vmax.f32 %v8417_v57, 0.0  ;;  %v8882_v55 = vmax.f32 %v8490_v47, 0.0  ;;  %12081 = vmatpush3.bf16.msra.mxu0 %v12882_v41  ;;  %v15957_v47 = vld [vmem:[%s16495_s10 + $0x18] sm:$0xff]  ;;  %v12894_v48 = vld [vmem:[%s16496_s11 + $0x690] sm:$0xff]   ;;  %v12895_v61 = vld [vmem:[%s16496_s11 + $0x648] sm:$0xff]  }
0x16a4   : > { %v8422_v54 = vpop.f32.mrf.mxu1  ;;  %v8495_v6 = vpop.f32.mrf.mxu0  ;;  %12042 = vmatprep.subr.bf16.mxu1 %v12883_v2  ;;  %12082 = vmatprep.subr.bf16.mxu0 %v12884_v40 }
0x16a5   : > { %v8881_v63 = vmax.f32 %v8419_v0, 0.0  ;;  %v8883_v23 = vmax.f32 %v8492_v5, 0.0  ;;  %v8960_v12 = vpack.c.bf16 %v8880_v44, %v8864_v34  ;;  %v8962_v43 = vpack.c.bf16 %v8882_v55, %v8866_v19 }
0x16a6   : > { %v8424_v3 = vpop.f32.mrf.mxu1  ;;  %v8497_v7 = vpop.f32.mrf.mxu0  ;;  %v8423_v10 = vadd.f32 %v8422_v54, %v15829_v9  ;;  %v8496_v25 = vadd.f32 %v8495_v6, %v15833_v28  ;;  %v15982_v54 = vrot.slane %v15957_v47, %v16613_v1 }
0x16a7   : > { %v8961_v29 = vpack.c.bf16 %v8881_v63, %v8865_v11  ;;  %v8963_v51 = vpack.c.bf16 %v8883_v23, %v8867_v26  ;;  %12043 = vmatpush3.bf16.msra.mxu1 %v12885_v42  ;;  %v8425_v15 = vadd.f32 %v8424_v3, %v15815_v31  ;;  %12083 = vmatpush3.bf16.msra.mxu0 %v12886_v13  ;;  %v12897_v63 = vld [vmem:[%s16496_s11 + $0x608] sm:$0xff]  }
0x16a8   : > { %v8426_v32 = vpop.f32.mrf.mxu1  ;;  %v8499_v24 = vpop.f32.mrf.mxu0  ;;  %12044 = vmatprep.subr.bf16.mxu1 %v12887_v21  ;;  %v8498_v53 = vadd.f32 %v8497_v7, %v15819_v59  ;;  %12084 = vmatprep.subr.bf16.mxu0 %v12888_v18  ;;  %v8898_v55 = vmax.f32 %v8496_v25, 0.0  ;;  %v12896_v21 = vld [vmem:[%s16496_s11 + $0x6c8] sm:$0xff]   ;;  %v12899_v7 = vld [vmem:[%s16496_s11 + $0x640] sm:$0xff]   ;;  %v12903_v25 = vld [vmem:[%s16496_s11 + $0x778] sm:$0xff]  }
0x16a9   : > { %v8427_v35 = vadd.f32 %v8426_v32, %v15829_v9  ;;  %v8500_v33 = vadd.f32 %v8499_v24, %v15833_v28  ;;  %9934 = vmatprep.mubr.bf16.mxu1 %v8961_v29  ;;  %9999 = vmatprep.mubr.bf16.mxu0 %v8963_v51  ;;  %v12893_v9 = vld [vmem:[%s16496_s11 + $0x610] sm:$0xff]   ;;  %v8897_v0 = vmax.f32 %v8425_v15, 0.0  ;;  %v12898_v3 = vld [vmem:[%s16496_s11 + $0x688] sm:$0xff]  }
0x16aa   : > { %v8428_v41 = vpop.f32.mrf.mxu1  ;;  %v8501_v2 = vpop.f32.mrf.mxu0  ;;  %9935 = vmatmul.mubr.bf16.gmra.mxu1 %v8960_v12  ;;  %10000 = vmatmul.mubr.bf16.gmra.mxu0 %v8962_v43  ;;  %v8899_v5 = vmax.f32 %v8498_v53, 0.0 }
0x16ab   : > { %v8429_v49 = vadd.f32 %v8428_v41, %v15815_v31  ;;  %v8502_v57 = vadd.f32 %v8501_v2, %v15819_v59  ;;  %12045 = vmatpush3.bf16.msra.mxu1 %v12889_v14  ;;  %v8912_v28 = vmax.f32 %v8427_v35, 0.0  ;;  %v8914_v40 = vmax.f32 %v8500_v33, 0.0  ;;  %12085 = vmatpush3.bf16.msra.mxu0 %v12890_v38  ;;  %v12900_v14 = vld [vmem:[%s16496_s11 + $0x6c0] sm:$0xff]  }
0x16ac   : > { %v8538_v22 = vpop.f32.mrf.mxu1  ;;  %v8611_v27 = vpop.f32.mrf.mxu0  ;;  %v15964_v31 = vrot.slane %v15957_v47, %v16610_v52  ;;  %v15968_v59 = vrot.slane %v15957_v47, %v16611_v16  ;;  %12046 = vmatprep.subr.bf16.mxu1 %v12891_v46  ;;  %12086 = vmatprep.subr.bf16.mxu0 %v12892_v8  ;;  %v8896_v52 = vmax.f32 %v8423_v10, 0.0  ;;  %v15978_v16 = vrot.slane %v15957_v47, %v16612_v58  ;;  %v12901_v46 = vld [vmem:[%s16496_s11 + $0x600] sm:$0xff]  }
0x16ad   : > { %v8913_v42 = vmax.f32 %v8429_v49, 0.0  ;;  %v8915_v44 = vmax.f32 %v8502_v57, 0.0  ;;  %v8978_v58 = vpack.c.bf16 %v8914_v40, %v8898_v55  ;;  %v8612_v43 = vadd.f32 %v8611_v27, %v15982_v54  ;;  %v12902_v10 = vld [vmem:[%s16496_s11 + $0x680] sm:$0xff]   ;;  %v12904_v27 = vld [vmem:[%s16496_s11 + $0x7f8] sm:$0xff]  }
0x16ae   : > { %v8540_v6 = vpop.f32.mrf.mxu1  ;;  %v8613_v13 = vpop.f32.mrf.mxu0  ;;  %v8976_v23 = vpack.c.bf16 %v8912_v28, %v8896_v52  ;;  %v8539_v12 = vadd.f32 %v8538_v22, %v15978_v16 }
0x16af   : > { %v8977_v11 = vpack.c.bf16 %v8913_v42, %v8897_v0  ;;  %v8979_v26 = vpack.c.bf16 %v8915_v44, %v8899_v5  ;;  %12047 = vmatpush3.bf16.msra.mxu1 %v12893_v9  ;;  %v8541_v34 = vadd.f32 %v8540_v6, %v15964_v31  ;;  %12087 = vmatpush3.bf16.msra.mxu0 %v12894_v48  ;;  %v8806_v28 = vmax.f32 %v8612_v43, 0.0  ;;  %v12905_v0 = vld [vmem:[%s16496_s11 + $0x738] sm:$0xff]   ;;  %v12911_v43 = vld [vmem:[%s16496_s11 + $0x768] sm:$0xff]  }
0x16b0   : > { %v8542_v1 = vpop.f32.mrf.mxu1  ;;  %v8615_v19 = vpop.f32.mrf.mxu0  ;;  %12048 = vmatprep.subr.bf16.mxu1 %v12895_v61  ;;  %v8614_v18 = vadd.f32 %v8613_v13, %v15968_v59  ;;  %12088 = vmatprep.subr.bf16.mxu0 %v12896_v21  ;;  %v8804_v9 = vmax.f32 %v8539_v12, 0.0  ;;  %v12906_v6 = vld [vmem:[%s16496_s11 + $0x7b8] sm:$0xff]   ;;  %v12907_v13 = vld [vmem:[%s16496_s11 + $0x770] sm:$0xff]  }
0x16b1   : > { %v8543_v29 = vadd.f32 %v8542_v1, %v15978_v16  ;;  %v8616_v51 = vadd.f32 %v8615_v19, %v15982_v54  ;;  %9942 = vmatprep.mubr.bf16.mxu1 %v8977_v11  ;;  %10007 = vmatprep.mubr.bf16.mxu0 %v8979_v26  ;;  %v8805_v41 = vmax.f32 %v8541_v34, 0.0  ;;  %v12910_v12 = vld [vmem:[%s16496_s11 + $0x7b0] sm:$0xff]  }
0x16b2   : > { %v8544_v15 = vpop.f32.mrf.mxu1  ;;  %v8617_v32 = vpop.f32.mrf.mxu0  ;;  %9943 = vmatmul.mubr.bf16.gmra.mxu1 %v8976_v23  ;;  %10008 = vmatmul.mubr.bf16.gmra.mxu0 %v8978_v58  ;;  %v8807_v2 = vmax.f32 %v8614_v18, 0.0 }
0x16b3   : > { %v8545_v24 = vadd.f32 %v8544_v15, %v15964_v31  ;;  %v8618_v38 = vadd.f32 %v8617_v32, %v15968_v59  ;;  %12049 = vmatpush3.bf16.msra.mxu1 %v12897_v63  ;;  %v8820_v53 = vmax.f32 %v8543_v29, 0.0  ;;  %v8822_v35 = vmax.f32 %v8616_v51, 0.0  ;;  %12089 = vmatpush3.bf16.msra.mxu0 %v12898_v3  ;;  %v12908_v63 = vld [vmem:[%s16496_s11 + $0x7f0] sm:$0xff]  }
0x16b4   : > { %v8548_v33 = vpop.f32.mrf.mxu1  ;;  %v8621_v8 = vpop.f32.mrf.mxu0  ;;  %12050 = vmatprep.subr.bf16.mxu1 %v12899_v7  ;;  %12090 = vmatprep.subr.bf16.mxu0 %v12900_v14  ;;  %v12909_v7 = vld [vmem:[%s16496_s11 + $0x730] sm:$0xff]  }
0x16b5   : > { %v8821_v49 = vmax.f32 %v8545_v24, 0.0  ;;  %v8823_v57 = vmax.f32 %v8618_v38, 0.0  ;;  %v8932_v5 = vpack.c.bf16 %v8820_v53, %v8804_v9  ;;  %v8934_v42 = vpack.c.bf16 %v8822_v35, %v8806_v28 }
0x16b6   : > { %v8550_v40 = vpop.f32.mrf.mxu1  ;;  %v8623_v22 = vpop.f32.mrf.mxu0  ;;  %v8549_v23 = vadd.f32 %v8548_v33, %v15978_v16  ;;  %v8622_v58 = vadd.f32 %v8621_v8, %v15982_v54  ;;  %v12912_v8 = vld [vmem:[%s16496_s11 + $0x7e8] sm:$0xff]  }
0x16b7   : > { %v8933_v48 = vpack.c.bf16 %v8821_v49, %v8805_v41  ;;  %v8935_v61 = vpack.c.bf16 %v8823_v57, %v8807_v2  ;;  %12051 = vmatpush3.bf16.msra.mxu1 %v12901_v46  ;;  %v8551_v44 = vadd.f32 %v8550_v40, %v15964_v31  ;;  %12091 = vmatpush3.bf16.msra.mxu0 %v12902_v10  ;;  %v12913_v41 = vld [vmem:[%s16496_s11 + $0x728] sm:$0xff]  }
0x16b8   : > { %v8552_v52 = vpop.f32.mrf.mxu1  ;;  %v8625_v55 = vpop.f32.mrf.mxu0  ;;  %12116 = vmatprep.subr.bf16.mxu1 %v12903_v25  ;;  %v8624_v21 = vadd.f32 %v8623_v22, %v15968_v59  ;;  %12156 = vmatprep.subr.bf16.mxu0 %v12904_v27  ;;  %v8836_v46 = vmax.f32 %v8549_v23, 0.0  ;;  %v8838_v53 = vmax.f32 %v8622_v58, 0.0  ;;  %v12914_v40 = vld [vmem:[%s16496_s11 + $0x7a8] sm:$0xff]   ;;  %v12915_v22 = vld [vmem:[%s16496_s11 + $0x760] sm:$0xff]   ;;  %v12919_v58 = vld [vmem:[%s16496_s11 + $0x758] sm:$0xff]  }
0x16b9   : > { %v8553_v11 = vadd.f32 %v8552_v52, %v15978_v16  ;;  %v8626_v26 = vadd.f32 %v8625_v55, %v15982_v54  ;;  %10048 = vmatprep.mubr.bf16.mxu1 %v8933_v48  ;;  %10113 = vmatprep.mubr.bf16.mxu0 %v8935_v61  ;;  %v8837_v15 = vmax.f32 %v8551_v44, 0.0  ;;  %v12918_v23 = vld [vmem:[%s16496_s11 + $0x7a0] sm:$0xff]  }
0x16ba   : > { %v8554_v34 = vpop.f32.mrf.mxu1  ;;  %v8627_v1 = vpop.f32.mrf.mxu0  ;;  %10049 = vmatmul.mubr.bf16.vlgmr.msra.gmra.mxu1 %v8932_v5  ;;  %10114 = vmatmul.mubr.bf16.vlgmr.msra.gmra.mxu0 %v8934_v42  ;;  %v8839_v32 = vmax.f32 %v8624_v21, 0.0 }
0x16bb   : > { %v8555_v19 = vadd.f32 %v8554_v34, %v15964_v31  ;;  %v8628_v3 = vadd.f32 %v8627_v1, %v15968_v59  ;;  %12117 = vmatpush3.bf16.msra.mxu1 %v12905_v0  ;;  %v8852_v18 = vmax.f32 %v8553_v11, 0.0  ;;  %v8854_v29 = vmax.f32 %v8626_v26, 0.0  ;;  %12157 = vmatpush3.bf16.msra.mxu0 %v12906_v6  ;;  %v12916_v0 = vld [vmem:[%s16496_s11 + $0x7e0] sm:$0xff]  }
0x16bc   : > { %v8558_v51 = vpop.f32.mrf.mxu1  ;;  %v8631_v14 = vpop.f32.mrf.mxu0  ;;  %12118 = vmatprep.subr.bf16.mxu1 %v12907_v13  ;;  %12158 = vmatprep.subr.bf16.mxu0 %v12908_v63  ;;  %v12917_v13 = vld [vmem:[%s16496_s11 + $0x720] sm:$0xff]  }
0x16bd   : > { %v8853_v24 = vmax.f32 %v8555_v19, 0.0  ;;  %v8855_v38 = vmax.f32 %v8628_v3, 0.0  ;;  %v8948_v2 = vpack.c.bf16 %v8852_v18, %v8836_v46  ;;  %v8950_v49 = vpack.c.bf16 %v8854_v29, %v8838_v53 }
0x16be   : > { %v8560_v35 = vpop.f32.mrf.mxu1  ;;  %v8633_v33 = vpop.f32.mrf.mxu0  ;;  %v8559_v5 = vadd.f32 %v8558_v51, %v15978_v16  ;;  %v8632_v42 = vadd.f32 %v8631_v14, %v15982_v54  ;;  %v12920_v14 = vld [vmem:[%s16496_s11 + $0x7d8] sm:$0xff]  }
0x16bf   : > { %v8949_v10 = vpack.c.bf16 %v8853_v24, %v8837_v15  ;;  %v8951_v25 = vpack.c.bf16 %v8855_v38, %v8839_v32  ;;  %12119 = vmatpush3.bf16.msra.mxu1 %v12909_v7  ;;  %v8561_v57 = vadd.f32 %v8560_v35, %v15964_v31  ;;  %12159 = vmatpush3.bf16.msra.mxu0 %v12910_v12  ;;  %v12921_v15 = vld [vmem:[%s16496_s11 + $0x718] sm:$0xff]  }
0x16c0   : > { %v8562_v9 = vpop.f32.mrf.mxu1  ;;  %v8635_v28 = vpop.f32.mrf.mxu0  ;;  %12120 = vmatprep.subr.bf16.mxu1 %v12911_v43  ;;  %v8634_v27 = vadd.f32 %v8633_v33, %v15968_v59  ;;  %12160 = vmatprep.subr.bf16.mxu0 %v12912_v8  ;;  %v8868_v7 = vmax.f32 %v8559_v5, 0.0  ;;  %v8870_v18 = vmax.f32 %v8632_v42, 0.0  ;;  %v12922_v35 = vld [vmem:[%s16496_s11 + $0x798] sm:$0xff]   ;;  %v12923_v33 = vld [vmem:[%s16496_s11 + $0x750] sm:$0xff]  }
0x16c1   : > { %v8563_v48 = vadd.f32 %v8562_v9, %v15978_v16  ;;  %v8636_v61 = vadd.f32 %v8635_v28, %v15982_v54  ;;  %10056 = vmatprep.mubr.bf16.mxu1 %v8949_v10  ;;  %10121 = vmatprep.mubr.bf16.mxu0 %v8951_v25  ;;  %v8869_v34 = vmax.f32 %v8561_v57, 0.0 }
0x16c2   : > { %v8564_v44 = vpop.f32.mrf.mxu1  ;;  %v8637_v52 = vpop.f32.mrf.mxu0  ;;  %10057 = vmatmul.mubr.bf16.gmra.mxu1 %v8948_v2  ;;  %10122 = vmatmul.mubr.bf16.gmra.mxu0 %v8950_v49  ;;  %v8871_v1 = vmax.f32 %v8634_v27, 0.0 }
0x16c3   : > { %v8565_v55 = vadd.f32 %v8564_v44, %v15964_v31  ;;  %v8638_v6 = vadd.f32 %v8637_v52, %v15968_v59  ;;  %12121 = vmatpush3.bf16.msra.mxu1 %v12913_v41  ;;  %v8884_v21 = vmax.f32 %v8563_v48, 0.0  ;;  %v8886_v11 = vmax.f32 %v8636_v61, 0.0  ;;  %12161 = vmatpush3.bf16.msra.mxu0 %v12914_v40  ;;  %v12924_v41 = vld [vmem:[%s16496_s11 + $0x7d0] sm:$0xff]  }
0x16c4   : > { %v8568_v26 = vpop.f32.mrf.mxu1  ;;  %v8641_v63 = vpop.f32.mrf.mxu0  ;;  %12122 = vmatprep.subr.bf16.mxu1 %v12915_v22  ;;  %12162 = vmatprep.subr.bf16.mxu0 %v12916_v0  ;;  %v12925_v22 = vld [vmem:[%s16496_s11 + $0x710] sm:$0xff]   ;;  %v12927_v0 = vld [vmem:[%s16496_s11 + $0x748] sm:$0xff]  }
0x16c5   : > { %v8885_v19 = vmax.f32 %v8565_v55, 0.0  ;;  %v8887_v3 = vmax.f32 %v8638_v6, 0.0  ;;  %v8964_v32 = vpack.c.bf16 %v8884_v21, %v8868_v7  ;;  %v8966_v24 = vpack.c.bf16 %v8886_v11, %v8870_v18  ;;  %v12928_v11 = vld [vmem:[%s16496_s11 + $0x7c8] sm:$0xff]  }
0x16c6   : > { %v8570_v29 = vpop.f32.mrf.mxu1  ;;  %v8643_v51 = vpop.f32.mrf.mxu0  ;;  %v8569_v2 = vadd.f32 %v8568_v26, %v15978_v16  ;;  %v8642_v49 = vadd.f32 %v8641_v63, %v15982_v54  ;;  %v16126_v6 = vrot.slane %v15957_v47, %v16617_v36 }
0x16c7   : > { %v8965_v12 = vpack.c.bf16 %v8885_v19, %v8869_v34  ;;  %v8967_v43 = vpack.c.bf16 %v8887_v3, %v8871_v1  ;;  %12123 = vmatpush3.bf16.msra.mxu1 %v12917_v13  ;;  %v8571_v38 = vadd.f32 %v8570_v29, %v15964_v31  ;;  %12163 = vmatpush3.bf16.msra.mxu0 %v12918_v23  ;;  %v12929_v23 = vld [vmem:[%s16496_s11 + $0x708] sm:$0xff]   ;;  %v12931_v19 = vld [vmem:[%s16496_s11 + $0x740] sm:$0xff]  }
0x16c8   : > { %v8572_v46 = vpop.f32.mrf.mxu1  ;;  %v8645_v53 = vpop.f32.mrf.mxu0  ;;  %12124 = vmatprep.subr.bf16.mxu1 %v12919_v58  ;;  %v8644_v8 = vadd.f32 %v8643_v51, %v15968_v59  ;;  %12164 = vmatprep.subr.bf16.mxu0 %v12920_v14  ;;  %v8902_v55 = vmax.f32 %v8642_v49, 0.0  ;;  %v12930_v1 = vld [vmem:[%s16496_s11 + $0x788] sm:$0xff]   ;;  %v12932_v29 = vld [vmem:[%s16496_s11 + $0x7c0] sm:$0xff]  }
0x16c9   : > { %v8573_v10 = vadd.f32 %v8572_v46, %v15978_v16  ;;  %v8646_v25 = vadd.f32 %v8645_v53, %v15982_v54  ;;  %10064 = vmatprep.mubr.bf16.mxu1 %v8965_v12  ;;  %10129 = vmatprep.mubr.bf16.mxu0 %v8967_v43  ;;  %v16108_v54 = vrot.slane %v15957_v47, %v16614_v60  ;;  %v8901_v5 = vmax.f32 %v8571_v38, 0.0 }
0x16ca   : > { %v8574_v57 = vpop.f32.mrf.mxu1  ;;  %v8647_v9 = vpop.f32.mrf.mxu0  ;;  %10065 = vmatmul.mubr.bf16.gmra.mxu1 %v8964_v32  ;;  %10130 = vmatmul.mubr.bf16.gmra.mxu0 %v8966_v24  ;;  %v8903_v42 = vmax.f32 %v8644_v8, 0.0  ;;  %v8900_v60 = vmax.f32 %v8569_v2, 0.0  ;;  %v12933_v24 = vld [vmem:[%s16496_s11 + $0x700] sm:$0xff]  }
0x16cb   : > { %v8575_v28 = vadd.f32 %v8574_v57, %v15964_v31  ;;  %v8648_v40 = vadd.f32 %v8647_v9, %v15968_v59  ;;  %12125 = vmatpush3.bf16.msra.mxu1 %v12921_v15  ;;  %v8916_v27 = vmax.f32 %v8573_v10, 0.0  ;;  %v8918_v48 = vmax.f32 %v8646_v25, 0.0  ;;  %12165 = vmatpush3.bf16.msra.mxu0 %v12922_v35  ;;  %v12926_v59 = vld [vmem:[%s16496_s11 + $0x790] sm:$0xff]  }
0x16cc   : > { %v8684_v16 = vpop.f32.mrf.mxu1  ;;  %v8757_v61 = vpop.f32.mrf.mxu0  ;;  %v16112_v31 = vrot.slane %v15957_v47, %v16615_v50  ;;  %12126 = vmatprep.subr.bf16.mxu1 %v12923_v33  ;;  %12166 = vmatprep.subr.bf16.mxu0 %v12924_v41  ;;  %v16122_v50 = vrot.slane %v15957_v47, %v16616_v30  ;;  %v12934_v33 = vld [vmem:[%s16496_s11 + $0x780] sm:$0xff]  }
0x16cd   : > { %v8917_v44 = vmax.f32 %v8575_v28, 0.0  ;;  %v8919_v52 = vmax.f32 %v8648_v40, 0.0  ;;  %v8980_v58 = vpack.c.bf16 %v8916_v27, %v8900_v60  ;;  %v8982_v30 = vpack.c.bf16 %v8918_v48, %v8902_v55 }
0x16ce   : > { %v8686_v13 = vpop.f32.mrf.mxu1  ;;  %v8759_v21 = vpop.f32.mrf.mxu0  ;;  %v8685_v51 = vadd.f32 %v8684_v16, %v16122_v50  ;;  %v8758_v14 = vadd.f32 %v8757_v61, %v16126_v6 }
0x16cf   : > { %v8981_v26 = vpack.c.bf16 %v8917_v44, %v8901_v5  ;;  %v8983_v63 = vpack.c.bf16 %v8919_v52, %v8903_v42  ;;  %12127 = vmatpush3.bf16.msra.mxu1 %v12925_v22  ;;  %v8687_v34 = vadd.f32 %v8686_v13, %v16108_v54  ;;  %12167 = vmatpush3.bf16.msra.mxu0 %v12926_v59 }
0x16d0   : > { %v8688_v36 = vpop.f32.mrf.mxu1  ;;  %v8761_v47 = vpop.f32.mrf.mxu0  ;;  %12128 = vmatprep.subr.bf16.mxu1 %v12927_v0  ;;  %v8760_v3 = vadd.f32 %v8759_v21, %v16112_v31  ;;  %12168 = vmatprep.subr.bf16.mxu0 %v12928_v11  ;;  %v8808_v2 = vmax.f32 %v8685_v51, 0.0  ;;  %v8810_v49 = vmax.f32 %v8758_v14, 0.0 }
0x16d1   : > { %v8689_v7 = vadd.f32 %v8688_v36, %v16122_v50  ;;  %v8762_v18 = vadd.f32 %v8761_v47, %v16126_v6  ;;  %10072 = vmatprep.mubr.bf16.mxu1 %v8981_v26  ;;  %10137 = vmatprep.mubr.bf16.mxu0 %v8983_v63  ;;  %v8809_v8 = vmax.f32 %v8687_v34, 0.0 }
0x16d2   : > { %v8690_v12 = vpop.f32.mrf.mxu1  ;;  %v8763_v43 = vpop.f32.mrf.mxu0  ;;  %10073 = vmatmul.mubr.bf16.gmra.mxu1 %v8980_v58  ;;  %10138 = vmatmul.mubr.bf16.gmra.mxu0 %v8982_v30  ;;  %v8811_v10 = vmax.f32 %v8760_v3, 0.0 }
0x16d3   : > { %v8691_v15 = vadd.f32 %v8690_v12, %v16108_v54  ;;  %v8764_v32 = vadd.f32 %v8763_v43, %v16112_v31  ;;  %12129 = vmatpush3.bf16.msra.mxu1 %v12929_v23  ;;  %v8824_v38 = vmax.f32 %v8689_v7, 0.0  ;;  %v8826_v46 = vmax.f32 %v8762_v18, 0.0  ;;  %12169 = vmatpush3.bf16.msra.mxu0 %v12930_v1 }
0x16d4   : > { %v8694_v53 = vpop.f32.mrf.mxu1  ;;  %v8767_v35 = vpop.f32.mrf.mxu0  ;;  %12130 = vmatprep.subr.bf16.mxu1 %v12931_v19  ;;  %12170 = vmatprep.subr.bf16.mxu0 %v12932_v29 }
0x16d5   : > { %v8825_v25 = vmax.f32 %v8691_v15, 0.0  ;;  %v8827_v41 = vmax.f32 %v8764_v32, 0.0  ;;  %v8936_v22 = vpack.c.bf16 %v8824_v38, %v8808_v2  ;;  %v8938_v27 = vpack.c.bf16 %v8826_v46, %v8810_v49 }
0x16d6   : > { %v8696_v57 = vpop.f32.mrf.mxu1  ;;  %v8769_v9 = vpop.f32.mrf.mxu0  ;;  %v8695_v42 = vadd.f32 %v8694_v53, %v16122_v50  ;;  %v8768_v44 = vadd.f32 %v8767_v35, %v16126_v6 }
0x16d7   : > { %v8937_v28 = vpack.c.bf16 %v8825_v25, %v8809_v8  ;;  %v8939_v40 = vpack.c.bf16 %v8827_v41, %v8811_v10  ;;  %12131 = vmatpush3.bf16.msra.mxu1 %v12933_v24  ;;  %v8697_v48 = vadd.f32 %v8696_v57, %v16108_v54  ;;  %12171 = vmatpush3.bf16.msra.mxu0 %v12934_v33 }
0x16d8   : > { %v8698_v16 = vpop.f32.mrf.mxu1  ;;  %v8771_v61 = vpop.f32.mrf.mxu0  ;;  %v8770_v59 = vadd.f32 %v8769_v9, %v16112_v31  ;;  %v8840_v36 = vmax.f32 %v8695_v42, 0.0  ;;  %v8842_v47 = vmax.f32 %v8768_v44, 0.0 }
0x16d9   : > { %v8699_v0 = vadd.f32 %v8698_v16, %v16122_v50  ;;  %v8772_v5 = vadd.f32 %v8771_v61, %v16126_v6  ;;  %10178 = vmatprep.mubr.bf16.mxu1 %v8937_v28  ;;  %10243 = vmatprep.mubr.bf16.mxu0 %v8939_v40  ;;  %v8841_v23 = vmax.f32 %v8697_v48, 0.0 }
0x16da   : > { %v8700_v52 = vpop.f32.mrf.mxu1  ;;  %v8773_v60 = vpop.f32.mrf.mxu0  ;;  %10179 = vmatmul.mubr.bf16.vlgmr.msra.gmra.mxu1 %v8936_v22  ;;  %10244 = vmatmul.mubr.bf16.vlgmr.msra.gmra.mxu0 %v8938_v27  ;;  %v8843_v58 = vmax.f32 %v8770_v59, 0.0 }
0x16db   : > { %v8701_v55 = vadd.f32 %v8700_v52, %v16108_v54  ;;  %v8774_v13 = vadd.f32 %v8773_v60, %v16112_v31  ;;  %v8856_v21 = vmax.f32 %v8699_v0, 0.0  ;;  %v8858_v11 = vmax.f32 %v8772_v5, 0.0 }
0x16dc   : > { %v8704_v26 = vpop.f32.mrf.mxu1  ;;  %v8777_v63 = vpop.f32.mrf.mxu0 }
0x16dd   : > { %v8857_v30 = vmax.f32 %v8701_v55, 0.0  ;;  %v8859_v34 = vmax.f32 %v8774_v13, 0.0  ;;  %v8952_v18 = vpack.c.bf16 %v8856_v21, %v8840_v36  ;;  %v8954_v29 = vpack.c.bf16 %v8858_v11, %v8842_v47 }
0x16de   : > { %v8706_v1 = vpop.f32.mrf.mxu1  ;;  %v8779_v19 = vpop.f32.mrf.mxu0  ;;  %v8705_v24 = vadd.f32 %v8704_v26, %v16122_v50  ;;  %v8778_v38 = vadd.f32 %v8777_v63, %v16126_v6 }
0x16df   : > { %v8953_v3 = vpack.c.bf16 %v8857_v30, %v8841_v23  ;;  %v8955_v7 = vpack.c.bf16 %v8859_v34, %v8843_v58  ;;  %v8707_v51 = vadd.f32 %v8706_v1, %v16108_v54  ;;  %v8780_v43 = vadd.f32 %v8779_v19, %v16112_v31 }
0x16e0   : > { %v8708_v14 = vpop.f32.mrf.mxu1  ;;  %v8781_v12 = vpop.f32.mrf.mxu0  ;;  %v8872_v28 = vmax.f32 %v8705_v24, 0.0  ;;  %v8874_v40 = vmax.f32 %v8778_v38, 0.0 }
0x16e1   : > { %v8709_v15 = vadd.f32 %v8708_v14, %v16122_v50  ;;  %v8782_v32 = vadd.f32 %v8781_v12, %v16126_v6  ;;  %10186 = vmatprep.mubr.bf16.mxu1 %v8953_v3  ;;  %10251 = vmatprep.mubr.bf16.mxu0 %v8955_v7  ;;  %v8873_v2 = vmax.f32 %v8707_v51, 0.0  ;;  %v8875_v49 = vmax.f32 %v8780_v43, 0.0 }
0x16e2   : > { %v8710_v46 = vpop.f32.mrf.mxu1  ;;  %v8783_v53 = vpop.f32.mrf.mxu0  ;;  %10187 = vmatmul.mubr.bf16.gmra.mxu1 %v8952_v18  ;;  %10252 = vmatmul.mubr.bf16.gmra.mxu0 %v8954_v29 }
0x16e3   : > { %v8711_v35 = vadd.f32 %v8710_v46, %v16108_v54  ;;  %v8784_v33 = vadd.f32 %v8783_v53, %v16112_v31  ;;  %v8888_v8 = vmax.f32 %v8709_v15, 0.0  ;;  %v8890_v10 = vmax.f32 %v8782_v32, 0.0 }
0x16e4   : > { %v8714_v25 = vpop.f32.mrf.mxu1  ;;  %v8787_v41 = vpop.f32.mrf.mxu0 }
0x16e5   : > { %v8889_v57 = vmax.f32 %v8711_v35, 0.0  ;;  %v8891_v9 = vmax.f32 %v8784_v33, 0.0  ;;  %v8968_v61 = vpack.c.bf16 %v8888_v8, %v8872_v28  ;;  %v8970_v59 = vpack.c.bf16 %v8890_v10, %v8874_v40 }
0x16e6   : > { %v8716_v22 = vpop.f32.mrf.mxu1  ;;  %v8789_v27 = vpop.f32.mrf.mxu0  ;;  %v8715_v55 = vadd.f32 %v8714_v25, %v16122_v50  ;;  %v8788_v11 = vadd.f32 %v8787_v41, %v16126_v6 }
0x16e7   : > { %v8969_v48 = vpack.c.bf16 %v8889_v57, %v8873_v2  ;;  %v8971_v16 = vpack.c.bf16 %v8891_v9, %v8875_v49  ;;  %v8717_v0 = vadd.f32 %v8716_v22, %v16108_v54  ;;  %v8790_v44 = vadd.f32 %v8789_v27, %v16112_v31 }
0x16e8   : > { %v8718_v5 = vpop.f32.mrf.mxu1  ;;  %v8791_v42 = vpop.f32.mrf.mxu0  ;;  %v8904_v1 = vmax.f32 %v8715_v55, 0.0  ;;  %v8906_v19 = vmax.f32 %v8788_v11, 0.0 }
0x16e9   : > { %v8719_v52 = vadd.f32 %v8718_v5, %v16122_v50  ;;  %v8792_v60 = vadd.f32 %v8791_v42, %v16126_v6  ;;  %10194 = vmatprep.mubr.bf16.mxu1 %v8969_v48  ;;  %10259 = vmatprep.mubr.bf16.mxu0 %v8971_v16  ;;  %v8905_v23 = vmax.f32 %v8717_v0, 0.0  ;;  %v8907_v30 = vmax.f32 %v8790_v44, 0.0 }
0x16ea   : > { %v8720_v13 = vpop.f32.mrf.mxu1  ;;  %v8793_v21 = vpop.f32.mrf.mxu0  ;;  %10195 = vmatmul.mubr.bf16.gmra.mxu1 %v8968_v61  ;;  %10260 = vmatmul.mubr.bf16.gmra.mxu0 %v8970_v59 }
0x16eb   : > { %v8721_v26 = vadd.f32 %v8720_v13, %v16108_v54  ;;  %v8794_v63 = vadd.f32 %v8793_v21, %v16112_v31  ;;  %v8920_v58 = vmax.f32 %v8719_v52, 0.0  ;;  %v8922_v34 = vmax.f32 %v8792_v60, 0.0 }
0x16ed   : > { %v8921_v36 = vmax.f32 %v8721_v26, 0.0  ;;  %v8923_v47 = vmax.f32 %v8794_v63, 0.0  ;;  %v8984_v7 = vpack.c.bf16 %v8920_v58, %v8904_v1  ;;  %v8986_v18 = vpack.c.bf16 %v8922_v34, %v8906_v19 }
0x16ef   : > { %v8985_v3 = vpack.c.bf16 %v8921_v36, %v8905_v23  ;;  %v8987_v50 = vpack.c.bf16 %v8923_v47, %v8907_v30 }
0x16f1   : > { %10202 = vmatprep.mubr.bf16.mxu1 %v8985_v3  ;;  %10267 = vmatprep.mubr.bf16.mxu0 %v8987_v50 }
0x16f2   : > { %10203 = vmatmul.mubr.bf16.gmra.mxu1 %v8984_v7  ;;  %10268 = vmatmul.mubr.bf16.gmra.mxu0 %v8986_v18 }
0x173a   : > { %v11892_v54 = vpop.f32.mrf.mxu1  ;;  %v11932_v6 = vpop.f32.mrf.mxu0 }
0x173c   : > { %v11893_v31 = vpop.f32.mrf.mxu1  ;;  %v11933_v29 = vpop.f32.mrf.mxu0 }
0x173d   : > { %v11894_v51 = vadd.f32 %v11893_v31, %v11892_v54  ;;  %v11934_v14 = vadd.f32 %v11933_v29, %v11932_v6 }
0x173e   : > { %v11895_v12 = vpop.f32.mrf.mxu1  ;;  %v11935_v43 = vpop.f32.mrf.mxu0 }
0x173f   : > { %v16181_v15 = vadd.f32 %v11934_v14, %v11894_v51 }
0x1740   : > { %v11896_v32 = vpop.f32.mrf.mxu1  ;;  %v11936_v24 = vpop.f32.mrf.mxu0 }
0x1741   : > { %v11897_v38 = vadd.f32 %v11896_v32, %v11895_v12  ;;  %v11937_v46 = vadd.f32 %v11936_v24, %v11935_v43 }
0x1742   : > { %v11898_v53 = vpop.f32.mrf.mxu1  ;;  %v11938_v33 = vpop.f32.mrf.mxu0 }
0x1743   : > { %v16183_v35 = vadd.f32 %v11937_v46, %v11897_v38 }
0x1744   : > { %v11899_v8 = vpop.f32.mrf.mxu1  ;;  %v11939_v25 = vpop.f32.mrf.mxu0 }
0x1745   : > { %v11900_v10 = vadd.f32 %v11899_v8, %v11898_v53  ;;  %v11940_v41 = vadd.f32 %v11939_v25, %v11938_v33 }
0x1746   : > { %v11901_v2 = vpop.f32.mrf.mxu1  ;;  %v11941_v49 = vpop.f32.mrf.mxu0 }
0x1747   : > { %v16185_v57 = vadd.f32 %v11940_v41, %v11900_v10 }
0x1748   : > { %v11902_v9 = vpop.f32.mrf.mxu1  ;;  %v11942_v40 = vpop.f32.mrf.mxu0 }
0x1749   : > { %v11903_v28 = vadd.f32 %v11902_v9, %v11901_v2  ;;  %v11943_v22 = vadd.f32 %v11942_v40, %v11941_v49 }
0x174a   : > { %v11904_v27 = vpop.f32.mrf.mxu1  ;;  %v11944_v48 = vpop.f32.mrf.mxu0 }
0x174b   : > { %v16187_v16 = vadd.f32 %v11943_v22, %v11903_v28 }
0x174c   : > { %v11905_v61 = vpop.f32.mrf.mxu1  ;;  %v11945_v0 = vpop.f32.mrf.mxu0 }
0x174d   : > { %v11906_v59 = vadd.f32 %v11905_v61, %v11904_v27  ;;  %v11946_v5 = vadd.f32 %v11945_v0, %v11944_v48 }
0x174e   : > { %v11907_v42 = vpop.f32.mrf.mxu1  ;;  %v11947_v44 = vpop.f32.mrf.mxu0 }
0x174f   : > { %v16189_v52 = vadd.f32 %v11946_v5, %v11906_v59 }
0x1750   : > { %v11908_v60 = vpop.f32.mrf.mxu1  ;;  %v11948_v13 = vpop.f32.mrf.mxu0 }
0x1751   : > { %v11909_v55 = vadd.f32 %v11908_v60, %v11907_v42  ;;  %v11949_v21 = vadd.f32 %v11948_v13, %v11947_v44 }
0x1752   : > { %v11910_v11 = vpop.f32.mrf.mxu1  ;;  %v11950_v26 = vpop.f32.mrf.mxu0 }
0x1753   : > { %v16191_v63 = vadd.f32 %v11949_v21, %v11909_v55 }
0x1754   : > { %v11911_v23 = vpop.f32.mrf.mxu1  ;;  %v11951_v30 = vpop.f32.mrf.mxu0 }
0x1755   : > { %v11912_v58 = vadd.f32 %v11911_v23, %v11910_v11  ;;  %v11952_v34 = vadd.f32 %v11951_v30, %v11950_v26 }
0x1756   : > { %v11913_v36 = vpop.f32.mrf.mxu1  ;;  %v11953_v47 = vpop.f32.mrf.mxu0 }
0x1757   : > { %v16193_v1 = vadd.f32 %v11952_v34, %v11912_v58 }
0x1758   : > { %v11914_v19 = vpop.f32.mrf.mxu1  ;;  %v11954_v50 = vpop.f32.mrf.mxu0 }
0x1759   : > { %16618 = vst [vmem:[#allocation22_spill] sm:$0xff] %v16193_v1  ;;  %v11915_v3 = vadd.f32 %v11914_v19, %v11913_v36  ;;  %v11955_v7 = vadd.f32 %v11954_v50, %v11953_v47 }
0x175a   : > { %v11972_v18 = vpop.f32.mrf.mxu1  ;;  %v12012_v54 = vpop.f32.mrf.mxu0 }
0x175b   : > { %v16195_v6 = vadd.f32 %v11955_v7, %v11915_v3 }
0x175c   : > { %v11973_v31 = vpop.f32.mrf.mxu1  ;;  %v12013_v29 = vpop.f32.mrf.mxu0 }
0x175d   : > { %16619 = vst [vmem:[#allocation23_spill] sm:$0xff] %v16195_v6  ;;  %v12014_v1 = vadd.f32 %v12013_v29, %v12012_v54 }
0x175e   : > { %v11975_v51 = vpop.f32.mrf.mxu1  ;;  %v16197_v14 = vpop.f32.mrf.mxu0 }
0x1760   : > { %v11976_v12 = vpop.f32.mrf.mxu1  ;;  %v16199_v43 = vpop.f32.mrf.mxu0 }
0x1762   : > { %v11978_v32 = vpop.f32.mrf.mxu1  ;;  %v16201_v24 = vpop.f32.mrf.mxu0 }
0x1764   : > { %v11979_v38 = vpop.f32.mrf.mxu1  ;;  %v16203_v46 = vpop.f32.mrf.mxu0 }
0x1766   : > { %v16205_v53 = vpop.f32.mrf.mxu1  ;;  %v16207_v33 = vpop.f32.mrf.mxu0 }
0x1768   : > { %v11982_v8 = vpop.f32.mrf.mxu1  ;;  %v16209_v10 = vpop.f32.mrf.mxu0 }
0x1769   : > { %v11983_v29 = vadd.f32 %v11982_v8, %v16205_v53 }
0x176a   : > { %v16211_v25 = vpop.f32.mrf.mxu1  ;;  %v16213_v41 = vpop.f32.mrf.mxu0 }
0x176c   : > { %v16215_v2 = vpop.f32.mrf.mxu1  ;;  %v16217_v49 = vpop.f32.mrf.mxu0 }
0x176e   : > { %v16219_v9 = vpop.f32.mrf.mxu1  ;;  %v16221_v28 = vpop.f32.mrf.mxu0 }
0x1770   : > { %v16223_v40 = vpop.f32.mrf.mxu1  ;;  %v16225_v22 = vpop.f32.mrf.mxu0 }
0x1772   : > { %v16227_v27 = vpop.f32.mrf.mxu1  ;;  %v16229_v48 = vpop.f32.mrf.mxu0 }
0x1773   : > { %16620 = vst [vmem:[#allocation33_spill] sm:$0xff] %v16229_v48 }
0x1774   : > { %v16231_v61 = vpop.f32.mrf.mxu1  ;;  %v16233_v59 = vpop.f32.mrf.mxu0 }
0x1775   : > { %16621 = vst [vmem:[#allocation7_spill] sm:$0xff] %v16233_v59 }
0x1776   : > { %v16235_v0 = vpop.f32.mrf.mxu1  ;;  %v16237_v5 = vpop.f32.mrf.mxu0 }
0x1777   : > { %16622 = vst [vmem:[#allocation21_spill] sm:$0xff] %v16235_v0  ;;  %16623 = vst [vmem:[#allocation30_spill] sm:$0xff] %v16237_v5 }
0x1778   : > { %v16239_v42 = vpop.f32.mrf.mxu1  ;;  %v16241_v44 = vpop.f32.mrf.mxu0 }
0x1779   : > { %16624 = vst [vmem:[#allocation32_spill] sm:$0xff] %v16239_v42  ;;  %16625 = vst [vmem:[#allocation25_spill] sm:$0xff] %v16241_v44  ;;  %v11974_v44 = vadd.f32 %v11973_v31, %v11972_v18  ;;  %v11977_v42 = vadd.f32 %v11976_v12, %v11975_v51  ;;  %v11980_v18 = vadd.f32 %v11979_v38, %v11978_v32 }
0x177a   : > { %v12052_v60 = vpop.f32.mrf.mxu1  ;;  %v12092_v55 = vpop.f32.mrf.mxu0 }
0x177b   : > { %v9921_v48 = vadd.f32 %v11974_v44, %v16181_v15  ;;  %v12017_v15 = vadd.f32 %v16199_v43, %v16197_v14  ;;  %v9929_v54 = vadd.f32 %v11980_v18, %v16185_v57  ;;  %v11986_v57 = vadd.f32 %v16215_v2, %v16211_v25 }
0x177c   : > { %v12053_v13 = vpop.f32.mrf.mxu1  ;;  %v12093_v21 = vpop.f32.mrf.mxu0 }
0x177e   : > { %v12055_v11 = vpop.f32.mrf.mxu1  ;;  %v12095_v26 = vpop.f32.mrf.mxu0 }
0x1780   : > { %v12056_v23 = vpop.f32.mrf.mxu1  ;;  %v12096_v58 = vpop.f32.mrf.mxu0 }
0x1781   : > { %v12057_v12 = vadd.f32 %v12056_v23, %v12055_v11  ;;  %v12097_v8 = vadd.f32 %v12096_v58, %v12095_v26  ;;  %v16299_v23 = vld [vmem:[%s16497_s12 + $0x1] ss:$0 sm:$0xff]  ;;  %v9937_v26 = vadd.f32 %v11986_v57, %v16189_v52  ;;  %v11989_v58 = vadd.f32 %v16223_v40, %v16219_v9  ;;  %v16635_v57 = vld [vmem:[#allocation22_spill] sm:$0xff] }
0x1782   : > { %v12058_v30 = vpop.f32.mrf.mxu1  ;;  %v16243_v34 = vpop.f32.mrf.mxu0 }
0x1784   : > { %v12059_v36 = vpop.f32.mrf.mxu1  ;;  %v16245_v47 = vpop.f32.mrf.mxu0 }
0x1786   : > { %v12061_v19 = vpop.f32.mrf.mxu1  ;;  %v16247_v3 = vpop.f32.mrf.mxu0 }
0x1788   : > { %v12062_v50 = vpop.f32.mrf.mxu1  ;;  %v16249_v7 = vpop.f32.mrf.mxu0 }
0x1789   : > { %v12063_v11 = vadd.f32 %v12062_v50, %v12061_v19 }
0x178a   : > { %v16251_v39 = vpop.f32.mrf.mxu1  ;;  %v16253_v45 = vpop.f32.mrf.mxu0 }
0x178b   : > { %16626 = vst [vmem:[#allocation27_spill] sm:$0xff] %v16253_v45 }
0x178c   : > { %v16255_v62 = vpop.f32.mrf.mxu1  ;;  %v16257_v4 = vpop.f32.mrf.mxu0 }
0x178d   : > { %16627 = vst [vmem:[#allocation6_spill] sm:$0xff] %v16257_v4  ;;  %v12054_v4 = vadd.f32 %v12053_v13, %v12052_v60  ;;  %v12066_v52 = vadd.f32 %v16255_v62, %v16251_v39 }
0x178e   : > { %v16259_v17 = vpop.f32.mrf.mxu1  ;;  %v16261_v5 = vpop.f32.mrf.mxu0 }
0x178f   : > { %16628 = vst [vmem:[#allocation8_spill] sm:$0xff] %v16261_v5  ;;  %v9986_v5 = vadd.f32 %v12014_v1, %v9921_v48  ;;  %v12094_v1 = vadd.f32 %v12093_v21, %v12092_v55 }
0x1790   : > { %v16263_v6 = vpop.f32.mrf.mxu1  ;;  %v16265_v37 = vpop.f32.mrf.mxu0 }
0x1791   : > { %16629 = vst [vmem:[#allocation34_spill] sm:$0xff] %v16263_v6  ;;  %16630 = vst [vmem:[#allocation9_spill] sm:$0xff] %v16265_v37  ;;  %v9924_v6 = vadd.f32 %v11977_v42, %v16183_v35  ;;  %v10051_v51 = vadd.f32 %v12054_v4, %v9986_v5  ;;  %v12020_v35 = vadd.f32 %v16203_v46, %v16201_v24 }
0x1792   : > { %v16267_v59 = vpop.f32.mrf.mxu1  ;;  %v16270_v0 = vpop.f32.mrf.mxu0  ;;  %v12060_v42 = vadd.f32 %v12059_v36, %v12058_v30  ;;  %v9932_v5 = vadd.f32 %v11983_v29, %v16187_v16  ;;  %v12023_v24 = vadd.f32 %v16209_v10, %v16207_v33  ;;  %v12100_v33 = vadd.f32 %v16245_v47, %v16243_v34 }
0x1793   : > { %16631 = vst [vmem:[#allocation11_spill] sm:$0xff] %v16267_v59  ;;  %v9989_v38 = vadd.f32 %v12017_v15, %v9924_v6  ;;  %v10116_v13 = vadd.f32 %v12094_v1, %v10051_v51  ;;  %v9994_v43 = vadd.f32 %v12020_v35, %v9929_v54  ;;  %v11992_v1 = vadd.f32 %v16231_v61, %v16227_v27 }
0x1794   : > { %v16272_v45 = vpop.f32.mrf.mxu1  ;;  %v16274_v56 = vpop.f32.mrf.mxu0  ;;  %v9997_v2 = vadd.f32 %v12023_v24, %v9932_v5 }
0x1795   : > { %v10059_v46 = vadd.f32 %v12060_v42, %v9994_v43 }
0x1796   : > { %v16276_v31 = vpop.f32.mrf.mxu1  ;;  %v16279_v37 = vpop.f32.mrf.mxu0  ;;  %v10062_v54 = vadd.f32 %v12063_v11, %v9997_v2 }
0x1797   : > { %16632 = vst [vmem:[#allocation10_spill] sm:$0xff] %v16279_v37  ;;  %v10054_v37 = vadd.f32 %v12057_v12, %v9989_v38  ;;  %v10124_v12 = vadd.f32 %v12100_v33, %v10059_v46  ;;  %v9940_v38 = vadd.f32 %v11989_v58, %v16191_v63 }
0x1798   : > { %v16281_v59 = vpop.f32.mrf.mxu1  ;;  %v16285_v44 = vpop.f32.mrf.mxu0  ;;  %v16633_v63 = vld [vmem:[#allocation34_spill] sm:$0xff] }
0x1799   : > { %v10119_v16 = vadd.f32 %v12097_v8, %v10054_v37  ;;  %v12026_v37 = vadd.f32 %v16217_v49, %v16213_v41  ;;  %v12103_v41 = vadd.f32 %v16249_v7, %v16247_v3  ;;  %v16636_v8 = vld [vmem:[#allocation21_spill] sm:$0xff] }
0x179a   : > { %v12132_v32 = vpop.f32.mrf.mxu1  ;;  %v12172_v48 = vpop.f32.mrf.mxu0 }
0x179b   : > { %v10002_v47 = vadd.f32 %v12026_v37, %v9937_v26  ;;  %v16642_v26 = vld [vmem:[#allocation11_spill] sm:$0xff] }
0x179c   : > { %v12133_v60 = vpop.f32.mrf.mxu1  ;;  %v12173_v4 = vpop.f32.mrf.mxu0  ;;  %v12072_v58 = vadd.f32 %v16272_v45, %v16642_v26 }
0x179d   : > { %v12134_v14 = vadd.f32 %v12133_v60, %v12132_v32  ;;  %v12174_v55 = vadd.f32 %v12173_v4, %v12172_v48  ;;  %v10127_v60 = vadd.f32 %v12103_v41, %v10062_v54  ;;  %v10067_v61 = vadd.f32 %v12066_v52, %v10002_v47  ;;  %v16634_v4 = vld [vmem:[#allocation31_spill] sm:$0xff]  ;;  %v16645_v52 = vld [vmem:[#allocation8_spill] sm:$0xff] }
0x179e   : > { %v12135_v53 = vpop.f32.mrf.mxu1  ;;  %v12175_v21 = vpop.f32.mrf.mxu0  ;;  %v16644_v54 = vld [vmem:[#allocation23_spill] sm:$0xff] }
0x179f   : > { %v10181_v6 = vadd.f32 %v12134_v14, %v10116_v13  ;;  %v12069_v13 = vadd.f32 %v16633_v63, %v16259_v17 }
0x17a0   : > { %v12136_v30 = vpop.f32.mrf.mxu1  ;;  %v12176_v25 = vpop.f32.mrf.mxu0 }
0x17a1   : > { %v10246_v36 = vadd.f32 %v12174_v55, %v10181_v6  ;;  %v12137_v18 = vadd.f32 %v12136_v30, %v12135_v53  ;;  %v12177_v15 = vadd.f32 %v12176_v25, %v12175_v21  ;;  %v9945_v53 = vadd.f32 %v11992_v1, %v16635_v57  ;;  %v16637_v6 = vld [vmem:[#allocation32_spill] sm:$0xff] }
0x17a2   : > { %v12138_v10 = vpop.f32.mrf.mxu1  ;;  %v12178_v51 = vpop.f32.mrf.mxu0  ;;  %v11995_v55 = vadd.f32 %v16637_v6, %v16636_v8 }
0x17a3   : > { %v10276_v19 = vadd.f32 %v16299_v23, %v10246_v36  ;;  %v10184_v50 = vadd.f32 %v12137_v18, %v10119_v16  ;;  %v16640_v36 = vld [vmem:[#allocation33_spill] sm:$0xff]  ;;  %v16641_v18 = vld [vmem:[#allocation7_spill] sm:$0xff] }
0x17a4   : > { %v12139_v29 = vpop.f32.mrf.mxu1  ;;  %v12179_v40 = vpop.f32.mrf.mxu0  ;;  %v12032_v25 = vadd.f32 %v16641_v18, %v16640_v36 }
0x17a5   : > { %v10249_v32 = vadd.f32 %v12177_v15, %v10184_v50  ;;  %v12140_v9 = vadd.f32 %v12139_v29, %v12138_v10  ;;  %v16312_v34 = vadd.f32 %v10276_v19, %v15447_v20  ;;  %v12180_v62 = vadd.f32 %v12179_v40, %v12178_v51  ;;  %v16643_v51 = vld [vmem:[#allocation20_spill] sm:$0xff] }
0x17a6   : > { %v12141_v49 = vpop.f32.mrf.mxu1  ;;  %v12181_v39 = vpop.f32.mrf.mxu0  ;;  %v12029_v20 = vadd.f32 %v16225_v22, %v16221_v28  ;;  %v16638_v28 = vld [vmem:[#allocation27_spill] sm:$0xff]  ;;  %v16639_v22 = vld [vmem:[#allocation6_spill] sm:$0xff]  ;;  %v9948_v29 = vadd.f32 %v11995_v55, %v16644_v54 }
0x17a7   : > { %v10277_v48 = vadd.f32 %v16299_v23, %v10249_v32  ;;  %v10189_v35 = vadd.f32 %v12140_v9, %v10124_v12  ;;  %v10296_v42 = vsel %vm587_vm0, %v16312_v34, 0.0  ;;  %v12106_v21 = vadd.f32 %v16639_v22, %v16638_v28  ;;  %v16646_v32 = vld [vmem:[#allocation9_spill] sm:$0xff] }
0x17a8   : > { %v12142_v27 = vpop.f32.mrf.mxu1  ;;  %10297 = vadd.xlane.f32.xlu1 %v10296_v42  ;;  %v12182_v14 = vpop.f32.mrf.mxu0  ;;  %v10005_v5 = vadd.f32 %v12029_v20, %v9940_v38  ;;  %v10010_v12 = vadd.f32 %v12032_v25, %v9945_v53  ;;  %v12109_v9 = vadd.f32 %v16646_v32, %v16645_v52  ;;  %v12075_v20 = vadd.f32 %v16281_v59, %v16276_v31  ;;  %v16654_v32 = vld [vmem:[#allocation28_spill] sm:$0xff] }
0x17a9   : > { %v10254_v3 = vadd.f32 %v12180_v62, %v10189_v35  ;;  %v12143_v7 = vadd.f32 %v12142_v27, %v12141_v49  ;;  %v16327_v43 = vadd.f32 %v10277_v48, %v16634_v4  ;;  %v12183_v11 = vadd.f32 %v12182_v14, %v12181_v39  ;;  %v16647_v49 = vld [vmem:[#allocation30_spill] sm:$0xff]  ;;  %v16648_v48 = vld [vmem:[#allocation25_spill] sm:$0xff] }
0x17aa   : > { %v12144_v24 = vpop.f32.mrf.mxu1  ;;  %v12184_v30 = vpop.f32.mrf.mxu0  ;;  %v10070_v2 = vadd.f32 %v12069_v13, %v10005_v5  ;;  %v10132_v10 = vadd.f32 %v12106_v21, %v10067_v61  ;;  %v12035_v35 = vadd.f32 %v16648_v48, %v16647_v49  ;;  %v10075_v39 = vadd.f32 %v12072_v58, %v10010_v12  ;;  %v16649_v27 = vld [vmem:[#allocation5_spill] sm:$0xff]  ;;  %v16650_v21 = vld [vmem:[#allocation24_spill] sm:$0xff] }
0x17ab   : > { %v10278_v17 = vadd.f32 %v16299_v23, %v10254_v3  ;;  %v10192_v46 = vadd.f32 %v12143_v7, %v10127_v60  ;;  %v10299_v16 = vsel %vm587_vm0, %v16327_v43, 0.0  ;;  %v12112_v7 = vadd.f32 %v16274_v56, %v16270_v0  ;;  %v16653_v12 = vld [vmem:[#allocation29_spill] sm:$0xff] }
0x17ac   : > { %v12145_v33 = vpop.f32.mrf.mxu1  ;;  %10300 = vadd.xlane.f32.xlu0 %v10299_v16  ;;  %v12185_v15 = vpop.f32.mrf.mxu0  ;;  %v10135_v62 = vadd.f32 %v12109_v9, %v10070_v2  ;;  %v10013_v3 = vadd.f32 %v12035_v35, %v9948_v29 }
0x17ad   : > { %v10257_v19 = vadd.f32 %v12183_v11, %v10192_v46  ;;  %v12146_v50 = vadd.f32 %v12145_v33, %v12144_v24  ;;  %v16342_v37 = vadd.f32 %v10278_v17, %v16643_v51  ;;  %v12186_v45 = vadd.f32 %v12185_v15, %v12184_v30  ;;  %v16651_v17 = vld [vmem:[#allocation10_spill] sm:$0xff] }
0x17ae   : > { %v12147_v40 = vpop.f32.mrf.mxu1  ;;  %v12187_v1 = vpop.f32.mrf.mxu0  ;;  %v10140_v59 = vadd.f32 %v12112_v7, %v10075_v39  ;;  %v10078_v6 = vadd.f32 %v12075_v20, %v10013_v3  ;;  %v12115_v56 = vadd.f32 %v16285_v44, %v16651_v17  ;;  %v16652_v33 = vld [vmem:[#allocation26_spill] sm:$0xff] }
0x17af   : > { %v10279_v47 = vadd.f32 %v16299_v23, %v10257_v19  ;;  %v10197_v38 = vadd.f32 %v12146_v50, %v10132_v10  ;;  %v10302_v41 = vsel %vm587_vm0, %v16342_v37, 0.0 }
0x17b0   : > { %v12148_v42 = vpop.f32.mrf.mxu1  ;;  %10303 = vadd.xlane.f32.xlu1 %v10302_v41  ;;  %v12188_v13 = vpop.f32.mrf.mxu0  ;;  %v10143_v25 = vadd.f32 %v12115_v56, %v10078_v6 }
0x17b1   : > { %v10262_v60 = vadd.f32 %v12186_v45, %v10197_v38  ;;  %v12149_v63 = vadd.f32 %v12148_v42, %v12147_v40  ;;  %v16355_v61 = vadd.f32 %v10279_v47, %v16649_v27  ;;  %v12189_v57 = vadd.f32 %v12188_v13, %v12187_v1  ;;  %v10428_v47 = vld [vmem:[%s16380_s26] sm:$0xff] }
0x17b2   : > { %v12150_v14 = vpop.f32.mrf.mxu1  ;;  %v12190_v53 = vpop.f32.mrf.mxu0 }
0x17b3   : > { %v10280_v4 = vadd.f32 %v16299_v23, %v10262_v60  ;;  %v10200_v5 = vadd.f32 %v12149_v63, %v10135_v62  ;;  %v10305_v8 = vsel %vm587_vm0, %v16355_v61, 0.0 }
0x17b4   : > { %v12151_v31 = vpop.f32.mrf.mxu1  ;;  %10306 = vadd.xlane.f32.xlu0 %v10305_v8  ;;  %v12191_v22 = vpop.f32.mrf.mxu0 }
0x17b5   : > { %v10265_v55 = vadd.f32 %v12189_v57, %v10200_v5  ;;  %v12152_v28 = vadd.f32 %v12151_v31, %v12150_v14  ;;  %v10288_v24 = vadd.f32 %v10280_v4, %v16650_v21  ;;  %v12192_v30 = vadd.f32 %v12191_v22, %v12190_v53 }
0x17b6   : > { %v12153_v0 = vpop.f32.mrf.mxu1  ;;  %v12193_v16 = vpop.f32.mrf.mxu0 }
0x17b7   : > { %v10281_v46 = vadd.f32 %v16299_v23, %v10265_v55  ;;  %v10205_v11 = vadd.f32 %v12152_v28, %v10140_v59  ;;  %v10308_v36 = vsel %vm587_vm0, %v10288_v24, 0.0 }
0x17b8   : > { %v12154_v18 = vpop.f32.mrf.mxu1  ;;  %10309 = vadd.xlane.f32.xlu1 %v10308_v36  ;;  %v12194_v58 = vpop.f32.mrf.mxu0  ;;  %v10429_v36 = vld [vmem:[%s16380_s26 + $0x8] sm:$0xff] }
0x17b9   : > { %v10270_v2 = vadd.f32 %v12192_v30, %v10205_v11  ;;  %v12155_v26 = vadd.f32 %v12154_v18, %v12153_v0  ;;  %v10289_v10 = vadd.f32 %v10281_v46, %v16652_v33  ;;  %v12195_v50 = vadd.f32 %v12194_v58, %v12193_v16  ;;  %v10430_v11 = vld [vmem:[%s16380_s26 + $0x10] sm:$0xff]  ;;  %v10431_v30 = vld [vmem:[%s16380_s26 + $0x18] sm:$0xff]  ;;  %v10432_v16 = vld [vmem:[%s16380_s26 + $0x20] sm:$0xff] }
0x17ba   : > { %v10433_v18 = vld [vmem:[%s16380_s26 + $0x28] sm:$0xff] }
0x17bb   : > { %v10282_v19 = vadd.f32 %v16299_v23, %v10270_v2  ;;  %v10208_v44 = vadd.f32 %v12155_v26, %v10143_v25  ;;  %v10311_v15 = vsel %vm587_vm0, %v10289_v10, 0.0  ;;  %v10434_v25 = vld [vmem:[%s16380_s26 + $0x30] sm:$0xff]  ;;  %v10435_v2 = vld [vmem:[%s16380_s26 + $0x38] sm:$0xff] }
0x17bc   : > { %10312 = vadd.xlane.f32.xlu0 %v10311_v15 }
0x17bd   : > { %v10273_v51 = vadd.f32 %v12195_v50, %v10208_v44  ;;  %v10290_v54 = vadd.f32 %v10282_v19, %v16653_v12 }
0x17bf   : > { %v10283_v29 = vadd.f32 %v16299_v23, %v10273_v51  ;;  %v10314_v52 = vsel %vm587_vm0, %v10290_v54, 0.0 }
0x17c0   : > { %10315 = vadd.xlane.f32.xlu1 %v10314_v52 }
0x17c1   : > { %v10291_v9 = vadd.f32 %v10283_v29, %v16654_v32 }
0x17c3   : > { %v10317_v40 = vsel %vm587_vm0, %v10291_v9, 0.0 }
0x17c4   : > { %10318 = vadd.xlane.f32.xlu0 %v10317_v40 }
0x17d1   : > { %10438 = vperm.xlu1 %12675, %v10428_v47   ;;  %v16437_v47 = vld [vmem:[%s16498_s13 + $0x1] ss:$0 sm:$0xff] }
0x1831   : > { %v10298_v38 = vpop.xlane.xlu1 %10297 }
0x1832   : > { %v10320_v45 = vmul.f32 0.0625, %v10298_v38 }
0x1834   : > { %v16384_v23 = vsub.f32 %v16312_v34, %v10320_v45 }
0x1835   : > { %v10301_v1 = vpop.xlane.xlu0 %10300 }
0x1836   : > { %v10321_v41 = vmul.f32 0.0625, %v10301_v1  ;;  %v10336_v49 = vmul.f32 %v16384_v23, %v16384_v23 }
0x1838   : > { %v16389_v48 = vsub.f32 %v16327_v43, %v10321_v41  ;;  %v10344_v35 = vsel %vm587_vm0, %v10336_v49, 0.0  ;;  %v16443_v41 = vld [vmem:[%s16499_s14 + $0x1] ss:$0 sm:$0xff] }
0x1839   : > { %v10304_v62 = vpop.xlane.xlu1 %10303  ;;  %10345 = vadd.xlane.f32.xlu1 %v10344_v35 }
0x183a   : > { %v10322_v39 = vmul.f32 0.0625, %v10304_v62  ;;  %v10337_v42 = vmul.f32 %v16389_v48, %v16389_v48 }
0x183c   : > { %v16395_v20 = vsub.f32 %v16342_v37, %v10322_v39  ;;  %v10347_v34 = vsel %vm587_vm0, %v10337_v42, 0.0 }
0x183d   : > { %v10307_v60 = vpop.xlane.xlu0 %10306  ;;  %10348 = vadd.xlane.f32.xlu0 %v10347_v34 }
0x183e   : > { %v10323_v63 = vmul.f32 0.0625, %v10307_v60  ;;  %v10338_v43 = vmul.f32 %v16395_v20, %v16395_v20 }
0x1840   : > { %v16401_v13 = vsub.f32 %v16355_v61, %v10323_v63  ;;  %v10350_v27 = vsel %vm587_vm0, %v10338_v43, 0.0 }
0x1841   : > { %v10310_v3 = vpop.xlane.xlu1 %10309  ;;  %10351 = vadd.xlane.f32.xlu1 %v10350_v27 }
0x1842   : > { %v10324_v7 = vmul.f32 0.0625, %v10310_v3  ;;  %v10339_v37 = vmul.f32 %v16401_v13, %v16401_v13 }
0x1844   : > { %v16406_v14 = vsub.f32 %v10288_v24, %v10324_v7  ;;  %v10353_v4 = vsel %vm587_vm0, %v10339_v37, 0.0 }
0x1845   : > { %v10313_v5 = vpop.xlane.xlu0 %10312  ;;  %10354 = vadd.xlane.f32.xlu0 %v10353_v4 }
0x1846   : > { %v10325_v57 = vmul.f32 0.0625, %v10313_v5  ;;  %v10340_v53 = vmul.f32 %v16406_v14, %v16406_v14 }
0x1848   : > { %v16411_v61 = vsub.f32 %v10289_v10, %v10325_v57  ;;  %v10356_v8 = vsel %vm587_vm0, %v10340_v53, 0.0 }
0x1849   : > { %10357 = vadd.xlane.f32.xlu1 %v10356_v8  ;;  %v10316_v59 = vpop.xlane.xlu1 %10315 }
0x184a   : > { %v10326_v31 = vmul.f32 0.0625, %v10316_v59  ;;  %v10341_v6 = vmul.f32 %v16411_v61, %v16411_v61 }
0x184c   : > { %v16416_v55 = vsub.f32 %v10290_v54, %v10326_v31  ;;  %v10359_v28 = vsel %vm587_vm0, %v10341_v6, 0.0 }
0x184d   : > { %10360 = vadd.xlane.f32.xlu0 %v10359_v28  ;;  %v10319_v22 = vpop.xlane.xlu0 %10318  ;;  %v10439_v26 = vpop.permute.xlu1 %10438 }
0x184e   : > { %v10327_v21 = vmul.f32 0.0625, %v10319_v22  ;;  %v10342_v24 = vmul.f32 %v16416_v55, %v16416_v55 }
0x1850   : > { %v16421_v17 = vsub.f32 %v10291_v9, %v10327_v21  ;;  %v10362_v56 = vsel %vm587_vm0, %v10342_v24, 0.0 }
0x1851   : > { %10363 = vadd.xlane.f32.xlu1 %v10362_v56 }
0x1852   : > { %v10343_v0 = vmul.f32 %v16421_v17, %v16421_v17 }
0x1854   : > { %v10365_v46 = vsel %vm587_vm0, %v10343_v0, 0.0 }
0x1855   : > { %10366 = vadd.xlane.f32.xlu0 %v10365_v46 }
0x1862   : > { %10448 = vperm.xlu1 %12675, %v10430_v11  }
0x1866   : > { %10453 = vperm.xlu1 %12675, %v10431_v30  }
0x186a   : > { %10458 = vperm.xlu1 %12675, %v10432_v16  }
0x186b   : > { %10443 = vperm.xlu0 %12676, %v10429_v36  }
0x186e   : > { %10463 = vperm.xlu1 %12675, %v10433_v18  }
0x1872   : > { %10468 = vperm.xlu1 %12675, %v10434_v25  }
0x1876   : > { %10473 = vperm.xlu1 %12675, %v10435_v2  }
0x18c2   : > { %v10346_v58 = vpop.xlane.xlu1 %10345 }
0x18c3   : > { %v10368_v33 = vmul.f32 0.0625, %v10346_v58 }
0x18c5   : > { %v10376_v10 = vadd.f32 1e-05, %v10368_v33 }
0x18c6   : > { %v10349_v19 = vpop.xlane.xlu0 %10348 }
0x18c7   : > { %13111 = vrsqrt.f32 %v10376_v10  ;;  %v10369_v44 = vmul.f32 0.0625, %v10349_v19 }
0x18c9   : > { %v10377_v50 = vadd.f32 1e-05, %v10369_v44 }
0x18ca   : > { %v10352_v15 = vpop.xlane.xlu1 %10351 }
0x18cb   : > { %v10370_v51 = vmul.f32 0.0625, %v10352_v15  ;;  %13113 = vrsqrt.f32 %v10377_v50 }
0x18cd   : > { %v10378_v12 = vadd.f32 1e-05, %v10370_v51 }
0x18ce   : > { %v10355_v54 = vpop.xlane.xlu0 %10354 }
0x18cf   : > { %13115 = vrsqrt.f32 %v10378_v12  ;;  %v10371_v29 = vmul.f32 0.0625, %v10355_v54 }
0x18d1   : > { %v10379_v52 = vadd.f32 1e-05, %v10371_v29 }
0x18d2   : > { %v10358_v32 = vpop.xlane.xlu1 %10357 }
0x18d3   : > { %13117 = vrsqrt.f32 %v10379_v52  ;;  %v10372_v9 = vmul.f32 0.0625, %v10358_v32 }
0x18d4   : > { %v13112_v40 = vpop.eup %13111 }
0x18d5   : > { %v10392_v38 = vmul.f32 %v13112_v40, %v16384_v23  ;;  %v10380_v45 = vadd.f32 1e-05, %v10372_v9 }
0x18d6   : > { %v10361_v1 = vpop.xlane.xlu0 %10360 }
0x18d7   : > { %v10406_v49 = vmul.f32 %v16437_v47, %v10392_v38  ;;  %13119 = vrsqrt.f32 %v10380_v45  ;;  %v10373_v35 = vmul.f32 0.0625, %v10361_v1 }
0x18d8   : > { %v13114_v62 = vpop.eup %13113 }
0x18d9   : > { %v10381_v39 = vadd.f32 1e-05, %v10373_v35  ;;  %v10420_v42 = vadd.f32 %v16443_v41, %v10406_v49  ;;  %v10393_v23 = vmul.f32 %v13114_v62, %v16389_v48 }
0x18da   : > { %v10364_v34 = vpop.xlane.xlu1 %10363 }
0x18db   : > { %13121 = vrsqrt.f32 %v10381_v39  ;;  %v10374_v60 = vmul.f32 0.0625, %v10364_v34  ;;  %v10476_v3 = vmul.f32 %v10439_v26, %v10420_v42  ;;  %v10407_v53 = vmul.f32 %v16437_v47, %v10393_v23 }
0x18dc   : > { %v13116_v63 = vpop.eup %13115 }
0x18dd   : > { %v10382_v43 = vadd.f32 1e-05, %v10374_v60  ;;  %v10394_v27 = vmul.f32 %v13116_v63, %v16395_v20  ;;  %v10484_v48 = vsel %vm587_vm0, %v10476_v3, 0.0  ;;  %v10421_v0 = vadd.f32 %v16443_v41, %v10407_v53 }
0x18de   : > { %v10367_v7 = vpop.xlane.xlu0 %10366  ;;  %v10449_v37 = vpop.permute.xlu1 %10448  ;;  %v10485_v21 = vrot.slane %v10484_v48, 4 }
0x18df   : > { %13123 = vrsqrt.f32 %v10382_v43  ;;  %v10375_v4 = vmul.f32 0.0625, %v10367_v7  ;;  %v10408_v5 = vmul.f32 %v16437_v47, %v10394_v27 }
0x18e0   : > { %v13118_v57 = vpop.eup %13117  ;;  %v10486_v2 = vadd.f32 %v10485_v21, %v10484_v48 }
0x18e1   : > { %v10383_v8 = vadd.f32 1e-05, %v10375_v4  ;;  %v10422_v59 = vadd.f32 %v16443_v41, %v10408_v5  ;;  %v10395_v31 = vmul.f32 %v13118_v57, %v16401_v13 }
0x18e2   : > { %v10454_v6 = vpop.permute.xlu1 %10453  ;;  %v10487_v54 = vrot.slane %v10486_v2, 2 }
0x18e3   : > { %13125 = vrsqrt.f32 %v10383_v8  ;;  %v10478_v20 = vmul.f32 %v10449_v37, %v10422_v59  ;;  %v10409_v28 = vmul.f32 %v16437_v47, %v10395_v31 }
0x18e4   : > { %v13120_v22 = vpop.eup %13119  ;;  %v10488_v62 = vadd.f32 %v10487_v54, %v10486_v2 }
0x18e5   : > { %v10498_v24 = vsel %vm587_vm0, %v10478_v20, 0.0  ;;  %v10423_v56 = vadd.f32 %v16443_v41, %v10409_v28  ;;  %v10396_v46 = vmul.f32 %v13120_v22, %v16406_v14 }
0x18e6   : > { %v10444_v11 = vpop.permute.xlu0 %10443  ;;  %v10459_v30 = vpop.permute.xlu1 %10458  ;;  %v10499_v13 = vrot.slane %v10498_v24, 4  ;;  %v10489_v5 = vrot.slane %v10488_v62, 1 }
0x18e7   : > { %v10479_v16 = vmul.f32 %v10454_v6, %v10423_v56  ;;  %v10477_v36 = vmul.f32 %v10444_v11, %v10421_v0  ;;  %v10410_v18 = vmul.f32 %v16437_v47, %v10396_v46 }
0x18e8   : > { %v13122_v25 = vpop.eup %13121  ;;  %v10500_v50 = vadd.f32 %v10499_v13, %v10498_v24  ;;  %v10490_v21 = vadd.f32 %v10489_v5, %v10488_v62 }
0x18e9   : > { %v10505_v26 = vsel %vm587_vm0, %v10479_v16, 0.0  ;;  %v10491_v58 = vsel %vm587_vm0, %v10477_v36, 0.0  ;;  %v10424_v33 = vadd.f32 %v16443_v41, %v10410_v18  ;;  %v10397_v10 = vmul.f32 %v13122_v25, %v16411_v61 }
0x18ea   : > { %v10506_v19 = vrot.slane %v10505_v26, 4  ;;  %v10492_v44 = vrot.slane %v10491_v58, 4  ;;  %v10464_v14 = vpop.permute.xlu1 %10463  ;;  %v10501_v61 = vrot.slane %v10500_v50, 2 }
0x18eb   : > { %v10480_v15 = vmul.f32 %v10459_v30, %v10424_v33  ;;  %v10411_v51 = vmul.f32 %v16437_v47, %v10397_v10 }
0x18ec   : > { %v13124_v12 = vpop.eup %13123  ;;  %v10493_v29 = vadd.f32 %v10492_v44, %v10491_v58  ;;  %v10507_v40 = vadd.f32 %v10506_v19, %v10505_v26  ;;  %v10502_v3 = vadd.f32 %v10501_v61, %v10500_v50 }
0x18ed   : > { %v10512_v52 = vsel %vm587_vm0, %v10480_v15, 0.0  ;;  %v10425_v32 = vadd.f32 %v16443_v41, %v10411_v51  ;;  %v10398_v9 = vmul.f32 %v13124_v12, %v16416_v55 }
0x18ee   : > { %v10494_v38 = vrot.slane %v10493_v29, 2  ;;  %v10513_v45 = vrot.slane %v10512_v52, 4  ;;  %v10469_v34 = vpop.permute.xlu1 %10468  ;;  %v10508_v43 = vrot.slane %v10507_v40, 2  ;;  %v10503_v20 = vrot.slane %v10502_v3, 1 }
0x18ef   : > { %v10481_v1 = vmul.f32 %v10464_v14, %v10425_v32  ;;  %v10412_v49 = vmul.f32 %v16437_v47, %v10398_v9 }
0x18f0   : > { %v13126_v35 = vpop.eup %13125  ;;  %v10495_v39 = vadd.f32 %v10494_v38, %v10493_v29  ;;  %v10514_v42 = vadd.f32 %v10513_v45, %v10512_v52  ;;  %v10509_v59 = vadd.f32 %v10508_v43, %v10507_v40  ;;  %v10504_v30 = vadd.f32 %v10503_v20, %v10502_v3 }
0x18f1   : > { %v10519_v60 = vsel %vm587_vm0, %v10481_v1, 0.0  ;;  %v10426_v63 = vadd.f32 %v16443_v41, %v10412_v49  ;;  %v10399_v23 = vmul.f32 %v13126_v35, %v16421_v17 }
0x18f2   : > { %v10496_v55 = vrot.slane %v10495_v39, 1  ;;  %v10520_v27 = vrot.slane %v10519_v60, 4  ;;  %v10515_v7 = vrot.slane %v10514_v42, 2  ;;  %v10474_v17 = vpop.permute.xlu1 %10473  ;;  %v10510_v0 = vrot.slane %v10509_v59, 1 }
0x18f3   : > { %v10482_v37 = vmul.f32 %v10469_v34, %v10426_v63  ;;  %v10413_v4 = vmul.f32 %v16437_v47, %v10399_v23 }
0x18f4   : > { %v10521_v57 = vadd.f32 %v10520_v27, %v10519_v60  ;;  %v10497_v31 = vadd.f32 %v10496_v55, %v10495_v39  ;;  %v10516_v28 = vadd.f32 %v10515_v7, %v10514_v42  ;;  %v10511_v2 = vadd.f32 %v10510_v0, %v10509_v59 }
0x18f5   : > { %v10526_v53 = vsel %vm587_vm0, %v10482_v37, 0.0  ;;  %v10427_v8 = vadd.f32 %v16443_v41, %v10413_v4 }
0x18f6   : > { %v10522_v48 = vrot.slane %v10521_v57, 2  ;;  %v10527_v6 = vrot.slane %v10526_v53, 4  ;;  %v10549_v46 = vsel %vm10548_vm4, %v10497_v31, %v10490_v21  ;;  %v10517_v13 = vrot.slane %v10516_v28, 1 }
0x18f7   : > { %v10483_v22 = vmul.f32 %v10474_v17, %v10427_v8  ;;  %v10551_v25 = vsel %vm10550_vm5, %v10504_v30, %v10549_v46 }
0x18f8   : > { %v10523_v24 = vadd.f32 %v10522_v48, %v10521_v57  ;;  %v10528_v47 = vadd.f32 %v10527_v6, %v10526_v53  ;;  %v10518_v33 = vadd.f32 %v10517_v13, %v10516_v28  ;;  %v10553_v10 = vsel %vm10552_vm6, %v10511_v2, %v10551_v25 }
0x18f9   : > { %v10533_v56 = vsel %vm587_vm0, %v10483_v22, 0.0 }
0x18fa   : > { %v10529_v41 = vrot.slane %v10528_v47, 2  ;;  %v10534_v11 = vrot.slane %v10533_v56, 4  ;;  %v10524_v16 = vrot.slane %v10523_v24, 1  ;;  %v10555_v15 = vsel %vm10554_vm7, %v10518_v33, %v10553_v10 }
0x18fc   : > { %v10530_v36 = vadd.f32 %v10529_v41, %v10528_v47  ;;  %v10535_v18 = vadd.f32 %v10534_v11, %v10533_v56  ;;  %v10525_v19 = vadd.f32 %v10524_v16, %v10523_v24 }
0x18fe   : > { %v10531_v26 = vrot.slane %v10530_v36, 1  ;;  %v10536_v58 = vrot.slane %v10535_v18, 2  ;;  %v10557_v51 = vsel %vm10556_vm8, %v10525_v19, %v10555_v15 }
0x1900   : > { %v10537_v44 = vadd.f32 %v10536_v58, %v10535_v18  ;;  %v10532_v14 = vadd.f32 %v10531_v26, %v10530_v36 }
0x1902   : > { %v10538_v50 = vrot.slane %v10537_v44, 1  ;;  %v10559_v54 = vsel %vm10558_vm9, %v10532_v14, %v10557_v51 }
0x1904   : > { %v10539_v12 = vadd.f32 %v10538_v50, %v10537_v44 }
0x1906   : > { %v10561_v29 = vsel %vm10560_vm10, %v10539_v12, %v10559_v54 }
0x1907   : > { %10563 = vst.msk [vmem:[%s550_s30] sm:$0xff] %vm587_vm0, %v10561_v29 }
0x1908 PF: > { %s26_s18 = sadd.s32 1, %s13179_s18  }
0x1909   : > { %p23_p2 = scmp.ge.s32.totalorder %s26_s18, 4  }
0x190b   :  { %25 = sbr.rel (!%p23_p2) target bundleno = 1 (0x1), region = 133 }
0x1910   :  { %10583 = vsyncpa [#allocation3], 1 }
0x1911   :  { %10585 = vsyncpa [#allocation3 + $0x1], 1 }

</bundles_post_ra>
